<compile_context>
chip_gen: v6e
topology: v6e:2x2x1
jax: 0.10.0
libtpu: 0.0.40
codegen_flags: <defaults>
</compile_context>

<pallas_src>
import functools
import numpy as np
import jax
import jax.numpy as jnp
from jax.experimental import pallas as pl
from jax.experimental.pallas import tpu as pltpu

Memory_size = 4
state_size = 9
action_size = 1


# ----------------------------- Pallas kernels -----------------------------

def _conv_gemm_t_kernel(w_ref, p_ref, b_ref, o_ref, *, relu):
    """out(co, M_blk) = relu?(W(co,K) @ P(K, M_blk) + b(co,1)) — f32 accumulate."""
    y = jnp.dot(w_ref[...], p_ref[...], preferred_element_type=jnp.float32)
    y = y + b_ref[...]
    if relu:
        y = jnp.maximum(y, 0.0)
    o_ref[...] = y.astype(o_ref.dtype)


def conv_gemm_t(w2d, patches_t, bias_col, *, relu, tm=8192,
                out_dtype=jnp.bfloat16):
    """Transposed conv-as-GEMM.  w2d:(co,K) bf16, patches_t:(K,M) bf16,
    bias_col:(co,1) f32.  Output (co,M) is lane-dense.  Tiles over M only;
    the ragged last block is masked by Pallas (no explicit pad)."""
    co, K = w2d.shape
    _, M = patches_t.shape
    kern = functools.partial(_conv_gemm_t_kernel, relu=relu)

    if M <= tm:  # small layers: single VMEM-resident block
        return pl.pallas_call(
            kern, out_shape=jax.ShapeDtypeStruct((co, M), out_dtype),
        )(w2d, patches_t, bias_col)

    return pl.pallas_call(
        kern,
        out_shape=jax.ShapeDtypeStruct((co, M), out_dtype),
        grid=(pl.cdiv(M, tm),),
        in_specs=[pl.BlockSpec((co, K), lambda i: (0, 0)),
                  pl.BlockSpec((K, tm), lambda i: (0, i)),
                  pl.BlockSpec((co, 1), lambda i: (0, 0))],
        out_specs=pl.BlockSpec((co, tm), lambda i: (0, i)),
        compiler_params=pltpu.CompilerParams(
            dimension_semantics=("parallel",)),
    )(w2d, patches_t, bias_col)


def _max9_kernel(*refs):
    """Elementwise max over 9 input tiles (the 3x3 pooling taps)."""
    o_ref = refs[-1]
    acc = refs[0][...]
    for r in refs[1:-1]:
        acc = jnp.maximum(acc, r[...])
    o_ref[...] = acc


def maxpool3s2(x_cnhw, tm=2048):
    """MaxPool2d(kernel=3, stride=2, pad=0) on a CNHW tensor.  The 9 taps are
    strided views built in XLA; the reduce runs in a gridded Pallas kernel."""
    c, n, h, w = x_cnhw.shape
    oh = (h - 3) // 2 + 1
    ow = (w - 3) // 2 + 1
    taps = [
        jax.lax.slice(x_cnhw, (0, 0, di, dj),
                      (c, n, di + 2 * (oh - 1) + 1, dj + 2 * (ow - 1) + 1),
                      (1, 1, 2, 2)).reshape(c, n * oh * ow)
        for di in range(3) for dj in range(3)
    ]
    M = n * oh * ow
    out = pl.pallas_call(
        _max9_kernel,
        out_shape=jax.ShapeDtypeStruct((c, M), x_cnhw.dtype),
        grid=(pl.cdiv(M, tm),),
        in_specs=[pl.BlockSpec((c, tm), lambda i: (0, i))] * 9,
        out_specs=pl.BlockSpec((c, tm), lambda i: (0, i)),
        compiler_params=pltpu.CompilerParams(
            dimension_semantics=("parallel",)),
    )(*taps)
    return out.reshape(c, n, oh, ow)


def _lstm_step(x, h, c, wih_t, whh_t, b):
    """Single-step LSTM, PyTorch gate order (i, f, g, o).  f32 math."""
    gates = (jnp.dot(x, wih_t, preferred_element_type=jnp.float32)
             + jnp.dot(h, whh_t, preferred_element_type=jnp.float32) + b)
    H = h.shape[1]
    i = jax.nn.sigmoid(gates[:, 0 * H:1 * H])
    f = jax.nn.sigmoid(gates[:, 1 * H:2 * H])
    g = jnp.tanh(gates[:, 2 * H:3 * H])
    o = jax.nn.sigmoid(gates[:, 3 * H:4 * H])
    c_new = f * c + i * g
    h_new = o * jnp.tanh(c_new)
    return h_new, c_new


def _tail_a_kernel(x_ref, s_ref, hcv_ref, ccv_ref, hn_ref, cn_ref,
                   wcnn_ref, bcnn_ref, wihcv_ref, whhcv_ref, bcv_ref,
                   w0_ref, b0_ref, w1_ref, b1_ref, w2_ref, b2_ref,
                   wihn_ref, whhn_ref, bn_ref,
                   hcv_out, ccv_out, hn_out, cn_out):
    # --- CNN branch: linear_CNN (bf16 x bf16 -> f32) + relu + lstm_CNN ---
    x = jnp.dot(x_ref[...], wcnn_ref[...], preferred_element_type=jnp.float32)
    x = jnp.maximum(x + bcnn_ref[...], 0.0)                      # (4, 256)
    h_cv, c_cv = _lstm_step(x, hcv_ref[...], ccv_ref[...],
                            wihcv_ref[...], whhcv_ref[...], bcv_ref[...])
    hcv_out[...] = h_cv
    ccv_out[...] = c_cv

    # --- state branch: linear0/1/2 (+relu) + lstm3 ---
    s = s_ref[...]
    o0 = jnp.maximum(jnp.dot(s, w0_ref[...],
                             preferred_element_type=jnp.float32) + b0_ref[...], 0.0)
    o1 = jnp.maximum(jnp.dot(o0, w1_ref[...],
                             preferred_element_type=jnp.float32) + b1_ref[...], 0.0)
    o2 = jnp.maximum(jnp.dot(o1, w2_ref[...],
                             preferred_element_type=jnp.float32) + b2_ref[...], 0.0)
    h_n, c_n = _lstm_step(o2, hn_ref[...], cn_ref[...],
                          wihn_ref[...], whhn_ref[...], bn_ref[...])
    hn_out[...] = h_n
    cn_out[...] = c_n


def tail_a(params, x_flat, s, h_cv, c_cv, h_n, c_n):
    B = Memory_size
    outs = (jax.ShapeDtypeStruct((B, 16), jnp.float32),) * 4
    return pl.pallas_call(
        _tail_a_kernel, out_shape=outs,
    )(x_flat, s, h_cv, c_cv, h_n, c_n,
      params["w_linCNN"], params["b_linCNN"],
      params["wih_cv"], params["whh_cv"], params["b_cv"],
      params["w_lin0"], params["b_lin0"],
      params["w_lin1"], params["b_lin1"],
      params["w_lin2"], params["b_lin2"],
      params["wih_n"], params["whh_n"], params["b_n"])


def _tail_b_kernel(cat_ref, h3_ref, c3_ref, wih3_ref, whh3_ref, b3_ref,
                   w4_ref, b4_ref, w5_ref, b5_ref,
                   val_out, h3_out, c3_out):
    h3, c3 = _lstm_step(cat_ref[...], h3_ref[...], c3_ref[...],
                        wih3_ref[...], whh3_ref[...], b3_ref[...])
    h3_out[...] = h3
    c3_out[...] = c3
    o4 = jnp.maximum(jnp.dot(h3, w4_ref[...],
                             preferred_element_type=jnp.float32) + b4_ref[...], 0.0)
    val_out[...] = jnp.tanh(
        jnp.dot(o4, w5_ref[...], preferred_element_type=jnp.float32)
        + b5_ref[...])


def tail_b(params, cat, h_3, c_3):
    outs = (jax.ShapeDtypeStruct((1, action_size), jnp.float32),
            jax.ShapeDtypeStruct((1, 16), jnp.float32),
            jax.ShapeDtypeStruct((1, 16), jnp.float32))
    return pl.pallas_call(
        _tail_b_kernel, out_shape=outs,
    )(cat, h_3, c_3,
      params["wih_3"], params["whh_3"], params["b_3"],
      params["w_lin4"], params["b_lin4"],
      params["w_lin5"], params["b_lin5"])


# ----------------------------- JAX glue -------------------------------------

def im2col_t(x_cnhw, kh, kw, stride):
    """CNHW -> transposed patch matrix (C*kh*kw, N*OH*OW).
    Row index k = c*(kh*kw) + di*kw + dj  (matches OIHW weight flatten)."""
    c, n, h, w = x_cnhw.shape
    oh = (h - kh) // stride + 1
    ow = (w - kw) // stride + 1
    taps = [
        jax.lax.slice(x_cnhw, (0, 0, di, dj),
                      (c, n, di + stride * (oh - 1) + 1,
                       dj + stride * (ow - 1) + 1),
                      (1, 1, stride, stride))
        for di in range(kh) for dj in range(kw)
    ]
    p = jnp.stack(taps, axis=1)                     # (C, kh*kw, N, OH, OW)
    return p.reshape(c * kh * kw, n * oh * ow), (n, oh, ow)


# ----------------------------- parameters -----------------------------------

def init_params(key):
    ks = iter(jax.random.split(key, 40))

    def uni(shape, fan_in, dtype=jnp.float32):
        bound = 1.0 / np.sqrt(fan_in)
        return jax.random.uniform(next(ks), shape, jnp.float32,
                                  -bound, bound).astype(dtype)

    p = {}
    # conv weights pre-flattened (co, ci*kh*kw) in bf16; biases (co,1) f32
    p["w_conv1"] = uni((16, 27), 27, jnp.bfloat16);   p["b_conv1"] = uni((16, 1), 27)
    p["w_conv2"] = uni((32, 144), 144, jnp.bfloat16); p["b_conv2"] = uni((32, 1), 144)
    p["w_conv3"] = uni((64, 288), 288, jnp.bfloat16); p["b_conv3"] = uni((64, 1), 288)
    # linears stored (in, out); linear_CNN weight in bf16 (memory-bound layer)
    p["w_linCNN"] = uni((5184, 256), 5184, jnp.bfloat16)
    p["b_linCNN"] = uni((1, 256), 5184)
    p["w_lin0"] = uni((9, 64), 9);      p["b_lin0"] = uni((1, 64), 9)
    p["w_lin1"] = uni((64, 128), 64);   p["b_lin1"] = uni((1, 128), 64)
    p["w_lin2"] = uni((128, 128), 128); p["b_lin2"] = uni((1, 128), 128)
    p["w_lin4"] = uni((16, 4), 16);     p["b_lin4"] = uni((1, 4), 16)
    p["w_lin5"] = uni((4, 1), 4);       p["b_lin5"] = uni((1, 1), 4)
    # LSTMs: W_ih^T (in, 4H), W_hh^T (H, 4H), combined bias b_ih + b_hh (1, 4H)
    p["wih_cv"] = uni((256, 64), 16); p["whh_cv"] = uni((16, 64), 16)
    p["b_cv"] = uni((1, 64), 16) + uni((1, 64), 16)
    p["wih_n"] = uni((128, 64), 16);  p["whh_n"] = uni((16, 64), 16)
    p["b_n"] = uni((1, 64), 16) + uni((1, 64), 16)
    p["wih_3"] = uni((128, 64), 16);  p["whh_3"] = uni((16, 64), 16)
    p["b_3"] = uni((1, 64), 16) + uni((1, 64), 16)
    return p


# ----------------------------- forward --------------------------------------

def critic_forward(params, state, tensor_cv, h_cv, c_cv, h_n, c_n, h_3, c_3):
    # --- CNN branch (CNHW layout, channels on sublanes, spatial on lanes) ---
    x = jnp.transpose(tensor_cv.astype(jnp.bfloat16), (1, 0, 2, 3))  # (3,4,160,160)

    # conv1 (+ relu folded here: relu∘maxpool == maxpool∘relu)
    p1, (n, oh, ow) = im2col_t(x, 3, 3, 2)                           # (27, 24964)
    y1 = conv_gemm_t(params["w_conv1"], p1, params["b_conv1"], relu=True)
    y1 = y1.reshape(16, n, oh, ow)                                   # (16,4,79,79)

    y1 = maxpool3s2(y1)                                              # (16,4,39,39)

    p2, (n, oh, ow) = im2col_t(y1, 3, 3, 2)                          # (144, 1444)
    y2 = conv_gemm_t(params["w_conv2"], p2, params["b_conv2"], relu=True)
    y2 = y2.reshape(32, n, oh, ow)                                   # (32,4,19,19)

    p3, (n, oh, ow) = im2col_t(y2, 3, 3, 2)                          # (288, 324)
    y3 = conv_gemm_t(params["w_conv3"], p3, params["b_conv3"], relu=True)
    y3 = y3.reshape(64, n, oh, ow)                                   # (64,4,9,9)

    # CNHW -> NCHW flatten (matches torch reshape(Memory_size, 1, 5184))
    x_flat = jnp.transpose(y3, (1, 0, 2, 3)).reshape(Memory_size, 64 * 9 * 9)

    s = state.reshape(Memory_size, state_size).astype(jnp.float32)   # (4,9)

    # Fused tail kernel A: linear_CNN + lstm_CNN, linear0/1/2 + lstm3
    h_cv_new, c_cv_new, h_n_new, c_n_new = tail_a(
        params, x_flat, s, h_cv[0], c_cv[0], h_n[0], c_n[0])

    # tiny glue: relu + flatten + concat (XLA)
    xcat = jnp.maximum(h_cv_new, 0.0).reshape(1, 16 * Memory_size)   # (1,64)
    ocat = jnp.maximum(h_n_new, 0.0).reshape(1, 16 * Memory_size)    # (1,64)
    cat = jnp.concatenate([xcat, ocat], axis=1)                      # (1,128)

    # Fused tail kernel B: LSTM_layer_3 + linear4 + linear5 + tanh
    value, h_3_new, c_3_new = tail_b(params, cat, h_3[0], c_3[0])

    return (value,
            (h_cv_new[None], c_cv_new[None]),
            (h_n_new[None], c_n_new[None]),
            (h_3_new[None], c_3_new[None]))


# ----------------------------- main -----------------------------------------

if __name__ == "__main__":
    key = jax.random.PRNGKey(0)
    kp, ks, kcv = jax.random.split(key, 3)
    params = init_params(kp)

    # 160x160 -> conv1 79 -> maxpool 39 -> conv2 19 -> conv3 9 => 64*9*9 = 5184
    state = jax.random.normal(ks, (Memory_size, 1, state_size), jnp.float32)
    tensor_cv = jax.random.normal(kcv, (Memory_size, 3, 160, 160), jnp.float32)
    h_cv = jnp.zeros((1, Memory_size, 16), jnp.float32)
    c_cv = jnp.zeros((1, Memory_size, 16), jnp.float32)
    h_n = jnp.zeros((1, Memory_size, 16), jnp.float32)
    c_n = jnp.zeros((1, Memory_size, 16), jnp.float32)
    h_3 = jnp.zeros((1, 1, 16), jnp.float32)
    c_3 = jnp.zeros((1, 1, 16), jnp.float32)

    fwd = jax.jit(critic_forward)
    out = fwd(params, state, tensor_cv, h_cv, c_cv, h_n, c_n, h_3, c_3)
    jax.block_until_ready(out)

    value = out[0]
    assert value.shape == (1, action_size) and value.dtype == jnp.float32
    assert out[1][0].shape == (1, Memory_size, 16)
    assert out[2][0].shape == (1, Memory_size, 16)
    assert out[3][0].shape == (1, 1, 16)
    print("KERNEL_OK")
</pallas_src>

<mosaic_0001>
module attributes {stable_mosaic.version = 11 : i64} {
  func.func @_conv_gemm_t_kernel(%arg0: i32, %arg1: memref<16x27xbf16, #tpu.memory_space<vmem>>, %arg2: memref<27x8192xbf16, #tpu.memory_space<vmem>>, %arg3: memref<16x1xf32, #tpu.memory_space<vmem>>, %arg4: memref<16x8192xbf16, #tpu.memory_space<vmem>>) attributes {dimension_semantics = [#tpu.dimension_semantics<parallel>], iteration_bounds = array<i64: 4>, scalar_prefetch = 0 : i64, scratch_operands = 0 : i64, tpu.core_type = #tpu.core_type<tc>, window_params = [{pipeline_mode = #tpu.pipeline_mode<synchronous>, transform_indices = @transform_0, window_bounds = array<i64: 16, 27>}, {transform_indices = @transform_1, window_bounds = array<i64: 27, 8192>}, {pipeline_mode = #tpu.pipeline_mode<synchronous>, transform_indices = @transform_2, window_bounds = array<i64: 16, 1>}, {transform_indices = @transform_3, window_bounds = array<i64: 16, 8192>}]} {
    %c0 = arith.constant 0 : index
    %c0_0 = arith.constant 0 : index
    %0 = vector.load %arg1[%c0, %c0_0] : memref<16x27xbf16, #tpu.memory_space<vmem>>, vector<16x27xbf16>
    %c0_1 = arith.constant 0 : index
    %c0_2 = arith.constant 0 : index
    %1 = vector.load %arg2[%c0_1, %c0_2] : memref<27x8192xbf16, #tpu.memory_space<vmem>>, vector<27x8192xbf16>
    %cst = arith.constant dense<0.000000e+00> : vector<16x8192xf32>
    %2 = tpu.matmul %0, %1, %cst {dimension_numbers = #tpu.dot_dimension_numbers<[1], [0], [0], [1], [0, 0, 1, 1], [], []>} : vector<16x27xbf16>, vector<27x8192xbf16>, vector<16x8192xf32> -> vector<16x8192xf32>
    %c0_3 = arith.constant 0 : index
    %c0_4 = arith.constant 0 : index
    %3 = vector.load %arg3[%c0_3, %c0_4] : memref<16x1xf32, #tpu.memory_space<vmem>>, vector<16x1xf32>
    %4 = vector.broadcast %3 : vector<16x1xf32> to vector<16x8192xf32>
    %5 = arith.addf %2, %4 : vector<16x8192xf32>
    %cst_5 = arith.constant 0.000000e+00 : f32
    %6 = vector.broadcast %cst_5 : f32 to vector<16x8192xf32>
    %7 = arith.maximumf %5, %6 : vector<16x8192xf32>
    %8 = arith.truncf %7 : vector<16x8192xf32> to vector<16x8192xbf16>
    %c0_6 = arith.constant 0 : index
    %c0_7 = arith.constant 0 : index
    %9 = vector.load %arg4[%c0_6, %c0_7] : memref<16x8192xbf16, #tpu.memory_space<vmem>>, vector<16x8192xbf16>
    tpu.vector_store %arg4[%c0_6, %c0_7], %8 {strides = array<i32>} : memref<16x8192xbf16, #tpu.memory_space<vmem>>, vector<16x8192xbf16>,
    return
  }
  func.func @transform_0(%arg0: i32) -> (i32, i32) {
    %c0_i32 = arith.constant 0 : i32
    %c0_i32_0 = arith.constant 0 : i32
    %c0_i32_1 = arith.constant 0 : i32
    return %c0_i32, %c0_i32_0 : i32, i32
  }
  func.func @transform_1(%arg0: i32) -> (i32, i32) {
    %c0_i32 = arith.constant 0 : i32
    %c0_i32_0 = arith.constant 0 : i32
    return %c0_i32, %arg0 : i32, i32
  }
  func.func @transform_2(%arg0: i32) -> (i32, i32) {
    %c0_i32 = arith.constant 0 : i32
    %c0_i32_0 = arith.constant 0 : i32
    %c0_i32_1 = arith.constant 0 : i32
    return %c0_i32, %c0_i32_0 : i32, i32
  }
  func.func @transform_3(%arg0: i32) -> (i32, i32) {
    %c0_i32 = arith.constant 0 : i32
    %c0_i32_0 = arith.constant 0 : i32
    return %c0_i32, %arg0 : i32, i32
  }
}

module attributes {stable_mosaic.version = 11 : i64} {
  func.func @_max9_kernel(%arg0: i32, %arg1: memref<16x2048xbf16, #tpu.memory_space<vmem>>, %arg2: memref<16x2048xbf16, #tpu.memory_space<vmem>>, %arg3: memref<16x2048xbf16, #tpu.memory_space<vmem>>, %arg4: memref<16x2048xbf16, #tpu.memory_space<vmem>>, %arg5: memref<16x2048xbf16, #tpu.memory_space<vmem>>, %arg6: memref<16x2048xbf16, #tpu.memory_space<vmem>>, %arg7: memref<16x2048xbf16, #tpu.memory_space<vmem>>, %arg8: memref<16x2048xbf16, #tpu.memory_space<vmem>>, %arg9: memref<16x2048xbf16, #tpu.memory_space<vmem>>, %arg10: memref<16x2048xbf16, #tpu.memory_space<vmem>>) attributes {dimension_semantics = [#tpu.dimension_semantics<parallel>], iteration_bounds = array<i64: 3>, scalar_prefetch = 0 : i64, scratch_operands = 0 : i64, tpu.core_type = #tpu.core_type<tc>, window_params = [{transform_indices = @transform_0, window_bounds = array<i64: 16, 2048>}, {transform_indices = @transform_1, window_bounds = array<i64: 16, 2048>}, {transform_indices = @transform_2, window_bounds = array<i64: 16, 2048>}, {transform_indices = @transform_3, window_bounds = array<i64: 16, 2048>}, {transform_indices = @transform_4, window_bounds = array<i64: 16, 2048>}, {transform_indices = @transform_5, window_bounds = array<i64: 16, 2048>}, {transform_indices = @transform_6, window_bounds = array<i64: 16, 2048>}, {transform_indices = @transform_7, window_bounds = array<i64: 16, 2048>}, {transform_indices = @transform_8, window_bounds = array<i64: 16, 2048>}, {transform_indices = @transform_9, window_bounds = array<i64: 16, 2048>}]} {
    %c0 = arith.constant 0 : index
    %c0_0 = arith.constant 0 : index
    %0 = vector.load %arg1[%c0, %c0_0] : memref<16x2048xbf16, #tpu.memory_space<vmem>>, vector<16x2048xbf16>
    %c0_1 = arith.constant 0 : index
    %c0_2 = arith.constant 0 : index
    %1 = vector.load %arg2[%c0_1, %c0_2] : memref<16x2048xbf16, #tpu.memory_space<vmem>>, vector<16x2048xbf16>
    %2 = arith.maximumf %0, %1 : vector<16x2048xbf16>
    %c0_3 = arith.constant 0 : index
    %c0_4 = arith.constant 0 : index
    %3 = vector.load %arg3[%c0_3, %c0_4] : memref<16x2048xbf16, #tpu.memory_space<vmem>>, vector<16x2048xbf16>
    %4 = arith.maximumf %2, %3 : vector<16x2048xbf16>
    %c0_5 = arith.constant 0 : index
    %c0_6 = arith.constant 0 : index
    %5 = vector.load %arg4[%c0_5, %c0_6] : memref<16x2048xbf16, #tpu.memory_space<vmem>>, vector<16x2048xbf16>
    %6 = arith.maximumf %4, %5 : vector<16x2048xbf16>
    %c0_7 = arith.constant 0 : index
    %c0_8 = arith.constant 0 : index
    %7 = vector.load %arg5[%c0_7, %c0_8] : memref<16x2048xbf16, #tpu.memory_space<vmem>>, vector<16x2048xbf16>
    %8 = arith.maximumf %6, %7 : vector<16x2048xbf16>
    %c0_9 = arith.constant 0 : index
    %c0_10 = arith.constant 0 : index
    %9 = vector.load %arg6[%c0_9, %c0_10] : memref<16x2048xbf16, #tpu.memory_space<vmem>>, vector<16x2048xbf16>
    %10 = arith.maximumf %8, %9 : vector<16x2048xbf16>
    %c0_11 = arith.constant 0 : index
    %c0_12 = arith.constant 0 : index
    %11 = vector.load %arg7[%c0_11, %c0_12] : memref<16x2048xbf16, #tpu.memory_space<vmem>>, vector<16x2048xbf16>
    %12 = arith.maximumf %10, %11 : vector<16x2048xbf16>
    %c0_13 = arith.constant 0 : index
    %c0_14 = arith.constant 0 : index
    %13 = vector.load %arg8[%c0_13, %c0_14] : memref<16x2048xbf16, #tpu.memory_space<vmem>>, vector<16x2048xbf16>
    %14 = arith.maximumf %12, %13 : vector<16x2048xbf16>
    %c0_15 = arith.constant 0 : index
    %c0_16 = arith.constant 0 : index
    %15 = vector.load %arg9[%c0_15, %c0_16] : memref<16x2048xbf16, #tpu.memory_space<vmem>>, vector<16x2048xbf16>
    %16 = arith.maximumf %14, %15 : vector<16x2048xbf16>
    %c0_17 = arith.constant 0 : index
    %c0_18 = arith.constant 0 : index
    %17 = vector.load %arg10[%c0_17, %c0_18] : memref<16x2048xbf16, #tpu.memory_space<vmem>>, vector<16x2048xbf16>
    tpu.vector_store %arg10[%c0_17, %c0_18], %16 {strides = array<i32>} : memref<16x2048xbf16, #tpu.memory_space<vmem>>, vector<16x2048xbf16>,
    return
  }
  func.func @transform_0(%arg0: i32) -> (i32, i32) {
    %c0_i32 = arith.constant 0 : i32
    %c0_i32_0 = arith.constant 0 : i32
    return %c0_i32, %arg0 : i32, i32
  }
  func.func @transform_1(%arg0: i32) -> (i32, i32) {
    %c0_i32 = arith.constant 0 : i32
    %c0_i32_0 = arith.constant 0 : i32
    return %c0_i32, %arg0 : i32, i32
  }
  func.func @transform_2(%arg0: i32) -> (i32, i32) {
    %c0_i32 = arith.constant 0 : i32
    %c0_i32_0 = arith.constant 0 : i32
    return %c0_i32, %arg0 : i32, i32
  }
  func.func @transform_3(%arg0: i32) -> (i32, i32) {
    %c0_i32 = arith.constant 0 : i32
    %c0_i32_0 = arith.constant 0 : i32
    return %c0_i32, %arg0 : i32, i32
  }
  func.func @transform_4(%arg0: i32) -> (i32, i32) {
    %c0_i32 = arith.constant 0 : i32
    %c0_i32_0 = arith.constant 0 : i32
    return %c0_i32, %arg0 : i32, i32
  }
  func.func @transform_5(%arg0: i32) -> (i32, i32) {
    %c0_i32 = arith.constant 0 : i32
    %c0_i32_0 = arith.constant 0 : i32
    return %c0_i32, %arg0 : i32, i32
  }
  func.func @transform_6(%arg0: i32) -> (i32, i32) {
    %c0_i32 = arith.constant 0 : i32
    %c0_i32_0 = arith.constant 0 : i32
    return %c0_i32, %arg0 : i32, i32
  }
  func.func @transform_7(%arg0: i32) -> (i32, i32) {
    %c0_i32 = arith.constant 0 : i32
    %c0_i32_0 = arith.constant 0 : i32
    return %c0_i32, %arg0 : i32, i32
  }
  func.func @transform_8(%arg0: i32) -> (i32, i32) {
    %c0_i32 = arith.constant 0 : i32
    %c0_i32_0 = arith.constant 0 : i32
    return %c0_i32, %arg0 : i32, i32
  }
  func.func @transform_9(%arg0: i32) -> (i32, i32) {
    %c0_i32 = arith.constant 0 : i32
    %c0_i32_0 = arith.constant 0 : i32
    return %c0_i32, %arg0 : i32, i32
  }
}

module attributes {stable_mosaic.version = 11 : i64} {
  func.func @_conv_gemm_t_kernel(%arg0: memref<32x144xbf16, #tpu.memory_space<vmem>>, %arg1: memref<144x1444xbf16, #tpu.memory_space<vmem>>, %arg2: memref<32x1xf32, #tpu.memory_space<vmem>>, %arg3: memref<32x1444xbf16, #tpu.memory_space<vmem>>) attributes {dimension_semantics = [], scalar_prefetch = 0 : i64, scratch_operands = 0 : i64, tpu.core_type = #tpu.core_type<tc>} {
    %c0 = arith.constant 0 : index
    %c0_0 = arith.constant 0 : index
    %0 = vector.load %arg0[%c0, %c0_0] : memref<32x144xbf16, #tpu.memory_space<vmem>>, vector<32x144xbf16>
    %c0_1 = arith.constant 0 : index
    %c0_2 = arith.constant 0 : index
    %1 = vector.load %arg1[%c0_1, %c0_2] : memref<144x1444xbf16, #tpu.memory_space<vmem>>, vector<144x1444xbf16>
    %cst = arith.constant dense<0.000000e+00> : vector<32x1444xf32>
    %2 = tpu.matmul %0, %1, %cst {dimension_numbers = #tpu.dot_dimension_numbers<[1], [0], [0], [1], [0, 0, 1, 1], [], []>} : vector<32x144xbf16>, vector<144x1444xbf16>, vector<32x1444xf32> -> vector<32x1444xf32>
    %c0_3 = arith.constant 0 : index
    %c0_4 = arith.constant 0 : index
    %3 = vector.load %arg2[%c0_3, %c0_4] : memref<32x1xf32, #tpu.memory_space<vmem>>, vector<32x1xf32>
    %4 = vector.broadcast %3 : vector<32x1xf32> to vector<32x1444xf32>
    %5 = arith.addf %2, %4 : vector<32x1444xf32>
    %cst_5 = arith.constant 0.000000e+00 : f32
    %6 = vector.broadcast %cst_5 : f32 to vector<32x1444xf32>
    %7 = arith.maximumf %5, %6 : vector<32x1444xf32>
    %8 = arith.truncf %7 : vector<32x1444xf32> to vector<32x1444xbf16>
    %c0_6 = arith.constant 0 : index
    %c0_7 = arith.constant 0 : index
    %9 = vector.load %arg3[%c0_6, %c0_7] : memref<32x1444xbf16, #tpu.memory_space<vmem>>, vector<32x1444xbf16>
    tpu.vector_store %arg3[%c0_6, %c0_7], %8 {strides = array<i32>} : memref<32x1444xbf16, #tpu.memory_space<vmem>>, vector<32x1444xbf16>,
    return
  }
}

module attributes {stable_mosaic.version = 11 : i64} {
  func.func @_conv_gemm_t_kernel(%arg0: memref<64x288xbf16, #tpu.memory_space<vmem>>, %arg1: memref<288x324xbf16, #tpu.memory_space<vmem>>, %arg2: memref<64x1xf32, #tpu.memory_space<vmem>>, %arg3: memref<64x324xbf16, #tpu.memory_space<vmem>>) attributes {dimension_semantics = [], scalar_prefetch = 0 : i64, scratch_operands = 0 : i64, tpu.core_type = #tpu.core_type<tc>} {
    %c0 = arith.constant 0 : index
    %c0_0 = arith.constant 0 : index
    %0 = vector.load %arg0[%c0, %c0_0] : memref<64x288xbf16, #tpu.memory_space<vmem>>, vector<64x288xbf16>
    %c0_1 = arith.constant 0 : index
    %c0_2 = arith.constant 0 : index
    %1 = vector.load %arg1[%c0_1, %c0_2] : memref<288x324xbf16, #tpu.memory_space<vmem>>, vector<288x324xbf16>
    %cst = arith.constant dense<0.000000e+00> : vector<64x324xf32>
    %2 = tpu.matmul %0, %1, %cst {dimension_numbers = #tpu.dot_dimension_numbers<[1], [0], [0], [1], [0, 0, 1, 1], [], []>} : vector<64x288xbf16>, vector<288x324xbf16>, vector<64x324xf32> -> vector<64x324xf32>
    %c0_3 = arith.constant 0 : index
    %c0_4 = arith.constant 0 : index
    %3 = vector.load %arg2[%c0_3, %c0_4] : memref<64x1xf32, #tpu.memory_space<vmem>>, vector<64x1xf32>
    %4 = vector.broadcast %3 : vector<64x1xf32> to vector<64x324xf32>
    %5 = arith.addf %2, %4 : vector<64x324xf32>
    %cst_5 = arith.constant 0.000000e+00 : f32
    %6 = vector.broadcast %cst_5 : f32 to vector<64x324xf32>
    %7 = arith.maximumf %5, %6 : vector<64x324xf32>
    %8 = arith.truncf %7 : vector<64x324xf32> to vector<64x324xbf16>
    %c0_6 = arith.constant 0 : index
    %c0_7 = arith.constant 0 : index
    %9 = vector.load %arg3[%c0_6, %c0_7] : memref<64x324xbf16, #tpu.memory_space<vmem>>, vector<64x324xbf16>
    tpu.vector_store %arg3[%c0_6, %c0_7], %8 {strides = array<i32>} : memref<64x324xbf16, #tpu.memory_space<vmem>>, vector<64x324xbf16>,
    return
  }
}

module attributes {stable_mosaic.version = 11 : i64} {
  func.func @_tail_a_kernel(%arg0: memref<4x5184xbf16, #tpu.memory_space<vmem>>, %arg1: memref<4x9xf32, #tpu.memory_space<vmem>>, %arg2: memref<4x16xf32, #tpu.memory_space<vmem>>, %arg3: memref<4x16xf32, #tpu.memory_space<vmem>>, %arg4: memref<4x16xf32, #tpu.memory_space<vmem>>, %arg5: memref<4x16xf32, #tpu.memory_space<vmem>>, %arg6: memref<5184x256xbf16, #tpu.memory_space<vmem>>, %arg7: memref<1x256xf32, #tpu.memory_space<vmem>>, %arg8: memref<256x64xf32, #tpu.memory_space<vmem>>, %arg9: memref<16x64xf32, #tpu.memory_space<vmem>>, %arg10: memref<1x64xf32, #tpu.memory_space<vmem>>, %arg11: memref<9x64xf32, #tpu.memory_space<vmem>>, %arg12: memref<1x64xf32, #tpu.memory_space<vmem>>, %arg13: memref<64x128xf32, #tpu.memory_space<vmem>>, %arg14: memref<1x128xf32, #tpu.memory_space<vmem>>, %arg15: memref<128x128xf32, #tpu.memory_space<vmem>>, %arg16: memref<1x128xf32, #tpu.memory_space<vmem>>, %arg17: memref<128x64xf32, #tpu.memory_space<vmem>>, %arg18: memref<16x64xf32, #tpu.memory_space<vmem>>, %arg19: memref<1x64xf32, #tpu.memory_space<vmem>>, %arg20: memref<4x16xf32, #tpu.memory_space<vmem>>, %arg21: memref<4x16xf32, #tpu.memory_space<vmem>>, %arg22: memref<4x16xf32, #tpu.memory_space<vmem>>, %arg23: memref<4x16xf32, #tpu.memory_space<vmem>>) attributes {dimension_semantics = [], scalar_prefetch = 0 : i64, scratch_operands = 0 : i64, tpu.core_type = #tpu.core_type<tc>} {
    %c0 = arith.constant 0 : index
    %c0_0 = arith.constant 0 : index
    %0 = vector.load %arg0[%c0, %c0_0] : memref<4x5184xbf16, #tpu.memory_space<vmem>>, vector<4x5184xbf16>
    %c0_1 = arith.constant 0 : index
    %c0_2 = arith.constant 0 : index
    %1 = vector.load %arg6[%c0_1, %c0_2] : memref<5184x256xbf16, #tpu.memory_space<vmem>>, vector<5184x256xbf16>
    %cst = arith.constant dense<0.000000e+00> : vector<4x256xf32>
    %2 = tpu.matmul %0, %1, %cst {dimension_numbers = #tpu.dot_dimension_numbers<[1], [0], [0], [1], [0, 0, 1, 1], [], []>} : vector<4x5184xbf16>, vector<5184x256xbf16>, vector<4x256xf32> -> vector<4x256xf32>
    %c0_3 = arith.constant 0 : index
    %c0_4 = arith.constant 0 : index
    %3 = vector.load %arg7[%c0_3, %c0_4] : memref<1x256xf32, #tpu.memory_space<vmem>>, vector<1x256xf32>
    %4 = vector.broadcast %3 : vector<1x256xf32> to vector<4x256xf32>
    %5 = arith.addf %2, %4 : vector<4x256xf32>
    %cst_5 = arith.constant 0.000000e+00 : f32
    %6 = vector.broadcast %cst_5 : f32 to vector<4x256xf32>
    %7 = arith.maximumf %5, %6 : vector<4x256xf32>
    %c0_6 = arith.constant 0 : index
    %c0_7 = arith.constant 0 : index
    %8 = vector.load %arg2[%c0_6, %c0_7] : memref<4x16xf32, #tpu.memory_space<vmem>>, vector<4x16xf32>
    %c0_8 = arith.constant 0 : index
    %c0_9 = arith.constant 0 : index
    %9 = vector.load %arg3[%c0_8, %c0_9] : memref<4x16xf32, #tpu.memory_space<vmem>>, vector<4x16xf32>
    %c0_10 = arith.constant 0 : index
    %c0_11 = arith.constant 0 : index
    %10 = vector.load %arg8[%c0_10, %c0_11] : memref<256x64xf32, #tpu.memory_space<vmem>>, vector<256x64xf32>
    %c0_12 = arith.constant 0 : index
    %c0_13 = arith.constant 0 : index
    %11 = vector.load %arg9[%c0_12, %c0_13] : memref<16x64xf32, #tpu.memory_space<vmem>>, vector<16x64xf32>
    %c0_14 = arith.constant 0 : index
    %c0_15 = arith.constant 0 : index
    %12 = vector.load %arg10[%c0_14, %c0_15] : memref<1x64xf32, #tpu.memory_space<vmem>>, vector<1x64xf32>
    %cst_16 = arith.constant dense<0.000000e+00> : vector<4x64xf32>
    %13 = tpu.matmul %7, %10, %cst_16 {dimension_numbers = #tpu.dot_dimension_numbers<[1], [0], [0], [1], [0, 0, 1, 1], [], []>} : vector<4x256xf32>, vector<256x64xf32>, vector<4x64xf32> -> vector<4x64xf32>
    %cst_17 = arith.constant dense<0.000000e+00> : vector<4x64xf32>
    %14 = tpu.matmul %8, %11, %cst_17 {dimension_numbers = #tpu.dot_dimension_numbers<[1], [0], [0], [1], [0, 0, 1, 1], [], []>} : vector<4x16xf32>, vector<16x64xf32>, vector<4x64xf32> -> vector<4x64xf32>
    %15 = arith.addf %13, %14 : vector<4x64xf32>
    %16 = vector.broadcast %12 : vector<1x64xf32> to vector<4x64xf32>
    %17 = arith.addf %15, %16 : vector<4x64xf32>
    %18 = vector.extract_strided_slice %17 {offsets = [0, 0], sizes = [4, 16], strides = [1, 1]} : vector<4x64xf32> to vector<4x16xf32>
    %19 = arith.negf %18 : vector<4x16xf32>
    %20 = math.exp %19 : vector<4x16xf32>
    %cst_18 = arith.constant 1.000000e+00 : f32
    %21 = vector.broadcast %cst_18 : f32 to vector<4x16xf32>
    %22 = arith.addf %21, %20 : vector<4x16xf32>
    %23 = arith.divf %21, %22 : vector<4x16xf32>
    %24 = vector.extract_strided_slice %17 {offsets = [0, 16], sizes = [4, 16], strides = [1, 1]} : vector<4x64xf32> to vector<4x16xf32>
    %25 = arith.negf %24 : vector<4x16xf32>
    %26 = math.exp %25 : vector<4x16xf32>
    %cst_19 = arith.constant 1.000000e+00 : f32
    %27 = vector.broadcast %cst_19 : f32 to vector<4x16xf32>
    %28 = arith.addf %27, %26 : vector<4x16xf32>
    %29 = arith.divf %27, %28 : vector<4x16xf32>
    %30 = vector.extract_strided_slice %17 {offsets = [0, 32], sizes = [4, 16], strides = [1, 1]} : vector<4x64xf32> to vector<4x16xf32>
    %31 = math.tanh %30 : vector<4x16xf32>
    %32 = vector.extract_strided_slice %17 {offsets = [0, 48], sizes = [4, 16], strides = [1, 1]} : vector<4x64xf32> to vector<4x16xf32>
    %33 = arith.negf %32 : vector<4x16xf32>
    %34 = math.exp %33 : vector<4x16xf32>
    %cst_20 = arith.constant 1.000000e+00 : f32
    %35 = vector.broadcast %cst_20 : f32 to vector<4x16xf32>
    %36 = arith.addf %35, %34 : vector<4x16xf32>
    %37 = arith.divf %35, %36 : vector<4x16xf32>
    %38 = arith.mulf %29, %9 : vector<4x16xf32>
    %39 = arith.mulf %23, %31 : vector<4x16xf32>
    %40 = arith.addf %38, %39 : vector<4x16xf32>
    %41 = math.tanh %40 : vector<4x16xf32>
    %42 = arith.mulf %37, %41 : vector<4x16xf32>
    %c0_21 = arith.constant 0 : index
    %c0_22 = arith.constant 0 : index
    %43 = vector.load %arg20[%c0_21, %c0_22] : memref<4x16xf32, #tpu.memory_space<vmem>>, vector<4x16xf32>
    tpu.vector_store %arg20[%c0_21, %c0_22], %42 {strides = array<i32>} : memref<4x16xf32, #tpu.memory_space<vmem>>, vector<4x16xf32>,
    %c0_23 = arith.constant 0 : index
    %c0_24 = arith.constant 0 : index
    %44 = vector.load %arg21[%c0_23, %c0_24] : memref<4x16xf32, #tpu.memory_space<vmem>>, vector<4x16xf32>
    tpu.vector_store %arg21[%c0_23, %c0_24], %40 {strides = array<i32>} : memref<4x16xf32, #tpu.memory_space<vmem>>, vector<4x16xf32>,
    %c0_25 = arith.constant 0 : index
    %c0_26 = arith.constant 0 : index
    %45 = vector.load %arg1[%c0_25, %c0_26] : memref<4x9xf32, #tpu.memory_space<vmem>>, vector<4x9xf32>
    %c0_27 = arith.constant 0 : index
    %c0_28 = arith.constant 0 : index
    %46 = vector.load %arg11[%c0_27, %c0_28] : memref<9x64xf32, #tpu.memory_space<vmem>>, vector<9x64xf32>
    %cst_29 = arith.constant dense<0.000000e+00> : vector<4x64xf32>
    %47 = tpu.matmul %45, %46, %cst_29 {dimension_numbers = #tpu.dot_dimension_numbers<[1], [0], [0], [1], [0, 0, 1, 1], [], []>} : vector<4x9xf32>, vector<9x64xf32>, vector<4x64xf32> -> vector<4x64xf32>
    %c0_30 = arith.constant 0 : index
    %c0_31 = arith.constant 0 : index
    %48 = vector.load %arg12[%c0_30, %c0_31] : memref<1x64xf32, #tpu.memory_space<vmem>>, vector<1x64xf32>
    %49 = vector.broadcast %48 : vector<1x64xf32> to vector<4x64xf32>
    %50 = arith.addf %47, %49 : vector<4x64xf32>
    %cst_32 = arith.constant 0.000000e+00 : f32
    %51 = vector.broadcast %cst_32 : f32 to vector<4x64xf32>
    %52 = arith.maximumf %50, %51 : vector<4x64xf32>
    %c0_33 = arith.constant 0 : index
    %c0_34 = arith.constant 0 : index
    %53 = vector.load %arg13[%c0_33, %c0_34] : memref<64x128xf32, #tpu.memory_space<vmem>>, vector<64x128xf32>
    %cst_35 = arith.constant dense<0.000000e+00> : vector<4x128xf32>
    %54 = tpu.matmul %52, %53, %cst_35 {dimension_numbers = #tpu.dot_dimension_numbers<[1], [0], [0], [1], [0, 0, 1, 1], [], []>} : vector<4x64xf32>, vector<64x128xf32>, vector<4x128xf32> -> vector<4x128xf32>
    %c0_36 = arith.constant 0 : index
    %c0_37 = arith.constant 0 : index
    %55 = vector.load %arg14[%c0_36, %c0_37] : memref<1x128xf32, #tpu.memory_space<vmem>>, vector<1x128xf32>
    %56 = vector.broadcast %55 : vector<1x128xf32> to vector<4x128xf32>
    %57 = arith.addf %54, %56 : vector<4x128xf32>
    %cst_38 = arith.constant 0.000000e+00 : f32
    %58 = vector.broadcast %cst_38 : f32 to vector<4x128xf32>
    %59 = arith.maximumf %57, %58 : vector<4x128xf32>
    %c0_39 = arith.constant 0 : index
    %c0_40 = arith.constant 0 : index
    %60 = vector.load %arg15[%c0_39, %c0_40] : memref<128x128xf32, #tpu.memory_space<vmem>>, vector<128x128xf32>
    %cst_41 = arith.constant dense<0.000000e+00> : vector<4x128xf32>
    %61 = tpu.matmul %59, %60, %cst_41 {dimension_numbers = #tpu.dot_dimension_numbers<[1], [0], [0], [1], [0, 0, 1, 1], [], []>} : vector<4x128xf32>, vector<128x128xf32>, vector<4x128xf32> -> vector<4x128xf32>
    %c0_42 = arith.constant 0 : index
    %c0_43 = arith.constant 0 : index
    %62 = vector.load %arg16[%c0_42, %c0_43] : memref<1x128xf32, #tpu.memory_space<vmem>>, vector<1x128xf32>
    %63 = vector.broadcast %62 : vector<1x128xf32> to vector<4x128xf32>
    %64 = arith.addf %61, %63 : vector<4x128xf32>
    %cst_44 = arith.constant 0.000000e+00 : f32
    %65 = vector.broadcast %cst_44 : f32 to vector<4x128xf32>
    %66 = arith.maximumf %64, %65 : vector<4x128xf32>
    %c0_45 = arith.constant 0 : index
    %c0_46 = arith.constant 0 : index
    %67 = vector.load %arg4[%c0_45, %c0_46] : memref<4x16xf32, #tpu.memory_space<vmem>>, vector<4x16xf32>
    %c0_47 = arith.constant 0 : index
    %c0_48 = arith.constant 0 : index
    %68 = vector.load %arg5[%c0_47, %c0_48] : memref<4x16xf32, #tpu.memory_space<vmem>>, vector<4x16xf32>
    %c0_49 = arith.constant 0 : index
    %c0_50 = arith.constant 0 : index
    %69 = vector.load %arg17[%c0_49, %c0_50] : memref<128x64xf32, #tpu.memory_space<vmem>>, vector<128x64xf32>
    %c0_51 = arith.constant 0 : index
    %c0_52 = arith.constant 0 : index
    %70 = vector.load %arg18[%c0_51, %c0_52] : memref<16x64xf32, #tpu.memory_space<vmem>>, vector<16x64xf32>
    %c0_53 = arith.constant 0 : index
    %c0_54 = arith.constant 0 : index
    %71 = vector.load %arg19[%c0_53, %c0_54] : memref<1x64xf32, #tpu.memory_space<vmem>>, vector<1x64xf32>
    %cst_55 = arith.constant dense<0.000000e+00> : vector<4x64xf32>
    %72 = tpu.matmul %66, %69, %cst_55 {dimension_numbers = #tpu.dot_dimension_numbers<[1], [0], [0], [1], [0, 0, 1, 1], [], []>} : vector<4x128xf32>, vector<128x64xf32>, vector<4x64xf32> -> vector<4x64xf32>
    %cst_56 = arith.constant dense<0.000000e+00> : vector<4x64xf32>
    %73 = tpu.matmul %67, %70, %cst_56 {dimension_numbers = #tpu.dot_dimension_numbers<[1], [0], [0], [1], [0, 0, 1, 1], [], []>} : vector<4x16xf32>, vector<16x64xf32>, vector<4x64xf32> -> vector<4x64xf32>
    %74 = arith.addf %72, %73 : vector<4x64xf32>
    %75 = vector.broadcast %71 : vector<1x64xf32> to vector<4x64xf32>
    %76 = arith.addf %74, %75 : vector<4x64xf32>
    %77 = vector.extract_strided_slice %76 {offsets = [0, 0], sizes = [4, 16], strides = [1, 1]} : vector<4x64xf32> to vector<4x16xf32>
    %78 = arith.negf %77 : vector<4x16xf32>
    %79 = math.exp %78 : vector<4x16xf32>
    %cst_57 = arith.constant 1.000000e+00 : f32
    %80 = vector.broadcast %cst_57 : f32 to vector<4x16xf32>
    %81 = arith.addf %80, %79 : vector<4x16xf32>
    %82 = arith.divf %80, %81 : vector<4x16xf32>
    %83 = vector.extract_strided_slice %76 {offsets = [0, 16], sizes = [4, 16], strides = [1, 1]} : vector<4x64xf32> to vector<4x16xf32>
    %84 = arith.negf %83 : vector<4x16xf32>
    %85 = math.exp %84 : vector<4x16xf32>
    %cst_58 = arith.constant 1.000000e+00 : f32
    %86 = vector.broadcast %cst_58 : f32 to vector<4x16xf32>
    %87 = arith.addf %86, %85 : vector<4x16xf32>
    %88 = arith.divf %86, %87 : vector<4x16xf32>
    %89 = vector.extract_strided_slice %76 {offsets = [0, 32], sizes = [4, 16], strides = [1, 1]} : vector<4x64xf32> to vector<4x16xf32>
    %90 = math.tanh %89 : vector<4x16xf32>
    %91 = vector.extract_strided_slice %76 {offsets = [0, 48], sizes = [4, 16], strides = [1, 1]} : vector<4x64xf32> to vector<4x16xf32>
    %92 = arith.negf %91 : vector<4x16xf32>
    %93 = math.exp %92 : vector<4x16xf32>
    %cst_59 = arith.constant 1.000000e+00 : f32
    %94 = vector.broadcast %cst_59 : f32 to vector<4x16xf32>
    %95 = arith.addf %94, %93 : vector<4x16xf32>
    %96 = arith.divf %94, %95 : vector<4x16xf32>
    %97 = arith.mulf %88, %68 : vector<4x16xf32>
    %98 = arith.mulf %82, %90 : vector<4x16xf32>
    %99 = arith.addf %97, %98 : vector<4x16xf32>
    %100 = math.tanh %99 : vector<4x16xf32>
    %101 = arith.mulf %96, %100 : vector<4x16xf32>
    %c0_60 = arith.constant 0 : index
    %c0_61 = arith.constant 0 : index
    %102 = vector.load %arg22[%c0_60, %c0_61] : memref<4x16xf32, #tpu.memory_space<vmem>>, vector<4x16xf32>
    tpu.vector_store %arg22[%c0_60, %c0_61], %101 {strides = array<i32>} : memref<4x16xf32, #tpu.memory_space<vmem>>, vector<4x16xf32>,
    %c0_62 = arith.constant 0 : index
    %c0_63 = arith.constant 0 : index
    %103 = vector.load %arg23[%c0_62, %c0_63] : memref<4x16xf32, #tpu.memory_space<vmem>>, vector<4x16xf32>
    tpu.vector_store %arg23[%c0_62, %c0_63], %99 {strides = array<i32>} : memref<4x16xf32, #tpu.memory_space<vmem>>, vector<4x16xf32>,
    return
  }
}

module attributes {stable_mosaic.version = 11 : i64} {
  func.func @_tail_b_kernel(%arg0: memref<1x128xf32, #tpu.memory_space<vmem>>, %arg1: memref<1x16xf32, #tpu.memory_space<vmem>>, %arg2: memref<1x16xf32, #tpu.memory_space<vmem>>, %arg3: memref<128x64xf32, #tpu.memory_space<vmem>>, %arg4: memref<16x64xf32, #tpu.memory_space<vmem>>, %arg5: memref<1x64xf32, #tpu.memory_space<vmem>>, %arg6: memref<16x4xf32, #tpu.memory_space<vmem>>, %arg7: memref<1x4xf32, #tpu.memory_space<vmem>>, %arg8: memref<4x1xf32, #tpu.memory_space<vmem>>, %arg9: memref<1x1xf32, #tpu.memory_space<vmem>>, %arg10: memref<1x1xf32, #tpu.memory_space<vmem>>, %arg11: memref<1x16xf32, #tpu.memory_space<vmem>>, %arg12: memref<1x16xf32, #tpu.memory_space<vmem>>) attributes {dimension_semantics = [], scalar_prefetch = 0 : i64, scratch_operands = 0 : i64, tpu.core_type = #tpu.core_type<tc>} {
    %c0 = arith.constant 0 : index
    %c0_0 = arith.constant 0 : index
    %0 = vector.load %arg0[%c0, %c0_0] : memref<1x128xf32, #tpu.memory_space<vmem>>, vector<1x128xf32>
    %c0_1 = arith.constant 0 : index
    %c0_2 = arith.constant 0 : index
    %1 = vector.load %arg1[%c0_1, %c0_2] : memref<1x16xf32, #tpu.memory_space<vmem>>, vector<1x16xf32>
    %c0_3 = arith.constant 0 : index
    %c0_4 = arith.constant 0 : index
    %2 = vector.load %arg2[%c0_3, %c0_4] : memref<1x16xf32, #tpu.memory_space<vmem>>, vector<1x16xf32>
    %c0_5 = arith.constant 0 : index
    %c0_6 = arith.constant 0 : index
    %3 = vector.load %arg3[%c0_5, %c0_6] : memref<128x64xf32, #tpu.memory_space<vmem>>, vector<128x64xf32>
    %c0_7 = arith.constant 0 : index
    %c0_8 = arith.constant 0 : index
    %4 = vector.load %arg4[%c0_7, %c0_8] : memref<16x64xf32, #tpu.memory_space<vmem>>, vector<16x64xf32>
    %c0_9 = arith.constant 0 : index
    %c0_10 = arith.constant 0 : index
    %5 = vector.load %arg5[%c0_9, %c0_10] : memref<1x64xf32, #tpu.memory_space<vmem>>, vector<1x64xf32>
    %cst = arith.constant dense<0.000000e+00> : vector<1x64xf32>
    %6 = tpu.matmul %0, %3, %cst {dimension_numbers = #tpu.dot_dimension_numbers<[1], [0], [0], [1], [0, 0, 1, 1], [], []>} : vector<1x128xf32>, vector<128x64xf32>, vector<1x64xf32> -> vector<1x64xf32>
    %cst_11 = arith.constant dense<0.000000e+00> : vector<1x64xf32>
    %7 = tpu.matmul %1, %4, %cst_11 {dimension_numbers = #tpu.dot_dimension_numbers<[1], [0], [0], [1], [0, 0, 1, 1], [], []>} : vector<1x16xf32>, vector<16x64xf32>, vector<1x64xf32> -> vector<1x64xf32>
    %8 = arith.addf %6, %7 : vector<1x64xf32>
    %9 = arith.addf %8, %5 : vector<1x64xf32>
    %10 = vector.extract_strided_slice %9 {offsets = [0, 0], sizes = [1, 16], strides = [1, 1]} : vector<1x64xf32> to vector<1x16xf32>
    %11 = arith.negf %10 : vector<1x16xf32>
    %12 = math.exp %11 : vector<1x16xf32>
    %cst_12 = arith.constant 1.000000e+00 : f32
    %13 = vector.broadcast %cst_12 : f32 to vector<1x16xf32>
    %14 = arith.addf %13, %12 : vector<1x16xf32>
    %15 = arith.divf %13, %14 : vector<1x16xf32>
    %16 = vector.extract_strided_slice %9 {offsets = [0, 16], sizes = [1, 16], strides = [1, 1]} : vector<1x64xf32> to vector<1x16xf32>
    %17 = arith.negf %16 : vector<1x16xf32>
    %18 = math.exp %17 : vector<1x16xf32>
    %cst_13 = arith.constant 1.000000e+00 : f32
    %19 = vector.broadcast %cst_13 : f32 to vector<1x16xf32>
    %20 = arith.addf %19, %18 : vector<1x16xf32>
    %21 = arith.divf %19, %20 : vector<1x16xf32>
    %22 = vector.extract_strided_slice %9 {offsets = [0, 32], sizes = [1, 16], strides = [1, 1]} : vector<1x64xf32> to vector<1x16xf32>
    %23 = math.tanh %22 : vector<1x16xf32>
    %24 = vector.extract_strided_slice %9 {offsets = [0, 48], sizes = [1, 16], strides = [1, 1]} : vector<1x64xf32> to vector<1x16xf32>
    %25 = arith.negf %24 : vector<1x16xf32>
    %26 = math.exp %25 : vector<1x16xf32>
    %cst_14 = arith.constant 1.000000e+00 : f32
    %27 = vector.broadcast %cst_14 : f32 to vector<1x16xf32>
    %28 = arith.addf %27, %26 : vector<1x16xf32>
    %29 = arith.divf %27, %28 : vector<1x16xf32>
    %30 = arith.mulf %21, %2 : vector<1x16xf32>
    %31 = arith.mulf %15, %23 : vector<1x16xf32>
    %32 = arith.addf %30, %31 : vector<1x16xf32>
    %33 = math.tanh %32 : vector<1x16xf32>
    %34 = arith.mulf %29, %33 : vector<1x16xf32>
    %c0_15 = arith.constant 0 : index
    %c0_16 = arith.constant 0 : index
    %35 = vector.load %arg11[%c0_15, %c0_16] : memref<1x16xf32, #tpu.memory_space<vmem>>, vector<1x16xf32>
    tpu.vector_store %arg11[%c0_15, %c0_16], %34 {strides = array<i32>} : memref<1x16xf32, #tpu.memory_space<vmem>>, vector<1x16xf32>,
    %c0_17 = arith.constant 0 : index
    %c0_18 = arith.constant 0 : index
    %36 = vector.load %arg12[%c0_17, %c0_18] : memref<1x16xf32, #tpu.memory_space<vmem>>, vector<1x16xf32>
    tpu.vector_store %arg12[%c0_17, %c0_18], %32 {strides = array<i32>} : memref<1x16xf32, #tpu.memory_space<vmem>>, vector<1x16xf32>,
    %c0_19 = arith.constant 0 : index
    %c0_20 = arith.constant 0 : index
    %37 = vector.load %arg6[%c0_19, %c0_20] : memref<16x4xf32, #tpu.memory_space<vmem>>, vector<16x4xf32>
    %cst_21 = arith.constant dense<0.000000e+00> : vector<1x4xf32>
    %38 = tpu.matmul %34, %37, %cst_21 {dimension_numbers = #tpu.dot_dimension_numbers<[1], [0], [0], [1], [0, 0, 1, 1], [], []>} : vector<1x16xf32>, vector<16x4xf32>, vector<1x4xf32> -> vector<1x4xf32>
    %c0_22 = arith.constant 0 : index
    %c0_23 = arith.constant 0 : index
    %39 = vector.load %arg7[%c0_22, %c0_23] : memref<1x4xf32, #tpu.memory_space<vmem>>, vector<1x4xf32>
    %40 = arith.addf %38, %39 : vector<1x4xf32>
    %cst_24 = arith.constant 0.000000e+00 : f32
    %41 = vector.broadcast %cst_24 : f32 to vector<1x4xf32>
    %42 = arith.maximumf %40, %41 : vector<1x4xf32>
    %c0_25 = arith.constant 0 : index
    %c0_26 = arith.constant 0 : index
    %43 = vector.load %arg8[%c0_25, %c0_26] : memref<4x1xf32, #tpu.memory_space<vmem>>, vector<4x1xf32>
    %cst_27 = arith.constant dense<0.000000e+00> : vector<1x1xf32>
    %44 = tpu.matmul %42, %43, %cst_27 {dimension_numbers = #tpu.dot_dimension_numbers<[1], [0], [0], [1], [0, 0, 1, 1], [], []>} : vector<1x4xf32>, vector<4x1xf32>, vector<1x1xf32> -> vector<1x1xf32>
    %c0_28 = arith.constant 0 : index
    %c0_29 = arith.constant 0 : index
    %45 = vector.load %arg9[%c0_28, %c0_29] : memref<1x1xf32, #tpu.memory_space<vmem>>, vector<1x1xf32>
    %46 = arith.addf %44, %45 : vector<1x1xf32>
    %47 = math.tanh %46 : vector<1x1xf32>
    %c0_30 = arith.constant 0 : index
    %c0_31 = arith.constant 0 : index
    %48 = vector.load %arg10[%c0_30, %c0_31] : memref<1x1xf32, #tpu.memory_space<vmem>>, vector<1x1xf32>
    tpu.vector_store %arg10[%c0_30, %c0_31], %47 {strides = array<i32>} : memref<1x1xf32, #tpu.memory_space<vmem>>, vector<1x1xf32>,
    return
  }
}

</mosaic_0001>

<bundles_post_ra>
// kernel: critic_forward.6
= control target key start
LH: loop header
LB: loop body
LE: loop exit
PB: predicated region body
PF: predicated region fallthrough
CT: control target
= control target key end

     0   :  { %s5092_s12 = smov 0   ;;  %s5094_s13 = smov 0   ;;  %s6736_s0 = inlined_call_operand.vmem [shape: bf16[16,27], index: 0, kind: input, shape index: {}]   ;;  %s6737_s1 = inlined_call_operand.vmem [shape: bf16[27,24964], index: 1, kind: input, shape index: {}]   ;;  %s6738_s2 = inlined_call_operand.vmem [shape: f32[16,1], index: 2, kind: input, shape index: {}]   ;;  %s6739_s3 = inlined_call_operand.vmem [shape: bf16[16,24964], index: 3, kind: output, shape index: {}]  }
   0x1   :  { %s5096_s14 = smov 0  }
   0x2 LB: > { %s5108_s15 = sadd.s32 4294967295, %s4936_s14   ;;  %s5111_s16 = sadd.s32 1, %s4936_s14   ;;  %s4936_s14 = sphi %s5096_s14, %s6768_s14   ;;  %s4932_s13 = sphi %s5094_s13, %s6767_s13   ;;  %s4928_s12 = sphi %s5092_s12, %s6766_s12  }
   0x3   : > { %s38_s17 = ssub.s32 %s4936_s14, %s5111_s16  ;;  %s41_s18 = sadd.s32 1, %s4932_s13 }
   0x4   : > { %p39_p0 = scmp.eq.s32.totalorder %s38_s17, 0  ;;  %p48_p1 = scmp.ne.s32.totalorder %s4932_s13, %s4928_s12 }
   0x5   : > { %p49_p2 = scmp.eq.s32.totalorder %s4936_s14, 0  ;;  %p99_p3 = scmp.eq.s32.totalorder %s5108_s15, 3 }
   0x6   : > { %s5121_s19 = scalar_select %p39_p0, %s4932_s13, %s41_s18  }
   0x7   : > { %p50_p4 = por %p49_p2, %p48_p1  ;;  %p5123_p5 = por %p99_p3, %p48_p1 }
   0x8   : > { %p4135_p6 = scmp.ge.s32.totalorder %s4936_s14, 4 }
   0xa   : > { %127 = sbr.rel (%p4135_p6) target bundleno = 170 (0xaa), region = 24 }
   0xf   : > { %130 = sbr.rel (!%p50_p4) target bundleno = 170 (0xaa), region = 28  ;;  %s132_s21 = sand.u32 (%p50_p4), 1, %s4932_s13  }
  0x10   : > { %s4137_s22 = sshll.u32 (%p50_p4), %s4936_s14, 6  ;;  %s4136_s23 = sshll.u32 (%p50_p4), %s132_s21, 10 }
  0x11   : > { %s136_s24 = ssub.s32 (%p50_p4), 196, %s4137_s22  ;;  %s4424_s25 = sshll.u32 (%p50_p4), %s4936_s14, 8 }
  0x12   : > { %p137_p7 = scmp.lt.s32.totalorder (%p50_p4), %s136_s24, 64  ;;  %s5134_s28 = scalar_lea.vmem (%p50_p4), %s6737_s1, %s4424_s25  }
  0x13   : > { %s5138_s4 = scalar_lea.vmem (%p50_p4), [#allocation2], %s4136_s23  }
  0x14   : > { %s6770_s24 = smov (!%p137_p7, %s136_s24), 64 }
  0x15   : > { %s4138_s29 = sshll.u32 %s6770_s24, 8  ;;  %s5136_s30 = sshll.u32 %s6770_s24, 2 }
  0x16   : > { %p4142_p8 = scmp.eq.s32.totalorder %s4138_s29, 0 }
  0x17   : > { %p147_p9 = scmp.lt.u32.totalorder (!%p4142_p8), %s5136_s30, 8 }
  0x18   : > { %146 = sbr.rel (%p4142_p8) target bundleno = 170 (0xaa), region = 32 }
  0x1d   : > { %150 = sbr.rel (%p147_p9) target bundleno = 159 (0x9f), region = 36  ;;  %s5142_s5 = sand.u32 (!%p147_p9), 7, %s5136_s30  }
  0x1e   : > { %p173_p10 = scmp.eq.s32.totalorder (!%p147_p9), %s5142_s5, 0  ;;  %p4143_p11 = scmp.ne.s32.totalorder (!%p147_p9), %s5142_s5, 0 }
  0x22   : > { %176 = sbr.rel (%p4143_p11) target bundleno = 93 (0x5d), region = 51  ;;  %s177_s6 = sshrl.u32 (!%p4143_p11), %s5136_s30, 3 }
  0x23   : > { %s5149_s7 = sshrl.u32 (!%p4143_p11), %s177_s6, 4 }
  0x24   : > { %p4144_p12 = scmp.le.s32.totalorder (!%p4143_p11), %s5149_s7, 0 }
  0x27   : > { %4005 = sbr.rel (%p4144_p12) target bundleno = 77 (0x4d), region = 229  ;;  %s6741_s8 = smov (!%p4144_p12), %s5138_s4 }
  0x28   : > { %s6742_s9 = smov (!%p4144_p12), %s5134_s28  ;;  %s5158_s10 = smov (!%p4144_p12), 0  }
  0x29   : > { %s5160_s11 = smov (!%p4144_p12), 0  }
  0x2c LB: >> { %v190_v0 = vld [vmem:[%s4944_s9] sm:$0xff]  ;;  %v192_v1 = vld [vmem:[%s4944_s9 + $0x8] sm:$0xff]  ;;  %v194_v2 = vld [vmem:[%s4944_s9 + $0x10] sm:$0xff]  ;;  %s318_s17 = sadd.s32 1, %s4948_s10  ;;  %s184_s11 = sadd.s32 1, %s4952_s11   ;;  %s4952_s11 = sphi %s5160_s11, %s184_s11   ;;  %s4948_s10 = sphi %s5158_s10, %s6745_s10   ;;  %s4944_s9 = sphi %s6742_s9, %s6744_s9   ;;  %s4940_s8 = sphi %s6741_s8, %s6743_s8  }
  0x2d   : >> { %191 = vst [vmem:[%s4940_s8] sm:$0xff] %v190_v0  ;;  %193 = vst [vmem:[%s4940_s8 + $0x8] sm:$0xff] %v192_v1  ;;  %v196_v3 = vld [vmem:[%s4944_s9 + $0x18] sm:$0xff]  ;;  %v198_v4 = vld [vmem:[%s4944_s9 + $0x20] sm:$0xff]  ;;  %p319_p13 = scmp.ge.s32.totalorder %s318_s17, %s5149_s7  ;;  %p183_p0 = scmp.ge.s32.totalorder %s184_s11, %s5149_s7 }
  0x2e   : >> { %195 = vst [vmem:[%s4940_s8 + $0x10] sm:$0xff] %v194_v2  ;;  %v200_v5 = vld [vmem:[%s4944_s9 + $0x28] sm:$0xff]  ;;  %197 = vst [vmem:[%s4940_s8 + $0x18] sm:$0xff] %v196_v3  ;;  %v202_v6 = vld [vmem:[%s4944_s9 + $0x30] sm:$0xff] }
  0x2f   : >> { %199 = vst [vmem:[%s4940_s8 + $0x20] sm:$0xff] %v198_v4  ;;  %201 = vst [vmem:[%s4940_s8 + $0x28] sm:$0xff] %v200_v5  ;;  %v204_v7 = vld [vmem:[%s4944_s9 + $0x38] sm:$0xff]  ;;  %v206_v8 = vld [vmem:[%s4944_s9 + $0x40] sm:$0xff]  ;;  %s6772_s17 = smov (%p319_p13, %s318_s17), 0 }
  0x30   : >> { %203 = vst [vmem:[%s4940_s8 + $0x30] sm:$0xff] %v202_v6  ;;  %205 = vst [vmem:[%s4940_s8 + $0x38] sm:$0xff] %v204_v7  ;;  %v208_v9 = vld [vmem:[%s4944_s9 + $0x48] sm:$0xff]  ;;  %v210_v10 = vld [vmem:[%s4944_s9 + $0x50] sm:$0xff]  ;;  %s4145_s18 = sshll.u32 %s6772_s17, 7  ;;  %s6745_s10 = smov %s6772_s17 }
  0x31   : >> { %207 = vst [vmem:[%s4940_s8 + $0x40] sm:$0xff] %v206_v8  ;;  %v212_v11 = vld [vmem:[%s4944_s9 + $0x58] sm:$0xff]  ;;  %209 = vst [vmem:[%s4940_s8 + $0x48] sm:$0xff] %v208_v9  ;;  %v214_v12 = vld [vmem:[%s4944_s9 + $0x60] sm:$0xff]  ;;  %s5216_s21 = scalar_lea.vmem %s5134_s28, %s4145_s18   ;;  %s5219_s22 = scalar_lea.vmem %s5138_s4, %s4145_s18 [#allocation2]  }
  0x32   : >> { %211 = vst [vmem:[%s4940_s8 + $0x50] sm:$0xff] %v210_v10  ;;  %213 = vst [vmem:[%s4940_s8 + $0x58] sm:$0xff] %v212_v11  ;;  %v216_v13 = vld [vmem:[%s4944_s9 + $0x68] sm:$0xff]  ;;  %v218_v14 = vld [vmem:[%s4944_s9 + $0x70] sm:$0xff] }
  0x33   : >> { %215 = vst [vmem:[%s4940_s8 + $0x60] sm:$0xff] %v214_v12  ;;  %217 = vst [vmem:[%s4940_s8 + $0x68] sm:$0xff] %v216_v13  ;;  %v220_v15 = vld [vmem:[%s4944_s9 + $0x78] sm:$0xff]  ;;  %v222_v16 = vld [vmem:[%s4944_s9 + $0x310] sm:$0xff] }
  0x34   : >> { %219 = vst [vmem:[%s4940_s8 + $0x70] sm:$0xff] %v218_v14  ;;  %v224_v17 = vld [vmem:[%s4944_s9 + $0x318] sm:$0xff]  ;;  %221 = vst [vmem:[%s4940_s8 + $0x78] sm:$0xff] %v220_v15  ;;  %v226_v18 = vld [vmem:[%s4944_s9 + $0x320] sm:$0xff] }
  0x35   : >> { %223 = vst [vmem:[%s4940_s8 + $0x100] sm:$0xff] %v222_v16  ;;  %225 = vst [vmem:[%s4940_s8 + $0x108] sm:$0xff] %v224_v17  ;;  %v228_v19 = vld [vmem:[%s4944_s9 + $0x328] sm:$0xff]  ;;  %v230_v20 = vld [vmem:[%s4944_s9 + $0x330] sm:$0xff] }
  0x36   : >> { %227 = vst [vmem:[%s4940_s8 + $0x110] sm:$0xff] %v226_v18  ;;  %229 = vst [vmem:[%s4940_s8 + $0x118] sm:$0xff] %v228_v19  ;;  %v232_v21 = vld [vmem:[%s4944_s9 + $0x338] sm:$0xff]  ;;  %v234_v22 = vld [vmem:[%s4944_s9 + $0x340] sm:$0xff] }
  0x37   : >> { %231 = vst [vmem:[%s4940_s8 + $0x120] sm:$0xff] %v230_v20  ;;  %v236_v23 = vld [vmem:[%s4944_s9 + $0x348] sm:$0xff]  ;;  %233 = vst [vmem:[%s4940_s8 + $0x128] sm:$0xff] %v232_v21  ;;  %v238_v24 = vld [vmem:[%s4944_s9 + $0x350] sm:$0xff] }
  0x38   : >> { %235 = vst [vmem:[%s4940_s8 + $0x130] sm:$0xff] %v234_v22  ;;  %237 = vst [vmem:[%s4940_s8 + $0x138] sm:$0xff] %v236_v23  ;;  %v240_v25 = vld [vmem:[%s4944_s9 + $0x358] sm:$0xff]  ;;  %v242_v26 = vld [vmem:[%s4944_s9 + $0x360] sm:$0xff] }
  0x39   : >> { %239 = vst [vmem:[%s4940_s8 + $0x140] sm:$0xff] %v238_v24  ;;  %241 = vst [vmem:[%s4940_s8 + $0x148] sm:$0xff] %v240_v25  ;;  %v244_v27 = vld [vmem:[%s4944_s9 + $0x368] sm:$0xff]  ;;  %v246_v28 = vld [vmem:[%s4944_s9 + $0x370] sm:$0xff] }
  0x3a   : >> { %243 = vst [vmem:[%s4940_s8 + $0x150] sm:$0xff] %v242_v26  ;;  %v248_v29 = vld [vmem:[%s4944_s9 + $0x378] sm:$0xff]  ;;  %245 = vst [vmem:[%s4940_s8 + $0x158] sm:$0xff] %v244_v27  ;;  %v250_v30 = vld [vmem:[%s4944_s9 + $0x380] sm:$0xff] }
  0x3b   : >> { %247 = vst [vmem:[%s4940_s8 + $0x160] sm:$0xff] %v246_v28  ;;  %249 = vst [vmem:[%s4940_s8 + $0x168] sm:$0xff] %v248_v29  ;;  %v252_v31 = vld [vmem:[%s4944_s9 + $0x388] sm:$0xff]  ;;  %v254_v32 = vld [vmem:[%s4944_s9 + $0x620] sm:$0xff] }
  0x3c   : >> { %251 = vst [vmem:[%s4940_s8 + $0x170] sm:$0xff] %v250_v30  ;;  %253 = vst [vmem:[%s4940_s8 + $0x178] sm:$0xff] %v252_v31  ;;  %v256_v33 = vld [vmem:[%s4944_s9 + $0x628] sm:$0xff]  ;;  %v258_v34 = vld [vmem:[%s4944_s9 + $0x630] sm:$0xff] }
  0x3d   : >> { %255 = vst [vmem:[%s4940_s8 + $0x200] sm:$0xff] %v254_v32  ;;  %v260_v35 = vld [vmem:[%s4944_s9 + $0x638] sm:$0xff]  ;;  %257 = vst [vmem:[%s4940_s8 + $0x208] sm:$0xff] %v256_v33  ;;  %v262_v36 = vld [vmem:[%s4944_s9 + $0x640] sm:$0xff] }
  0x3e   : >> { %259 = vst [vmem:[%s4940_s8 + $0x210] sm:$0xff] %v258_v34  ;;  %261 = vst [vmem:[%s4940_s8 + $0x218] sm:$0xff] %v260_v35  ;;  %v264_v37 = vld [vmem:[%s4944_s9 + $0x648] sm:$0xff]  ;;  %v266_v38 = vld [vmem:[%s4944_s9 + $0x650] sm:$0xff] }
  0x3f   : >> { %263 = vst [vmem:[%s4940_s8 + $0x220] sm:$0xff] %v262_v36  ;;  %265 = vst [vmem:[%s4940_s8 + $0x228] sm:$0xff] %v264_v37  ;;  %v268_v39 = vld [vmem:[%s4944_s9 + $0x658] sm:$0xff]  ;;  %v270_v40 = vld [vmem:[%s4944_s9 + $0x660] sm:$0xff] }
  0x40   : >> { %267 = vst [vmem:[%s4940_s8 + $0x230] sm:$0xff] %v266_v38  ;;  %v272_v41 = vld [vmem:[%s4944_s9 + $0x668] sm:$0xff]  ;;  %269 = vst [vmem:[%s4940_s8 + $0x238] sm:$0xff] %v268_v39  ;;  %v274_v42 = vld [vmem:[%s4944_s9 + $0x670] sm:$0xff] }
  0x41   : >> { %271 = vst [vmem:[%s4940_s8 + $0x240] sm:$0xff] %v270_v40  ;;  %273 = vst [vmem:[%s4940_s8 + $0x248] sm:$0xff] %v272_v41  ;;  %v276_v43 = vld [vmem:[%s4944_s9 + $0x678] sm:$0xff]  ;;  %v278_v44 = vld [vmem:[%s4944_s9 + $0x680] sm:$0xff] }
  0x42   : >> { %275 = vst [vmem:[%s4940_s8 + $0x250] sm:$0xff] %v274_v42  ;;  %277 = vst [vmem:[%s4940_s8 + $0x258] sm:$0xff] %v276_v43  ;;  %v280_v45 = vld [vmem:[%s4944_s9 + $0x688] sm:$0xff]  ;;  %v282_v46 = vld [vmem:[%s4944_s9 + $0x690] sm:$0xff] }
  0x43   : >> { %279 = vst [vmem:[%s4940_s8 + $0x260] sm:$0xff] %v278_v44  ;;  %v284_v47 = vld [vmem:[%s4944_s9 + $0x698] sm:$0xff]  ;;  %281 = vst [vmem:[%s4940_s8 + $0x268] sm:$0xff] %v280_v45  ;;  %v286_v48 = vld [vmem:[%s4944_s9 + $0x930] sm:$0xff] }
  0x44   : >> { %283 = vst [vmem:[%s4940_s8 + $0x270] sm:$0xff] %v282_v46  ;;  %285 = vst [vmem:[%s4940_s8 + $0x278] sm:$0xff] %v284_v47  ;;  %v288_v49 = vld [vmem:[%s4944_s9 + $0x938] sm:$0xff]  ;;  %v290_v50 = vld [vmem:[%s4944_s9 + $0x940] sm:$0xff] }
  0x45   : >> { %287 = vst [vmem:[%s4940_s8 + $0x300] sm:$0xff] %v286_v48  ;;  %289 = vst [vmem:[%s4940_s8 + $0x308] sm:$0xff] %v288_v49  ;;  %v292_v51 = vld [vmem:[%s4944_s9 + $0x948] sm:$0xff]  ;;  %v294_v52 = vld [vmem:[%s4944_s9 + $0x950] sm:$0xff] }
  0x46   : >> { %291 = vst [vmem:[%s4940_s8 + $0x310] sm:$0xff] %v290_v50  ;;  %v296_v53 = vld [vmem:[%s4944_s9 + $0x958] sm:$0xff]  ;;  %293 = vst [vmem:[%s4940_s8 + $0x318] sm:$0xff] %v292_v51  ;;  %v298_v54 = vld [vmem:[%s4944_s9 + $0x960] sm:$0xff] }
  0x47   : >> { %295 = vst [vmem:[%s4940_s8 + $0x320] sm:$0xff] %v294_v52  ;;  %297 = vst [vmem:[%s4940_s8 + $0x328] sm:$0xff] %v296_v53  ;;  %v300_v55 = vld [vmem:[%s4944_s9 + $0x968] sm:$0xff]  ;;  %v302_v56 = vld [vmem:[%s4944_s9 + $0x970] sm:$0xff] }
  0x48   : >> { %299 = vst [vmem:[%s4940_s8 + $0x330] sm:$0xff] %v298_v54  ;;  %301 = vst [vmem:[%s4940_s8 + $0x338] sm:$0xff] %v300_v55  ;;  %v304_v57 = vld [vmem:[%s4944_s9 + $0x978] sm:$0xff]  ;;  %v306_v58 = vld [vmem:[%s4944_s9 + $0x980] sm:$0xff]  ;;  %186 = sbr.rel (!%p183_p0) target bundleno = 44 (0x2c), region = 235 }
  0x49   : >> { %303 = vst [vmem:[%s4940_s8 + $0x340] sm:$0xff] %v302_v56  ;;  %v308_v59 = vld [vmem:[%s4944_s9 + $0x988] sm:$0xff]  ;;  %305 = vst [vmem:[%s4940_s8 + $0x348] sm:$0xff] %v304_v57  ;;  %v310_v60 = vld [vmem:[%s4944_s9 + $0x990] sm:$0xff] }
  0x4a   : >> { %307 = vst [vmem:[%s4940_s8 + $0x350] sm:$0xff] %v306_v58  ;;  %309 = vst [vmem:[%s4940_s8 + $0x358] sm:$0xff] %v308_v59  ;;  %v312_v61 = vld [vmem:[%s4944_s9 + $0x998] sm:$0xff]  ;;  %v314_v62 = vld [vmem:[%s4944_s9 + $0x9a0] sm:$0xff] }
  0x4b   : >> { %311 = vst [vmem:[%s4940_s8 + $0x360] sm:$0xff] %v310_v60  ;;  %313 = vst [vmem:[%s4940_s8 + $0x368] sm:$0xff] %v312_v61  ;;  %v316_v63 = vld [vmem:[%s4944_s9 + $0x9a8] sm:$0xff]  ;;  %s6744_s9 = smov %s5216_s21 }
  0x4c   : >> { %315 = vst [vmem:[%s4940_s8 + $0x370] sm:$0xff] %v314_v62  ;;  %317 = vst [vmem:[%s4940_s8 + $0x378] sm:$0xff] %v316_v63  ;;  %s6743_s8 = smov %s5219_s22 }
  0x4d PF: > { %s5325_s23 = sand.u32 15, %s177_s6   ;;  %s4425_s24 = sshll.u32 %s5149_s7, 11 }
  0x4e   : > { %s329_s25 = sshra.s32 %s4425_s24, 4  ;;  %p4150_p1 = scmp.le.s32.totalorder %s5325_s23, 0 }
  0x4f   : > { %s5329_s26 = scalar_lea.vmem %s5134_s28, %s329_s25   ;;  %s5332_s27 = scalar_lea.vmem %s5138_s4, %s329_s25 [#allocation2]  }
  0x50   : > { %4019 = sbr.rel (%p4150_p1) target bundleno = 93 (0x5d), region = 240  ;;  %s6746_s29 = smov (!%p4150_p1), %s5332_s27 }
  0x51   : > { %s6747_s8 = smov (!%p4150_p1), %s5329_s26  ;;  %s5341_s9 = smov (!%p4150_p1), 0  }
  0x52   : > { %s4966_s10 = smov (!%p4150_p1), 0  }
  0x55 LB: >> { %v345_v0 = vld [vmem:[%s4960_s8] sm:$0xff]  ;;  %v347_v1 = vld [vmem:[%s4960_s8 + $0x310] sm:$0xff]  ;;  %s353_s6 = sadd.s32 1, %s4964_s9  ;;  %s339_s10 = sadd.s32 1, %s4968_s10   ;;  %s4968_s10 = sphi %s4966_s10, %s339_s10   ;;  %s4964_s9 = sphi %s5341_s9, %s6748_s9   ;;  %s4960_s8 = sphi %s6747_s8, %s358_s8   ;;  %s4956_s29 = sphi %s6746_s29, %s359_s29  }
  0x56   : >> { %v349_v2 = vld [vmem:[%s4960_s8 + $0x620] sm:$0xff]  ;;  %346 = vst [vmem:[%s4956_s29] sm:$0xff] %v345_v0  ;;  %348 = vst [vmem:[%s4956_s29 + $0x100] sm:$0xff] %v347_v1  ;;  %v351_v3 = vld [vmem:[%s4960_s8 + $0x930] sm:$0xff]  ;;  %p354_p2 = scmp.ge.s32.totalorder %s353_s6, %s5325_s23  ;;  %p338_p3 = scmp.ge.s32.totalorder %s339_s10, %s5325_s23 }
  0x57   : >> { %350 = vst [vmem:[%s4956_s29 + $0x200] sm:$0xff] %v349_v2  ;;  %352 = vst [vmem:[%s4956_s29 + $0x300] sm:$0xff] %v351_v3 }
  0x58   : >> { %s6774_s6 = smov (%p354_p2, %s353_s6), 0  ;;  %341 = sbr.rel (!%p338_p3) target bundleno = 85 (0x55), region = 246 }
  0x59   : >> { %s4151_s7 = sshll.u32 %s6774_s6, 3  ;;  %s6748_s9 = smov %s6774_s6 }
  0x5a   : >> { %s358_s8 = scalar_lea.vmem %s5329_s26, %s4151_s7   ;;  %s359_s29 = scalar_lea.vmem %s5332_s27, %s4151_s7 [#allocation2]  }
  0x5d PF: > { %362 = sbr.rel (%p173_p10) target bundleno = 159 (0x9f), region = 69  ;;  %s364_s11 = ssub.s32 (!%p173_p10), %s5136_s30, %s5142_s5 }
  0x5e   : > { %s368_s17 = sshrl.u32 (!%p173_p10), %s5136_s30, 3  ;;  %s5362_s18 = scalar_lea.vmem (!%p173_p10), %s5134_s28, %s364_s11 }
  0x5f   : > { %s5365_s21 = scalar_lea.vmem (!%p173_p10), %s5138_s4, %s364_s11 [#allocation2]  ;;  %s5369_s22 = sshrl.u32 (!%p173_p10), %s368_s17, 4 }
  0x60   : > { %p4153_p4 = scmp.le.s32.totalorder (!%p173_p10), %s5369_s22, 0 }
  0x62   : > { %4033 = sbr.rel (%p4153_p4) target bundleno = 136 (0x88), region = 251  ;;  %s6749_s23 = smov (!%p4153_p4), %s5138_s4 }
  0x63   : > { %s6750_s24 = smov (!%p4153_p4), %s5134_s28  ;;  %s5378_s25 = smov (!%p4153_p4), 0  }
  0x64   : > { %s5380_s26 = smov (!%p4153_p4), 0  }
  0x67 LB: >> { %v381_v4 = vld [vmem:[%s4976_s24] sm:$0xff]  ;;  %v383_v5 = vld [vmem:[%s4976_s24 + $0x8] sm:$0xff]  ;;  %v385_v6 = vld [vmem:[%s4976_s24 + $0x10] sm:$0xff]  ;;  %s509_s27 = sadd.s32 1, %s4980_s25  ;;  %s375_s26 = sadd.s32 1, %s4984_s26   ;;  %s4984_s26 = sphi %s5380_s26, %s375_s26   ;;  %s4980_s25 = sphi %s5378_s25, %s6753_s25   ;;  %s4976_s24 = sphi %s6750_s24, %s6752_s24   ;;  %s4972_s23 = sphi %s6749_s23, %s6751_s23  }
  0x68   : >> { %382 = vst [vmem:[%s4972_s23] sm:$0xff] %v381_v4  ;;  %384 = vst [vmem:[%s4972_s23 + $0x8] sm:$0xff] %v383_v5  ;;  %v387_v7 = vld [vmem:[%s4976_s24 + $0x18] sm:$0xff]  ;;  %v389_v8 = vld [vmem:[%s4976_s24 + $0x20] sm:$0xff]  ;;  %p510_p6 = scmp.ge.s32.totalorder %s509_s27, %s5369_s22  ;;  %p374_p7 = scmp.ge.s32.totalorder %s375_s26, %s5369_s22 }
  0x69   : >> { %386 = vst [vmem:[%s4972_s23 + $0x10] sm:$0xff] %v385_v6  ;;  %v391_v9 = vld [vmem:[%s4976_s24 + $0x28] sm:$0xff]  ;;  %388 = vst [vmem:[%s4972_s23 + $0x18] sm:$0xff] %v387_v7  ;;  %v393_v10 = vld [vmem:[%s4976_s24 + $0x30] sm:$0xff] }
  0x6a   : >> { %390 = vst [vmem:[%s4972_s23 + $0x20] sm:$0xff] %v389_v8  ;;  %392 = vst [vmem:[%s4972_s23 + $0x28] sm:$0xff] %v391_v9  ;;  %v395_v11 = vld [vmem:[%s4976_s24 + $0x38] sm:$0xff]  ;;  %v397_v12 = vld [vmem:[%s4976_s24 + $0x40] sm:$0xff]  ;;  %s6776_s27 = smov (%p510_p6, %s509_s27), 0 }
  0x6b   : >> { %394 = vst [vmem:[%s4972_s23 + $0x30] sm:$0xff] %v393_v10  ;;  %396 = vst [vmem:[%s4972_s23 + $0x38] sm:$0xff] %v395_v11  ;;  %v399_v13 = vld [vmem:[%s4976_s24 + $0x48] sm:$0xff]  ;;  %v401_v14 = vld [vmem:[%s4976_s24 + $0x50] sm:$0xff]  ;;  %s4154_s29 = sshll.u32 %s6776_s27, 7  ;;  %s6753_s25 = smov %s6776_s27 }
  0x6c   : >> { %398 = vst [vmem:[%s4972_s23 + $0x40] sm:$0xff] %v397_v12  ;;  %v403_v15 = vld [vmem:[%s4976_s24 + $0x58] sm:$0xff]  ;;  %400 = vst [vmem:[%s4972_s23 + $0x48] sm:$0xff] %v399_v13  ;;  %v405_v16 = vld [vmem:[%s4976_s24 + $0x60] sm:$0xff]  ;;  %s5436_s8 = scalar_lea.vmem %s5134_s28, %s4154_s29   ;;  %s5439_s9 = scalar_lea.vmem %s5138_s4, %s4154_s29 [#allocation2]  }
  0x6d   : >> { %402 = vst [vmem:[%s4972_s23 + $0x50] sm:$0xff] %v401_v14  ;;  %404 = vst [vmem:[%s4972_s23 + $0x58] sm:$0xff] %v403_v15  ;;  %v407_v17 = vld [vmem:[%s4976_s24 + $0x68] sm:$0xff]  ;;  %v409_v18 = vld [vmem:[%s4976_s24 + $0x70] sm:$0xff] }
  0x6e   : >> { %406 = vst [vmem:[%s4972_s23 + $0x60] sm:$0xff] %v405_v16  ;;  %408 = vst [vmem:[%s4972_s23 + $0x68] sm:$0xff] %v407_v17  ;;  %v411_v19 = vld [vmem:[%s4976_s24 + $0x78] sm:$0xff]  ;;  %v413_v20 = vld [vmem:[%s4976_s24 + $0x310] sm:$0xff] }
  0x6f   : >> { %410 = vst [vmem:[%s4972_s23 + $0x70] sm:$0xff] %v409_v18  ;;  %v415_v21 = vld [vmem:[%s4976_s24 + $0x318] sm:$0xff]  ;;  %412 = vst [vmem:[%s4972_s23 + $0x78] sm:$0xff] %v411_v19  ;;  %v417_v22 = vld [vmem:[%s4976_s24 + $0x320] sm:$0xff] }
  0x70   : >> { %414 = vst [vmem:[%s4972_s23 + $0x100] sm:$0xff] %v413_v20  ;;  %416 = vst [vmem:[%s4972_s23 + $0x108] sm:$0xff] %v415_v21  ;;  %v419_v23 = vld [vmem:[%s4976_s24 + $0x328] sm:$0xff]  ;;  %v421_v24 = vld [vmem:[%s4976_s24 + $0x330] sm:$0xff] }
  0x71   : >> { %418 = vst [vmem:[%s4972_s23 + $0x110] sm:$0xff] %v417_v22  ;;  %420 = vst [vmem:[%s4972_s23 + $0x118] sm:$0xff] %v419_v23  ;;  %v423_v25 = vld [vmem:[%s4976_s24 + $0x338] sm:$0xff]  ;;  %v425_v26 = vld [vmem:[%s4976_s24 + $0x340] sm:$0xff] }
  0x72   : >> { %422 = vst [vmem:[%s4972_s23 + $0x120] sm:$0xff] %v421_v24  ;;  %v427_v27 = vld [vmem:[%s4976_s24 + $0x348] sm:$0xff]  ;;  %424 = vst [vmem:[%s4972_s23 + $0x128] sm:$0xff] %v423_v25  ;;  %v429_v28 = vld [vmem:[%s4976_s24 + $0x350] sm:$0xff] }
  0x73   : >> { %426 = vst [vmem:[%s4972_s23 + $0x130] sm:$0xff] %v425_v26  ;;  %428 = vst [vmem:[%s4972_s23 + $0x138] sm:$0xff] %v427_v27  ;;  %v431_v29 = vld [vmem:[%s4976_s24 + $0x358] sm:$0xff]  ;;  %v433_v30 = vld [vmem:[%s4976_s24 + $0x360] sm:$0xff] }
  0x74   : >> { %430 = vst [vmem:[%s4972_s23 + $0x140] sm:$0xff] %v429_v28  ;;  %432 = vst [vmem:[%s4972_s23 + $0x148] sm:$0xff] %v431_v29  ;;  %v435_v31 = vld [vmem:[%s4976_s24 + $0x368] sm:$0xff]  ;;  %v437_v32 = vld [vmem:[%s4976_s24 + $0x370] sm:$0xff] }
  0x75   : >> { %434 = vst [vmem:[%s4972_s23 + $0x150] sm:$0xff] %v433_v30  ;;  %v439_v33 = vld [vmem:[%s4976_s24 + $0x378] sm:$0xff]  ;;  %436 = vst [vmem:[%s4972_s23 + $0x158] sm:$0xff] %v435_v31  ;;  %v441_v34 = vld [vmem:[%s4976_s24 + $0x380] sm:$0xff] }
  0x76   : >> { %438 = vst [vmem:[%s4972_s23 + $0x160] sm:$0xff] %v437_v32  ;;  %440 = vst [vmem:[%s4972_s23 + $0x168] sm:$0xff] %v439_v33  ;;  %v443_v35 = vld [vmem:[%s4976_s24 + $0x388] sm:$0xff]  ;;  %v445_v36 = vld [vmem:[%s4976_s24 + $0x620] sm:$0xff] }
  0x77   : >> { %442 = vst [vmem:[%s4972_s23 + $0x170] sm:$0xff] %v441_v34  ;;  %444 = vst [vmem:[%s4972_s23 + $0x178] sm:$0xff] %v443_v35  ;;  %v447_v37 = vld [vmem:[%s4976_s24 + $0x628] sm:$0xff]  ;;  %v449_v38 = vld [vmem:[%s4976_s24 + $0x630] sm:$0xff] }
  0x78   : >> { %446 = vst [vmem:[%s4972_s23 + $0x200] sm:$0xff] %v445_v36  ;;  %v451_v39 = vld [vmem:[%s4976_s24 + $0x638] sm:$0xff]  ;;  %448 = vst [vmem:[%s4972_s23 + $0x208] sm:$0xff] %v447_v37  ;;  %v453_v40 = vld [vmem:[%s4976_s24 + $0x640] sm:$0xff] }
  0x79   : >> { %450 = vst [vmem:[%s4972_s23 + $0x210] sm:$0xff] %v449_v38  ;;  %452 = vst [vmem:[%s4972_s23 + $0x218] sm:$0xff] %v451_v39  ;;  %v455_v41 = vld [vmem:[%s4976_s24 + $0x648] sm:$0xff]  ;;  %v457_v42 = vld [vmem:[%s4976_s24 + $0x650] sm:$0xff] }
  0x7a   : >> { %454 = vst [vmem:[%s4972_s23 + $0x220] sm:$0xff] %v453_v40  ;;  %456 = vst [vmem:[%s4972_s23 + $0x228] sm:$0xff] %v455_v41  ;;  %v459_v43 = vld [vmem:[%s4976_s24 + $0x658] sm:$0xff]  ;;  %v461_v44 = vld [vmem:[%s4976_s24 + $0x660] sm:$0xff] }
  0x7b   : >> { %458 = vst [vmem:[%s4972_s23 + $0x230] sm:$0xff] %v457_v42  ;;  %v463_v45 = vld [vmem:[%s4976_s24 + $0x668] sm:$0xff]  ;;  %460 = vst [vmem:[%s4972_s23 + $0x238] sm:$0xff] %v459_v43  ;;  %v465_v46 = vld [vmem:[%s4976_s24 + $0x670] sm:$0xff] }
  0x7c   : >> { %462 = vst [vmem:[%s4972_s23 + $0x240] sm:$0xff] %v461_v44  ;;  %464 = vst [vmem:[%s4972_s23 + $0x248] sm:$0xff] %v463_v45  ;;  %v467_v47 = vld [vmem:[%s4976_s24 + $0x678] sm:$0xff]  ;;  %v469_v48 = vld [vmem:[%s4976_s24 + $0x680] sm:$0xff] }
  0x7d   : >> { %466 = vst [vmem:[%s4972_s23 + $0x250] sm:$0xff] %v465_v46  ;;  %468 = vst [vmem:[%s4972_s23 + $0x258] sm:$0xff] %v467_v47  ;;  %v471_v49 = vld [vmem:[%s4976_s24 + $0x688] sm:$0xff]  ;;  %v473_v50 = vld [vmem:[%s4976_s24 + $0x690] sm:$0xff] }
  0x7e   : >> { %470 = vst [vmem:[%s4972_s23 + $0x260] sm:$0xff] %v469_v48  ;;  %v475_v51 = vld [vmem:[%s4976_s24 + $0x698] sm:$0xff]  ;;  %472 = vst [vmem:[%s4972_s23 + $0x268] sm:$0xff] %v471_v49  ;;  %v477_v52 = vld [vmem:[%s4976_s24 + $0x930] sm:$0xff] }
  0x7f   : >> { %474 = vst [vmem:[%s4972_s23 + $0x270] sm:$0xff] %v473_v50  ;;  %476 = vst [vmem:[%s4972_s23 + $0x278] sm:$0xff] %v475_v51  ;;  %v479_v53 = vld [vmem:[%s4976_s24 + $0x938] sm:$0xff]  ;;  %v481_v54 = vld [vmem:[%s4976_s24 + $0x940] sm:$0xff] }
  0x80   : >> { %478 = vst [vmem:[%s4972_s23 + $0x300] sm:$0xff] %v477_v52  ;;  %480 = vst [vmem:[%s4972_s23 + $0x308] sm:$0xff] %v479_v53  ;;  %v483_v55 = vld [vmem:[%s4976_s24 + $0x948] sm:$0xff]  ;;  %v485_v56 = vld [vmem:[%s4976_s24 + $0x950] sm:$0xff] }
  0x81   : >> { %482 = vst [vmem:[%s4972_s23 + $0x310] sm:$0xff] %v481_v54  ;;  %v487_v57 = vld [vmem:[%s4976_s24 + $0x958] sm:$0xff]  ;;  %484 = vst [vmem:[%s4972_s23 + $0x318] sm:$0xff] %v483_v55  ;;  %v489_v58 = vld [vmem:[%s4976_s24 + $0x960] sm:$0xff] }
  0x82   : >> { %486 = vst [vmem:[%s4972_s23 + $0x320] sm:$0xff] %v485_v56  ;;  %488 = vst [vmem:[%s4972_s23 + $0x328] sm:$0xff] %v487_v57  ;;  %v491_v59 = vld [vmem:[%s4976_s24 + $0x968] sm:$0xff]  ;;  %v493_v60 = vld [vmem:[%s4976_s24 + $0x970] sm:$0xff] }
  0x83   : >> { %490 = vst [vmem:[%s4972_s23 + $0x330] sm:$0xff] %v489_v58  ;;  %492 = vst [vmem:[%s4972_s23 + $0x338] sm:$0xff] %v491_v59  ;;  %v495_v61 = vld [vmem:[%s4976_s24 + $0x978] sm:$0xff]  ;;  %v497_v62 = vld [vmem:[%s4976_s24 + $0x980] sm:$0xff]  ;;  %377 = sbr.rel (!%p374_p7) target bundleno = 103 (0x67), region = 257 }
  0x84   : >> { %494 = vst [vmem:[%s4972_s23 + $0x340] sm:$0xff] %v493_v60  ;;  %v499_v63 = vld [vmem:[%s4976_s24 + $0x988] sm:$0xff]  ;;  %496 = vst [vmem:[%s4972_s23 + $0x348] sm:$0xff] %v495_v61  ;;  %v501_v0 = vld [vmem:[%s4976_s24 + $0x990] sm:$0xff] }
  0x85   : >> { %498 = vst [vmem:[%s4972_s23 + $0x350] sm:$0xff] %v497_v62  ;;  %500 = vst [vmem:[%s4972_s23 + $0x358] sm:$0xff] %v499_v63  ;;  %v503_v1 = vld [vmem:[%s4976_s24 + $0x998] sm:$0xff]  ;;  %v505_v2 = vld [vmem:[%s4976_s24 + $0x9a0] sm:$0xff] }
  0x86   : >> { %502 = vst [vmem:[%s4972_s23 + $0x360] sm:$0xff] %v501_v0  ;;  %504 = vst [vmem:[%s4972_s23 + $0x368] sm:$0xff] %v503_v1  ;;  %v507_v3 = vld [vmem:[%s4976_s24 + $0x9a8] sm:$0xff]  ;;  %s6752_s24 = smov %s5436_s8 }
  0x87   : >> { %506 = vst [vmem:[%s4972_s23 + $0x370] sm:$0xff] %v505_v2  ;;  %508 = vst [vmem:[%s4972_s23 + $0x378] sm:$0xff] %v507_v3  ;;  %s6751_s23 = smov %s5439_s9 }
  0x88 PF: > { %s5545_s10 = sand.u32 15, %s368_s17   ;;  %s4427_s6 = sshll.u32 %s5369_s22, 11 }
  0x89   : > { %s520_s7 = sshra.s32 %s4427_s6, 4  ;;  %p4159_p8 = scmp.le.s32.totalorder %s5545_s10, 0 }
  0x8a   : > { %s5549_s11 = scalar_lea.vmem %s5134_s28, %s520_s7   ;;  %s5552_s29 = scalar_lea.vmem %s5138_s4, %s520_s7 [#allocation2]  }
  0x8b   : > { %4047 = sbr.rel (%p4159_p8) target bundleno = 152 (0x98), region = 262  ;;  %s6754_s23 = smov (!%p4159_p8), %s5552_s29 }
  0x8c   : > { %s6755_s24 = smov (!%p4159_p8), %s5549_s11  ;;  %s4994_s25 = smov (!%p4159_p8), 0  }
  0x8d   : > { %s4998_s26 = smov (!%p4159_p8), 0  }
  0x90 LB: >> { %v536_v4 = vld [vmem:[%s4992_s24] sm:$0xff]  ;;  %v538_v5 = vld [vmem:[%s4992_s24 + $0x310] sm:$0xff]  ;;  %s544_s17 = sadd.s32 1, %s4996_s25  ;;  %s530_s26 = sadd.s32 1, %s5000_s26   ;;  %s5000_s26 = sphi %s4998_s26, %s530_s26   ;;  %s4996_s25 = sphi %s4994_s25, %s4995_s25   ;;  %s4992_s24 = sphi %s6755_s24, %s549_s24   ;;  %s4988_s23 = sphi %s6754_s23, %s550_s23  }
  0x91   : >> { %v540_v6 = vld [vmem:[%s4992_s24 + $0x620] sm:$0xff]  ;;  %537 = vst [vmem:[%s4988_s23] sm:$0xff] %v536_v4  ;;  %539 = vst [vmem:[%s4988_s23 + $0x100] sm:$0xff] %v538_v5  ;;  %v542_v7 = vld [vmem:[%s4992_s24 + $0x930] sm:$0xff]  ;;  %p545_p9 = scmp.ge.s32.totalorder %s544_s17, %s5545_s10  ;;  %p529_p10 = scmp.ge.s32.totalorder %s530_s26, %s5545_s10 }
  0x92   : >> { %541 = vst [vmem:[%s4988_s23 + $0x200] sm:$0xff] %v540_v6  ;;  %543 = vst [vmem:[%s4988_s23 + $0x300] sm:$0xff] %v542_v7 }
  0x93   : >> { %s6778_s17 = smov (%p545_p9, %s544_s17), 0  ;;  %532 = sbr.rel (!%p529_p10) target bundleno = 144 (0x90), region = 268 }
  0x94   : >> { %s4160_s22 = sshll.u32 %s6778_s17, 3  ;;  %s4995_s25 = smov %s6778_s17  }
  0x95   : >> { %s549_s24 = scalar_lea.vmem %s5549_s11, %s4160_s22   ;;  %s550_s23 = scalar_lea.vmem %s5552_s29, %s4160_s22 [#allocation2]  }
  0x98 PF: > { %s5066_s27 = smov 1  }
  0x99   : > { %s551_s8 = sshll.u32 %s5066_s27, %s5142_s5 }
  0x9a   : > { %s4162_s9 = sadd.s32 4294967295, %s551_s8 }
  0x9b   : > { %v561_v8 = vld [vmem:[%s5362_s18] sm:%s4162_s9]  ;;  %v563_v9 = vld [vmem:[%s5362_s18 + $0x310] sm:%s4162_s9] }
  0x9c   : > { %562 = vst [vmem:[%s5365_s21] sm:%s4162_s9] %v561_v8  ;;  %564 = vst [vmem:[%s5365_s21 + $0x100] sm:%s4162_s9] %v563_v9 }
  0x9d   : > { %v565_v10 = vld [vmem:[%s5362_s18 + $0x620] sm:%s4162_s9]  ;;  %v567_v11 = vld [vmem:[%s5362_s18 + $0x930] sm:%s4162_s9] }
  0x9e   : > { %566 = vst [vmem:[%s5365_s21 + $0x200] sm:%s4162_s9] %v565_v10  ;;  %568 = vst [vmem:[%s5365_s21 + $0x300] sm:%s4162_s9] %v567_v11 }
  0x9f PF: > { %p4163_p11 = scmp.ge.u32.totalorder %s5136_s30, 8 }
  0xa0   : > { %s5067_s10 = smov (!%p4163_p11), 1  }
  0xa1   : > { %153 = sbr.rel (%p4163_p11) target bundleno = 170 (0xaa), region = 40  ;;  %s154_s5 = sshll.u32 (!%p4163_p11), %s5067_s10, %s5136_s30 }
  0xa2   : > { %s4164_s6 = sadd.s32 (!%p4163_p11), 4294967295, %s154_s5 }
  0xa6   : > { %v164_v12 = vld [vmem:[%s5134_s28] sm:%s4164_s6]  ;;  %v166_v13 = vld [vmem:[%s5134_s28 + $0x310] sm:%s4164_s6] }
  0xa7   : > { %165 = vst [vmem:[%s5138_s4] sm:%s4164_s6] %v164_v12  ;;  %167 = vst [vmem:[%s5138_s4 + $0x100] sm:%s4164_s6] %v166_v13 }
  0xa8   : > { %v168_v14 = vld [vmem:[%s5134_s28 + $0x620] sm:%s4164_s6]  ;;  %v170_v15 = vld [vmem:[%s5134_s28 + $0x930] sm:%s4164_s6] }
  0xa9   : > { %169 = vst [vmem:[%s5138_s4 + $0x200] sm:%s4164_s6] %v168_v14  ;;  %171 = vst [vmem:[%s5138_s4 + $0x300] sm:%s4164_s6] %v170_v15 }
  0xaa PF: > { %p4165_p12 = scmp.ge.s32.totalorder %s4936_s14, 1  ;;  %p571_p13 = scmp.lt.s32.totalorder %s4936_s14, 5 }
  0xac   : > { %p572_p0 = pnand %p4165_p12, %p571_p13 }
  0xad   : > { %s578_s30 = sand.u32 (!%p572_p0), 1, %s4928_s12  }
  0xae   : > { %575 = sbr.rel (%p572_p0) target bundleno = 669 (0x29d), region = 94  ;;  %s4166_s18 = sshll.u32 (!%p572_p0), %s578_s30, 10 }
  0xaf   : > { %s5604_s7 = scalar_lea.vmem (!%p572_p0), [#allocation2], %s4166_s18  ;;  %s4167_s23 = sshll.u32 (!%p572_p0), %s578_s30, 9 }
  0xb0   : > { %s6120_s12 = scalar_lea.vmem (!%p572_p0), [#allocation3], %s4167_s23  }
  0xb3   : > { %vm1338_vm0 = vcmask 1044480   ;;  %vm1339_vm1 = vcmask 1045504   ;;  %v5068_v16 = vmov 65535   ;;  %v5069_v18 = vmov 0   ;;  %v741_v19 = vld [vmem:[%s6738_s2] sm:$0xff]  ;;  %v742_v20 = vld [vmem:[%s6738_s2 + $0x8] sm:$0xff] }
  0xb4   : > { %v1340_v17 = vsel %vm1338_vm0, 4294967295, %v5068_v16  ;;  %1566 = vmatprep.mubr.bf16.mxu0 %v5069_v18  ;;  %1609 = vmatprep.mubr.bf16.mxu1 %v5069_v18  ;;  %v677_v21 = vld [vmem:[%s5604_s7 + $0x200] sm:$0xff]  ;;  %v678_v24 = vld [vmem:[%s5604_s7 + $0x208] sm:$0xff]  ;;  %v679_v34 = vld [vmem:[%s5604_s7 + $0x210] sm:$0xff]  ;;  %vm1334_vm2 = vcmask 220160   ;;  %s4394_s24 = sshll.u32 (%p5123_p5), %s5108_s15, 6 }
  0xb5   : > { %4784 = vset.pattern.permute.xlu0 %v5069_v18  ;;  %v709_v22 = vld [vmem:[%s5604_s7 + $0x300] sm:$0x33]  ;;  %v5608_v23 = vsel %vm1339_vm1, %v1340_v17, 0  ;;  %v710_v26 = vld [vmem:[%s5604_s7 + $0x308] sm:$0x33]  ;;  %v680_v39 = vld [vmem:[%s5604_s7 + $0x218] sm:$0xff] }
  0xb6   : > { %745 = vperm.xlu0 %4784, %v741_v19   ;;  %v4234_v25 = vcombine.high %v677_v21, %v709_v22  ;;  %v4233_v27 = vcombine.low %v677_v21, %v709_v22  ;;  %v613_v28 = vld [vmem:[%s5604_s7] sm:$0xff]  ;;  %v4236_v30 = vcombine.high %v678_v24, %v710_v26  ;;  %v4235_v31 = vcombine.low %v678_v24, %v710_v26  ;;  %v614_v32 = vld [vmem:[%s5604_s7 + $0x8] sm:$0xff]  ;;  %v711_v38 = vld [vmem:[%s5604_s7 + $0x310] sm:$0x33]  ;;  %s4493_s25 = sshll.u32 (%p5123_p5), %s5108_s15, 8  ;;  %s3494_s26 = ssub.s32 (%p5123_p5), 196, %s4394_s24 }
  0xb7   : > { %v645_v29 = vld [vmem:[%s5604_s7 + $0x100] sm:$0xff]  ;;  %v646_v33 = vld [vmem:[%s5604_s7 + $0x108] sm:$0xff]  ;;  %v712_v40 = vld [vmem:[%s5604_s7 + $0x318] sm:$0x33]  ;;  %v4238_v44 = vcombine.high %v679_v34, %v711_v38  ;;  %v4237_v47 = vcombine.low %v679_v34, %v711_v38  ;;  %s6313_s27 = scalar_lea.vmem (%p5123_p5), %s6739_s3, %s4493_s25   ;;  %p3495_p1 = scmp.lt.s32.totalorder (%p5123_p5), %s3494_s26, 64 }
  0xb8   : > { %v1346_v35 = vand.u32 %v4234_v25, %v5608_v23  ;;  %v1343_v36 = vand.u32 %v4233_v27, %v5608_v23  ;;  %v4170_v37 = vcombine.high %v613_v28, %v645_v29  ;;  %v1352_v41 = vand.u32 %v4236_v30, %v5608_v23  ;;  %v5627_v49 = vld [vmem:[%s6736_s0] sm:$0xff]   ;;  %v615_v52 = vld [vmem:[%s5604_s7 + $0x10] sm:$0xff]  ;;  %v616_v55 = vld [vmem:[%s5604_s7 + $0x18] sm:$0xff] }
  0xb9   : > { %v1349_v42 = vand.u32 %v4235_v31, %v5608_v23  ;;  %v4172_v43 = vcombine.high %v614_v32, %v646_v33  ;;  %v4240_v45 = vcombine.high %v680_v39, %v712_v40  ;;  %v4169_v46 = vcombine.low %v613_v28, %v645_v29  ;;  %v647_v53 = vld [vmem:[%s5604_s7 + $0x110] sm:$0xff]  ;;  %v681_v56 = vld [vmem:[%s5604_s7 + $0x220] sm:$0xff]  ;;  %v648_v58 = vld [vmem:[%s5604_s7 + $0x118] sm:$0xff] }
  0xba   : > { %750 = vperm.xlu0 %4784, %v742_v20   ;;  %1546 = vmatprep.subr.bf16.mxu0 %v1346_v35  ;;  %v4171_v48 = vcombine.low %v614_v32, %v646_v33  ;;  %v1358_v50 = vand.u32 %v4238_v44, %v5608_v23  ;;  %v4239_v51 = vcombine.low %v680_v39, %v712_v40  ;;  %v713_v57 = vld [vmem:[%s5604_s7 + $0x320] sm:$0x33]  ;;  %v682_v59 = vld [vmem:[%s5604_s7 + $0x228] sm:$0xff]  ;;  %v683_v12 = vld [vmem:[%s5604_s7 + $0x230] sm:$0xff] }
  0xbb   : > { %1589 = vmatprep.subr.bf16.mxu1 %v1352_v41  ;;  %1547 = vmatpush1.bf16.msra.mxu0 %v1343_v36  ;;  %v1364_v54 = vand.u32 %v4240_v45, %v5608_v23  ;;  %v714_v60 = vld [vmem:[%s5604_s7 + $0x328] sm:$0x33]  ;;  %v1355_v61 = vand.u32 %v4237_v47, %v5608_v23  ;;  %v4174_v63 = vcombine.high %v615_v52, %v647_v53  ;;  %v617_v8 = vld [vmem:[%s5604_s7 + $0x20] sm:$0xff]  ;;  %v715_v13 = vld [vmem:[%s5604_s7 + $0x330] sm:$0x33] }
  0xbc   : > { %1590 = vmatpush1.bf16.msra.mxu1 %v1349_v42  ;;  %1548 = vmatprep.subr.bf16.mxu0 %v4170_v37  ;;  %v1361_v62 = vand.u32 %v4239_v51, %v5608_v23  ;;  %v4242_v0 = vcombine.high %v681_v56, %v713_v57  ;;  %v4176_v1 = vcombine.high %v616_v55, %v648_v58  ;;  %v649_v9 = vld [vmem:[%s5604_s7 + $0x120] sm:$0xff]  ;;  %v618_v11 = vld [vmem:[%s5604_s7 + $0x28] sm:$0xff]  ;;  %v684_v15 = vld [vmem:[%s5604_s7 + $0x238] sm:$0xff] }
  0xbd   : > { %1591 = vmatprep.subr.bf16.mxu1 %v4172_v43  ;;  %v4244_v2 = vcombine.high %v682_v59, %v714_v60  ;;  %v4173_v3 = vcombine.low %v615_v52, %v647_v53  ;;  %v4241_v4 = vcombine.low %v681_v56, %v713_v57  ;;  %v4175_v5 = vcombine.low %v616_v55, %v648_v58  ;;  %v650_v14 = vld [vmem:[%s5604_s7 + $0x128] sm:$0xff]  ;;  %v716_v16 = vld [vmem:[%s5604_s7 + $0x338] sm:$0x33]  ;;  %v685_v27 = vld [vmem:[%s5604_s7 + $0x240] sm:$0xff] }
  0xbe   : > { %v1370_v6 = vand.u32 %v4242_v0, %v5608_v23  ;;  %v4243_v7 = vcombine.low %v682_v59, %v714_v60  ;;  %v4178_v20 = vcombine.high %v617_v8, %v649_v9  ;;  %v4246_v21 = vcombine.high %v683_v12, %v715_v13  ;;  %v717_v28 = vld [vmem:[%s5604_s7 + $0x340] sm:$0x33]  ;;  %v686_v32 = vld [vmem:[%s5604_s7 + $0x248] sm:$0xff]  ;;  %v5671_v35 = vld [vmem:[%s5604_s7 + $0x30] sm:$0xff] }
  0xbf   : > { %1549 = vmatpush1.bf16.msra.mxu0 %v4169_v46  ;;  %v1376_v10 = vand.u32 %v4244_v2, %v5608_v23  ;;  %v1367_v17 = vand.u32 %v4241_v4, %v5608_v23  ;;  %v4180_v22 = vcombine.high %v618_v11, %v650_v14  ;;  %v4248_v24 = vcombine.high %v684_v15, %v716_v16  ;;  %v718_v33 = vld [vmem:[%s5604_s7 + $0x348] sm:$0x33]  ;;  %v651_v36 = vld [vmem:[%s5604_s7 + $0x130] sm:$0xff]  ;;  %v5676_v37 = vld [vmem:[%s5604_s7 + $0x38] sm:$0xff] }
  0xc0   : > { %1592 = vmatpush1.bf16.msra.mxu1 %v4171_v48  ;;  %1632 = vmatprep.subr.bf16.mxu0 %v1358_v50  ;;  %v1373_v19 = vand.u32 %v4243_v7, %v5608_v23  ;;  %v4177_v25 = vcombine.low %v617_v8, %v649_v9  ;;  %v4245_v26 = vcombine.low %v683_v12, %v715_v13  ;;  %v5679_v38 = vld [vmem:[%s5604_s7 + $0x138] sm:$0xff]  ;;  %v5683_v44 = vld [vmem:[%s5604_s7 + $0x40] sm:$0xff]  ;;  %v5691_v48 = vld [vmem:[%s5604_s7 + $0x48] sm:$0xff] }
  0xc1   : > { %1675 = vmatprep.subr.bf16.mxu1 %v1364_v54  ;;  %v4179_v29 = vcombine.low %v618_v11, %v650_v14  ;;  %v1382_v30 = vand.u32 %v4246_v21, %v5608_v23  ;;  %v4247_v31 = vcombine.low %v684_v15, %v716_v16  ;;  %v1388_v34 = vand.u32 %v4248_v24, %v5608_v23  ;;  %v5686_v45 = vld [vmem:[%s5604_s7 + $0x140] sm:$0xff]  ;;  %v5697_v52 = vld [vmem:[%s5604_s7 + $0x148] sm:$0xff]  ;;  %v695_v53 = vld [vmem:[%s5604_s7 + $0x290] sm:$0xff] }
  0xc2   : > { %4297 = vmatmul.mubr.msk.bf16.vlgmr.msra.gmra.mxu0 %vm1334_vm2, %v5627_v49  ;;  %v4249_v39 = vcombine.low %v685_v27, %v717_v28  ;;  %v4250_v40 = vcombine.high %v685_v27, %v717_v28  ;;  %v1379_v41 = vand.u32 %v4245_v26, %v5608_v23  ;;  %v4251_v42 = vcombine.low %v686_v32, %v718_v33  ;;  %v727_v54 = vld [vmem:[%s5604_s7 + $0x390] sm:$0x33]  ;;  %v696_v60 = vld [vmem:[%s5604_s7 + $0x298] sm:$0xff]  ;;  %v697_v8 = vld [vmem:[%s5604_s7 + $0x2a0] sm:$0xff] }
  0xc3   : > { %4298 = vmatmul.mubr.msk.bf16.vlgmr.msra.gmra.mxu1 %vm1334_vm2, %v5627_v49  ;;  %1633 = vmatpush1.bf16.msra.mxu0 %v1355_v61  ;;  %v4252_v43 = vcombine.high %v686_v32, %v718_v33  ;;  %v1385_v46 = vand.u32 %v4247_v31, %v5608_v23  ;;  %v4182_v47 = vcombine.high %v5671_v35, %v651_v36  ;;  %v5710_v59 = vld [vmem:[%s5604_s7 + $0x250] sm:$0xff]  ;;  %v728_v61 = vld [vmem:[%s5604_s7 + $0x398] sm:$0x33]  ;;  %v729_v12 = vld [vmem:[%s5604_s7 + $0x3a0] sm:$0x33] }
  0xc4   : > { %1676 = vmatpush1.bf16.msra.mxu1 %v1361_v62  ;;  %1634 = vmatprep.subr.bf16.mxu0 %v4174_v63  ;;  %v4181_v50 = vcombine.low %v5671_v35, %v651_v36  ;;  %v4184_v51 = vcombine.high %v5676_v37, %v5679_v38  ;;  %v4183_v55 = vcombine.low %v5676_v37, %v5679_v38  ;;  %v5724_v2 = vld [vmem:[%s5604_s7 + $0x258] sm:$0xff]  ;;  %v698_v13 = vld [vmem:[%s5604_s7 + $0x2a8] sm:$0xff]  ;;  %v699_v31 = vld [vmem:[%s5604_s7 + $0x2b0] sm:$0xff] }
  0xc5   : > { %1677 = vmatprep.subr.bf16.mxu1 %v4176_v1  ;;  %1652 = vmatprep.mubr.bf16.mxu0 %v5069_v18  ;;  %v1394_v56 = vand.u32 %v4250_v40, %v5608_v23  ;;  %v1391_v57 = vand.u32 %v4249_v39, %v5608_v23  ;;  %v4185_v58 = vcombine.low %v5683_v44, %v5686_v45  ;;  %v5721_v1 = vld [vmem:[%s5604_s7 + $0x350] sm:$0x33]  ;;  %v730_v14 = vld [vmem:[%s5604_s7 + $0x3a8] sm:$0x33]  ;;  %v5755_v21 = vld [vmem:[%s5604_s7 + $0x158] sm:$0xff] }
  0xc6   : > { %1695 = vmatprep.mubr.bf16.mxu1 %v5069_v18  ;;  %v1400_v62 = vand.u32 %v4252_v43, %v5608_v23  ;;  %v1397_v63 = vand.u32 %v4251_v42, %v5608_v23  ;;  %v4186_v0 = vcombine.high %v5683_v44, %v5686_v45  ;;  %v4187_v4 = vcombine.low %v5691_v48, %v5697_v52  ;;  %v731_v32 = vld [vmem:[%s5604_s7 + $0x3b0] sm:$0x33]  ;;  %v700_v37 = vld [vmem:[%s5604_s7 + $0x2b8] sm:$0xff]  ;;  %v5796_v43 = vld [vmem:[%s5604_s7 + $0x260] sm:$0xff] }
  0xc7   : > { %1635 = vmatpush1.bf16.msra.mxu0 %v4173_v3  ;;  %v5727_v3 = vld [vmem:[%s5604_s7 + $0x358] sm:$0x33]  ;;  %v4269_v7 = vcombine.low %v695_v53, %v727_v54  ;;  %v4270_v9 = vcombine.high %v695_v53, %v727_v54  ;;  %v4272_v11 = vcombine.high %v696_v60, %v728_v61  ;;  %v4253_v15 = vcombine.low %v5710_v59, %v5721_v1  ;;  %v701_v53 = vld [vmem:[%s5604_s7 + $0x2c0] sm:$0xff] }
  0xc8   : > { %1678 = vmatpush1.bf16.msra.mxu1 %v4175_v5  ;;  %1718 = vmatprep.subr.bf16.mxu0 %v1370_v6  ;;  %v4188_v5 = vcombine.high %v5691_v48, %v5697_v52  ;;  %v5734_v6 = vld [vmem:[%s5604_s7 + $0x50] sm:$0xff]  ;;  %v4254_v16 = vcombine.high %v5710_v59, %v5721_v1  ;;  %v4256_v24 = vcombine.high %v5724_v2, %v5727_v3  ;;  %v732_v38 = vld [vmem:[%s5604_s7 + $0x3b8] sm:$0x33]  ;;  %v702_v59 = vld [vmem:[%s5604_s7 + $0x2c8] sm:$0xff] }
  0xc9   : > { %1761 = vmatprep.subr.bf16.mxu1 %v1376_v10  ;;  %v4271_v10 = vcombine.low %v696_v60, %v728_v61  ;;  %v5766_v26 = vand.u32 %v4272_v11, %v5608_v23  ;;  %v4273_v28 = vcombine.low %v697_v8, %v729_v12  ;;  %v4276_v36 = vcombine.high %v698_v13, %v730_v14  ;;  %v734_v60 = vld [vmem:[%s5604_s7 + $0x3c8] sm:$0x33] }
  0xca   : > { %4299 = vmatmul.mubr.msk.bf16.vlgmr.msra.gmra.mxu0 %vm1334_vm2, %v5627_v49  ;;  %v1406_v39 = vand.u32 %v4254_v16, %v5608_v23  ;;  %v1412_v54 = vand.u32 %v4256_v24, %v5608_v23  ;;  %v1403_v61 = vand.u32 %v4253_v15, %v5608_v23  ;;  %v5815_v1 = vld [vmem:[%s5604_s7 + $0x368] sm:$0x33]  ;;  %v4283_v11 = vcombine.low %v702_v59, %v734_v60  ;;  %v736_v15 = vld [vmem:[%s5604_s7 + $0x3d8] sm:$0x33] }
  0xcb   : > { %4300 = vmatmul.mubr.msk.bf16.vlgmr.msra.gmra.mxu1 %vm1334_vm2, %v5627_v49  ;;  %1719 = vmatpush1.bf16.msra.mxu0 %v1367_v17  ;;  %v4255_v17 = vcombine.low %v5724_v2, %v5727_v3  ;;  %v5769_v27 = vand.u32 %v4271_v10, %v5608_v23 }
  0xcc   : > { %1762 = vmatpush1.bf16.msra.mxu1 %v1373_v19  ;;  %1720 = vmatprep.subr.bf16.mxu0 %v4178_v20  ;;  %v5749_v19 = vld [vmem:[%s5604_s7 + $0x150] sm:$0xff]  ;;  %v5752_v20 = vld [vmem:[%s5604_s7 + $0x58] sm:$0xff]  ;;  %v5865_v24 = vand.u32 %v4283_v11, %v5608_v23 }
  0xcd   : > { %1763 = vmatprep.subr.bf16.mxu1 %v4180_v22  ;;  %1738 = vmatprep.mubr.bf16.mxu0 %v5069_v18  ;;  %v5758_v22 = vand.u32 %v4269_v7, %v5608_v23  ;;  %v4189_v33 = vcombine.low %v5734_v6, %v5749_v19  ;;  %v4191_v35 = vcombine.low %v5752_v20, %v5755_v21  ;;  %v708_v11 = vld [vmem:[%s5604_s7 + $0x2f8] sm:$0xff] }
  0xce   : > { %1781 = vmatprep.mubr.bf16.mxu1 %v5069_v18  ;;  %v1409_v2 = vand.u32 %v4255_v17, %v5608_v23  ;;  %v4192_v16 = vcombine.high %v5752_v20, %v5755_v21  ;;  %v5853_v17 = vld [vmem:[%s5604_s7 + $0x160] sm:$0xff] }
  0xcf   : > { %1721 = vmatpush1.bf16.msra.mxu0 %v4177_v25  ;;  %v5763_v25 = vand.u32 %v4270_v9, %v5608_v23 }
  0xd0   : > { %1764 = vmatpush1.bf16.msra.mxu1 %v4179_v29  ;;  %1804 = vmatprep.subr.bf16.mxu0 %v1382_v30  ;;  %v4274_v29 = vcombine.high %v697_v8, %v729_v12  ;;  %v4275_v30 = vcombine.low %v698_v13, %v730_v14  ;;  %v703_v8 = vld [vmem:[%s5604_s7 + $0x2d0] sm:$0xff]  ;;  %v4284_v12 = vcombine.high %v702_v59, %v734_v60  ;;  %v704_v14 = vld [vmem:[%s5604_s7 + $0x2d8] sm:$0xff] }
  0xd1   : > { %1847 = vmatprep.subr.bf16.mxu1 %v1388_v34  ;;  %v4190_v34 = vcombine.high %v5734_v6, %v5749_v19  ;;  %v735_v13 = vld [vmem:[%s5604_s7 + $0x3d0] sm:$0x33] }
  0xd2   : > { %4301 = vmatmul.mubr.msk.bf16.vlgmr.msra.gmra.mxu0 %vm1334_vm2, %v5627_v49  ;;  %v5785_v40 = vand.u32 %v4274_v29, %v5608_v23  ;;  %v5791_v42 = vand.u32 %v4275_v30, %v5608_v23  ;;  %v5859_v52 = vand.u32 %v4284_v12, %v5608_v23  ;;  %v5872_v29 = vld [vmem:[%s5604_s7 + $0x68] sm:$0xff]  ;;  %v740_v12 = vld [vmem:[%s5604_s7 + $0x3f8] sm:$0x33] }
  0xd3   : > { %4302 = vmatmul.mubr.msk.bf16.vlgmr.msra.gmra.mxu1 %vm1334_vm2, %v5627_v49  ;;  %1805 = vmatpush1.bf16.msra.mxu0 %v1379_v41  ;;  %v5788_v41 = vand.u32 %v4273_v28, %v5608_v23  ;;  %v5875_v30 = vld [vmem:[%s5604_s7 + $0x168] sm:$0xff] }
  0xd4   : > { %1848 = vmatpush1.bf16.msra.mxu1 %v1385_v46  ;;  %1806 = vmatprep.subr.bf16.mxu0 %v4182_v47  ;;  %v5799_v46 = vld [vmem:[%s5604_s7 + $0x360] sm:$0x33]  ;;  %v5802_v47 = vand.u32 %v4276_v36, %v5608_v23  ;;  %v4286_v36 = vcombine.high %v703_v8, %v735_v13  ;;  %v4195_v21 = vcombine.low %v5872_v29, %v5875_v30 }
  0xd5   : > { %1849 = vmatprep.subr.bf16.mxu1 %v4184_v51  ;;  %1824 = vmatprep.mubr.bf16.mxu0 %v5069_v18  ;;  %v4278_v51 = vcombine.high %v699_v31, %v731_v32  ;;  %v4258_v3 = vcombine.high %v5796_v43, %v5799_v46  ;;  %v4257_v44 = vcombine.low %v5796_v43, %v5799_v46 }
  0xd6   : > { %1867 = vmatprep.mubr.bf16.mxu1 %v5069_v18  ;;  %v4288_v46 = vcombine.high %v704_v14, %v736_v15 }
  0xd7   : > { %1807 = vmatpush1.bf16.msra.mxu0 %v4181_v50  ;;  %v4277_v50 = vcombine.low %v699_v31, %v731_v32  ;;  %v5878_v31 = vld [vmem:[%s5604_s7 + $0x270] sm:$0xff]  ;;  %v4285_v32 = vcombine.low %v703_v8, %v735_v13 }
  0xd8   : > { %1850 = vmatpush1.bf16.msra.mxu1 %v4183_v55  ;;  %1890 = vmatprep.subr.bf16.mxu0 %v1394_v56  ;;  %v4279_v55 = vcombine.low %v700_v37, %v732_v38  ;;  %v4280_v56 = vcombine.high %v700_v37, %v732_v38  ;;  %v4287_v37 = vcombine.low %v704_v14, %v736_v15  ;;  %v705_v38 = vld [vmem:[%s5604_s7 + $0x2e0] sm:$0xff] }
  0xd9   : > { %1933 = vmatprep.subr.bf16.mxu1 %v1400_v62  ;;  %v5812_v62 = vld [vmem:[%s5604_s7 + $0x268] sm:$0xff]  ;;  %v5905_v59 = vand.u32 %v4285_v32, %v5608_v23  ;;  %v4196_v14 = vcombine.high %v5872_v29, %v5875_v30  ;;  %v4295_v32 = vcombine.low %v708_v11, %v740_v12  ;;  %v627_v30 = vld [vmem:[%s5604_s7 + $0x70] sm:$0xff] }
  0xda   : > { %4303 = vmatmul.mubr.msk.bf16.vlgmr.msra.gmra.mxu0 %vm1334_vm2, %v5627_v49  ;;  %v5831_v7 = vand.u32 %v4279_v55, %v5608_v23  ;;  %v4260_v45 = vcombine.high %v5812_v62, %v5815_v1  ;;  %v4259_v28 = vcombine.low %v5812_v62, %v5815_v1  ;;  %v5896_v55 = vld [vmem:[%s5604_s7 + $0x278] sm:$0xff]  ;;  %v5908_v60 = vand.u32 %v4287_v37, %v5608_v23  ;;  %v707_v1 = vld [vmem:[%s5604_s7 + $0x2f0] sm:$0xff] }
  0xdb   : > { %4304 = vmatmul.mubr.msk.bf16.vlgmr.msra.gmra.mxu1 %vm1334_vm2, %v5627_v49  ;;  %1891 = vmatpush1.bf16.msra.mxu0 %v1391_v57  ;;  %v733_v57 = vld [vmem:[%s5604_s7 + $0x3c0] sm:$0x33]  ;;  %v5914_v62 = vand.u32 %v4288_v46, %v5608_v23 }
  0xdc   : > { %1934 = vmatpush1.bf16.msra.mxu1 %v1397_v63  ;;  %1892 = vmatprep.subr.bf16.mxu0 %v4186_v0  ;;  %v5818_v63 = vand.u32 %v4278_v51, %v5608_v23  ;;  %v5821_v0 = vand.u32 %v4277_v50, %v5608_v23  ;;  %v4281_v9 = vcombine.low %v701_v53, %v733_v57  ;;  %v737_v50 = vld [vmem:[%s5604_s7 + $0x3e0] sm:$0x33]  ;;  %v706_v51 = vld [vmem:[%s5604_s7 + $0x2e8] sm:$0xff] }
  0xdd   : > { %1935 = vmatprep.subr.bf16.mxu1 %v4188_v5  ;;  %1910 = vmatprep.mubr.bf16.mxu0 %v5069_v18  ;;  %v5828_v5 = vand.u32 %v4280_v56, %v5608_v23  ;;  %v4282_v10 = vcombine.high %v701_v53, %v733_v57  ;;  %v738_v53 = vld [vmem:[%s5604_s7 + $0x3e8] sm:$0x33]  ;;  %v5899_v56 = vld [vmem:[%s5604_s7 + $0x378] sm:$0x33]  ;;  %v5902_v57 = vand.u32 %v4286_v36, %v5608_v23 }
  0xde   : > { %1953 = vmatprep.mubr.bf16.mxu1 %v5069_v18  ;;  %v4291_v8 = vcombine.low %v706_v51, %v738_v53  ;;  %v1421_v13 = vand.u32 %v4259_v28, %v5608_v23  ;;  %v4296_v36 = vcombine.high %v708_v11, %v740_v12  ;;  %v4263_v29 = vcombine.low %v5896_v55, %v5899_v56 }
  0xdf   : > { %1893 = vmatpush1.bf16.msra.mxu0 %v4185_v58  ;;  %v5850_v58 = vld [vmem:[%s5604_s7 + $0x60] sm:$0xff]  ;;  %v5856_v48 = vand.u32 %v4282_v10, %v5608_v23  ;;  %v739_v10 = vld [vmem:[%s5604_s7 + $0x3f0] sm:$0x33] }
  0xe0   : > { %1936 = vmatpush1.bf16.msra.mxu1 %v4187_v4  ;;  %1976 = vmatprep.subr.bf16.mxu0 %v1406_v39  ;;  %v5862_v4 = vand.u32 %v4281_v9, %v5608_v23  ;;  %v1418_v39 = vand.u32 %v4258_v3, %v5608_v23  ;;  %v4194_v43 = vcombine.high %v5850_v58, %v5853_v17 }
  0xe1   : > { %2019 = vmatprep.subr.bf16.mxu1 %v1412_v54  ;;  %v5893_v54 = vld [vmem:[%s5604_s7 + $0x370] sm:$0x33]  ;;  %v4290_v3 = vcombine.high %v705_v38, %v737_v50  ;;  %v4292_v9 = vcombine.high %v706_v51, %v738_v53  ;;  %v4294_v28 = vcombine.high %v707_v1, %v739_v10  ;;  %v4193_v20 = vcombine.low %v5850_v58, %v5853_v17  ;;  %v693_v51 = vld [vmem:[%s5604_s7 + $0x280] sm:$0xff] }
  0xe2   : > { %4305 = vmatmul.mubr.msk.bf16.vlgmr.msra.gmra.mxu0 %vm1334_vm2, %v5627_v49  ;;  %v4262_v15 = vcombine.high %v5878_v31, %v5893_v54  ;;  %v5963_v58 = vand.u32 %v4295_v32, %v5608_v23  ;;  %v725_v53 = vld [vmem:[%s5604_s7 + $0x380] sm:$0x33] }
  0xe3   : > { %4306 = vmatmul.mubr.msk.bf16.vlgmr.msra.gmra.mxu1 %vm1334_vm2, %v5627_v49  ;;  %1977 = vmatpush1.bf16.msra.mxu0 %v1403_v61  ;;  %v1415_v61 = vand.u32 %v4257_v44, %v5608_v23  ;;  %v5935_v44 = vand.u32 %v4290_v3, %v5608_v23  ;;  %v5938_v6 = vand.u32 %v4292_v9, %v5608_v23 }
  0xe4   : > { %2020 = vmatpush1.bf16.msra.mxu1 %v1409_v2  ;;  %1978 = vmatprep.subr.bf16.mxu0 %v4190_v34  ;;  %v1424_v34 = vand.u32 %v4260_v45, %v5608_v23  ;;  %v4289_v2 = vcombine.low %v705_v38, %v737_v50  ;;  %v4293_v45 = vcombine.low %v707_v1, %v739_v10  ;;  %v628_v50 = vld [vmem:[%s5604_s7 + $0x78] sm:$0xff] }
  0xe5   : > { %2021 = vmatprep.subr.bf16.mxu1 %v4192_v16  ;;  %1996 = vmatprep.mubr.bf16.mxu0 %v5069_v18  ;;  %v4264_v16 = vcombine.high %v5896_v55, %v5899_v56  ;;  %v5957_v37 = vand.u32 %v4294_v28, %v5608_v23  ;;  %v1430_v17 = vand.u32 %v4262_v15, %v5608_v23  ;;  %v661_v15 = vld [vmem:[%s5604_s7 + $0x180] sm:$0xff] }
  0xe6   : > { %2039 = vmatprep.mubr.bf16.mxu1 %v5069_v18  ;;  %v5941_v19 = vand.u32 %v4289_v2, %v5608_v23  ;;  %v5960_v38 = vand.u32 %v4293_v45, %v5608_v23  ;;  %v1433_v56 = vand.u32 %v4263_v29, %v5608_v23  ;;  %v4266_v1 = vcombine.high %v693_v51, %v725_v53  ;;  %v662_v45 = vld [vmem:[%s5604_s7 + $0x188] sm:$0xff]  ;;  %v632_v29 = vld [vmem:[%s5604_s7 + $0x98] sm:$0xff] }
  0xe7   : > { %1979 = vmatpush1.bf16.msra.mxu0 %v4189_v33  ;;  %v5944_v33 = vand.u32 %v4291_v8, %v5608_v23  ;;  %v1436_v46 = vand.u32 %v4264_v16, %v5608_v23  ;;  %v4265_v9 = vcombine.low %v693_v51, %v725_v53  ;;  %v630_v16 = vld [vmem:[%s5604_s7 + $0x88] sm:$0xff]  ;;  %v665_v53 = vld [vmem:[%s5604_s7 + $0x1a0] sm:$0xff] }
  0xe8   : > { %2022 = vmatpush1.bf16.msra.mxu1 %v4191_v35  ;;  %2062 = vmatprep.subr.bf16.mxu0 %v1418_v39  ;;  %v4261_v35 = vcombine.low %v5878_v31, %v5893_v54  ;;  %v659_v31 = vld [vmem:[%s5604_s7 + $0x170] sm:$0xff]  ;;  %v5971_v39 = vand.u32 %v4296_v36, %v5608_v23  ;;  %v694_v54 = vld [vmem:[%s5604_s7 + $0x288] sm:$0xff]  ;;  %v1442_v11 = vand.u32 %v4266_v1, %v5608_v23 }
  0xe9   : > { %2105 = vmatprep.subr.bf16.mxu1 %v1424_v34  ;;  %v726_v34 = vld [vmem:[%s5604_s7 + $0x388] sm:$0x33]  ;;  %v4197_v8 = vcombine.low %v627_v30, %v659_v31  ;;  %v1439_v28 = vand.u32 %v4265_v9, %v5608_v23  ;;  %v4203_v36 = vcombine.low %v630_v16, %v662_v45 }
  0xea   : > { %4307 = vmatmul.mubr.msk.bf16.vlgmr.msra.gmra.mxu0 %vm1334_vm2, %v5627_v49  ;;  %v1427_v55 = vand.u32 %v4261_v35, %v5608_v23  ;;  %v4268_v3 = vcombine.high %v694_v54, %v726_v34  ;;  %v4267_v12 = vcombine.low %v694_v54, %v726_v34 }
  0xeb   : > { %4308 = vmatmul.mubr.msk.bf16.vlgmr.msra.gmra.mxu1 %vm1334_vm2, %v5627_v49  ;;  %2063 = vmatpush1.bf16.msra.mxu0 %v1415_v61  ;;  %v4198_v61 = vcombine.high %v627_v30, %v659_v31  ;;  %v664_v30 = vld [vmem:[%s5604_s7 + $0x198] sm:$0xff] }
  0xec   : > { %2106 = vmatpush1.bf16.msra.mxu1 %v1421_v13  ;;  %2064 = vmatprep.subr.bf16.mxu0 %v4194_v43  ;;  %v660_v43 = vld [vmem:[%s5604_s7 + $0x178] sm:$0xff]  ;;  %v1448_v13 = vand.u32 %v4268_v3, %v5608_v23  ;;  %v1445_v32 = vand.u32 %v4267_v12, %v5608_v23  ;;  %v631_v23 = vld [vmem:[%s5604_s7 + $0x90] sm:$0xff]  ;;  %v4207_v51 = vcombine.low %v632_v29, %v664_v30  ;;  %v670_v3 = vld [vmem:[%s5604_s7 + $0x1c8] sm:$0xff] }
  0xed   : > { %2107 = vmatprep.subr.bf16.mxu1 %v4196_v14  ;;  %2082 = vmatprep.mubr.bf16.mxu0 %v5069_v18  ;;  %v4200_v2 = vcombine.high %v628_v50, %v660_v43  ;;  %v4199_v10 = vcombine.low %v628_v50, %v660_v43  ;;  %v629_v14 = vld [vmem:[%s5604_s7 + $0x80] sm:$0xff]  ;;  %v666_v43 = vld [vmem:[%s5604_s7 + $0x1a8] sm:$0xff] }
  0xee   : > { %2125 = vmatprep.mubr.bf16.mxu1 %v5069_v18  ;;  %v4201_v35 = vcombine.low %v629_v14, %v661_v15 }
  0xef   : > { %2065 = vmatpush1.bf16.msra.mxu0 %v4193_v20  ;;  %v4202_v20 = vcombine.high %v629_v14, %v661_v15  ;;  %v673_v14 = vld [vmem:[%s5604_s7 + $0x1e0] sm:$0xff]  ;;  %v674_v15 = vld [vmem:[%s5604_s7 + $0x1e8] sm:$0xff] }
  0xf0   : > { %2108 = vmatpush1.bf16.msra.mxu1 %v4195_v21  ;;  %2148 = vmatprep.subr.bf16.mxu0 %v1430_v17  ;;  %v4204_v21 = vcombine.high %v630_v16, %v662_v45  ;;  %v663_v17 = vld [vmem:[%s5604_s7 + $0x190] sm:$0xff] }
  0xf1   : > { %2191 = vmatprep.subr.bf16.mxu1 %v1436_v46  ;;  %v4206_v31 = vcombine.high %v631_v23, %v663_v17  ;;  %v4208_v46 = vcombine.high %v632_v29, %v664_v30  ;;  %v4205_v50 = vcombine.low %v631_v23, %v663_v17 }
  0xf2   : > { %4309 = vmatmul.mubr.msk.bf16.vlgmr.msra.gmra.mxu0 %vm1334_vm2, %v5627_v49 }
  0xf3   : > { %4310 = vmatmul.mubr.msk.bf16.vlgmr.msra.gmra.mxu1 %vm1334_vm2, %v5627_v49  ;;  %2149 = vmatpush1.bf16.msra.mxu0 %v1427_v55  ;;  %v667_v55 = vld [vmem:[%s5604_s7 + $0x1b0] sm:$0xff] }
  0xf4   : > { %2192 = vmatpush1.bf16.msra.mxu1 %v1433_v56  ;;  %2150 = vmatprep.subr.bf16.mxu0 %v4198_v61  ;;  %v668_v56 = vld [vmem:[%s5604_s7 + $0x1b8] sm:$0xff] }
  0xf5   : > { %2193 = vmatprep.subr.bf16.mxu1 %v4200_v2  ;;  %2168 = vmatprep.mubr.bf16.mxu0 %v5069_v18  ;;  %v669_v2 = vld [vmem:[%s5604_s7 + $0x1c0] sm:$0xff] }
  0xf6   : > { %2211 = vmatprep.mubr.bf16.mxu1 %v5069_v18 }
  0xf7   : > { %2151 = vmatpush1.bf16.msra.mxu0 %v4197_v8 }
  0xf8   : > { %2194 = vmatpush1.bf16.msra.mxu1 %v4199_v10  ;;  %2234 = vmatprep.subr.bf16.mxu0 %v1442_v11  ;;  %v671_v10 = vld [vmem:[%s5604_s7 + $0x1d0] sm:$0xff]  ;;  %v672_v11 = vld [vmem:[%s5604_s7 + $0x1d8] sm:$0xff] }
  0xf9   : > { %2277 = vmatprep.subr.bf16.mxu1 %v1448_v13 }
  0xfa   : > { %4311 = vmatmul.mubr.msk.bf16.vlgmr.msra.gmra.mxu0 %vm1334_vm2, %v5627_v49 }
  0xfb   : > { %4312 = vmatmul.mubr.msk.bf16.vlgmr.msra.gmra.mxu1 %vm1334_vm2, %v5627_v49  ;;  %2235 = vmatpush1.bf16.msra.mxu0 %v1439_v28  ;;  %v675_v28 = vld [vmem:[%s5604_s7 + $0x1f0] sm:$0xff] }
  0xfc   : > { %2278 = vmatpush1.bf16.msra.mxu1 %v1445_v32  ;;  %2236 = vmatprep.subr.bf16.mxu0 %v4202_v20  ;;  %v676_v32 = vld [vmem:[%s5604_s7 + $0x1f8] sm:$0xff] }
  0xfd   : > { %2279 = vmatprep.subr.bf16.mxu1 %v4204_v21  ;;  %2254 = vmatprep.mubr.bf16.mxu0 %v5069_v18 }
  0xfe   : > { %2297 = vmatprep.mubr.bf16.mxu1 %v5069_v18 }
  0xff   : > { %2237 = vmatpush1.bf16.msra.mxu0 %v4201_v35 }
 0x100   : > { %2280 = vmatpush1.bf16.msra.mxu1 %v4203_v36  ;;  %2320 = vmatprep.subr.bf16.mxu0 %v5763_v25  ;;  %v633_v25 = vld [vmem:[%s5604_s7 + $0xa0] sm:$0xff] }
 0x101   : > { %2363 = vmatprep.subr.bf16.mxu1 %v5766_v26  ;;  %v634_v26 = vld [vmem:[%s5604_s7 + $0xa8] sm:$0xff]  ;;  %v4209_v54 = vcombine.low %v633_v25, %v665_v53 }
 0x102   : > { %4313 = vmatmul.mubr.msk.bf16.vlgmr.msra.gmra.mxu0 %vm1334_vm2, %v5627_v49  ;;  %v4211_v34 = vcombine.low %v634_v26, %v666_v43 }
 0x103   : > { %4314 = vmatmul.mubr.msk.bf16.vlgmr.msra.gmra.mxu1 %vm1334_vm2, %v5627_v49  ;;  %2321 = vmatpush1.bf16.msra.mxu0 %v5758_v22  ;;  %v4210_v22 = vcombine.high %v633_v25, %v665_v53 }
 0x104   : > { %2364 = vmatpush1.bf16.msra.mxu1 %v5769_v27  ;;  %2322 = vmatprep.subr.bf16.mxu0 %v4206_v31  ;;  %v4212_v27 = vcombine.high %v634_v26, %v666_v43 }
 0x105   : > { %2365 = vmatprep.subr.bf16.mxu1 %v4208_v46  ;;  %2340 = vmatprep.mubr.bf16.mxu0 %v5069_v18 }
 0x106   : > { %2383 = vmatprep.mubr.bf16.mxu1 %v5069_v18 }
 0x107   : > { %2323 = vmatpush1.bf16.msra.mxu0 %v4205_v50 }
 0x108   : > { %2366 = vmatpush1.bf16.msra.mxu1 %v4207_v51  ;;  %2406 = vmatprep.subr.bf16.mxu0 %v5785_v40  ;;  %v635_v40 = vld [vmem:[%s5604_s7 + $0xb0] sm:$0xff] }
 0x109   : > { %2449 = vmatprep.subr.bf16.mxu1 %v5802_v47  ;;  %v636_v47 = vld [vmem:[%s5604_s7 + $0xb8] sm:$0xff]  ;;  %v4213_v61 = vcombine.low %v635_v40, %v667_v55 }
 0x10a   : > { %4315 = vmatmul.mubr.msk.bf16.vlgmr.msra.gmra.mxu0 %vm1334_vm2, %v5627_v49  ;;  %v4215_v1 = vcombine.low %v636_v47, %v668_v56 }
 0x10b   : > { %4316 = vmatmul.mubr.msk.bf16.vlgmr.msra.gmra.mxu1 %vm1334_vm2, %v5627_v49  ;;  %2407 = vmatpush1.bf16.msra.mxu0 %v5788_v41  ;;  %v4214_v41 = vcombine.high %v635_v40, %v667_v55 }
 0x10c   : > { %2450 = vmatpush1.bf16.msra.mxu1 %v5791_v42  ;;  %2408 = vmatprep.subr.bf16.mxu0 %v4210_v22  ;;  %v4216_v42 = vcombine.high %v636_v47, %v668_v56 }
 0x10d   : > { %2451 = vmatprep.subr.bf16.mxu1 %v4212_v27  ;;  %2426 = vmatprep.mubr.bf16.mxu0 %v5069_v18 }
 0x10e   : > { %2469 = vmatprep.mubr.bf16.mxu1 %v5069_v18 }
 0x10f   : > { %2409 = vmatpush1.bf16.msra.mxu0 %v4209_v54 }
 0x110   : > { %2452 = vmatpush1.bf16.msra.mxu1 %v4211_v34  ;;  %2492 = vmatprep.subr.bf16.mxu0 %v5818_v63  ;;  %v637_v63 = vld [vmem:[%s5604_s7 + $0xc0] sm:$0xff] }
 0x111   : > { %2535 = vmatprep.subr.bf16.mxu1 %v5828_v5  ;;  %v638_v5 = vld [vmem:[%s5604_s7 + $0xc8] sm:$0xff]  ;;  %v4217_v8 = vcombine.low %v637_v63, %v669_v2 }
 0x112   : > { %4317 = vmatmul.mubr.msk.bf16.vlgmr.msra.gmra.mxu0 %vm1334_vm2, %v5627_v49  ;;  %v4219_v9 = vcombine.low %v638_v5, %v670_v3 }
 0x113   : > { %4318 = vmatmul.mubr.msk.bf16.vlgmr.msra.gmra.mxu1 %vm1334_vm2, %v5627_v49  ;;  %2493 = vmatpush1.bf16.msra.mxu0 %v5821_v0  ;;  %v4218_v0 = vcombine.high %v637_v63, %v669_v2 }
 0x114   : > { %2536 = vmatpush1.bf16.msra.mxu1 %v5831_v7  ;;  %2494 = vmatprep.subr.bf16.mxu0 %v4214_v41  ;;  %v4220_v7 = vcombine.high %v638_v5, %v670_v3 }
 0x115   : > { %2537 = vmatprep.subr.bf16.mxu1 %v4216_v42  ;;  %2512 = vmatprep.mubr.bf16.mxu0 %v5069_v18 }
 0x116   : > { %2555 = vmatprep.mubr.bf16.mxu1 %v5069_v18 }
 0x117   : > { %2495 = vmatpush1.bf16.msra.mxu0 %v4213_v61 }
 0x118   : > { %2538 = vmatpush1.bf16.msra.mxu1 %v4215_v1  ;;  %2578 = vmatprep.subr.bf16.mxu0 %v5856_v48  ;;  %v639_v48 = vld [vmem:[%s5604_s7 + $0xd0] sm:$0xff] }
 0x119   : > { %2621 = vmatprep.subr.bf16.mxu1 %v5859_v52  ;;  %v640_v52 = vld [vmem:[%s5604_s7 + $0xd8] sm:$0xff]  ;;  %v4221_v12 = vcombine.low %v639_v48, %v671_v10 }
 0x11a   : > { %4319 = vmatmul.mubr.msk.bf16.vlgmr.msra.gmra.mxu0 %vm1334_vm2, %v5627_v49  ;;  %v4223_v13 = vcombine.low %v640_v52, %v672_v11 }
 0x11b   : > { %4320 = vmatmul.mubr.msk.bf16.vlgmr.msra.gmra.mxu1 %vm1334_vm2, %v5627_v49  ;;  %2579 = vmatpush1.bf16.msra.mxu0 %v5862_v4  ;;  %v4222_v4 = vcombine.high %v639_v48, %v671_v10 }
 0x11c   : > { %2622 = vmatpush1.bf16.msra.mxu1 %v5865_v24  ;;  %2580 = vmatprep.subr.bf16.mxu0 %v4218_v0  ;;  %v4224_v24 = vcombine.high %v640_v52, %v672_v11 }
 0x11d   : > { %2623 = vmatprep.subr.bf16.mxu1 %v4220_v7  ;;  %2598 = vmatprep.mubr.bf16.mxu0 %v5069_v18 }
 0x11e   : > { %2641 = vmatprep.mubr.bf16.mxu1 %v5069_v18 }
 0x11f   : > { %2581 = vmatpush1.bf16.msra.mxu0 %v4217_v8 }
 0x120   : > { %2624 = vmatpush1.bf16.msra.mxu1 %v4219_v9  ;;  %2664 = vmatprep.subr.bf16.mxu0 %v5902_v57  ;;  %v641_v57 = vld [vmem:[%s5604_s7 + $0xe0] sm:$0xff] }
 0x121   : > { %2707 = vmatprep.subr.bf16.mxu1 %v5914_v62  ;;  %v642_v62 = vld [vmem:[%s5604_s7 + $0xe8] sm:$0xff]  ;;  %v4225_v16 = vcombine.low %v641_v57, %v673_v14 }
 0x122   : > { %4321 = vmatmul.mubr.msk.bf16.vlgmr.msra.gmra.mxu0 %vm1334_vm2, %v5627_v49  ;;  %v4227_v45 = vcombine.low %v642_v62, %v674_v15 }
 0x123   : > { %4322 = vmatmul.mubr.msk.bf16.vlgmr.msra.gmra.mxu1 %vm1334_vm2, %v5627_v49  ;;  %2665 = vmatpush1.bf16.msra.mxu0 %v5905_v59  ;;  %v4226_v59 = vcombine.high %v641_v57, %v673_v14 }
 0x124   : > { %2708 = vmatpush1.bf16.msra.mxu1 %v5908_v60  ;;  %2666 = vmatprep.subr.bf16.mxu0 %v4222_v4  ;;  %v4228_v60 = vcombine.high %v642_v62, %v674_v15 }
 0x125   : > { %2709 = vmatprep.subr.bf16.mxu1 %v4224_v24  ;;  %2684 = vmatprep.mubr.bf16.mxu0 %v5069_v18 }
 0x126   : > { %2727 = vmatprep.mubr.bf16.mxu1 %v5069_v18 }
 0x127   : > { %2667 = vmatpush1.bf16.msra.mxu0 %v4221_v12 }
 0x128   : > { %2710 = vmatpush1.bf16.msra.mxu1 %v4223_v13  ;;  %2750 = vmatprep.subr.bf16.mxu0 %v5935_v44  ;;  %v643_v44 = vld [vmem:[%s5604_s7 + $0xf0] sm:$0xff] }
 0x129   : > { %2793 = vmatprep.subr.bf16.mxu1 %v5938_v6  ;;  %v644_v6 = vld [vmem:[%s5604_s7 + $0xf8] sm:$0xff]  ;;  %v4230_v20 = vcombine.high %v643_v44, %v675_v28 }
 0x12a   : > { %4323 = vmatmul.mubr.msk.bf16.vlgmr.msra.gmra.mxu0 %vm1334_vm2, %v5627_v49  ;;  %v4231_v21 = vcombine.low %v644_v6, %v676_v32 }
 0x12b   : > { %4324 = vmatmul.mubr.msk.bf16.vlgmr.msra.gmra.mxu1 %vm1334_vm2, %v5627_v49  ;;  %2751 = vmatpush1.bf16.msra.mxu0 %v5941_v19  ;;  %v4232_v19 = vcombine.high %v644_v6, %v676_v32 }
 0x12c   : > { %2794 = vmatpush1.bf16.msra.mxu1 %v5944_v33  ;;  %2752 = vmatprep.subr.bf16.mxu0 %v4226_v59  ;;  %v4229_v33 = vcombine.low %v643_v44, %v675_v28 }
 0x12d   : > { %2795 = vmatprep.subr.bf16.mxu1 %v4228_v60  ;;  %2770 = vmatprep.mubr.bf16.mxu0 %v5069_v18 }
 0x12e   : > { %2813 = vmatprep.mubr.bf16.mxu1 %v5069_v18 }
 0x12f   : > { %2753 = vmatpush1.bf16.msra.mxu0 %v4225_v16 }
 0x130   : > { %2796 = vmatpush1.bf16.msra.mxu1 %v4227_v45  ;;  %2836 = vmatprep.subr.bf16.mxu0 %v5957_v37 }
 0x131   : > { %2879 = vmatprep.subr.bf16.mxu1 %v5971_v39  ;;  %v6106_v37 = vpop.permute.xlu0 %745 }
 0x132   : > { %4325 = vmatmul.mubr.msk.bf16.vlgmr.msra.gmra.mxu0 %vm1334_vm2, %v5627_v49 }
 0x133   : > { %4326 = vmatmul.mubr.msk.bf16.vlgmr.msra.gmra.mxu1 %vm1334_vm2, %v5627_v49  ;;  %2837 = vmatpush1.bf16.msra.mxu0 %v5960_v38 }
 0x134   : > { %2880 = vmatpush1.bf16.msra.mxu1 %v5963_v58  ;;  %2838 = vmatprep.subr.bf16.mxu0 %v4230_v20 }
 0x135   : > { %2881 = vmatprep.subr.bf16.mxu1 %v4232_v19  ;;  %2856 = vmatprep.mubr.bf16.mxu0 %v5069_v18  ;;  %v6110_v23 = vpop.permute.xlu0 %750 }
 0x136   : > { %2899 = vmatprep.mubr.bf16.mxu1 %v5069_v18 }
 0x137   : > { %2839 = vmatpush1.bf16.msra.mxu0 %v4229_v33 }
 0x138   : > { %2882 = vmatpush1.bf16.msra.mxu1 %v4231_v21 }
 0x13a   : > { %4327 = vmatmul.mubr.msk.bf16.vlgmr.msra.gmra.mxu0 %vm1334_vm2, %v5627_v49 }
 0x13b   : > { %4328 = vmatmul.mubr.msk.bf16.vlgmr.msra.gmra.mxu1 %vm1334_vm2, %v5627_v49 }
 0x182   : > { %v1568_v38 = vpop.f32.mrf.mxu0 }
 0x183   : > { %v1569_v58 = vadd.f32 %v1568_v38, %v6106_v37  ;;  %v1611_v39 = vpop.f32.mrf.mxu1 }
 0x184   : > { %v1612_v35 = vadd.f32 %v1611_v39, %v6106_v37  ;;  %v1570_v36 = vpop.f32.mrf.mxu0 }
 0x185   : > { %v1571_v18 = vadd.f32 %v1570_v36, %v6106_v37  ;;  %v1613_v17 = vpop.f32.mrf.mxu1  ;;  %v2910_v49 = vmax.f32 %v1569_v58, 0.0 }
 0x186   : > { %v1614_v29 = vadd.f32 %v1613_v17, %v6106_v37  ;;  %v1572_v30 = vpop.f32.mrf.mxu0  ;;  %v2912_v51 = vmax.f32 %v1612_v35, 0.0 }
 0x187   : > { %v2911_v31 = vmax.f32 %v1571_v18, 0.0  ;;  %v1573_v46 = vadd.f32 %v1572_v30, %v6110_v23  ;;  %v1615_v50 = vpop.f32.mrf.mxu1 }
 0x188   : > { %v2913_v25 = vmax.f32 %v1614_v29, 0.0  ;;  %v1616_v53 = vadd.f32 %v1615_v50, %v6110_v23  ;;  %v1574_v26 = vpop.f32.mrf.mxu0 }
 0x189   : > { %v4429_v43 = vpack.c.bf16 %v2911_v31, %v2910_v49  ;;  %v1575_v22 = vadd.f32 %v1574_v26, %v6110_v23  ;;  %v1617_v27 = vpop.f32.mrf.mxu1  ;;  %v2974_v55 = vmax.f32 %v1573_v46, 0.0 }
 0x18a   : > { %v4430_v54 = vpack.c.bf16 %v2913_v25, %v2912_v51  ;;  %v1618_v34 = vadd.f32 %v1617_v27, %v6110_v23  ;;  %v1654_v40 = vpop.f32.mrf.mxu0  ;;  %v2976_v42 = vmax.f32 %v1616_v53, 0.0 }
 0x18b   : > { %3422 = vst [vmem:[%s6120_s12] sm:$0xff] %v4429_v43  ;;  %v2975_v47 = vmax.f32 %v1575_v22, 0.0  ;;  %v1655_v56 = vadd.f32 %v1654_v40, %v6106_v37  ;;  %v1697_v41 = vpop.f32.mrf.mxu1 }
 0x18c   : > { %3423 = vst [vmem:[%s6120_s12 + $0x8] sm:$0xff] %v4430_v54  ;;  %v2977_v61 = vmax.f32 %v1618_v34, 0.0  ;;  %v1698_v1 = vadd.f32 %v1697_v41, %v6106_v37  ;;  %v1656_v63 = vpop.f32.mrf.mxu0 }
 0x18d   : > { %v4461_v2 = vpack.c.bf16 %v2975_v47, %v2974_v55  ;;  %v1657_v5 = vadd.f32 %v1656_v63, %v6106_v37  ;;  %v1699_v3 = vpop.f32.mrf.mxu1  ;;  %v2914_v9 = vmax.f32 %v1655_v56, 0.0 }
 0x18e   : > { %v4462_v0 = vpack.c.bf16 %v2977_v61, %v2976_v42  ;;  %v1700_v7 = vadd.f32 %v1699_v3, %v6106_v37  ;;  %v1658_v8 = vpop.f32.mrf.mxu0  ;;  %v2916_v11 = vmax.f32 %v1698_v1, 0.0 }
 0x18f   : > { %3454 = vst [vmem:[%s6120_s12 + $0x100] sm:$0xff] %v4461_v2  ;;  %v2915_v48 = vmax.f32 %v1657_v5, 0.0  ;;  %v1659_v10 = vadd.f32 %v1658_v8, %v6110_v23  ;;  %v1701_v52 = vpop.f32.mrf.mxu1 }
 0x190   : > { %3455 = vst [vmem:[%s6120_s12 + $0x108] sm:$0xff] %v4462_v0  ;;  %v2917_v4 = vmax.f32 %v1700_v7, 0.0  ;;  %v1702_v24 = vadd.f32 %v1701_v52, %v6110_v23  ;;  %v1660_v12 = vpop.f32.mrf.mxu0 }
 0x191   : > { %v4431_v13 = vpack.c.bf16 %v2915_v48, %v2914_v9  ;;  %v1661_v57 = vadd.f32 %v1660_v12, %v6110_v23  ;;  %v1703_v14 = vpop.f32.mrf.mxu1  ;;  %v2978_v60 = vmax.f32 %v1659_v10, 0.0 }
 0x192   : > { %v4432_v62 = vpack.c.bf16 %v2917_v4, %v2916_v11  ;;  %v1704_v15 = vadd.f32 %v1703_v14, %v6110_v23  ;;  %v1740_v59 = vpop.f32.mrf.mxu0  ;;  %v2980_v28 = vmax.f32 %v1702_v24, 0.0 }
 0x193   : > { %3424 = vst [vmem:[%s6120_s12 + $0x10] sm:$0xff] %v4431_v13  ;;  %v2979_v16 = vmax.f32 %v1661_v57, 0.0  ;;  %v1741_v45 = vadd.f32 %v1740_v59, %v6106_v37  ;;  %v1783_v44 = vpop.f32.mrf.mxu1 }
 0x194   : > { %3425 = vst [vmem:[%s6120_s12 + $0x18] sm:$0xff] %v4432_v62  ;;  %v2981_v6 = vmax.f32 %v1704_v15, 0.0  ;;  %v1784_v32 = vadd.f32 %v1783_v44, %v6106_v37  ;;  %v1742_v20 = vpop.f32.mrf.mxu0 }
 0x195   : > { %v4463_v19 = vpack.c.bf16 %v2979_v16, %v2978_v60  ;;  %v1743_v33 = vadd.f32 %v1742_v20, %v6106_v37  ;;  %v1785_v21 = vpop.f32.mrf.mxu1  ;;  %v2918_v35 = vmax.f32 %v1741_v45, 0.0 }
 0x196   : > { %v4464_v38 = vpack.c.bf16 %v2981_v6, %v2980_v28  ;;  %v1786_v58 = vadd.f32 %v1785_v21, %v6106_v37  ;;  %v1744_v39 = vpop.f32.mrf.mxu0  ;;  %v2920_v29 = vmax.f32 %v1784_v32, 0.0 }
 0x197   : > { %3456 = vst [vmem:[%s6120_s12 + $0x110] sm:$0xff] %v4463_v19  ;;  %v2919_v36 = vmax.f32 %v1743_v33, 0.0  ;;  %v1745_v18 = vadd.f32 %v1744_v39, %v6110_v23  ;;  %v1787_v17 = vpop.f32.mrf.mxu1 }
 0x198   : > { %3457 = vst [vmem:[%s6120_s12 + $0x118] sm:$0xff] %v4464_v38  ;;  %v2921_v30 = vmax.f32 %v1786_v58, 0.0  ;;  %v1788_v49 = vadd.f32 %v1787_v17, %v6110_v23  ;;  %v1746_v31 = vpop.f32.mrf.mxu0 }
 0x199   : > { %v4433_v46 = vpack.c.bf16 %v2919_v36, %v2918_v35  ;;  %v1747_v50 = vadd.f32 %v1746_v31, %v6110_v23  ;;  %v1789_v51 = vpop.f32.mrf.mxu1  ;;  %v2982_v43 = vmax.f32 %v1745_v18, 0.0 }
 0x19a   : > { %v4434_v25 = vpack.c.bf16 %v2921_v30, %v2920_v29  ;;  %v1790_v53 = vadd.f32 %v1789_v51, %v6110_v23  ;;  %v1826_v26 = vpop.f32.mrf.mxu0  ;;  %v2984_v34 = vmax.f32 %v1788_v49, 0.0 }
 0x19b   : > { %3426 = vst [vmem:[%s6120_s12 + $0x20] sm:$0xff] %v4433_v46  ;;  %v2983_v22 = vmax.f32 %v1747_v50, 0.0  ;;  %v1827_v27 = vadd.f32 %v1826_v26, %v6106_v37  ;;  %v1869_v54 = vpop.f32.mrf.mxu1 }
 0x19c   : > { %3427 = vst [vmem:[%s6120_s12 + $0x28] sm:$0xff] %v4434_v25  ;;  %v2985_v40 = vmax.f32 %v1790_v53, 0.0  ;;  %v1870_v55 = vadd.f32 %v1869_v54, %v6106_v37  ;;  %v1828_v47 = vpop.f32.mrf.mxu0 }
 0x19d   : > { %v4465_v56 = vpack.c.bf16 %v2983_v22, %v2982_v43  ;;  %v1829_v41 = vadd.f32 %v1828_v47, %v6106_v37  ;;  %v1871_v42 = vpop.f32.mrf.mxu1  ;;  %v2922_v2 = vmax.f32 %v1827_v27, 0.0 }
 0x19e   : > { %v4466_v61 = vpack.c.bf16 %v2985_v40, %v2984_v34  ;;  %v1872_v1 = vadd.f32 %v1871_v42, %v6106_v37  ;;  %v1830_v63 = vpop.f32.mrf.mxu0  ;;  %v2924_v7 = vmax.f32 %v1870_v55, 0.0 }
 0x19f   : > { %3458 = vst [vmem:[%s6120_s12 + $0x120] sm:$0xff] %v4465_v56  ;;  %v2923_v5 = vmax.f32 %v1829_v41, 0.0  ;;  %v1831_v3 = vadd.f32 %v1830_v63, %v6110_v23  ;;  %v1873_v0 = vpop.f32.mrf.mxu1 }
 0x1a0   : > { %3459 = vst [vmem:[%s6120_s12 + $0x128] sm:$0xff] %v4466_v61  ;;  %v2925_v8 = vmax.f32 %v1872_v1, 0.0  ;;  %v1874_v9 = vadd.f32 %v1873_v0, %v6110_v23  ;;  %v1832_v48 = vpop.f32.mrf.mxu0 }
 0x1a1   : > { %v4435_v10 = vpack.c.bf16 %v2923_v5, %v2922_v2  ;;  %v1833_v52 = vadd.f32 %v1832_v48, %v6110_v23  ;;  %v1875_v11 = vpop.f32.mrf.mxu1  ;;  %v2986_v13 = vmax.f32 %v1831_v3, 0.0 }
 0x1a2   : > { %v4436_v4 = vpack.c.bf16 %v2925_v8, %v2924_v7  ;;  %v1876_v24 = vadd.f32 %v1875_v11, %v6110_v23  ;;  %v1912_v12 = vpop.f32.mrf.mxu0  ;;  %v2988_v15 = vmax.f32 %v1874_v9, 0.0 }
 0x1a3   : > { %3428 = vst [vmem:[%s6120_s12 + $0x30] sm:$0xff] %v4435_v10  ;;  %v2987_v57 = vmax.f32 %v1833_v52, 0.0  ;;  %v1913_v14 = vadd.f32 %v1912_v12, %v6106_v37  ;;  %v1955_v62 = vpop.f32.mrf.mxu1 }
 0x1a4   : > { %3429 = vst [vmem:[%s6120_s12 + $0x38] sm:$0xff] %v4436_v4  ;;  %v2989_v59 = vmax.f32 %v1876_v24, 0.0  ;;  %v1956_v60 = vadd.f32 %v1955_v62, %v6106_v37  ;;  %v1914_v16 = vpop.f32.mrf.mxu0 }
 0x1a5   : > { %v4467_v45 = vpack.c.bf16 %v2987_v57, %v2986_v13  ;;  %v1915_v44 = vadd.f32 %v1914_v16, %v6106_v37  ;;  %v1957_v28 = vpop.f32.mrf.mxu1  ;;  %v2926_v19 = vmax.f32 %v1913_v14, 0.0 }
 0x1a6   : > { %v4468_v6 = vpack.c.bf16 %v2989_v59, %v2988_v15  ;;  %v1958_v32 = vadd.f32 %v1957_v28, %v6106_v37  ;;  %v1916_v20 = vpop.f32.mrf.mxu0  ;;  %v2928_v58 = vmax.f32 %v1956_v60, 0.0 }
 0x1a7   : > { %3460 = vst [vmem:[%s6120_s12 + $0x130] sm:$0xff] %v4467_v45  ;;  %v2927_v33 = vmax.f32 %v1915_v44, 0.0  ;;  %v1917_v21 = vadd.f32 %v1916_v20, %v6110_v23  ;;  %v1959_v38 = vpop.f32.mrf.mxu1 }
 0x1a8   : > { %3461 = vst [vmem:[%s6120_s12 + $0x138] sm:$0xff] %v4468_v6  ;;  %v2929_v39 = vmax.f32 %v1958_v32, 0.0  ;;  %v1960_v35 = vadd.f32 %v1959_v38, %v6110_v23  ;;  %v1918_v36 = vpop.f32.mrf.mxu0 }
 0x1a9   : > { %v4437_v18 = vpack.c.bf16 %v2927_v33, %v2926_v19  ;;  %v1919_v17 = vadd.f32 %v1918_v36, %v6110_v23  ;;  %v1961_v29 = vpop.f32.mrf.mxu1  ;;  %v2990_v46 = vmax.f32 %v1917_v21, 0.0 }
 0x1aa   : > { %v4438_v30 = vpack.c.bf16 %v2929_v39, %v2928_v58  ;;  %v1962_v49 = vadd.f32 %v1961_v29, %v6110_v23  ;;  %v1998_v31 = vpop.f32.mrf.mxu0  ;;  %v2992_v53 = vmax.f32 %v1960_v35, 0.0 }
 0x1ab   : > { %3430 = vst [vmem:[%s6120_s12 + $0x40] sm:$0xff] %v4437_v18  ;;  %v2991_v50 = vmax.f32 %v1919_v17, 0.0  ;;  %v1999_v51 = vadd.f32 %v1998_v31, %v6106_v37  ;;  %v2041_v25 = vpop.f32.mrf.mxu1 }
 0x1ac   : > { %3431 = vst [vmem:[%s6120_s12 + $0x48] sm:$0xff] %v4438_v30  ;;  %v2993_v26 = vmax.f32 %v1962_v49, 0.0  ;;  %v2042_v43 = vadd.f32 %v2041_v25, %v6106_v37  ;;  %v2000_v22 = vpop.f32.mrf.mxu0 }
 0x1ad   : > { %v4469_v27 = vpack.c.bf16 %v2991_v50, %v2990_v46  ;;  %v2001_v54 = vadd.f32 %v2000_v22, %v6106_v37  ;;  %v2043_v34 = vpop.f32.mrf.mxu1  ;;  %v2930_v56 = vmax.f32 %v1999_v51, 0.0 }
 0x1ae   : > { %v4470_v40 = vpack.c.bf16 %v2993_v26, %v2992_v53  ;;  %v2044_v55 = vadd.f32 %v2043_v34, %v6106_v37  ;;  %v2002_v47 = vpop.f32.mrf.mxu0  ;;  %v2932_v1 = vmax.f32 %v2042_v43, 0.0 }
 0x1af   : > { %3462 = vst [vmem:[%s6120_s12 + $0x140] sm:$0xff] %v4469_v27  ;;  %v2931_v41 = vmax.f32 %v2001_v54, 0.0  ;;  %v2003_v42 = vadd.f32 %v2002_v47, %v6110_v23  ;;  %v2045_v61 = vpop.f32.mrf.mxu1 }
 0x1b0   : > { %3463 = vst [vmem:[%s6120_s12 + $0x148] sm:$0xff] %v4470_v40  ;;  %v2933_v63 = vmax.f32 %v2044_v55, 0.0  ;;  %v2046_v2 = vadd.f32 %v2045_v61, %v6110_v23  ;;  %v2004_v5 = vpop.f32.mrf.mxu0 }
 0x1b1   : > { %v4439_v3 = vpack.c.bf16 %v2931_v41, %v2930_v56  ;;  %v2005_v0 = vadd.f32 %v2004_v5, %v6110_v23  ;;  %v2047_v7 = vpop.f32.mrf.mxu1  ;;  %v2994_v10 = vmax.f32 %v2003_v42, 0.0 }
 0x1b2   : > { %v4440_v8 = vpack.c.bf16 %v2933_v63, %v2932_v1  ;;  %v2048_v9 = vadd.f32 %v2047_v7, %v6110_v23  ;;  %v2084_v48 = vpop.f32.mrf.mxu0  ;;  %v2996_v24 = vmax.f32 %v2046_v2, 0.0 }
 0x1b3   : > { %3432 = vst [vmem:[%s6120_s12 + $0x50] sm:$0xff] %v4439_v3  ;;  %v2995_v52 = vmax.f32 %v2005_v0, 0.0  ;;  %v2085_v11 = vadd.f32 %v2084_v48, %v6106_v37  ;;  %v2127_v4 = vpop.f32.mrf.mxu1 }
 0x1b4   : > { %3433 = vst [vmem:[%s6120_s12 + $0x58] sm:$0xff] %v4440_v8  ;;  %v2997_v12 = vmax.f32 %v2048_v9, 0.0  ;;  %v2128_v13 = vadd.f32 %v2127_v4, %v6106_v37  ;;  %v2086_v57 = vpop.f32.mrf.mxu0 }
 0x1b5   : > { %v4471_v14 = vpack.c.bf16 %v2995_v52, %v2994_v10  ;;  %v2087_v62 = vadd.f32 %v2086_v57, %v6106_v37  ;;  %v2129_v15 = vpop.f32.mrf.mxu1  ;;  %v2934_v45 = vmax.f32 %v2085_v11, 0.0 }
 0x1b6   : > { %v4472_v59 = vpack.c.bf16 %v2997_v12, %v2996_v24  ;;  %v2130_v60 = vadd.f32 %v2129_v15, %v6106_v37  ;;  %v2088_v16 = vpop.f32.mrf.mxu0  ;;  %v2936_v32 = vmax.f32 %v2128_v13, 0.0 }
 0x1b7   : > { %3464 = vst [vmem:[%s6120_s12 + $0x150] sm:$0xff] %v4471_v14  ;;  %v2935_v44 = vmax.f32 %v2087_v62, 0.0  ;;  %v2089_v28 = vadd.f32 %v2088_v16, %v6110_v23  ;;  %v2131_v6 = vpop.f32.mrf.mxu1 }
 0x1b8   : > { %3465 = vst [vmem:[%s6120_s12 + $0x158] sm:$0xff] %v4472_v59  ;;  %v2937_v20 = vmax.f32 %v2130_v60, 0.0  ;;  %v2132_v19 = vadd.f32 %v2131_v6, %v6110_v23  ;;  %v2090_v33 = vpop.f32.mrf.mxu0 }
 0x1b9   : > { %v4441_v21 = vpack.c.bf16 %v2935_v44, %v2934_v45  ;;  %v2091_v38 = vadd.f32 %v2090_v33, %v6110_v23  ;;  %v2133_v58 = vpop.f32.mrf.mxu1  ;;  %v2998_v18 = vmax.f32 %v2089_v28, 0.0 }
 0x1ba   : > { %v4442_v39 = vpack.c.bf16 %v2937_v20, %v2936_v32  ;;  %v2134_v35 = vadd.f32 %v2133_v58, %v6110_v23  ;;  %v2170_v36 = vpop.f32.mrf.mxu0  ;;  %v3000_v49 = vmax.f32 %v2132_v19, 0.0 }
 0x1bb   : > { %3434 = vst [vmem:[%s6120_s12 + $0x60] sm:$0xff] %v4441_v21  ;;  %v2999_v17 = vmax.f32 %v2091_v38, 0.0  ;;  %v2171_v29 = vadd.f32 %v2170_v36, %v6106_v37  ;;  %v2213_v30 = vpop.f32.mrf.mxu1 }
 0x1bc   : > { %3435 = vst [vmem:[%s6120_s12 + $0x68] sm:$0xff] %v4442_v39  ;;  %v3001_v31 = vmax.f32 %v2134_v35, 0.0  ;;  %v2214_v46 = vadd.f32 %v2213_v30, %v6106_v37  ;;  %v2172_v50 = vpop.f32.mrf.mxu0 }
 0x1bd   : > { %v4473_v51 = vpack.c.bf16 %v2999_v17, %v2998_v18  ;;  %v2173_v25 = vadd.f32 %v2172_v50, %v6106_v37  ;;  %v2215_v53 = vpop.f32.mrf.mxu1  ;;  %v2938_v27 = vmax.f32 %v2171_v29, 0.0 }
 0x1be   : > { %v4474_v26 = vpack.c.bf16 %v3001_v31, %v3000_v49  ;;  %v2216_v43 = vadd.f32 %v2215_v53, %v6106_v37  ;;  %v2174_v22 = vpop.f32.mrf.mxu0  ;;  %v2940_v55 = vmax.f32 %v2214_v46, 0.0 }
 0x1bf   : > { %3466 = vst [vmem:[%s6120_s12 + $0x160] sm:$0xff] %v4473_v51  ;;  %v2939_v54 = vmax.f32 %v2173_v25, 0.0  ;;  %v2175_v34 = vadd.f32 %v2174_v22, %v6110_v23  ;;  %v2217_v40 = vpop.f32.mrf.mxu1 }
 0x1c0   : > { %3467 = vst [vmem:[%s6120_s12 + $0x168] sm:$0xff] %v4474_v26  ;;  %v2941_v47 = vmax.f32 %v2216_v43, 0.0  ;;  %v2218_v56 = vadd.f32 %v2217_v40, %v6110_v23  ;;  %v2176_v41 = vpop.f32.mrf.mxu0 }
 0x1c1   : > { %v4443_v42 = vpack.c.bf16 %v2939_v54, %v2938_v27  ;;  %v2177_v61 = vadd.f32 %v2176_v41, %v6110_v23  ;;  %v2219_v1 = vpop.f32.mrf.mxu1  ;;  %v3002_v3 = vmax.f32 %v2175_v34, 0.0 }
 0x1c2   : > { %v4444_v63 = vpack.c.bf16 %v2941_v47, %v2940_v55  ;;  %v2220_v2 = vadd.f32 %v2219_v1, %v6110_v23  ;;  %v2256_v5 = vpop.f32.mrf.mxu0  ;;  %v3004_v9 = vmax.f32 %v2218_v56, 0.0 }
 0x1c3   : > { %3436 = vst [vmem:[%s6120_s12 + $0x70] sm:$0xff] %v4443_v42  ;;  %v3003_v0 = vmax.f32 %v2177_v61, 0.0  ;;  %v2257_v7 = vadd.f32 %v2256_v5, %v6106_v37  ;;  %v2299_v8 = vpop.f32.mrf.mxu1 }
 0x1c4   : > { %3437 = vst [vmem:[%s6120_s12 + $0x78] sm:$0xff] %v4444_v63  ;;  %v3005_v48 = vmax.f32 %v2220_v2, 0.0  ;;  %v2300_v10 = vadd.f32 %v2299_v8, %v6106_v37  ;;  %v2258_v52 = vpop.f32.mrf.mxu0 }
 0x1c5   : > { %v4475_v11 = vpack.c.bf16 %v3003_v0, %v3002_v3  ;;  %v2259_v4 = vadd.f32 %v2258_v52, %v6106_v37  ;;  %v2301_v24 = vpop.f32.mrf.mxu1  ;;  %v2942_v14 = vmax.f32 %v2257_v7, 0.0 }
 0x1c6   : > { %v4476_v12 = vpack.c.bf16 %v3005_v48, %v3004_v9  ;;  %v2302_v13 = vadd.f32 %v2301_v24, %v6106_v37  ;;  %v2260_v57 = vpop.f32.mrf.mxu0  ;;  %v2944_v60 = vmax.f32 %v2300_v10, 0.0 }
 0x1c7   : > { %3468 = vst [vmem:[%s6120_s12 + $0x170] sm:$0xff] %v4475_v11  ;;  %v2943_v62 = vmax.f32 %v2259_v4, 0.0  ;;  %v2261_v15 = vadd.f32 %v2260_v57, %v6110_v23  ;;  %v2303_v59 = vpop.f32.mrf.mxu1 }
 0x1c8   : > { %3469 = vst [vmem:[%s6120_s12 + $0x178] sm:$0xff] %v4476_v12  ;;  %v2945_v16 = vmax.f32 %v2302_v13, 0.0  ;;  %v2304_v45 = vadd.f32 %v2303_v59, %v6110_v23  ;;  %v2262_v44 = vpop.f32.mrf.mxu0 }
 0x1c9   : > { %v4445_v28 = vpack.c.bf16 %v2943_v62, %v2942_v14  ;;  %v2263_v6 = vadd.f32 %v2262_v44, %v6110_v23  ;;  %v2305_v32 = vpop.f32.mrf.mxu1  ;;  %v3006_v21 = vmax.f32 %v2261_v15, 0.0 }
 0x1ca   : > { %v4446_v20 = vpack.c.bf16 %v2945_v16, %v2944_v60  ;;  %v2306_v19 = vadd.f32 %v2305_v32, %v6110_v23  ;;  %v2342_v33 = vpop.f32.mrf.mxu0  ;;  %v3008_v35 = vmax.f32 %v2304_v45, 0.0 }
 0x1cb   : > { %3438 = vst [vmem:[%s6120_s12 + $0x80] sm:$0xff] %v4445_v28  ;;  %v3007_v38 = vmax.f32 %v2263_v6, 0.0  ;;  %v2343_v58 = vadd.f32 %v2342_v33, %v6106_v37  ;;  %v2385_v39 = vpop.f32.mrf.mxu1 }
 0x1cc   : > { %3439 = vst [vmem:[%s6120_s12 + $0x88] sm:$0xff] %v4446_v20  ;;  %v3009_v36 = vmax.f32 %v2306_v19, 0.0  ;;  %v2386_v18 = vadd.f32 %v2385_v39, %v6106_v37  ;;  %v2344_v17 = vpop.f32.mrf.mxu0 }
 0x1cd   : > { %v4477_v29 = vpack.c.bf16 %v3007_v38, %v3006_v21  ;;  %v2345_v30 = vadd.f32 %v2344_v17, %v6106_v37  ;;  %v2387_v49 = vpop.f32.mrf.mxu1  ;;  %v2946_v51 = vmax.f32 %v2343_v58, 0.0 }
 0x1ce   : > { %v4478_v31 = vpack.c.bf16 %v3009_v36, %v3008_v35  ;;  %v2388_v46 = vadd.f32 %v2387_v49, %v6106_v37  ;;  %v2346_v50 = vpop.f32.mrf.mxu0  ;;  %v2948_v43 = vmax.f32 %v2386_v18, 0.0 }
 0x1cf   : > { %3470 = vst [vmem:[%s6120_s12 + $0x180] sm:$0xff] %v4477_v29  ;;  %v2947_v25 = vmax.f32 %v2345_v30, 0.0  ;;  %v2347_v53 = vadd.f32 %v2346_v50, %v6110_v23  ;;  %v2389_v26 = vpop.f32.mrf.mxu1 }
 0x1d0   : > { %3471 = vst [vmem:[%s6120_s12 + $0x188] sm:$0xff] %v4478_v31  ;;  %v2949_v22 = vmax.f32 %v2388_v46, 0.0  ;;  %v2390_v27 = vadd.f32 %v2389_v26, %v6110_v23  ;;  %v2348_v54 = vpop.f32.mrf.mxu0 }
 0x1d1   : > { %v4447_v34 = vpack.c.bf16 %v2947_v25, %v2946_v51  ;;  %v2349_v40 = vadd.f32 %v2348_v54, %v6110_v23  ;;  %v2391_v55 = vpop.f32.mrf.mxu1  ;;  %v3010_v42 = vmax.f32 %v2347_v53, 0.0 }
 0x1d2   : > { %v4448_v47 = vpack.c.bf16 %v2949_v22, %v2948_v43  ;;  %v2392_v56 = vadd.f32 %v2391_v55, %v6110_v23  ;;  %v2428_v41 = vpop.f32.mrf.mxu0  ;;  %v3012_v2 = vmax.f32 %v2390_v27, 0.0 }
 0x1d3   : > { %3440 = vst [vmem:[%s6120_s12 + $0x90] sm:$0xff] %v4447_v34  ;;  %v3011_v61 = vmax.f32 %v2349_v40, 0.0  ;;  %v2429_v1 = vadd.f32 %v2428_v41, %v6106_v37  ;;  %v2471_v63 = vpop.f32.mrf.mxu1 }
 0x1d4   : > { %3441 = vst [vmem:[%s6120_s12 + $0x98] sm:$0xff] %v4448_v47  ;;  %v3013_v5 = vmax.f32 %v2392_v56, 0.0  ;;  %v2472_v3 = vadd.f32 %v2471_v63, %v6106_v37  ;;  %v2430_v0 = vpop.f32.mrf.mxu0 }
 0x1d5   : > { %v4479_v7 = vpack.c.bf16 %v3011_v61, %v3010_v42  ;;  %v2431_v8 = vadd.f32 %v2430_v0, %v6106_v37  ;;  %v2473_v9 = vpop.f32.mrf.mxu1  ;;  %v2950_v11 = vmax.f32 %v2429_v1, 0.0 }
 0x1d6   : > { %v4480_v48 = vpack.c.bf16 %v3013_v5, %v3012_v2  ;;  %v2474_v10 = vadd.f32 %v2473_v9, %v6106_v37  ;;  %v2432_v52 = vpop.f32.mrf.mxu0  ;;  %v2952_v13 = vmax.f32 %v2472_v3, 0.0 }
 0x1d7   : > { %3472 = vst [vmem:[%s6120_s12 + $0x190] sm:$0xff] %v4479_v7  ;;  %v2951_v4 = vmax.f32 %v2431_v8, 0.0  ;;  %v2433_v24 = vadd.f32 %v2432_v52, %v6110_v23  ;;  %v2475_v12 = vpop.f32.mrf.mxu1 }
 0x1d8   : > { %3473 = vst [vmem:[%s6120_s12 + $0x198] sm:$0xff] %v4480_v48  ;;  %v2953_v57 = vmax.f32 %v2474_v10, 0.0  ;;  %v2476_v14 = vadd.f32 %v2475_v12, %v6110_v23  ;;  %v2434_v62 = vpop.f32.mrf.mxu0 }
 0x1d9   : > { %v4449_v15 = vpack.c.bf16 %v2951_v4, %v2950_v11  ;;  %v2435_v59 = vadd.f32 %v2434_v62, %v6110_v23  ;;  %v2477_v60 = vpop.f32.mrf.mxu1  ;;  %v3014_v28 = vmax.f32 %v2433_v24, 0.0 }
 0x1da   : > { %v4450_v16 = vpack.c.bf16 %v2953_v57, %v2952_v13  ;;  %v2478_v45 = vadd.f32 %v2477_v60, %v6110_v23  ;;  %v2514_v44 = vpop.f32.mrf.mxu0  ;;  %v3016_v19 = vmax.f32 %v2476_v14, 0.0 }
 0x1db   : > { %3442 = vst [vmem:[%s6120_s12 + $0xa0] sm:$0xff] %v4449_v15  ;;  %v3015_v6 = vmax.f32 %v2435_v59, 0.0  ;;  %v2515_v32 = vadd.f32 %v2514_v44, %v6106_v37  ;;  %v2557_v20 = vpop.f32.mrf.mxu1 }
 0x1dc   : > { %3443 = vst [vmem:[%s6120_s12 + $0xa8] sm:$0xff] %v4450_v16  ;;  %v3017_v33 = vmax.f32 %v2478_v45, 0.0  ;;  %v2558_v21 = vadd.f32 %v2557_v20, %v6106_v37  ;;  %v2516_v38 = vpop.f32.mrf.mxu0 }
 0x1dd   : > { %v4481_v58 = vpack.c.bf16 %v3015_v6, %v3014_v28  ;;  %v2517_v39 = vadd.f32 %v2516_v38, %v6106_v37  ;;  %v2559_v35 = vpop.f32.mrf.mxu1  ;;  %v2954_v29 = vmax.f32 %v2515_v32, 0.0 }
 0x1de   : > { %v4482_v36 = vpack.c.bf16 %v3017_v33, %v3016_v19  ;;  %v2560_v18 = vadd.f32 %v2559_v35, %v6106_v37  ;;  %v2518_v17 = vpop.f32.mrf.mxu0  ;;  %v2956_v46 = vmax.f32 %v2558_v21, 0.0 }
 0x1df   : > { %3474 = vst [vmem:[%s6120_s12 + $0x1a0] sm:$0xff] %v4481_v58  ;;  %v2955_v30 = vmax.f32 %v2517_v39, 0.0  ;;  %v2519_v49 = vadd.f32 %v2518_v17, %v6110_v23  ;;  %v2561_v31 = vpop.f32.mrf.mxu1 }
 0x1e0   : > { %3475 = vst [vmem:[%s6120_s12 + $0x1a8] sm:$0xff] %v4482_v36  ;;  %v2957_v50 = vmax.f32 %v2560_v18, 0.0  ;;  %v2562_v51 = vadd.f32 %v2561_v31, %v6110_v23  ;;  %v2520_v25 = vpop.f32.mrf.mxu0 }
 0x1e1   : > { %v4451_v53 = vpack.c.bf16 %v2955_v30, %v2954_v29  ;;  %v2521_v26 = vadd.f32 %v2520_v25, %v6110_v23  ;;  %v2563_v43 = vpop.f32.mrf.mxu1  ;;  %v3018_v34 = vmax.f32 %v2519_v49, 0.0 }
 0x1e2   : > { %v4452_v22 = vpack.c.bf16 %v2957_v50, %v2956_v46  ;;  %v2564_v27 = vadd.f32 %v2563_v43, %v6110_v23  ;;  %v2600_v54 = vpop.f32.mrf.mxu0  ;;  %v3020_v56 = vmax.f32 %v2562_v51, 0.0 }
 0x1e3   : > { %3444 = vst [vmem:[%s6120_s12 + $0xb0] sm:$0xff] %v4451_v53  ;;  %v3019_v40 = vmax.f32 %v2521_v26, 0.0  ;;  %v2601_v55 = vadd.f32 %v2600_v54, %v6106_v37  ;;  %v2643_v47 = vpop.f32.mrf.mxu1 }
 0x1e4   : > { %3445 = vst [vmem:[%s6120_s12 + $0xb8] sm:$0xff] %v4452_v22  ;;  %v3021_v41 = vmax.f32 %v2564_v27, 0.0  ;;  %v2644_v42 = vadd.f32 %v2643_v47, %v6106_v37  ;;  %v2602_v61 = vpop.f32.mrf.mxu0 }
 0x1e5   : > { %v4483_v1 = vpack.c.bf16 %v3019_v40, %v3018_v34  ;;  %v2603_v63 = vadd.f32 %v2602_v61, %v6106_v37  ;;  %v2645_v2 = vpop.f32.mrf.mxu1  ;;  %v2958_v7 = vmax.f32 %v2601_v55, 0.0 }
 0x1e6   : > { %v4484_v5 = vpack.c.bf16 %v3021_v41, %v3020_v56  ;;  %v2646_v3 = vadd.f32 %v2645_v2, %v6106_v37  ;;  %v2604_v0 = vpop.f32.mrf.mxu0  ;;  %v2960_v10 = vmax.f32 %v2644_v42, 0.0 }
 0x1e7   : > { %3476 = vst [vmem:[%s6120_s12 + $0x1b0] sm:$0xff] %v4483_v1  ;;  %v2959_v8 = vmax.f32 %v2603_v63, 0.0  ;;  %v2605_v9 = vadd.f32 %v2604_v0, %v6110_v23  ;;  %v2647_v48 = vpop.f32.mrf.mxu1 }
 0x1e8   : > { %3477 = vst [vmem:[%s6120_s12 + $0x1b8] sm:$0xff] %v4484_v5  ;;  %v2961_v52 = vmax.f32 %v2646_v3, 0.0  ;;  %v2648_v11 = vadd.f32 %v2647_v48, %v6110_v23  ;;  %v2606_v4 = vpop.f32.mrf.mxu0 }
 0x1e9   : > { %v4453_v24 = vpack.c.bf16 %v2959_v8, %v2958_v7  ;;  %v2607_v12 = vadd.f32 %v2606_v4, %v6110_v23  ;;  %v2649_v13 = vpop.f32.mrf.mxu1  ;;  %v3022_v15 = vmax.f32 %v2605_v9, 0.0 }
 0x1ea   : > { %v4454_v57 = vpack.c.bf16 %v2961_v52, %v2960_v10  ;;  %v2650_v14 = vadd.f32 %v2649_v13, %v6110_v23  ;;  %v2686_v62 = vpop.f32.mrf.mxu0  ;;  %v3024_v45 = vmax.f32 %v2648_v11, 0.0 }
 0x1eb   : > { %3446 = vst [vmem:[%s6120_s12 + $0xc0] sm:$0xff] %v4453_v24  ;;  %v3023_v59 = vmax.f32 %v2607_v12, 0.0  ;;  %v2687_v60 = vadd.f32 %v2686_v62, %v6106_v37  ;;  %v2729_v16 = vpop.f32.mrf.mxu1 }
 0x1ec   : > { %3447 = vst [vmem:[%s6120_s12 + $0xc8] sm:$0xff] %v4454_v57  ;;  %v3025_v44 = vmax.f32 %v2650_v14, 0.0  ;;  %v2730_v28 = vadd.f32 %v2729_v16, %v6106_v37  ;;  %v2688_v6 = vpop.f32.mrf.mxu0 }
 0x1ed   : > { %v4485_v32 = vpack.c.bf16 %v3023_v59, %v3022_v15  ;;  %v2689_v20 = vadd.f32 %v2688_v6, %v6106_v37  ;;  %v2731_v19 = vpop.f32.mrf.mxu1  ;;  %v2962_v58 = vmax.f32 %v2687_v60, 0.0 }
 0x1ee   : > { %v4486_v33 = vpack.c.bf16 %v3025_v44, %v3024_v45  ;;  %v2732_v21 = vadd.f32 %v2731_v19, %v6106_v37  ;;  %v2690_v38 = vpop.f32.mrf.mxu0  ;;  %v2964_v18 = vmax.f32 %v2730_v28, 0.0 }
 0x1ef   : > { %3478 = vst [vmem:[%s6120_s12 + $0x1c0] sm:$0xff] %v4485_v32  ;;  %v2963_v39 = vmax.f32 %v2689_v20, 0.0  ;;  %v2691_v35 = vadd.f32 %v2690_v38, %v6110_v23  ;;  %v2733_v36 = vpop.f32.mrf.mxu1 }
 0x1f0   : > { %3479 = vst [vmem:[%s6120_s12 + $0x1c8] sm:$0xff] %v4486_v33  ;;  %v2965_v17 = vmax.f32 %v2732_v21, 0.0  ;;  %v2734_v29 = vadd.f32 %v2733_v36, %v6110_v23  ;;  %v2692_v30 = vpop.f32.mrf.mxu0 }
 0x1f1   : > { %v4455_v49 = vpack.c.bf16 %v2963_v39, %v2962_v58  ;;  %v2693_v31 = vadd.f32 %v2692_v30, %v6110_v23  ;;  %v2735_v46 = vpop.f32.mrf.mxu1  ;;  %v3026_v53 = vmax.f32 %v2691_v35, 0.0 }
 0x1f2   : > { %v4456_v50 = vpack.c.bf16 %v2965_v17, %v2964_v18  ;;  %v2736_v51 = vadd.f32 %v2735_v46, %v6110_v23  ;;  %v2772_v25 = vpop.f32.mrf.mxu0  ;;  %v3028_v27 = vmax.f32 %v2734_v29, 0.0 }
 0x1f3   : > { %3448 = vst [vmem:[%s6120_s12 + $0xd0] sm:$0xff] %v4455_v49  ;;  %v3027_v26 = vmax.f32 %v2693_v31, 0.0  ;;  %v2773_v43 = vadd.f32 %v2772_v25, %v6106_v37  ;;  %v2815_v22 = vpop.f32.mrf.mxu1 }
 0x1f4   : > { %3449 = vst [vmem:[%s6120_s12 + $0xd8] sm:$0xff] %v4456_v50  ;;  %v3029_v54 = vmax.f32 %v2736_v51, 0.0  ;;  %v2816_v34 = vadd.f32 %v2815_v22, %v6106_v37  ;;  %v2774_v40 = vpop.f32.mrf.mxu0 }
 0x1f5   : > { %v4487_v55 = vpack.c.bf16 %v3027_v26, %v3026_v53  ;;  %v2775_v47 = vadd.f32 %v2774_v40, %v6106_v37  ;;  %v2817_v56 = vpop.f32.mrf.mxu1  ;;  %v2966_v1 = vmax.f32 %v2773_v43, 0.0 }
 0x1f6   : > { %v4488_v41 = vpack.c.bf16 %v3029_v54, %v3028_v27  ;;  %v2818_v42 = vadd.f32 %v2817_v56, %v6106_v37  ;;  %v2776_v61 = vpop.f32.mrf.mxu0  ;;  %v2968_v3 = vmax.f32 %v2816_v34, 0.0 }
 0x1f7   : > { %3480 = vst [vmem:[%s6120_s12 + $0x1d0] sm:$0xff] %v4487_v55  ;;  %v2967_v63 = vmax.f32 %v2775_v47, 0.0  ;;  %v2777_v2 = vadd.f32 %v2776_v61, %v6110_v23  ;;  %v2819_v5 = vpop.f32.mrf.mxu1 }
 0x1f8   : > { %3481 = vst [vmem:[%s6120_s12 + $0x1d8] sm:$0xff] %v4488_v41  ;;  %v2969_v0 = vmax.f32 %v2818_v42, 0.0  ;;  %v2820_v7 = vadd.f32 %v2819_v5, %v6110_v23  ;;  %v2778_v8 = vpop.f32.mrf.mxu0 }
 0x1f9   : > { %v4457_v9 = vpack.c.bf16 %v2967_v63, %v2966_v1  ;;  %v2779_v48 = vadd.f32 %v2778_v8, %v6110_v23  ;;  %v2821_v10 = vpop.f32.mrf.mxu1  ;;  %v3030_v24 = vmax.f32 %v2777_v2, 0.0 }
 0x1fa   : > { %v4458_v52 = vpack.c.bf16 %v2969_v0, %v2968_v3  ;;  %v2822_v11 = vadd.f32 %v2821_v10, %v6110_v23  ;;  %v2858_v4 = vpop.f32.mrf.mxu0  ;;  %v3032_v14 = vmax.f32 %v2820_v7, 0.0 }
 0x1fb   : > { %3450 = vst [vmem:[%s6120_s12 + $0xe0] sm:$0xff] %v4457_v9  ;;  %v3031_v12 = vmax.f32 %v2779_v48, 0.0  ;;  %v2859_v13 = vadd.f32 %v2858_v4, %v6106_v37  ;;  %v2901_v57 = vpop.f32.mrf.mxu1 }
 0x1fc   : > { %3451 = vst [vmem:[%s6120_s12 + $0xe8] sm:$0xff] %v4458_v52  ;;  %v3033_v62 = vmax.f32 %v2822_v11, 0.0  ;;  %v2902_v15 = vadd.f32 %v2901_v57, %v6106_v37  ;;  %v2860_v59 = vpop.f32.mrf.mxu0 }
 0x1fd   : > { %v4489_v60 = vpack.c.bf16 %v3031_v12, %v3030_v24  ;;  %v2861_v16 = vadd.f32 %v2860_v59, %v6106_v37  ;;  %v2903_v45 = vpop.f32.mrf.mxu1  ;;  %v2970_v32 = vmax.f32 %v2859_v13, 0.0 }
 0x1fe   : > { %v4490_v44 = vpack.c.bf16 %v3033_v62, %v3032_v14  ;;  %v2904_v28 = vadd.f32 %v2903_v45, %v6106_v37  ;;  %v2862_v6 = vpop.f32.mrf.mxu0  ;;  %v2972_v21 = vmax.f32 %v2902_v15, 0.0 }
 0x1ff   : > { %3482 = vst [vmem:[%s6120_s12 + $0x1e0] sm:$0xff] %v4489_v60  ;;  %v2971_v20 = vmax.f32 %v2861_v16, 0.0  ;;  %v2863_v19 = vadd.f32 %v2862_v6, %v6110_v23  ;;  %v2905_v33 = vpop.f32.mrf.mxu1 }
 0x200   : > { %3483 = vst [vmem:[%s6120_s12 + $0x1e8] sm:$0xff] %v4490_v44  ;;  %v2973_v38 = vmax.f32 %v2904_v28, 0.0  ;;  %v2906_v58 = vadd.f32 %v2905_v33, %v6110_v23  ;;  %v2864_v39 = vpop.f32.mrf.mxu0 }
 0x201   : > { %v4459_v35 = vpack.c.bf16 %v2971_v20, %v2970_v32  ;;  %v2865_v37 = vadd.f32 %v2864_v39, %v6110_v23  ;;  %v2907_v36 = vpop.f32.mrf.mxu1  ;;  %v3034_v29 = vmax.f32 %v2863_v19, 0.0 }
 0x202   : > { %v4460_v18 = vpack.c.bf16 %v2973_v38, %v2972_v21  ;;  %v2908_v17 = vadd.f32 %v2907_v36, %v6110_v23  ;;  %v3036_v49 = vmax.f32 %v2906_v58, 0.0 }
 0x203   : > { %3452 = vst [vmem:[%s6120_s12 + $0xf0] sm:$0xff] %v4459_v35  ;;  %v3035_v30 = vmax.f32 %v2865_v37, 0.0 }
 0x204   : > { %3453 = vst [vmem:[%s6120_s12 + $0xf8] sm:$0xff] %v4460_v18  ;;  %v3037_v31 = vmax.f32 %v2908_v17, 0.0  ;;  %3492 = sbr.rel (!%p5123_p5) target bundleno = 669 (0x29d), region = 102 }
 0x205   : > { %v4491_v46 = vpack.c.bf16 %v3035_v30, %v3034_v29 }
 0x206   : > { %v4492_v50 = vpack.c.bf16 %v3037_v31, %v3036_v49 }
 0x207   : > { %3484 = vst [vmem:[%s6120_s12 + $0x1f0] sm:$0xff] %v4491_v46 }
 0x208   : > { %3485 = vst [vmem:[%s6120_s12 + $0x1f8] sm:$0xff] %v4492_v50 }
 0x209   : > { %s6780_s26 = smov (!%p3495_p1, %s3494_s26), 64 }
 0x20a   : > { %s4395_s8 = sshll.u32 %s6780_s26, 7  ;;  %s6315_s9 = sshll.u32 %s6780_s26, 2 }
 0x20b   : > { %p4399_p2 = scmp.eq.s32.totalorder %s4395_s8, 0 }
 0x20c   : > { %p3505_p3 = scmp.lt.u32.totalorder (!%p4399_p2), %s6315_s9, 8 }
 0x20d   : > { %3504 = sbr.rel (%p4399_p2) target bundleno = 669 (0x29d), region = 106 }
 0x212   : > { %3508 = sbr.rel (%p3505_p3) target bundleno = 659 (0x293), region = 110  ;;  %s6319_s20 = sand.u32 (!%p3505_p3), 7, %s6315_s9  }
 0x213   : > { %p3527_p5 = scmp.eq.s32.totalorder (!%p3505_p3), %s6319_s20, 0  ;;  %p4400_p4 = scmp.ne.s32.totalorder (!%p3505_p3), %s6319_s20, 0 }
 0x217   : > { %3530 = sbr.rel (%p4400_p4) target bundleno = 594 (0x252), region = 125  ;;  %s3531_s15 = sshrl.u32 (!%p4400_p4), %s6315_s9, 3 }
 0x218   : > { %s6326_s10 = sshrl.u32 (!%p4400_p4), %s3531_s15, 5 }
 0x219   : > { %p4401_p6 = scmp.le.s32.totalorder (!%p4400_p4), %s6326_s10, 0 }
 0x21c   : > { %4061 = sbr.rel (%p4401_p6) target bundleno = 578 (0x242), region = 273  ;;  %s6756_s5 = smov (!%p4401_p6), %s6313_s27 }
 0x21d   : > { %s6757_s6 = smov (!%p4401_p6), %s6120_s12  ;;  %s6335_s30 = smov (!%p4401_p6), 0  }
 0x21e   : > { %s6337_s18 = smov (!%p4401_p6), 0  }
 0x221 LB: >> { %v3544_v23 = vld [vmem:[%s5008_s6] sm:$0xff]  ;;  %v3546_v51 = vld [vmem:[%s5008_s6 + $0x8] sm:$0xff]  ;;  %v3548_v25 = vld [vmem:[%s5008_s6 + $0x10] sm:$0xff]  ;;  %s3672_s28 = sadd.s32 1, %s5012_s30  ;;  %s3538_s18 = sadd.s32 1, %s5016_s18   ;;  %s5016_s18 = sphi %s6337_s18, %s3538_s18   ;;  %s5012_s30 = sphi %s6335_s30, %s6760_s30   ;;  %s5008_s6 = sphi %s6757_s6, %s6759_s6   ;;  %s5004_s5 = sphi %s6756_s5, %s6758_s5  }
 0x222   : >> { %3545 = vst [vmem:[%s5004_s5] sm:$0xff] %v3544_v23  ;;  %3547 = vst [vmem:[%s5004_s5 + $0x8] sm:$0xff] %v3546_v51  ;;  %v3550_v53 = vld [vmem:[%s5008_s6 + $0x18] sm:$0xff]  ;;  %v3552_v26 = vld [vmem:[%s5008_s6 + $0x20] sm:$0xff]  ;;  %p3673_p7 = scmp.ge.s32.totalorder %s3672_s28, %s6326_s10  ;;  %p3537_p8 = scmp.ge.s32.totalorder %s3538_s18, %s6326_s10 }
 0x223   : >> { %3549 = vst [vmem:[%s5004_s5 + $0x10] sm:$0xff] %v3548_v25  ;;  %v3554_v43 = vld [vmem:[%s5008_s6 + $0x28] sm:$0xff]  ;;  %3551 = vst [vmem:[%s5004_s5 + $0x18] sm:$0xff] %v3550_v53  ;;  %v3556_v22 = vld [vmem:[%s5008_s6 + $0x30] sm:$0xff] }
 0x224   : >> { %3553 = vst [vmem:[%s5004_s5 + $0x20] sm:$0xff] %v3552_v26  ;;  %3555 = vst [vmem:[%s5004_s5 + $0x28] sm:$0xff] %v3554_v43  ;;  %v3558_v27 = vld [vmem:[%s5008_s6 + $0x38] sm:$0xff]  ;;  %v3560_v54 = vld [vmem:[%s5008_s6 + $0x40] sm:$0xff]  ;;  %s6782_s28 = smov (%p3673_p7, %s3672_s28), 0 }
 0x225   : >> { %3557 = vst [vmem:[%s5004_s5 + $0x30] sm:$0xff] %v3556_v22  ;;  %3559 = vst [vmem:[%s5004_s5 + $0x38] sm:$0xff] %v3558_v27  ;;  %v3562_v34 = vld [vmem:[%s5008_s6 + $0x48] sm:$0xff]  ;;  %v3564_v40 = vld [vmem:[%s5008_s6 + $0x50] sm:$0xff]  ;;  %s4402_s14 = sshll.u32 %s6782_s28, 8  ;;  %s6760_s30 = smov %s6782_s28 }
 0x226   : >> { %3561 = vst [vmem:[%s5004_s5 + $0x40] sm:$0xff] %v3560_v54  ;;  %v3566_v55 = vld [vmem:[%s5008_s6 + $0x58] sm:$0xff]  ;;  %3563 = vst [vmem:[%s5004_s5 + $0x48] sm:$0xff] %v3562_v34  ;;  %v3568_v47 = vld [vmem:[%s5008_s6 + $0x60] sm:$0xff]  ;;  %s6393_s4 = scalar_lea.vmem %s6120_s12, %s4402_s14 [#allocation3]   ;;  %s6396_s21 = scalar_lea.vmem %s6313_s27, %s4402_s14  }
 0x227   : >> { %3565 = vst [vmem:[%s5004_s5 + $0x50] sm:$0xff] %v3564_v40  ;;  %3567 = vst [vmem:[%s5004_s5 + $0x58] sm:$0xff] %v3566_v55  ;;  %v3570_v56 = vld [vmem:[%s5008_s6 + $0x68] sm:$0xff]  ;;  %v3572_v41 = vld [vmem:[%s5008_s6 + $0x70] sm:$0xff] }
 0x228   : >> { %3569 = vst [vmem:[%s5004_s5 + $0x60] sm:$0xff] %v3568_v47  ;;  %3571 = vst [vmem:[%s5004_s5 + $0x68] sm:$0xff] %v3570_v56  ;;  %v3574_v42 = vld [vmem:[%s5008_s6 + $0x78] sm:$0xff]  ;;  %v3576_v61 = vld [vmem:[%s5008_s6 + $0x80] sm:$0xff] }
 0x229   : >> { %3573 = vst [vmem:[%s5004_s5 + $0x70] sm:$0xff] %v3572_v41  ;;  %v3578_v1 = vld [vmem:[%s5008_s6 + $0x88] sm:$0xff]  ;;  %3575 = vst [vmem:[%s5004_s5 + $0x78] sm:$0xff] %v3574_v42  ;;  %v3580_v63 = vld [vmem:[%s5008_s6 + $0x90] sm:$0xff] }
 0x22a   : >> { %3577 = vst [vmem:[%s5004_s5 + $0x80] sm:$0xff] %v3576_v61  ;;  %3579 = vst [vmem:[%s5004_s5 + $0x88] sm:$0xff] %v3578_v1  ;;  %v3582_v2 = vld [vmem:[%s5008_s6 + $0x98] sm:$0xff]  ;;  %v3584_v5 = vld [vmem:[%s5008_s6 + $0xa0] sm:$0xff] }
 0x22b   : >> { %3581 = vst [vmem:[%s5004_s5 + $0x90] sm:$0xff] %v3580_v63  ;;  %3583 = vst [vmem:[%s5004_s5 + $0x98] sm:$0xff] %v3582_v2  ;;  %v3586_v3 = vld [vmem:[%s5008_s6 + $0xa8] sm:$0xff]  ;;  %v3588_v0 = vld [vmem:[%s5008_s6 + $0xb0] sm:$0xff] }
 0x22c   : >> { %3585 = vst [vmem:[%s5004_s5 + $0xa0] sm:$0xff] %v3584_v5  ;;  %v3590_v7 = vld [vmem:[%s5008_s6 + $0xb8] sm:$0xff]  ;;  %3587 = vst [vmem:[%s5004_s5 + $0xa8] sm:$0xff] %v3586_v3  ;;  %v3592_v8 = vld [vmem:[%s5008_s6 + $0xc0] sm:$0xff] }
 0x22d   : >> { %3589 = vst [vmem:[%s5004_s5 + $0xb0] sm:$0xff] %v3588_v0  ;;  %3591 = vst [vmem:[%s5004_s5 + $0xb8] sm:$0xff] %v3590_v7  ;;  %v3594_v9 = vld [vmem:[%s5008_s6 + $0xc8] sm:$0xff]  ;;  %v3596_v48 = vld [vmem:[%s5008_s6 + $0xd0] sm:$0xff] }
 0x22e   : >> { %3593 = vst [vmem:[%s5004_s5 + $0xc0] sm:$0xff] %v3592_v8  ;;  %3595 = vst [vmem:[%s5004_s5 + $0xc8] sm:$0xff] %v3594_v9  ;;  %v3598_v10 = vld [vmem:[%s5008_s6 + $0xd8] sm:$0xff]  ;;  %v3600_v52 = vld [vmem:[%s5008_s6 + $0xe0] sm:$0xff] }
 0x22f   : >> { %3597 = vst [vmem:[%s5004_s5 + $0xd0] sm:$0xff] %v3596_v48  ;;  %v3602_v11 = vld [vmem:[%s5008_s6 + $0xe8] sm:$0xff]  ;;  %3599 = vst [vmem:[%s5004_s5 + $0xd8] sm:$0xff] %v3598_v10  ;;  %v3604_v4 = vld [vmem:[%s5008_s6 + $0xf0] sm:$0xff] }
 0x230   : >> { %3601 = vst [vmem:[%s5004_s5 + $0xe0] sm:$0xff] %v3600_v52  ;;  %3603 = vst [vmem:[%s5004_s5 + $0xe8] sm:$0xff] %v3602_v11  ;;  %v3606_v24 = vld [vmem:[%s5008_s6 + $0xf8] sm:$0xff]  ;;  %v3608_v12 = vld [vmem:[%s5008_s6 + $0x100] sm:$0xff] }
 0x231   : >> { %3605 = vst [vmem:[%s5004_s5 + $0xf0] sm:$0xff] %v3604_v4  ;;  %3607 = vst [vmem:[%s5004_s5 + $0xf8] sm:$0xff] %v3606_v24  ;;  %v3610_v13 = vld [vmem:[%s5008_s6 + $0x108] sm:$0xff]  ;;  %v3612_v57 = vld [vmem:[%s5008_s6 + $0x110] sm:$0xff] }
 0x232   : >> { %3609 = vst [vmem:[%s5004_s5 + $0x310] sm:$0xff] %v3608_v12  ;;  %v3614_v14 = vld [vmem:[%s5008_s6 + $0x118] sm:$0xff]  ;;  %3611 = vst [vmem:[%s5004_s5 + $0x318] sm:$0xff] %v3610_v13  ;;  %v3616_v62 = vld [vmem:[%s5008_s6 + $0x120] sm:$0xff] }
 0x233   : >> { %3613 = vst [vmem:[%s5004_s5 + $0x320] sm:$0xff] %v3612_v57  ;;  %3615 = vst [vmem:[%s5004_s5 + $0x328] sm:$0xff] %v3614_v14  ;;  %v3618_v15 = vld [vmem:[%s5008_s6 + $0x128] sm:$0xff]  ;;  %v3620_v59 = vld [vmem:[%s5008_s6 + $0x130] sm:$0xff] }
 0x234   : >> { %3617 = vst [vmem:[%s5004_s5 + $0x330] sm:$0xff] %v3616_v62  ;;  %3619 = vst [vmem:[%s5004_s5 + $0x338] sm:$0xff] %v3618_v15  ;;  %v3622_v60 = vld [vmem:[%s5008_s6 + $0x138] sm:$0xff]  ;;  %v3624_v16 = vld [vmem:[%s5008_s6 + $0x140] sm:$0xff] }
 0x235   : >> { %3621 = vst [vmem:[%s5004_s5 + $0x340] sm:$0xff] %v3620_v59  ;;  %v3626_v45 = vld [vmem:[%s5008_s6 + $0x148] sm:$0xff]  ;;  %3623 = vst [vmem:[%s5004_s5 + $0x348] sm:$0xff] %v3622_v60  ;;  %v3628_v44 = vld [vmem:[%s5008_s6 + $0x150] sm:$0xff] }
 0x236   : >> { %3625 = vst [vmem:[%s5004_s5 + $0x350] sm:$0xff] %v3624_v16  ;;  %3627 = vst [vmem:[%s5004_s5 + $0x358] sm:$0xff] %v3626_v45  ;;  %v3630_v28 = vld [vmem:[%s5008_s6 + $0x158] sm:$0xff]  ;;  %v3632_v6 = vld [vmem:[%s5008_s6 + $0x160] sm:$0xff] }
 0x237   : >> { %3629 = vst [vmem:[%s5004_s5 + $0x360] sm:$0xff] %v3628_v44  ;;  %3631 = vst [vmem:[%s5004_s5 + $0x368] sm:$0xff] %v3630_v28  ;;  %v3634_v32 = vld [vmem:[%s5008_s6 + $0x168] sm:$0xff]  ;;  %v3636_v20 = vld [vmem:[%s5008_s6 + $0x170] sm:$0xff] }
 0x238   : >> { %3633 = vst [vmem:[%s5004_s5 + $0x370] sm:$0xff] %v3632_v6  ;;  %v3638_v19 = vld [vmem:[%s5008_s6 + $0x178] sm:$0xff]  ;;  %3635 = vst [vmem:[%s5004_s5 + $0x378] sm:$0xff] %v3634_v32  ;;  %v3640_v33 = vld [vmem:[%s5008_s6 + $0x180] sm:$0xff] }
 0x239   : >> { %3637 = vst [vmem:[%s5004_s5 + $0x380] sm:$0xff] %v3636_v20  ;;  %3639 = vst [vmem:[%s5004_s5 + $0x388] sm:$0xff] %v3638_v19  ;;  %v3642_v21 = vld [vmem:[%s5008_s6 + $0x188] sm:$0xff]  ;;  %v3644_v38 = vld [vmem:[%s5008_s6 + $0x190] sm:$0xff] }
 0x23a   : >> { %3641 = vst [vmem:[%s5004_s5 + $0x390] sm:$0xff] %v3640_v33  ;;  %3643 = vst [vmem:[%s5004_s5 + $0x398] sm:$0xff] %v3642_v21  ;;  %v3646_v58 = vld [vmem:[%s5008_s6 + $0x198] sm:$0xff]  ;;  %v3648_v39 = vld [vmem:[%s5008_s6 + $0x1a0] sm:$0xff] }
 0x23b   : >> { %3645 = vst [vmem:[%s5004_s5 + $0x3a0] sm:$0xff] %v3644_v38  ;;  %v3650_v35 = vld [vmem:[%s5008_s6 + $0x1a8] sm:$0xff]  ;;  %3647 = vst [vmem:[%s5004_s5 + $0x3a8] sm:$0xff] %v3646_v58  ;;  %v3652_v37 = vld [vmem:[%s5008_s6 + $0x1b0] sm:$0xff] }
 0x23c   : >> { %3649 = vst [vmem:[%s5004_s5 + $0x3b0] sm:$0xff] %v3648_v39  ;;  %3651 = vst [vmem:[%s5004_s5 + $0x3b8] sm:$0xff] %v3650_v35  ;;  %v3654_v36 = vld [vmem:[%s5008_s6 + $0x1b8] sm:$0xff]  ;;  %v3656_v18 = vld [vmem:[%s5008_s6 + $0x1c0] sm:$0xff] }
 0x23d   : >> { %3653 = vst [vmem:[%s5004_s5 + $0x3c0] sm:$0xff] %v3652_v37  ;;  %3655 = vst [vmem:[%s5004_s5 + $0x3c8] sm:$0xff] %v3654_v36  ;;  %v3658_v17 = vld [vmem:[%s5008_s6 + $0x1c8] sm:$0xff]  ;;  %v3660_v29 = vld [vmem:[%s5008_s6 + $0x1d0] sm:$0xff]  ;;  %3540 = sbr.rel (!%p3537_p8) target bundleno = 545 (0x221), region = 279 }
 0x23e   : >> { %3657 = vst [vmem:[%s5004_s5 + $0x3d0] sm:$0xff] %v3656_v18  ;;  %v3662_v30 = vld [vmem:[%s5008_s6 + $0x1d8] sm:$0xff]  ;;  %3659 = vst [vmem:[%s5004_s5 + $0x3d8] sm:$0xff] %v3658_v17  ;;  %v3664_v49 = vld [vmem:[%s5008_s6 + $0x1e0] sm:$0xff] }
 0x23f   : >> { %3661 = vst [vmem:[%s5004_s5 + $0x3e0] sm:$0xff] %v3660_v29  ;;  %3663 = vst [vmem:[%s5004_s5 + $0x3e8] sm:$0xff] %v3662_v30  ;;  %v3666_v31 = vld [vmem:[%s5008_s6 + $0x1e8] sm:$0xff]  ;;  %v3668_v46 = vld [vmem:[%s5008_s6 + $0x1f0] sm:$0xff] }
 0x240   : >> { %3665 = vst [vmem:[%s5004_s5 + $0x3f0] sm:$0xff] %v3664_v49  ;;  %3667 = vst [vmem:[%s5004_s5 + $0x3f8] sm:$0xff] %v3666_v31  ;;  %v3670_v50 = vld [vmem:[%s5008_s6 + $0x1f8] sm:$0xff]  ;;  %s6759_s6 = smov %s6393_s4 }
 0x241   : >> { %3669 = vst [vmem:[%s5004_s5 + $0x400] sm:$0xff] %v3668_v46  ;;  %3671 = vst [vmem:[%s5004_s5 + $0x408] sm:$0xff] %v3670_v50  ;;  %s6758_s5 = smov %s6396_s21 }
 0x242 PF: > { %s6502_s7 = sand.u32 31, %s3531_s15   ;;  %s4494_s11 = sshll.u32 %s6326_s10, 12 }
 0x243   : > { %s3683_s29 = sshra.s32 %s4494_s11, 4  ;;  %p4407_p9 = scmp.le.s32.totalorder %s6502_s7, 0 }
 0x244   : > { %s6506_s23 = scalar_lea.vmem %s6120_s12, %s3683_s29 [#allocation3]   ;;  %s3687_s24 = scalar_lea.vmem %s6313_s27, %s3683_s29  }
 0x245   : > { %4075 = sbr.rel (%p4407_p9) target bundleno = 594 (0x252), region = 284  ;;  %s5018_s25 = smov (!%p4407_p9), %s3687_s24  }
 0x246   : > { %s5022_s26 = smov (!%p4407_p9), %s6506_s23   ;;  %s5026_s17 = smov (!%p4407_p9), 0  }
 0x247   : > { %s5030_s22 = smov (!%p4407_p9), 0  }
 0x24a LB: >> { %v3699_v23 = vld [vmem:[%s5024_s26] sm:$0xff]  ;;  %s3703_s8 = sadd.s32 1, %s5028_s17  ;;  %s3693_s22 = sadd.s32 1, %s5032_s22   ;;  %s5032_s22 = sphi %s5030_s22, %s3693_s22   ;;  %s5028_s17 = sphi %s5026_s17, %s5027_s17   ;;  %s5024_s26 = sphi %s5022_s26, %s3708_s26   ;;  %s5020_s25 = sphi %s5018_s25, %s3709_s25  }
 0x24b   : >> { %v3701_v51 = vld [vmem:[%s5024_s26 + $0x100] sm:$0xff]  ;;  %3700 = vst [vmem:[%s5020_s25] sm:$0xff] %v3699_v23  ;;  %p3704_p10 = scmp.ge.s32.totalorder %s3703_s8, %s6502_s7  ;;  %p3692_p11 = scmp.ge.s32.totalorder %s3693_s22, %s6502_s7 }
 0x24c   : >> { %3702 = vst [vmem:[%s5020_s25 + $0x310] sm:$0xff] %v3701_v51 }
 0x24d   : >> { %s6784_s8 = smov (%p3704_p10, %s3703_s8), 0  ;;  %3695 = sbr.rel (!%p3692_p11) target bundleno = 586 (0x24a), region = 290 }
 0x24e   : >> { %s4408_s15 = sshll.u32 %s6784_s8, 3  ;;  %s5027_s17 = smov %s6784_s8  }
 0x24f   : >> { %s3708_s26 = scalar_lea.vmem %s6506_s23, %s4408_s15 [#allocation3]   ;;  %s3709_s25 = scalar_lea.vmem %s3687_s24, %s4408_s15  }
 0x252 PF: > { %3712 = sbr.rel (%p3527_p5) target bundleno = 659 (0x293), region = 143  ;;  %s3714_s10 = ssub.s32 (!%p3527_p5), %s6315_s9, %s6319_s20 }
 0x253   : > { %s3718_s5 = sshrl.u32 (!%p3527_p5), %s6315_s9, 3  ;;  %s6520_s6 = scalar_lea.vmem (!%p3527_p5), %s6120_s12, %s3714_s10 [#allocation3] }
 0x254   : > { %s6523_s30 = scalar_lea.vmem (!%p3527_p5), %s6313_s27, %s3714_s10  ;;  %s6527_s18 = sshrl.u32 (!%p3527_p5), %s3718_s5, 5 }
 0x255   : > { %p4410_p12 = scmp.le.s32.totalorder (!%p3527_p5), %s6527_s18, 0 }
 0x257   : > { %4089 = sbr.rel (%p4410_p12) target bundleno = 637 (0x27d), region = 295  ;;  %s6761_s28 = smov (!%p4410_p12), %s6313_s27 }
 0x258   : > { %s6762_s14 = smov (!%p4410_p12), %s6120_s12  ;;  %s6536_s4 = smov (!%p4410_p12), 0  }
 0x259   : > { %s6538_s21 = smov (!%p4410_p12), 0  }
 0x25c LB: >> { %v3731_v25 = vld [vmem:[%s5040_s14] sm:$0xff]  ;;  %v3733_v53 = vld [vmem:[%s5040_s14 + $0x8] sm:$0xff]  ;;  %v3735_v26 = vld [vmem:[%s5040_s14 + $0x10] sm:$0xff]  ;;  %s3859_s7 = sadd.s32 1, %s5044_s4  ;;  %s3725_s21 = sadd.s32 1, %s5048_s21   ;;  %s5048_s21 = sphi %s6538_s21, %s3725_s21   ;;  %s5044_s4 = sphi %s6536_s4, %s6765_s4   ;;  %s5040_s14 = sphi %s6762_s14, %s6764_s14   ;;  %s5036_s28 = sphi %s6761_s28, %s6763_s28  }
 0x25d   : >> { %3732 = vst [vmem:[%s5036_s28] sm:$0xff] %v3731_v25  ;;  %3734 = vst [vmem:[%s5036_s28 + $0x8] sm:$0xff] %v3733_v53  ;;  %v3737_v43 = vld [vmem:[%s5040_s14 + $0x18] sm:$0xff]  ;;  %v3739_v22 = vld [vmem:[%s5040_s14 + $0x20] sm:$0xff]  ;;  %p3860_p13 = scmp.ge.s32.totalorder %s3859_s7, %s6527_s18  ;;  %p3724_p0 = scmp.ge.s32.totalorder %s3725_s21, %s6527_s18 }
 0x25e   : >> { %3736 = vst [vmem:[%s5036_s28 + $0x10] sm:$0xff] %v3735_v26  ;;  %v3741_v27 = vld [vmem:[%s5040_s14 + $0x28] sm:$0xff]  ;;  %3738 = vst [vmem:[%s5036_s28 + $0x18] sm:$0xff] %v3737_v43  ;;  %v3743_v54 = vld [vmem:[%s5040_s14 + $0x30] sm:$0xff] }
 0x25f   : >> { %3740 = vst [vmem:[%s5036_s28 + $0x20] sm:$0xff] %v3739_v22  ;;  %3742 = vst [vmem:[%s5036_s28 + $0x28] sm:$0xff] %v3741_v27  ;;  %v3745_v34 = vld [vmem:[%s5040_s14 + $0x38] sm:$0xff]  ;;  %v3747_v40 = vld [vmem:[%s5040_s14 + $0x40] sm:$0xff]  ;;  %s6786_s7 = smov (%p3860_p13, %s3859_s7), 0 }
 0x260   : >> { %3744 = vst [vmem:[%s5036_s28 + $0x30] sm:$0xff] %v3743_v54  ;;  %3746 = vst [vmem:[%s5036_s28 + $0x38] sm:$0xff] %v3745_v34  ;;  %v3749_v55 = vld [vmem:[%s5040_s14 + $0x48] sm:$0xff]  ;;  %v3751_v47 = vld [vmem:[%s5040_s14 + $0x50] sm:$0xff]  ;;  %s4411_s11 = sshll.u32 %s6786_s7, 8  ;;  %s6765_s4 = smov %s6786_s7 }
 0x261   : >> { %3748 = vst [vmem:[%s5036_s28 + $0x40] sm:$0xff] %v3747_v40  ;;  %v3753_v56 = vld [vmem:[%s5040_s14 + $0x58] sm:$0xff]  ;;  %3750 = vst [vmem:[%s5036_s28 + $0x48] sm:$0xff] %v3749_v55  ;;  %v3755_v41 = vld [vmem:[%s5040_s14 + $0x60] sm:$0xff]  ;;  %s6594_s29 = scalar_lea.vmem %s6120_s12, %s4411_s11 [#allocation3]   ;;  %s6597_s23 = scalar_lea.vmem %s6313_s27, %s4411_s11  }
 0x262   : >> { %3752 = vst [vmem:[%s5036_s28 + $0x50] sm:$0xff] %v3751_v47  ;;  %3754 = vst [vmem:[%s5036_s28 + $0x58] sm:$0xff] %v3753_v56  ;;  %v3757_v42 = vld [vmem:[%s5040_s14 + $0x68] sm:$0xff]  ;;  %v3759_v61 = vld [vmem:[%s5040_s14 + $0x70] sm:$0xff] }
 0x263   : >> { %3756 = vst [vmem:[%s5036_s28 + $0x60] sm:$0xff] %v3755_v41  ;;  %3758 = vst [vmem:[%s5036_s28 + $0x68] sm:$0xff] %v3757_v42  ;;  %v3761_v1 = vld [vmem:[%s5040_s14 + $0x78] sm:$0xff]  ;;  %v3763_v63 = vld [vmem:[%s5040_s14 + $0x80] sm:$0xff] }
 0x264   : >> { %3760 = vst [vmem:[%s5036_s28 + $0x70] sm:$0xff] %v3759_v61  ;;  %v3765_v2 = vld [vmem:[%s5040_s14 + $0x88] sm:$0xff]  ;;  %3762 = vst [vmem:[%s5036_s28 + $0x78] sm:$0xff] %v3761_v1  ;;  %v3767_v5 = vld [vmem:[%s5040_s14 + $0x90] sm:$0xff] }
 0x265   : >> { %3764 = vst [vmem:[%s5036_s28 + $0x80] sm:$0xff] %v3763_v63  ;;  %3766 = vst [vmem:[%s5036_s28 + $0x88] sm:$0xff] %v3765_v2  ;;  %v3769_v3 = vld [vmem:[%s5040_s14 + $0x98] sm:$0xff]  ;;  %v3771_v0 = vld [vmem:[%s5040_s14 + $0xa0] sm:$0xff] }
 0x266   : >> { %3768 = vst [vmem:[%s5036_s28 + $0x90] sm:$0xff] %v3767_v5  ;;  %3770 = vst [vmem:[%s5036_s28 + $0x98] sm:$0xff] %v3769_v3  ;;  %v3773_v7 = vld [vmem:[%s5040_s14 + $0xa8] sm:$0xff]  ;;  %v3775_v8 = vld [vmem:[%s5040_s14 + $0xb0] sm:$0xff] }
 0x267   : >> { %3772 = vst [vmem:[%s5036_s28 + $0xa0] sm:$0xff] %v3771_v0  ;;  %v3777_v9 = vld [vmem:[%s5040_s14 + $0xb8] sm:$0xff]  ;;  %3774 = vst [vmem:[%s5036_s28 + $0xa8] sm:$0xff] %v3773_v7  ;;  %v3779_v48 = vld [vmem:[%s5040_s14 + $0xc0] sm:$0xff] }
 0x268   : >> { %3776 = vst [vmem:[%s5036_s28 + $0xb0] sm:$0xff] %v3775_v8  ;;  %3778 = vst [vmem:[%s5036_s28 + $0xb8] sm:$0xff] %v3777_v9  ;;  %v3781_v10 = vld [vmem:[%s5040_s14 + $0xc8] sm:$0xff]  ;;  %v3783_v52 = vld [vmem:[%s5040_s14 + $0xd0] sm:$0xff] }
 0x269   : >> { %3780 = vst [vmem:[%s5036_s28 + $0xc0] sm:$0xff] %v3779_v48  ;;  %3782 = vst [vmem:[%s5036_s28 + $0xc8] sm:$0xff] %v3781_v10  ;;  %v3785_v11 = vld [vmem:[%s5040_s14 + $0xd8] sm:$0xff]  ;;  %v3787_v4 = vld [vmem:[%s5040_s14 + $0xe0] sm:$0xff] }
 0x26a   : >> { %3784 = vst [vmem:[%s5036_s28 + $0xd0] sm:$0xff] %v3783_v52  ;;  %v3789_v24 = vld [vmem:[%s5040_s14 + $0xe8] sm:$0xff]  ;;  %3786 = vst [vmem:[%s5036_s28 + $0xd8] sm:$0xff] %v3785_v11  ;;  %v3791_v12 = vld [vmem:[%s5040_s14 + $0xf0] sm:$0xff] }
 0x26b   : >> { %3788 = vst [vmem:[%s5036_s28 + $0xe0] sm:$0xff] %v3787_v4  ;;  %3790 = vst [vmem:[%s5036_s28 + $0xe8] sm:$0xff] %v3789_v24  ;;  %v3793_v13 = vld [vmem:[%s5040_s14 + $0xf8] sm:$0xff]  ;;  %v3795_v57 = vld [vmem:[%s5040_s14 + $0x100] sm:$0xff] }
 0x26c   : >> { %3792 = vst [vmem:[%s5036_s28 + $0xf0] sm:$0xff] %v3791_v12  ;;  %3794 = vst [vmem:[%s5036_s28 + $0xf8] sm:$0xff] %v3793_v13  ;;  %v3797_v14 = vld [vmem:[%s5040_s14 + $0x108] sm:$0xff]  ;;  %v3799_v62 = vld [vmem:[%s5040_s14 + $0x110] sm:$0xff] }
 0x26d   : >> { %3796 = vst [vmem:[%s5036_s28 + $0x310] sm:$0xff] %v3795_v57  ;;  %v3801_v15 = vld [vmem:[%s5040_s14 + $0x118] sm:$0xff]  ;;  %3798 = vst [vmem:[%s5036_s28 + $0x318] sm:$0xff] %v3797_v14  ;;  %v3803_v59 = vld [vmem:[%s5040_s14 + $0x120] sm:$0xff] }
 0x26e   : >> { %3800 = vst [vmem:[%s5036_s28 + $0x320] sm:$0xff] %v3799_v62  ;;  %3802 = vst [vmem:[%s5036_s28 + $0x328] sm:$0xff] %v3801_v15  ;;  %v3805_v60 = vld [vmem:[%s5040_s14 + $0x128] sm:$0xff]  ;;  %v3807_v16 = vld [vmem:[%s5040_s14 + $0x130] sm:$0xff] }
 0x26f   : >> { %3804 = vst [vmem:[%s5036_s28 + $0x330] sm:$0xff] %v3803_v59  ;;  %3806 = vst [vmem:[%s5036_s28 + $0x338] sm:$0xff] %v3805_v60  ;;  %v3809_v45 = vld [vmem:[%s5040_s14 + $0x138] sm:$0xff]  ;;  %v3811_v44 = vld [vmem:[%s5040_s14 + $0x140] sm:$0xff] }
 0x270   : >> { %3808 = vst [vmem:[%s5036_s28 + $0x340] sm:$0xff] %v3807_v16  ;;  %v3813_v28 = vld [vmem:[%s5040_s14 + $0x148] sm:$0xff]  ;;  %3810 = vst [vmem:[%s5036_s28 + $0x348] sm:$0xff] %v3809_v45  ;;  %v3815_v6 = vld [vmem:[%s5040_s14 + $0x150] sm:$0xff] }
 0x271   : >> { %3812 = vst [vmem:[%s5036_s28 + $0x350] sm:$0xff] %v3811_v44  ;;  %3814 = vst [vmem:[%s5036_s28 + $0x358] sm:$0xff] %v3813_v28  ;;  %v3817_v32 = vld [vmem:[%s5040_s14 + $0x158] sm:$0xff]  ;;  %v3819_v20 = vld [vmem:[%s5040_s14 + $0x160] sm:$0xff] }
 0x272   : >> { %3816 = vst [vmem:[%s5036_s28 + $0x360] sm:$0xff] %v3815_v6  ;;  %3818 = vst [vmem:[%s5036_s28 + $0x368] sm:$0xff] %v3817_v32  ;;  %v3821_v19 = vld [vmem:[%s5040_s14 + $0x168] sm:$0xff]  ;;  %v3823_v33 = vld [vmem:[%s5040_s14 + $0x170] sm:$0xff] }
 0x273   : >> { %3820 = vst [vmem:[%s5036_s28 + $0x370] sm:$0xff] %v3819_v20  ;;  %v3825_v21 = vld [vmem:[%s5040_s14 + $0x178] sm:$0xff]  ;;  %3822 = vst [vmem:[%s5036_s28 + $0x378] sm:$0xff] %v3821_v19  ;;  %v3827_v38 = vld [vmem:[%s5040_s14 + $0x180] sm:$0xff] }
 0x274   : >> { %3824 = vst [vmem:[%s5036_s28 + $0x380] sm:$0xff] %v3823_v33  ;;  %3826 = vst [vmem:[%s5036_s28 + $0x388] sm:$0xff] %v3825_v21  ;;  %v3829_v58 = vld [vmem:[%s5040_s14 + $0x188] sm:$0xff]  ;;  %v3831_v39 = vld [vmem:[%s5040_s14 + $0x190] sm:$0xff] }
 0x275   : >> { %3828 = vst [vmem:[%s5036_s28 + $0x390] sm:$0xff] %v3827_v38  ;;  %3830 = vst [vmem:[%s5036_s28 + $0x398] sm:$0xff] %v3829_v58  ;;  %v3833_v35 = vld [vmem:[%s5040_s14 + $0x198] sm:$0xff]  ;;  %v3835_v37 = vld [vmem:[%s5040_s14 + $0x1a0] sm:$0xff] }
 0x276   : >> { %3832 = vst [vmem:[%s5036_s28 + $0x3a0] sm:$0xff] %v3831_v39  ;;  %v3837_v36 = vld [vmem:[%s5040_s14 + $0x1a8] sm:$0xff]  ;;  %3834 = vst [vmem:[%s5036_s28 + $0x3a8] sm:$0xff] %v3833_v35  ;;  %v3839_v18 = vld [vmem:[%s5040_s14 + $0x1b0] sm:$0xff] }
 0x277   : >> { %3836 = vst [vmem:[%s5036_s28 + $0x3b0] sm:$0xff] %v3835_v37  ;;  %3838 = vst [vmem:[%s5036_s28 + $0x3b8] sm:$0xff] %v3837_v36  ;;  %v3841_v17 = vld [vmem:[%s5040_s14 + $0x1b8] sm:$0xff]  ;;  %v3843_v29 = vld [vmem:[%s5040_s14 + $0x1c0] sm:$0xff] }
 0x278   : >> { %3840 = vst [vmem:[%s5036_s28 + $0x3c0] sm:$0xff] %v3839_v18  ;;  %3842 = vst [vmem:[%s5036_s28 + $0x3c8] sm:$0xff] %v3841_v17  ;;  %v3845_v30 = vld [vmem:[%s5040_s14 + $0x1c8] sm:$0xff]  ;;  %v3847_v49 = vld [vmem:[%s5040_s14 + $0x1d0] sm:$0xff]  ;;  %3727 = sbr.rel (!%p3724_p0) target bundleno = 604 (0x25c), region = 301 }
 0x279   : >> { %3844 = vst [vmem:[%s5036_s28 + $0x3d0] sm:$0xff] %v3843_v29  ;;  %v3849_v31 = vld [vmem:[%s5040_s14 + $0x1d8] sm:$0xff]  ;;  %3846 = vst [vmem:[%s5036_s28 + $0x3d8] sm:$0xff] %v3845_v30  ;;  %v3851_v46 = vld [vmem:[%s5040_s14 + $0x1e0] sm:$0xff] }
 0x27a   : >> { %3848 = vst [vmem:[%s5036_s28 + $0x3e0] sm:$0xff] %v3847_v49  ;;  %3850 = vst [vmem:[%s5036_s28 + $0x3e8] sm:$0xff] %v3849_v31  ;;  %v3853_v50 = vld [vmem:[%s5040_s14 + $0x1e8] sm:$0xff]  ;;  %v3855_v23 = vld [vmem:[%s5040_s14 + $0x1f0] sm:$0xff] }
 0x27b   : >> { %3852 = vst [vmem:[%s5036_s28 + $0x3f0] sm:$0xff] %v3851_v46  ;;  %3854 = vst [vmem:[%s5036_s28 + $0x3f8] sm:$0xff] %v3853_v50  ;;  %v3857_v51 = vld [vmem:[%s5040_s14 + $0x1f8] sm:$0xff]  ;;  %s6764_s14 = smov %s6594_s29 }
 0x27c   : >> { %3856 = vst [vmem:[%s5036_s28 + $0x400] sm:$0xff] %v3855_v23  ;;  %3858 = vst [vmem:[%s5036_s28 + $0x408] sm:$0xff] %v3857_v51  ;;  %s6763_s28 = smov %s6597_s23 }
 0x27d PF: > { %s6703_s24 = sand.u32 31, %s3718_s5   ;;  %s4496_s25 = sshll.u32 %s6527_s18, 12 }
 0x27e   : > { %s3870_s26 = sshra.s32 %s4496_s25, 4  ;;  %p4416_p1 = scmp.le.s32.totalorder %s6703_s24, 0 }
 0x27f   : > { %s6707_s17 = scalar_lea.vmem %s6120_s12, %s3870_s26 [#allocation3]   ;;  %s3874_s22 = scalar_lea.vmem %s6313_s27, %s3870_s26  }
 0x280   : > { %4103 = sbr.rel (%p4416_p1) target bundleno = 653 (0x28d), region = 306  ;;  %s5050_s8 = smov (!%p4416_p1), %s3874_s22  }
 0x281   : > { %s5054_s15 = smov (!%p4416_p1), %s6707_s17   ;;  %s5058_s10 = smov (!%p4416_p1), 0  }
 0x282   : > { %s5062_s28 = smov (!%p4416_p1), 0  }
 0x285 LB: >> { %v3886_v25 = vld [vmem:[%s5056_s15] sm:$0xff]  ;;  %s3890_s5 = sadd.s32 1, %s5060_s10  ;;  %s3880_s28 = sadd.s32 1, %s5064_s28   ;;  %s5064_s28 = sphi %s5062_s28, %s3880_s28   ;;  %s5060_s10 = sphi %s5058_s10, %s5059_s10   ;;  %s5056_s15 = sphi %s5054_s15, %s3895_s15   ;;  %s5052_s8 = sphi %s5050_s8, %s3896_s8  }
 0x286   : >> { %v3888_v53 = vld [vmem:[%s5056_s15 + $0x100] sm:$0xff]  ;;  %3887 = vst [vmem:[%s5052_s8] sm:$0xff] %v3886_v25  ;;  %p3891_p2 = scmp.ge.s32.totalorder %s3890_s5, %s6703_s24  ;;  %p3879_p3 = scmp.ge.s32.totalorder %s3880_s28, %s6703_s24 }
 0x287   : >> { %3889 = vst [vmem:[%s5052_s8 + $0x310] sm:$0xff] %v3888_v53 }
 0x288   : >> { %s6788_s5 = smov (%p3891_p2, %s3890_s5), 0  ;;  %3882 = sbr.rel (!%p3879_p3) target bundleno = 645 (0x285), region = 312 }
 0x289   : >> { %s4417_s18 = sshll.u32 %s6788_s5, 3  ;;  %s5059_s10 = smov %s6788_s5  }
 0x28a   : >> { %s3895_s15 = scalar_lea.vmem %s6707_s17, %s4417_s18 [#allocation3]   ;;  %s3896_s8 = scalar_lea.vmem %s3874_s22, %s4417_s18  }
 0x28d PF: > { %s5070_s14 = smov 1  }
 0x28e   : > { %s3897_s4 = sshll.u32 %s5070_s14, %s6319_s20 }
 0x28f   : > { %s4419_s21 = sadd.s32 4294967295, %s3897_s4 }
 0x290   : > { %v3907_v26 = vld [vmem:[%s6520_s6] sm:%s4419_s21] }
 0x291   : > { %v3909_v43 = vld [vmem:[%s6520_s6 + $0x100] sm:%s4419_s21]  ;;  %3908 = vst [vmem:[%s6523_s30] sm:%s4419_s21] %v3907_v26 }
 0x292   : > { %3910 = vst [vmem:[%s6523_s30 + $0x310] sm:%s4419_s21] %v3909_v43 }
 0x293 PF: > { %p4420_p5 = scmp.ge.u32.totalorder %s6315_s9, 8 }
 0x294   : > { %s5071_s7 = smov (!%p4420_p5), 1  }
 0x295   : > { %3511 = sbr.rel (%p4420_p5) target bundleno = 669 (0x29d), region = 114  ;;  %s3512_s11 = sshll.u32 (!%p4420_p5), %s5071_s7, %s6315_s9 }
 0x296   : > { %s4421_s29 = sadd.s32 (!%p4420_p5), 4294967295, %s3512_s11 }
 0x29a   : > { %v3522_v22 = vld [vmem:[%s6120_s12] sm:%s4421_s29] }
 0x29b   : > { %v3524_v27 = vld [vmem:[%s6120_s12 + $0x100] sm:%s4421_s29]  ;;  %3523 = vst [vmem:[%s6313_s27] sm:%s4421_s29] %v3522_v22 }
 0x29c   : > { %3525 = vst [vmem:[%s6313_s27 + $0x310] sm:%s4421_s29] %v3524_v27 }
 0x29d PF: > { %p10_p4 = scmp.ge.s32.totalorder %s5111_s16, 6   ;;  %s6766_s12 = smov %s4932_s13 }
 0x29e   : > { %s6767_s13 = smov %s5121_s19  ;;  %s6768_s14 = smov %s5111_s16 }
 0x29f   :  { %12 = sbr.rel (!%p10_p4) target bundleno = 2 (0x2), region = 323 }

// kernel: critic_forward.7
= control target key start
LH: loop header
LB: loop body
LE: loop exit
PB: predicated region body
PF: predicated region fallthrough
CT: control target
= control target key end

     0   :  { %s1647_s30 = smov 0   ;;  %s1649_s10 = smov 0   ;;  %s2139_s0 = inlined_call_operand.vmem [shape: bf16[16,6084], index: 0, kind: input, shape index: {}]   ;;  %s2140_s1 = inlined_call_operand.vmem [shape: bf16[16,6084], index: 1, kind: input, shape index: {}]   ;;  %s2141_s2 = inlined_call_operand.vmem [shape: bf16[16,6084], index: 2, kind: input, shape index: {}]   ;;  %s2142_s3 = inlined_call_operand.vmem [shape: bf16[16,6084], index: 3, kind: input, shape index: {}]   ;;  %s2143_s4 = inlined_call_operand.vmem [shape: bf16[16,6084], index: 4, kind: input, shape index: {}]   ;;  %s2144_s5 = inlined_call_operand.vmem [shape: bf16[16,6084], index: 5, kind: input, shape index: {}]   ;;  %s2145_s6 = inlined_call_operand.vmem [shape: bf16[16,6084], index: 6, kind: input, shape index: {}]   ;;  %s2146_s7 = inlined_call_operand.vmem [shape: bf16[16,6084], index: 7, kind: input, shape index: {}]   ;;  %s2147_s8 = inlined_call_operand.vmem [shape: bf16[16,6084], index: 8, kind: input, shape index: {}]   ;;  %s2148_s9 = inlined_call_operand.vmem [shape: bf16[16,6084], index: 9, kind: output, shape index: {}]  }
   0x1   :  { %s1651_s11 = smov 0  }
   0x2 LB: > { %s1492_s12 = sadd.s32 4294967295, %s1595_s11   ;;  %s1664_s13 = sadd.s32 1, %s1595_s11   ;;  %s1595_s11 = sphi %s1651_s11, %s2153_s11   ;;  %s1591_s10 = sphi %s1649_s10, %s2152_s10   ;;  %s1587_s30 = sphi %s1647_s30, %s2151_s30  }
   0x3   : > { %s23_s14 = ssub.s32 %s1595_s11, %s1664_s13  ;;  %s26_s15 = sadd.s32 1, %s1591_s10 }
   0x4   : > { %p24_p0 = scmp.eq.s32.totalorder %s23_s14, 0  ;;  %p33_p1 = scmp.ne.s32.totalorder %s1591_s10, %s1587_s30 }
   0x5   : > { %p34_p2 = scmp.eq.s32.totalorder %s1595_s11, 0  ;;  %p271_p3 = scmp.eq.s32.totalorder %s1492_s12, 2 }
   0x6   : > { %s1675_s16 = scalar_select %p24_p0, %s1591_s10, %s26_s15  }
   0x7   : > { %p1677_p4 = por %p34_p2, %p33_p1  ;;  %p1681_p5 = por %p271_p3, %p33_p1 }
   0x8   : > { %p1495_p6 = scmp.ge.s32.totalorder %s1595_s11, 3 }
   0xa   : > { %293 = sbr.rel (%p1495_p6) target bundleno = 123 (0x7b), region = 16 }
   0xf   : > { %296 = sbr.rel (!%p1677_p4) target bundleno = 27 (0x1b), region = 20  ;;  %s298_s19 = sand.u32 (%p1677_p4), 1, %s1591_s10  }
  0x10   : > { %s1539_s20 = sshll.u32 (%p1677_p4), %s1595_s11, 6  ;;  %s1496_s21 = sshll.u32 (%p1677_p4), %s298_s19, 7 }
  0x11   : > { %s1693_s24 = scalar_lea.vmem (%p1677_p4), %s2139_s0, %s1539_s20  ;;  %s300_s25 = scalar_lea.vmem (%p1677_p4), [#allocation2], %s1496_s21 }
  0x12   : > { %v316_v0 = vld [vmem:[%s1693_s24] sm:$0xff] (%p1677_p4)  ;;  %v318_v1 = vld [vmem:[%s1693_s24 + $0x8] sm:$0xff] (%p1677_p4)  ;;  %v320_v2 = vld [vmem:[%s1693_s24 + $0x10] sm:$0xff] (%p1677_p4) }
  0x13   : > { %317 = vst [vmem:[%s300_s25] sm:$0xff] (%p1677_p4), %v316_v0  ;;  %319 = vst [vmem:[%s300_s25 + $0x8] sm:$0xff] (%p1677_p4), %v318_v1  ;;  %v322_v3 = vld [vmem:[%s1693_s24 + $0x18] sm:$0xff] (%p1677_p4)  ;;  %v324_v4 = vld [vmem:[%s1693_s24 + $0x20] sm:$0xff] (%p1677_p4) }
  0x14   : > { %321 = vst [vmem:[%s300_s25 + $0x10] sm:$0xff] %v320_v2  ;;  %v326_v5 = vld [vmem:[%s1693_s24 + $0x28] sm:$0xff]  ;;  %323 = vst [vmem:[%s300_s25 + $0x18] sm:$0xff] %v322_v3  ;;  %v328_v6 = vld [vmem:[%s1693_s24 + $0x30] sm:$0xff] }
  0x15   : > { %325 = vst [vmem:[%s300_s25 + $0x20] sm:$0xff] %v324_v4  ;;  %327 = vst [vmem:[%s300_s25 + $0x28] sm:$0xff] %v326_v5  ;;  %v330_v7 = vld [vmem:[%s1693_s24 + $0x38] sm:$0xff]  ;;  %v332_v8 = vld [vmem:[%s1693_s24 + $0xc0] sm:$0xff] }
  0x16   : > { %329 = vst [vmem:[%s300_s25 + $0x30] sm:$0xff] %v328_v6  ;;  %331 = vst [vmem:[%s300_s25 + $0x38] sm:$0xff] %v330_v7  ;;  %v334_v9 = vld [vmem:[%s1693_s24 + $0xc8] sm:$0xff]  ;;  %v336_v10 = vld [vmem:[%s1693_s24 + $0xd0] sm:$0xff] }
  0x17   : > { %333 = vst [vmem:[%s300_s25 + $0x40] sm:$0xff] %v332_v8  ;;  %v338_v11 = vld [vmem:[%s1693_s24 + $0xd8] sm:$0xff]  ;;  %335 = vst [vmem:[%s300_s25 + $0x48] sm:$0xff] %v334_v9  ;;  %v340_v12 = vld [vmem:[%s1693_s24 + $0xe0] sm:$0xff] }
  0x18   : > { %337 = vst [vmem:[%s300_s25 + $0x50] sm:$0xff] %v336_v10  ;;  %339 = vst [vmem:[%s300_s25 + $0x58] sm:$0xff] %v338_v11  ;;  %v342_v13 = vld [vmem:[%s1693_s24 + $0xe8] sm:$0xff]  ;;  %v344_v14 = vld [vmem:[%s1693_s24 + $0xf0] sm:$0xff] }
  0x19   : > { %341 = vst [vmem:[%s300_s25 + $0x60] sm:$0xff] %v340_v12  ;;  %343 = vst [vmem:[%s300_s25 + $0x68] sm:$0xff] %v342_v13  ;;  %v346_v15 = vld [vmem:[%s1693_s24 + $0xf8] sm:$0xff] }
  0x1a   : > { %345 = vst [vmem:[%s300_s25 + $0x70] sm:$0xff] %v344_v14  ;;  %347 = vst [vmem:[%s300_s25 + $0x78] sm:$0xff] %v346_v15 }
  0x1b PF: > { %353 = sbr.rel (!%p1677_p4) target bundleno = 39 (0x27), region = 43  ;;  %s355_s26 = sand.u32 (%p1677_p4), 1, %s1591_s10  }
  0x1c   : > { %s1540_s27 = sshll.u32 (%p1677_p4), %s1595_s11, 6  ;;  %s1499_s28 = sshll.u32 (%p1677_p4), %s355_s26, 7 }
  0x1d   : > { %s1718_s15 = scalar_lea.vmem (%p1677_p4), %s2140_s1, %s1540_s27  ;;  %s357_s19 = scalar_lea.vmem (%p1677_p4), [#allocation3], %s1499_s28 }
  0x1e   : > { %v373_v16 = vld [vmem:[%s1718_s15] sm:$0xff] (%p1677_p4)  ;;  %v375_v17 = vld [vmem:[%s1718_s15 + $0x8] sm:$0xff] (%p1677_p4)  ;;  %v377_v18 = vld [vmem:[%s1718_s15 + $0x10] sm:$0xff] (%p1677_p4) }
  0x1f   : > { %374 = vst [vmem:[%s357_s19] sm:$0xff] (%p1677_p4), %v373_v16  ;;  %376 = vst [vmem:[%s357_s19 + $0x8] sm:$0xff] (%p1677_p4), %v375_v17  ;;  %v379_v19 = vld [vmem:[%s1718_s15 + $0x18] sm:$0xff] (%p1677_p4)  ;;  %v381_v20 = vld [vmem:[%s1718_s15 + $0x20] sm:$0xff] (%p1677_p4) }
  0x20   : > { %378 = vst [vmem:[%s357_s19 + $0x10] sm:$0xff] %v377_v18  ;;  %v383_v21 = vld [vmem:[%s1718_s15 + $0x28] sm:$0xff]  ;;  %380 = vst [vmem:[%s357_s19 + $0x18] sm:$0xff] %v379_v19  ;;  %v385_v22 = vld [vmem:[%s1718_s15 + $0x30] sm:$0xff] }
  0x21   : > { %382 = vst [vmem:[%s357_s19 + $0x20] sm:$0xff] %v381_v20  ;;  %384 = vst [vmem:[%s357_s19 + $0x28] sm:$0xff] %v383_v21  ;;  %v387_v23 = vld [vmem:[%s1718_s15 + $0x38] sm:$0xff]  ;;  %v389_v24 = vld [vmem:[%s1718_s15 + $0xc0] sm:$0xff] }
  0x22   : > { %386 = vst [vmem:[%s357_s19 + $0x30] sm:$0xff] %v385_v22  ;;  %388 = vst [vmem:[%s357_s19 + $0x38] sm:$0xff] %v387_v23  ;;  %v391_v25 = vld [vmem:[%s1718_s15 + $0xc8] sm:$0xff]  ;;  %v393_v26 = vld [vmem:[%s1718_s15 + $0xd0] sm:$0xff] }
  0x23   : > { %390 = vst [vmem:[%s357_s19 + $0x40] sm:$0xff] %v389_v24  ;;  %v395_v27 = vld [vmem:[%s1718_s15 + $0xd8] sm:$0xff]  ;;  %392 = vst [vmem:[%s357_s19 + $0x48] sm:$0xff] %v391_v25  ;;  %v397_v28 = vld [vmem:[%s1718_s15 + $0xe0] sm:$0xff] }
  0x24   : > { %394 = vst [vmem:[%s357_s19 + $0x50] sm:$0xff] %v393_v26  ;;  %396 = vst [vmem:[%s357_s19 + $0x58] sm:$0xff] %v395_v27  ;;  %v399_v29 = vld [vmem:[%s1718_s15 + $0xe8] sm:$0xff]  ;;  %v401_v30 = vld [vmem:[%s1718_s15 + $0xf0] sm:$0xff] }
  0x25   : > { %398 = vst [vmem:[%s357_s19 + $0x60] sm:$0xff] %v397_v28  ;;  %400 = vst [vmem:[%s357_s19 + $0x68] sm:$0xff] %v399_v29  ;;  %v403_v31 = vld [vmem:[%s1718_s15 + $0xf8] sm:$0xff] }
  0x26   : > { %402 = vst [vmem:[%s357_s19 + $0x70] sm:$0xff] %v401_v30  ;;  %404 = vst [vmem:[%s357_s19 + $0x78] sm:$0xff] %v403_v31 }
  0x27 PF: > { %410 = sbr.rel (!%p1677_p4) target bundleno = 51 (0x33), region = 66  ;;  %s412_s20 = sand.u32 (%p1677_p4), 1, %s1591_s10  }
  0x28   : > { %s1541_s21 = sshll.u32 (%p1677_p4), %s1595_s11, 6  ;;  %s1502_s22 = sshll.u32 (%p1677_p4), %s412_s20, 7 }
  0x29   : > { %s1743_s25 = scalar_lea.vmem (%p1677_p4), %s2141_s2, %s1541_s21  ;;  %s414_s26 = scalar_lea.vmem (%p1677_p4), [#allocation4], %s1502_s22 }
  0x2a   : > { %v430_v32 = vld [vmem:[%s1743_s25] sm:$0xff] (%p1677_p4)  ;;  %v432_v33 = vld [vmem:[%s1743_s25 + $0x8] sm:$0xff] (%p1677_p4)  ;;  %v434_v34 = vld [vmem:[%s1743_s25 + $0x10] sm:$0xff] (%p1677_p4) }
  0x2b   : > { %431 = vst [vmem:[%s414_s26] sm:$0xff] (%p1677_p4), %v430_v32  ;;  %433 = vst [vmem:[%s414_s26 + $0x8] sm:$0xff] (%p1677_p4), %v432_v33  ;;  %v436_v35 = vld [vmem:[%s1743_s25 + $0x18] sm:$0xff] (%p1677_p4)  ;;  %v438_v36 = vld [vmem:[%s1743_s25 + $0x20] sm:$0xff] (%p1677_p4) }
  0x2c   : > { %435 = vst [vmem:[%s414_s26 + $0x10] sm:$0xff] %v434_v34  ;;  %v440_v37 = vld [vmem:[%s1743_s25 + $0x28] sm:$0xff]  ;;  %437 = vst [vmem:[%s414_s26 + $0x18] sm:$0xff] %v436_v35  ;;  %v442_v38 = vld [vmem:[%s1743_s25 + $0x30] sm:$0xff] }
  0x2d   : > { %439 = vst [vmem:[%s414_s26 + $0x20] sm:$0xff] %v438_v36  ;;  %441 = vst [vmem:[%s414_s26 + $0x28] sm:$0xff] %v440_v37  ;;  %v444_v39 = vld [vmem:[%s1743_s25 + $0x38] sm:$0xff]  ;;  %v446_v40 = vld [vmem:[%s1743_s25 + $0xc0] sm:$0xff] }
  0x2e   : > { %443 = vst [vmem:[%s414_s26 + $0x30] sm:$0xff] %v442_v38  ;;  %445 = vst [vmem:[%s414_s26 + $0x38] sm:$0xff] %v444_v39  ;;  %v448_v41 = vld [vmem:[%s1743_s25 + $0xc8] sm:$0xff]  ;;  %v450_v42 = vld [vmem:[%s1743_s25 + $0xd0] sm:$0xff] }
  0x2f   : > { %447 = vst [vmem:[%s414_s26 + $0x40] sm:$0xff] %v446_v40  ;;  %v452_v43 = vld [vmem:[%s1743_s25 + $0xd8] sm:$0xff]  ;;  %449 = vst [vmem:[%s414_s26 + $0x48] sm:$0xff] %v448_v41  ;;  %v454_v44 = vld [vmem:[%s1743_s25 + $0xe0] sm:$0xff] }
  0x30   : > { %451 = vst [vmem:[%s414_s26 + $0x50] sm:$0xff] %v450_v42  ;;  %453 = vst [vmem:[%s414_s26 + $0x58] sm:$0xff] %v452_v43  ;;  %v456_v45 = vld [vmem:[%s1743_s25 + $0xe8] sm:$0xff]  ;;  %v458_v46 = vld [vmem:[%s1743_s25 + $0xf0] sm:$0xff] }
  0x31   : > { %455 = vst [vmem:[%s414_s26 + $0x60] sm:$0xff] %v454_v44  ;;  %457 = vst [vmem:[%s414_s26 + $0x68] sm:$0xff] %v456_v45  ;;  %v460_v47 = vld [vmem:[%s1743_s25 + $0xf8] sm:$0xff] }
  0x32   : > { %459 = vst [vmem:[%s414_s26 + $0x70] sm:$0xff] %v458_v46  ;;  %461 = vst [vmem:[%s414_s26 + $0x78] sm:$0xff] %v460_v47 }
  0x33 PF: > { %467 = sbr.rel (!%p1677_p4) target bundleno = 63 (0x3f), region = 89  ;;  %s469_s27 = sand.u32 (%p1677_p4), 1, %s1591_s10  }
  0x34   : > { %s1542_s28 = sshll.u32 (%p1677_p4), %s1595_s11, 6  ;;  %s1505_s29 = sshll.u32 (%p1677_p4), %s469_s27, 7 }
  0x35   : > { %s1768_s19 = scalar_lea.vmem (%p1677_p4), %s2142_s3, %s1542_s28  ;;  %s471_s20 = scalar_lea.vmem (%p1677_p4), [#allocation5], %s1505_s29 }
  0x36   : > { %v487_v48 = vld [vmem:[%s1768_s19] sm:$0xff] (%p1677_p4)  ;;  %v489_v49 = vld [vmem:[%s1768_s19 + $0x8] sm:$0xff] (%p1677_p4)  ;;  %v491_v50 = vld [vmem:[%s1768_s19 + $0x10] sm:$0xff] (%p1677_p4) }
  0x37   : > { %488 = vst [vmem:[%s471_s20] sm:$0xff] (%p1677_p4), %v487_v48  ;;  %490 = vst [vmem:[%s471_s20 + $0x8] sm:$0xff] (%p1677_p4), %v489_v49  ;;  %v493_v51 = vld [vmem:[%s1768_s19 + $0x18] sm:$0xff] (%p1677_p4)  ;;  %v495_v52 = vld [vmem:[%s1768_s19 + $0x20] sm:$0xff] (%p1677_p4) }
  0x38   : > { %492 = vst [vmem:[%s471_s20 + $0x10] sm:$0xff] %v491_v50  ;;  %v497_v53 = vld [vmem:[%s1768_s19 + $0x28] sm:$0xff]  ;;  %494 = vst [vmem:[%s471_s20 + $0x18] sm:$0xff] %v493_v51  ;;  %v499_v54 = vld [vmem:[%s1768_s19 + $0x30] sm:$0xff] }
  0x39   : > { %496 = vst [vmem:[%s471_s20 + $0x20] sm:$0xff] %v495_v52  ;;  %498 = vst [vmem:[%s471_s20 + $0x28] sm:$0xff] %v497_v53  ;;  %v501_v55 = vld [vmem:[%s1768_s19 + $0x38] sm:$0xff]  ;;  %v503_v56 = vld [vmem:[%s1768_s19 + $0xc0] sm:$0xff] }
  0x3a   : > { %500 = vst [vmem:[%s471_s20 + $0x30] sm:$0xff] %v499_v54  ;;  %502 = vst [vmem:[%s471_s20 + $0x38] sm:$0xff] %v501_v55  ;;  %v505_v57 = vld [vmem:[%s1768_s19 + $0xc8] sm:$0xff]  ;;  %v507_v58 = vld [vmem:[%s1768_s19 + $0xd0] sm:$0xff] }
  0x3b   : > { %504 = vst [vmem:[%s471_s20 + $0x40] sm:$0xff] %v503_v56  ;;  %v509_v59 = vld [vmem:[%s1768_s19 + $0xd8] sm:$0xff]  ;;  %506 = vst [vmem:[%s471_s20 + $0x48] sm:$0xff] %v505_v57  ;;  %v511_v60 = vld [vmem:[%s1768_s19 + $0xe0] sm:$0xff] }
  0x3c   : > { %508 = vst [vmem:[%s471_s20 + $0x50] sm:$0xff] %v507_v58  ;;  %510 = vst [vmem:[%s471_s20 + $0x58] sm:$0xff] %v509_v59  ;;  %v513_v61 = vld [vmem:[%s1768_s19 + $0xe8] sm:$0xff]  ;;  %v515_v62 = vld [vmem:[%s1768_s19 + $0xf0] sm:$0xff] }
  0x3d   : > { %512 = vst [vmem:[%s471_s20 + $0x60] sm:$0xff] %v511_v60  ;;  %514 = vst [vmem:[%s471_s20 + $0x68] sm:$0xff] %v513_v61  ;;  %v517_v63 = vld [vmem:[%s1768_s19 + $0xf8] sm:$0xff] }
  0x3e   : > { %516 = vst [vmem:[%s471_s20 + $0x70] sm:$0xff] %v515_v62  ;;  %518 = vst [vmem:[%s471_s20 + $0x78] sm:$0xff] %v517_v63 }
  0x3f PF: > { %524 = sbr.rel (!%p1677_p4) target bundleno = 75 (0x4b), region = 112  ;;  %s526_s21 = sand.u32 (%p1677_p4), 1, %s1591_s10  }
  0x40   : > { %s1543_s22 = sshll.u32 (%p1677_p4), %s1595_s11, 6  ;;  %s1508_s23 = sshll.u32 (%p1677_p4), %s526_s21, 7 }
  0x41   : > { %s1793_s26 = scalar_lea.vmem (%p1677_p4), %s2143_s4, %s1543_s22  ;;  %s528_s27 = scalar_lea.vmem (%p1677_p4), [#allocation6], %s1508_s23 }
  0x42   : > { %v544_v0 = vld [vmem:[%s1793_s26] sm:$0xff] (%p1677_p4)  ;;  %v546_v1 = vld [vmem:[%s1793_s26 + $0x8] sm:$0xff] (%p1677_p4)  ;;  %v548_v2 = vld [vmem:[%s1793_s26 + $0x10] sm:$0xff] (%p1677_p4) }
  0x43   : > { %545 = vst [vmem:[%s528_s27] sm:$0xff] (%p1677_p4), %v544_v0  ;;  %547 = vst [vmem:[%s528_s27 + $0x8] sm:$0xff] (%p1677_p4), %v546_v1  ;;  %v550_v3 = vld [vmem:[%s1793_s26 + $0x18] sm:$0xff] (%p1677_p4)  ;;  %v552_v4 = vld [vmem:[%s1793_s26 + $0x20] sm:$0xff] (%p1677_p4) }
  0x44   : > { %549 = vst [vmem:[%s528_s27 + $0x10] sm:$0xff] %v548_v2  ;;  %v554_v5 = vld [vmem:[%s1793_s26 + $0x28] sm:$0xff]  ;;  %551 = vst [vmem:[%s528_s27 + $0x18] sm:$0xff] %v550_v3  ;;  %v556_v6 = vld [vmem:[%s1793_s26 + $0x30] sm:$0xff] }
  0x45   : > { %553 = vst [vmem:[%s528_s27 + $0x20] sm:$0xff] %v552_v4  ;;  %555 = vst [vmem:[%s528_s27 + $0x28] sm:$0xff] %v554_v5  ;;  %v558_v7 = vld [vmem:[%s1793_s26 + $0x38] sm:$0xff]  ;;  %v560_v8 = vld [vmem:[%s1793_s26 + $0xc0] sm:$0xff] }
  0x46   : > { %557 = vst [vmem:[%s528_s27 + $0x30] sm:$0xff] %v556_v6  ;;  %559 = vst [vmem:[%s528_s27 + $0x38] sm:$0xff] %v558_v7  ;;  %v562_v9 = vld [vmem:[%s1793_s26 + $0xc8] sm:$0xff]  ;;  %v564_v10 = vld [vmem:[%s1793_s26 + $0xd0] sm:$0xff] }
  0x47   : > { %561 = vst [vmem:[%s528_s27 + $0x40] sm:$0xff] %v560_v8  ;;  %v566_v11 = vld [vmem:[%s1793_s26 + $0xd8] sm:$0xff]  ;;  %563 = vst [vmem:[%s528_s27 + $0x48] sm:$0xff] %v562_v9  ;;  %v568_v12 = vld [vmem:[%s1793_s26 + $0xe0] sm:$0xff] }
  0x48   : > { %565 = vst [vmem:[%s528_s27 + $0x50] sm:$0xff] %v564_v10  ;;  %567 = vst [vmem:[%s528_s27 + $0x58] sm:$0xff] %v566_v11  ;;  %v570_v13 = vld [vmem:[%s1793_s26 + $0xe8] sm:$0xff]  ;;  %v572_v14 = vld [vmem:[%s1793_s26 + $0xf0] sm:$0xff] }
  0x49   : > { %569 = vst [vmem:[%s528_s27 + $0x60] sm:$0xff] %v568_v12  ;;  %571 = vst [vmem:[%s528_s27 + $0x68] sm:$0xff] %v570_v13  ;;  %v574_v15 = vld [vmem:[%s1793_s26 + $0xf8] sm:$0xff] }
  0x4a   : > { %573 = vst [vmem:[%s528_s27 + $0x70] sm:$0xff] %v572_v14  ;;  %575 = vst [vmem:[%s528_s27 + $0x78] sm:$0xff] %v574_v15 }
  0x4b PF: > { %581 = sbr.rel (!%p1677_p4) target bundleno = 87 (0x57), region = 135  ;;  %s583_s28 = sand.u32 (%p1677_p4), 1, %s1591_s10  }
  0x4c   : > { %s1544_s29 = sshll.u32 (%p1677_p4), %s1595_s11, 6  ;;  %s1511_s14 = sshll.u32 (%p1677_p4), %s583_s28, 7 }
  0x4d   : > { %s1818_s20 = scalar_lea.vmem (%p1677_p4), %s2144_s5, %s1544_s29  ;;  %s585_s21 = scalar_lea.vmem (%p1677_p4), [#allocation7], %s1511_s14 }
  0x4e   : > { %v601_v16 = vld [vmem:[%s1818_s20] sm:$0xff] (%p1677_p4)  ;;  %v603_v17 = vld [vmem:[%s1818_s20 + $0x8] sm:$0xff] (%p1677_p4)  ;;  %v605_v18 = vld [vmem:[%s1818_s20 + $0x10] sm:$0xff] (%p1677_p4) }
  0x4f   : > { %602 = vst [vmem:[%s585_s21] sm:$0xff] (%p1677_p4), %v601_v16  ;;  %604 = vst [vmem:[%s585_s21 + $0x8] sm:$0xff] (%p1677_p4), %v603_v17  ;;  %v607_v19 = vld [vmem:[%s1818_s20 + $0x18] sm:$0xff] (%p1677_p4)  ;;  %v609_v20 = vld [vmem:[%s1818_s20 + $0x20] sm:$0xff] (%p1677_p4) }
  0x50   : > { %606 = vst [vmem:[%s585_s21 + $0x10] sm:$0xff] %v605_v18  ;;  %v611_v21 = vld [vmem:[%s1818_s20 + $0x28] sm:$0xff]  ;;  %608 = vst [vmem:[%s585_s21 + $0x18] sm:$0xff] %v607_v19  ;;  %v613_v22 = vld [vmem:[%s1818_s20 + $0x30] sm:$0xff] }
  0x51   : > { %610 = vst [vmem:[%s585_s21 + $0x20] sm:$0xff] %v609_v20  ;;  %612 = vst [vmem:[%s585_s21 + $0x28] sm:$0xff] %v611_v21  ;;  %v615_v23 = vld [vmem:[%s1818_s20 + $0x38] sm:$0xff]  ;;  %v617_v24 = vld [vmem:[%s1818_s20 + $0xc0] sm:$0xff] }
  0x52   : > { %614 = vst [vmem:[%s585_s21 + $0x30] sm:$0xff] %v613_v22  ;;  %616 = vst [vmem:[%s585_s21 + $0x38] sm:$0xff] %v615_v23  ;;  %v619_v25 = vld [vmem:[%s1818_s20 + $0xc8] sm:$0xff]  ;;  %v621_v26 = vld [vmem:[%s1818_s20 + $0xd0] sm:$0xff] }
  0x53   : > { %618 = vst [vmem:[%s585_s21 + $0x40] sm:$0xff] %v617_v24  ;;  %v623_v27 = vld [vmem:[%s1818_s20 + $0xd8] sm:$0xff]  ;;  %620 = vst [vmem:[%s585_s21 + $0x48] sm:$0xff] %v619_v25  ;;  %v625_v28 = vld [vmem:[%s1818_s20 + $0xe0] sm:$0xff] }
  0x54   : > { %622 = vst [vmem:[%s585_s21 + $0x50] sm:$0xff] %v621_v26  ;;  %624 = vst [vmem:[%s585_s21 + $0x58] sm:$0xff] %v623_v27  ;;  %v627_v29 = vld [vmem:[%s1818_s20 + $0xe8] sm:$0xff]  ;;  %v629_v30 = vld [vmem:[%s1818_s20 + $0xf0] sm:$0xff] }
  0x55   : > { %626 = vst [vmem:[%s585_s21 + $0x60] sm:$0xff] %v625_v28  ;;  %628 = vst [vmem:[%s585_s21 + $0x68] sm:$0xff] %v627_v29  ;;  %v631_v31 = vld [vmem:[%s1818_s20 + $0xf8] sm:$0xff] }
  0x56   : > { %630 = vst [vmem:[%s585_s21 + $0x70] sm:$0xff] %v629_v30  ;;  %632 = vst [vmem:[%s585_s21 + $0x78] sm:$0xff] %v631_v31 }
  0x57 PF: > { %638 = sbr.rel (!%p1677_p4) target bundleno = 99 (0x63), region = 158  ;;  %s640_s22 = sand.u32 (%p1677_p4), 1, %s1591_s10  }
  0x58   : > { %s1545_s23 = sshll.u32 (%p1677_p4), %s1595_s11, 6  ;;  %s1514_s24 = sshll.u32 (%p1677_p4), %s640_s22, 7 }
  0x59   : > { %s1843_s27 = scalar_lea.vmem (%p1677_p4), %s2145_s6, %s1545_s23  ;;  %s642_s28 = scalar_lea.vmem (%p1677_p4), [#allocation8], %s1514_s24 }
  0x5a   : > { %v658_v32 = vld [vmem:[%s1843_s27] sm:$0xff] (%p1677_p4)  ;;  %v660_v33 = vld [vmem:[%s1843_s27 + $0x8] sm:$0xff] (%p1677_p4)  ;;  %v662_v34 = vld [vmem:[%s1843_s27 + $0x10] sm:$0xff] (%p1677_p4) }
  0x5b   : > { %659 = vst [vmem:[%s642_s28] sm:$0xff] (%p1677_p4), %v658_v32  ;;  %661 = vst [vmem:[%s642_s28 + $0x8] sm:$0xff] (%p1677_p4), %v660_v33  ;;  %v664_v35 = vld [vmem:[%s1843_s27 + $0x18] sm:$0xff] (%p1677_p4)  ;;  %v666_v36 = vld [vmem:[%s1843_s27 + $0x20] sm:$0xff] (%p1677_p4) }
  0x5c   : > { %663 = vst [vmem:[%s642_s28 + $0x10] sm:$0xff] %v662_v34  ;;  %v668_v37 = vld [vmem:[%s1843_s27 + $0x28] sm:$0xff]  ;;  %665 = vst [vmem:[%s642_s28 + $0x18] sm:$0xff] %v664_v35  ;;  %v670_v38 = vld [vmem:[%s1843_s27 + $0x30] sm:$0xff] }
  0x5d   : > { %667 = vst [vmem:[%s642_s28 + $0x20] sm:$0xff] %v666_v36  ;;  %669 = vst [vmem:[%s642_s28 + $0x28] sm:$0xff] %v668_v37  ;;  %v672_v39 = vld [vmem:[%s1843_s27 + $0x38] sm:$0xff]  ;;  %v674_v40 = vld [vmem:[%s1843_s27 + $0xc0] sm:$0xff] }
  0x5e   : > { %671 = vst [vmem:[%s642_s28 + $0x30] sm:$0xff] %v670_v38  ;;  %673 = vst [vmem:[%s642_s28 + $0x38] sm:$0xff] %v672_v39  ;;  %v676_v41 = vld [vmem:[%s1843_s27 + $0xc8] sm:$0xff]  ;;  %v678_v42 = vld [vmem:[%s1843_s27 + $0xd0] sm:$0xff] }
  0x5f   : > { %675 = vst [vmem:[%s642_s28 + $0x40] sm:$0xff] %v674_v40  ;;  %v680_v43 = vld [vmem:[%s1843_s27 + $0xd8] sm:$0xff]  ;;  %677 = vst [vmem:[%s642_s28 + $0x48] sm:$0xff] %v676_v41  ;;  %v682_v44 = vld [vmem:[%s1843_s27 + $0xe0] sm:$0xff] }
  0x60   : > { %679 = vst [vmem:[%s642_s28 + $0x50] sm:$0xff] %v678_v42  ;;  %681 = vst [vmem:[%s642_s28 + $0x58] sm:$0xff] %v680_v43  ;;  %v684_v45 = vld [vmem:[%s1843_s27 + $0xe8] sm:$0xff]  ;;  %v686_v46 = vld [vmem:[%s1843_s27 + $0xf0] sm:$0xff] }
  0x61   : > { %683 = vst [vmem:[%s642_s28 + $0x60] sm:$0xff] %v682_v44  ;;  %685 = vst [vmem:[%s642_s28 + $0x68] sm:$0xff] %v684_v45  ;;  %v688_v47 = vld [vmem:[%s1843_s27 + $0xf8] sm:$0xff] }
  0x62   : > { %687 = vst [vmem:[%s642_s28 + $0x70] sm:$0xff] %v686_v46  ;;  %689 = vst [vmem:[%s642_s28 + $0x78] sm:$0xff] %v688_v47 }
  0x63 PF: > { %695 = sbr.rel (!%p1677_p4) target bundleno = 111 (0x6f), region = 181  ;;  %s697_s29 = sand.u32 (%p1677_p4), 1, %s1591_s10  }
  0x64   : > { %s1546_s14 = sshll.u32 (%p1677_p4), %s1595_s11, 6  ;;  %s1517_s15 = sshll.u32 (%p1677_p4), %s697_s29, 7 }
  0x65   : > { %s1868_s21 = scalar_lea.vmem (%p1677_p4), %s2146_s7, %s1546_s14  ;;  %s699_s22 = scalar_lea.vmem (%p1677_p4), [#allocation9], %s1517_s15 }
  0x66   : > { %v715_v48 = vld [vmem:[%s1868_s21] sm:$0xff] (%p1677_p4)  ;;  %v717_v49 = vld [vmem:[%s1868_s21 + $0x8] sm:$0xff] (%p1677_p4)  ;;  %v719_v50 = vld [vmem:[%s1868_s21 + $0x10] sm:$0xff] (%p1677_p4) }
  0x67   : > { %716 = vst [vmem:[%s699_s22] sm:$0xff] (%p1677_p4), %v715_v48  ;;  %718 = vst [vmem:[%s699_s22 + $0x8] sm:$0xff] (%p1677_p4), %v717_v49  ;;  %v721_v51 = vld [vmem:[%s1868_s21 + $0x18] sm:$0xff] (%p1677_p4)  ;;  %v723_v52 = vld [vmem:[%s1868_s21 + $0x20] sm:$0xff] (%p1677_p4) }
  0x68   : > { %720 = vst [vmem:[%s699_s22 + $0x10] sm:$0xff] %v719_v50  ;;  %v725_v53 = vld [vmem:[%s1868_s21 + $0x28] sm:$0xff]  ;;  %722 = vst [vmem:[%s699_s22 + $0x18] sm:$0xff] %v721_v51  ;;  %v727_v54 = vld [vmem:[%s1868_s21 + $0x30] sm:$0xff] }
  0x69   : > { %724 = vst [vmem:[%s699_s22 + $0x20] sm:$0xff] %v723_v52  ;;  %726 = vst [vmem:[%s699_s22 + $0x28] sm:$0xff] %v725_v53  ;;  %v729_v55 = vld [vmem:[%s1868_s21 + $0x38] sm:$0xff]  ;;  %v731_v56 = vld [vmem:[%s1868_s21 + $0xc0] sm:$0xff] }
  0x6a   : > { %728 = vst [vmem:[%s699_s22 + $0x30] sm:$0xff] %v727_v54  ;;  %730 = vst [vmem:[%s699_s22 + $0x38] sm:$0xff] %v729_v55  ;;  %v733_v57 = vld [vmem:[%s1868_s21 + $0xc8] sm:$0xff]  ;;  %v735_v58 = vld [vmem:[%s1868_s21 + $0xd0] sm:$0xff] }
  0x6b   : > { %732 = vst [vmem:[%s699_s22 + $0x40] sm:$0xff] %v731_v56  ;;  %v737_v59 = vld [vmem:[%s1868_s21 + $0xd8] sm:$0xff]  ;;  %734 = vst [vmem:[%s699_s22 + $0x48] sm:$0xff] %v733_v57  ;;  %v739_v60 = vld [vmem:[%s1868_s21 + $0xe0] sm:$0xff] }
  0x6c   : > { %736 = vst [vmem:[%s699_s22 + $0x50] sm:$0xff] %v735_v58  ;;  %738 = vst [vmem:[%s699_s22 + $0x58] sm:$0xff] %v737_v59  ;;  %v741_v61 = vld [vmem:[%s1868_s21 + $0xe8] sm:$0xff]  ;;  %v743_v62 = vld [vmem:[%s1868_s21 + $0xf0] sm:$0xff] }
  0x6d   : > { %740 = vst [vmem:[%s699_s22 + $0x60] sm:$0xff] %v739_v60  ;;  %742 = vst [vmem:[%s699_s22 + $0x68] sm:$0xff] %v741_v61  ;;  %v745_v63 = vld [vmem:[%s1868_s21 + $0xf8] sm:$0xff] }
  0x6e   : > { %744 = vst [vmem:[%s699_s22 + $0x70] sm:$0xff] %v743_v62  ;;  %746 = vst [vmem:[%s699_s22 + $0x78] sm:$0xff] %v745_v63 }
  0x6f PF: > { %752 = sbr.rel (!%p1677_p4) target bundleno = 123 (0x7b), region = 204  ;;  %s754_s23 = sand.u32 (%p1677_p4), 1, %s1591_s10  }
  0x70   : > { %s1547_s24 = sshll.u32 (%p1677_p4), %s1595_s11, 6  ;;  %s1520_s25 = sshll.u32 (%p1677_p4), %s754_s23, 7 }
  0x71   : > { %s1893_s28 = scalar_lea.vmem (%p1677_p4), %s2147_s8, %s1547_s24  ;;  %s756_s17 = scalar_lea.vmem (%p1677_p4), [#allocation10], %s1520_s25 }
  0x72   : > { %v772_v0 = vld [vmem:[%s1893_s28] sm:$0xff] (%p1677_p4)  ;;  %v774_v1 = vld [vmem:[%s1893_s28 + $0x8] sm:$0xff] (%p1677_p4)  ;;  %v776_v2 = vld [vmem:[%s1893_s28 + $0x10] sm:$0xff] (%p1677_p4) }
  0x73   : > { %773 = vst [vmem:[%s756_s17] sm:$0xff] (%p1677_p4), %v772_v0  ;;  %775 = vst [vmem:[%s756_s17 + $0x8] sm:$0xff] (%p1677_p4), %v774_v1  ;;  %v778_v3 = vld [vmem:[%s1893_s28 + $0x18] sm:$0xff] (%p1677_p4)  ;;  %v780_v4 = vld [vmem:[%s1893_s28 + $0x20] sm:$0xff] (%p1677_p4) }
  0x74   : > { %777 = vst [vmem:[%s756_s17 + $0x10] sm:$0xff] %v776_v2  ;;  %v782_v5 = vld [vmem:[%s1893_s28 + $0x28] sm:$0xff]  ;;  %779 = vst [vmem:[%s756_s17 + $0x18] sm:$0xff] %v778_v3  ;;  %v784_v6 = vld [vmem:[%s1893_s28 + $0x30] sm:$0xff] }
  0x75   : > { %781 = vst [vmem:[%s756_s17 + $0x20] sm:$0xff] %v780_v4  ;;  %783 = vst [vmem:[%s756_s17 + $0x28] sm:$0xff] %v782_v5  ;;  %v786_v7 = vld [vmem:[%s1893_s28 + $0x38] sm:$0xff]  ;;  %v788_v8 = vld [vmem:[%s1893_s28 + $0xc0] sm:$0xff] }
  0x76   : > { %785 = vst [vmem:[%s756_s17 + $0x30] sm:$0xff] %v784_v6  ;;  %787 = vst [vmem:[%s756_s17 + $0x38] sm:$0xff] %v786_v7  ;;  %v790_v9 = vld [vmem:[%s1893_s28 + $0xc8] sm:$0xff]  ;;  %v792_v10 = vld [vmem:[%s1893_s28 + $0xd0] sm:$0xff] }
  0x77   : > { %789 = vst [vmem:[%s756_s17 + $0x40] sm:$0xff] %v788_v8  ;;  %v794_v11 = vld [vmem:[%s1893_s28 + $0xd8] sm:$0xff]  ;;  %791 = vst [vmem:[%s756_s17 + $0x48] sm:$0xff] %v790_v9  ;;  %v796_v12 = vld [vmem:[%s1893_s28 + $0xe0] sm:$0xff] }
  0x78   : > { %793 = vst [vmem:[%s756_s17 + $0x50] sm:$0xff] %v792_v10  ;;  %795 = vst [vmem:[%s756_s17 + $0x58] sm:$0xff] %v794_v11  ;;  %v798_v13 = vld [vmem:[%s1893_s28 + $0xe8] sm:$0xff]  ;;  %v800_v14 = vld [vmem:[%s1893_s28 + $0xf0] sm:$0xff] }
  0x79   : > { %797 = vst [vmem:[%s756_s17 + $0x60] sm:$0xff] %v796_v12  ;;  %799 = vst [vmem:[%s756_s17 + $0x68] sm:$0xff] %v798_v13  ;;  %v802_v15 = vld [vmem:[%s1893_s28 + $0xf8] sm:$0xff] }
  0x7a   : > { %801 = vst [vmem:[%s756_s17 + $0x70] sm:$0xff] %v800_v14  ;;  %803 = vst [vmem:[%s756_s17 + $0x78] sm:$0xff] %v802_v15 }
  0x7b PF: > { %p1523_p7 = scmp.ge.s32.totalorder %s1595_s11, 1  ;;  %p808_p8 = scmp.lt.s32.totalorder %s1595_s11, 4 }
  0x7d   : > { %p809_p9 = pnand %p1523_p7, %p808_p8 }
  0x7e   : > { %s815_s29 = sand.u32 (!%p809_p9), 1, %s1587_s30  }
  0x7f   : > { %812 = sbr.rel (%p809_p9) target bundleno = 201 (0xc9), region = 227  ;;  %s1914_s14 = sshll.u32 (!%p809_p9), %s815_s29, 7 }
  0x80   : > { %s1917_s15 = scalar_lea.vmem (!%p809_p9), [#allocation2], %s1914_s14  ;;  %s1921_s19 = scalar_lea.vmem (!%p809_p9), [#allocation3], %s1914_s14 }
  0x81   : > { %s1926_s30 = scalar_lea.vmem (!%p809_p9), [#allocation4], %s1914_s14  ;;  %s1931_s20 = scalar_lea.vmem (!%p809_p9), [#allocation5], %s1914_s14 }
  0x82   : > { %s1937_s21 = scalar_lea.vmem (!%p809_p9), [#allocation6], %s1914_s14  ;;  %s1941_s22 = scalar_lea.vmem (!%p809_p9), [#allocation7], %s1914_s14 }
  0x83   : > { %s1950_s23 = scalar_lea.vmem (!%p809_p9), [#allocation8], %s1914_s14  ;;  %s1959_s24 = scalar_lea.vmem (!%p809_p9), [#allocation9], %s1914_s14 }
  0x84   : > { %v947_v16 = vld [vmem:[%s1917_s15] sm:$0xff]  ;;  %v948_v18 = vld [vmem:[%s1917_s15 + $0x8] sm:$0xff]  ;;  %v949_v33 = vld [vmem:[%s1917_s15 + $0x10] sm:$0xff]  ;;  %s1963_s25 = scalar_lea.vmem [#allocation10], %s1914_s14  ;;  %s1985_s26 = scalar_lea.vmem [#allocation11], %s1914_s14 }
  0x85   : > { %v963_v17 = vld [vmem:[%s1921_s19] sm:$0xff]  ;;  %v964_v21 = vld [vmem:[%s1921_s19 + $0x8] sm:$0xff]  ;;  %v965_v34 = vld [vmem:[%s1921_s19 + $0x10] sm:$0xff]  ;;  %s1548_s27 = sshll.u32 (%p1681_p5), %s1492_s12, 6 }
  0x86   : > { %v979_v19 = vmax.bf16 %v963_v17, %v947_v16  ;;  %v995_v20 = vld [vmem:[%s1926_s30] sm:$0xff]  ;;  %v980_v23 = vmax.bf16 %v964_v21, %v948_v18  ;;  %v996_v24 = vld [vmem:[%s1926_s30 + $0x8] sm:$0xff]  ;;  %v997_v35 = vld [vmem:[%s1926_s30 + $0x10] sm:$0xff]  ;;  %v981_v38 = vmax.bf16 %v965_v34, %v949_v33  ;;  %s1244_s18 = scalar_lea.vmem (%p1681_p5), %s2148_s9, %s1548_s27 }
  0x87   : > { %v1027_v22 = vld [vmem:[%s1931_s20] sm:$0xff]  ;;  %v1028_v26 = vld [vmem:[%s1931_s20 + $0x8] sm:$0xff]  ;;  %v1029_v42 = vld [vmem:[%s1931_s20 + $0x10] sm:$0xff] }
  0x88   : > { %v1011_v25 = vmax.bf16 %v995_v20, %v979_v19  ;;  %v1059_v27 = vld [vmem:[%s1937_s21] sm:$0xff]  ;;  %v1012_v28 = vmax.bf16 %v996_v24, %v980_v23  ;;  %v1060_v31 = vld [vmem:[%s1937_s21 + $0x8] sm:$0xff]  ;;  %v1013_v44 = vmax.bf16 %v997_v35, %v981_v38  ;;  %v950_v45 = vld [vmem:[%s1917_s15 + $0x18] sm:$0xff] }
  0x89   : > { %v1091_v30 = vld [vmem:[%s1941_s22] sm:$0xff]  ;;  %v1092_v37 = vld [vmem:[%s1941_s22 + $0x8] sm:$0xff]  ;;  %v966_v46 = vld [vmem:[%s1921_s19 + $0x18] sm:$0xff] }
  0x8a   : > { %v1043_v29 = vmax.bf16 %v1027_v22, %v1011_v25  ;;  %v1044_v32 = vmax.bf16 %v1028_v26, %v1012_v28  ;;  %v1123_v39 = vld [vmem:[%s1950_s23] sm:$0xff]  ;;  %v1124_v41 = vld [vmem:[%s1950_s23 + $0x8] sm:$0xff]  ;;  %v998_v47 = vld [vmem:[%s1926_s30 + $0x18] sm:$0xff]  ;;  %v982_v52 = vmax.bf16 %v966_v46, %v950_v45  ;;  %v1045_v55 = vmax.bf16 %v1029_v42, %v1013_v44 }
  0x8b   : > { %v1155_v48 = vld [vmem:[%s1959_s24] sm:$0xff]  ;;  %v1061_v51 = vld [vmem:[%s1937_s21 + $0x10] sm:$0xff]  ;;  %v1156_v54 = vld [vmem:[%s1959_s24 + $0x8] sm:$0xff] }
  0x8c   : > { %v1075_v36 = vmax.bf16 %v1059_v27, %v1043_v29  ;;  %v1076_v40 = vmax.bf16 %v1060_v31, %v1044_v32  ;;  %v1187_v49 = vld [vmem:[%s1963_s25] sm:$0xff]  ;;  %v1093_v56 = vld [vmem:[%s1941_s22 + $0x10] sm:$0xff]  ;;  %v1030_v57 = vld [vmem:[%s1931_s20 + $0x18] sm:$0xff]  ;;  %v1014_v59 = vmax.bf16 %v998_v47, %v982_v52  ;;  %v1077_v1 = vmax.bf16 %v1061_v51, %v1045_v55 }
  0x8d   : > { %v951_v60 = vld [vmem:[%s1917_s15 + $0x20] sm:$0xff]  ;;  %v1188_v0 = vld [vmem:[%s1963_s25 + $0x8] sm:$0xff]  ;;  %v1062_v2 = vld [vmem:[%s1937_s21 + $0x18] sm:$0xff] }
  0x8e   : > { %v1107_v43 = vmax.bf16 %v1091_v30, %v1075_v36  ;;  %v1108_v50 = vmax.bf16 %v1092_v37, %v1076_v40  ;;  %v967_v61 = vld [vmem:[%s1921_s19 + $0x20] sm:$0xff]  ;;  %v1125_v5 = vld [vmem:[%s1950_s23 + $0x10] sm:$0xff]  ;;  %v1046_v6 = vmax.bf16 %v1030_v57, %v1014_v59  ;;  %v1094_v7 = vld [vmem:[%s1941_s22 + $0x18] sm:$0xff]  ;;  %v1109_v10 = vmax.bf16 %v1093_v56, %v1077_v1 }
  0x8f   : > { %v999_v62 = vld [vmem:[%s1926_s30 + $0x20] sm:$0xff]  ;;  %v983_v3 = vmax.bf16 %v967_v61, %v951_v60  ;;  %v952_v12 = vld [vmem:[%s1917_s15 + $0x28] sm:$0xff]  ;;  %v1157_v16 = vld [vmem:[%s1959_s24 + $0x10] sm:$0xff] }
  0x90   : > { %v1139_v53 = vmax.bf16 %v1123_v39, %v1107_v43  ;;  %v1140_v58 = vmax.bf16 %v1124_v41, %v1108_v50  ;;  %v1031_v8 = vld [vmem:[%s1931_s20 + $0x20] sm:$0xff]  ;;  %v968_v13 = vld [vmem:[%s1921_s19 + $0x28] sm:$0xff]  ;;  %v1189_v17 = vld [vmem:[%s1963_s25 + $0x10] sm:$0xff]  ;;  %v1078_v18 = vmax.bf16 %v1062_v2, %v1046_v6  ;;  %v1141_v21 = vmax.bf16 %v1125_v5, %v1109_v10 }
  0x91   : > { %v1015_v11 = vmax.bf16 %v999_v62, %v983_v3  ;;  %v1000_v14 = vld [vmem:[%s1926_s30 + $0x28] sm:$0xff]  ;;  %v1063_v19 = vld [vmem:[%s1937_s21 + $0x20] sm:$0xff]  ;;  %v984_v20 = vmax.bf16 %v968_v13, %v952_v12  ;;  %v1126_v22 = vld [vmem:[%s1950_s23 + $0x18] sm:$0xff] }
  0x92   : > { %v1171_v63 = vmax.bf16 %v1155_v48, %v1139_v53  ;;  %v1172_v4 = vmax.bf16 %v1156_v54, %v1140_v58  ;;  %v1095_v24 = vld [vmem:[%s1941_s22 + $0x20] sm:$0xff]  ;;  %v1032_v25 = vld [vmem:[%s1931_s20 + $0x28] sm:$0xff]  ;;  %v1110_v26 = vmax.bf16 %v1094_v7, %v1078_v18  ;;  %v953_v28 = vld [vmem:[%s1917_s15 + $0x30] sm:$0xff]  ;;  %v1173_v31 = vmax.bf16 %v1157_v16, %v1141_v21 }
  0x93   : > { %v1047_v23 = vmax.bf16 %v1031_v8, %v1015_v11  ;;  %v1016_v27 = vmax.bf16 %v1000_v14, %v984_v20  ;;  %v969_v29 = vld [vmem:[%s1921_s19 + $0x30] sm:$0xff]  ;;  %v1158_v32 = vld [vmem:[%s1959_s24 + $0x18] sm:$0xff]  ;;  %v1064_v35 = vld [vmem:[%s1937_s21 + $0x28] sm:$0xff] }
  0x94   : > { %v1203_v9 = vmax.bf16 %v1187_v49, %v1171_v63  ;;  %v1204_v15 = vmax.bf16 %v1188_v0, %v1172_v4  ;;  %v1001_v30 = vld [vmem:[%s1926_s30 + $0x30] sm:$0xff]  ;;  %v1190_v33 = vld [vmem:[%s1963_s25 + $0x18] sm:$0xff]  ;;  %v985_v36 = vmax.bf16 %v969_v29, %v953_v28  ;;  %v1142_v37 = vmax.bf16 %v1126_v22, %v1110_v26  ;;  %v1127_v38 = vld [vmem:[%s1950_s23 + $0x20] sm:$0xff] }
  0x95   : > { %v1079_v34 = vmax.bf16 %v1063_v19, %v1047_v23  ;;  %v1048_v39 = vmax.bf16 %v1032_v25, %v1016_v27  ;;  %v1096_v40 = vld [vmem:[%s1941_s22 + $0x28] sm:$0xff]  ;;  %v1033_v41 = vld [vmem:[%s1931_s20 + $0x30] sm:$0xff]  ;;  %v1205_v42 = vmax.bf16 %v1189_v17, %v1173_v31  ;;  %v954_v45 = vld [vmem:[%s1917_s15 + $0x38] sm:$0xff] }
  0x96   : > { %1219 = vst [vmem:[%s1985_s26] sm:$0xff] %v1203_v9  ;;  %1220 = vst [vmem:[%s1985_s26 + $0x8] sm:$0xff] %v1204_v15  ;;  %v1017_v44 = vmax.bf16 %v1001_v30, %v985_v36  ;;  %v970_v46 = vld [vmem:[%s1921_s19 + $0x38] sm:$0xff]  ;;  %v1174_v48 = vmax.bf16 %v1158_v32, %v1142_v37  ;;  %v1159_v49 = vld [vmem:[%s1959_s24 + $0x20] sm:$0xff] }
  0x97   : > { %v1111_v43 = vmax.bf16 %v1095_v24, %v1079_v34  ;;  %v1002_v47 = vld [vmem:[%s1926_s30 + $0x38] sm:$0xff]  ;;  %v1191_v50 = vld [vmem:[%s1963_s25 + $0x20] sm:$0xff]  ;;  %v1080_v51 = vmax.bf16 %v1064_v35, %v1048_v39  ;;  %v1065_v52 = vld [vmem:[%s1937_s21 + $0x30] sm:$0xff]  ;;  %v986_v53 = vmax.bf16 %v970_v46, %v954_v45  ;;  %1221 = vst [vmem:[%s1985_s26 + $0x10] sm:$0xff] %v1205_v42 }
  0x98   : > { %v1128_v55 = vld [vmem:[%s1950_s23 + $0x28] sm:$0xff]  ;;  %v1049_v56 = vmax.bf16 %v1033_v41, %v1017_v44  ;;  %v1097_v57 = vld [vmem:[%s1941_s22 + $0x30] sm:$0xff]  ;;  %v1034_v58 = vld [vmem:[%s1931_s20 + $0x38] sm:$0xff]  ;;  %v1206_v59 = vmax.bf16 %v1190_v33, %v1174_v48 }
  0x99   : > { %v1143_v54 = vmax.bf16 %v1127_v38, %v1111_v43  ;;  %v1112_v60 = vmax.bf16 %v1096_v40, %v1080_v51  ;;  %v1018_v61 = vmax.bf16 %v1002_v47, %v986_v53  ;;  %v955_v62 = vld [vmem:[%s1917_s15 + $0x40] sm:$0xff]  ;;  %v1160_v2 = vld [vmem:[%s1959_s24 + $0x28] sm:$0xff]  ;;  %v1066_v5 = vld [vmem:[%s1937_s21 + $0x38] sm:$0xff] }
  0x9a   : > { %v971_v63 = vld [vmem:[%s1921_s19 + $0x40] sm:$0xff]  ;;  %v1192_v3 = vld [vmem:[%s1963_s25 + $0x28] sm:$0xff]  ;;  %v1081_v4 = vmax.bf16 %v1065_v52, %v1049_v56  ;;  %1222 = vst [vmem:[%s1985_s26 + $0x18] sm:$0xff] %v1206_v59  ;;  %v1129_v8 = vld [vmem:[%s1950_s23 + $0x30] sm:$0xff] }
  0x9b   : > { %v1003_v0 = vld [vmem:[%s1926_s30 + $0x40] sm:$0xff]  ;;  %v1175_v1 = vmax.bf16 %v1159_v49, %v1143_v54  ;;  %v987_v6 = vmax.bf16 %v971_v63, %v955_v62  ;;  %v1144_v7 = vmax.bf16 %v1128_v55, %v1112_v60  ;;  %v1050_v9 = vmax.bf16 %v1034_v58, %v1018_v61  ;;  %v1098_v10 = vld [vmem:[%s1941_s22 + $0x38] sm:$0xff]  ;;  %v956_v15 = vld [vmem:[%s1917_s15 + $0x48] sm:$0xff] }
  0x9c   : > { %v1035_v11 = vld [vmem:[%s1931_s20 + $0x40] sm:$0xff]  ;;  %v1113_v13 = vmax.bf16 %v1097_v57, %v1081_v4  ;;  %v972_v16 = vld [vmem:[%s1921_s19 + $0x48] sm:$0xff]  ;;  %v1161_v19 = vld [vmem:[%s1959_s24 + $0x30] sm:$0xff] }
  0x9d   : > { %v1207_v12 = vmax.bf16 %v1191_v50, %v1175_v1  ;;  %v1019_v14 = vmax.bf16 %v1003_v0, %v987_v6  ;;  %v1004_v17 = vld [vmem:[%s1926_s30 + $0x48] sm:$0xff]  ;;  %v1176_v18 = vmax.bf16 %v1160_v2, %v1144_v7  ;;  %v1193_v20 = vld [vmem:[%s1963_s25 + $0x30] sm:$0xff]  ;;  %v1082_v21 = vmax.bf16 %v1066_v5, %v1050_v9  ;;  %v1067_v22 = vld [vmem:[%s1937_s21 + $0x40] sm:$0xff] }
  0x9e   : > { %v988_v23 = vmax.bf16 %v972_v16, %v956_v15  ;;  %v1145_v24 = vmax.bf16 %v1129_v8, %v1113_v13  ;;  %v1130_v25 = vld [vmem:[%s1950_s23 + $0x38] sm:$0xff]  ;;  %v1099_v27 = vld [vmem:[%s1941_s22 + $0x40] sm:$0xff]  ;;  %v1036_v28 = vld [vmem:[%s1931_s20 + $0x48] sm:$0xff] }
  0x9f   : > { %1223 = vst [vmem:[%s1985_s26 + $0x20] sm:$0xff] %v1207_v12  ;;  %v1051_v26 = vmax.bf16 %v1035_v11, %v1019_v14  ;;  %v1208_v29 = vmax.bf16 %v1192_v3, %v1176_v18  ;;  %v1114_v30 = vmax.bf16 %v1098_v10, %v1082_v21  ;;  %v957_v32 = vld [vmem:[%s1917_s15 + $0x50] sm:$0xff]  ;;  %v1162_v36 = vld [vmem:[%s1959_s24 + $0x38] sm:$0xff]  ;;  %v1068_v39 = vld [vmem:[%s1937_s21 + $0x48] sm:$0xff] }
  0xa0   : > { %v1020_v31 = vmax.bf16 %v1004_v17, %v988_v23  ;;  %v973_v33 = vld [vmem:[%s1921_s19 + $0x50] sm:$0xff]  ;;  %v1177_v35 = vmax.bf16 %v1161_v19, %v1145_v24  ;;  %v1194_v37 = vld [vmem:[%s1963_s25 + $0x38] sm:$0xff]  ;;  %v1131_v42 = vld [vmem:[%s1950_s23 + $0x40] sm:$0xff] }
  0xa1   : > { %v1005_v34 = vld [vmem:[%s1926_s30 + $0x50] sm:$0xff]  ;;  %v1083_v38 = vmax.bf16 %v1067_v22, %v1051_v26  ;;  %v989_v40 = vmax.bf16 %v973_v33, %v957_v32  ;;  %1224 = vst [vmem:[%s1985_s26 + $0x28] sm:$0xff] %v1208_v29  ;;  %v1146_v41 = vmax.bf16 %v1130_v25, %v1114_v30  ;;  %v1100_v44 = vld [vmem:[%s1941_s22 + $0x48] sm:$0xff]  ;;  %v958_v49 = vld [vmem:[%s1917_s15 + $0x58] sm:$0xff] }
  0xa2   : > { %v1052_v43 = vmax.bf16 %v1036_v28, %v1020_v31  ;;  %v1037_v45 = vld [vmem:[%s1931_s20 + $0x50] sm:$0xff]  ;;  %v1209_v46 = vmax.bf16 %v1193_v20, %v1177_v35  ;;  %v974_v50 = vld [vmem:[%s1921_s19 + $0x58] sm:$0xff]  ;;  %v1163_v53 = vld [vmem:[%s1959_s24 + $0x40] sm:$0xff] }
  0xa3   : > { %v1115_v47 = vmax.bf16 %v1099_v27, %v1083_v38  ;;  %v1021_v48 = vmax.bf16 %v1005_v34, %v989_v40  ;;  %v1006_v51 = vld [vmem:[%s1926_s30 + $0x58] sm:$0xff]  ;;  %v1178_v52 = vmax.bf16 %v1162_v36, %v1146_v41  ;;  %v1195_v54 = vld [vmem:[%s1963_s25 + $0x40] sm:$0xff]  ;;  %v1069_v56 = vld [vmem:[%s1937_s21 + $0x50] sm:$0xff]  ;;  %v990_v57 = vmax.bf16 %v974_v50, %v958_v49 }
  0xa4   : > { %v1084_v55 = vmax.bf16 %v1068_v39, %v1052_v43  ;;  %1225 = vst [vmem:[%s1985_s26 + $0x30] sm:$0xff] %v1209_v46  ;;  %v1132_v59 = vld [vmem:[%s1950_s23 + $0x48] sm:$0xff]  ;;  %v1101_v61 = vld [vmem:[%s1941_s22 + $0x50] sm:$0xff]  ;;  %v1038_v62 = vld [vmem:[%s1931_s20 + $0x58] sm:$0xff] }
  0xa5   : > { %v1147_v58 = vmax.bf16 %v1131_v42, %v1115_v47  ;;  %v1053_v60 = vmax.bf16 %v1037_v45, %v1021_v48  ;;  %v1210_v63 = vmax.bf16 %v1194_v37, %v1178_v52  ;;  %v1022_v1 = vmax.bf16 %v1006_v51, %v990_v57  ;;  %v959_v2 = vld [vmem:[%s1917_s15 + $0x60] sm:$0xff]  ;;  %v1164_v6 = vld [vmem:[%s1959_s24 + $0x48] sm:$0xff]  ;;  %v1070_v9 = vld [vmem:[%s1937_s21 + $0x58] sm:$0xff] }
  0xa6   : > { %v1116_v0 = vmax.bf16 %v1100_v44, %v1084_v55  ;;  %v975_v3 = vld [vmem:[%s1921_s19 + $0x60] sm:$0xff]  ;;  %v1196_v7 = vld [vmem:[%s1963_s25 + $0x48] sm:$0xff]  ;;  %v1133_v12 = vld [vmem:[%s1950_s23 + $0x50] sm:$0xff] }
  0xa7   : > { %v1007_v4 = vld [vmem:[%s1926_s30 + $0x60] sm:$0xff]  ;;  %v1179_v5 = vmax.bf16 %v1163_v53, %v1147_v58  ;;  %v1085_v8 = vmax.bf16 %v1069_v56, %v1053_v60  ;;  %v991_v10 = vmax.bf16 %v975_v3, %v959_v2  ;;  %1226 = vst [vmem:[%s1985_s26 + $0x38] sm:$0xff] %v1210_v63  ;;  %v1054_v13 = vmax.bf16 %v1038_v62, %v1022_v1  ;;  %v1102_v14 = vld [vmem:[%s1941_s22 + $0x58] sm:$0xff]  ;;  %v960_v19 = vld [vmem:[%s1917_s15 + $0x68] sm:$0xff] }
  0xa8   : > { %v1148_v11 = vmax.bf16 %v1132_v59, %v1116_v0  ;;  %v1039_v15 = vld [vmem:[%s1931_s20 + $0x60] sm:$0xff]  ;;  %v976_v20 = vld [vmem:[%s1921_s19 + $0x68] sm:$0xff]  ;;  %v1165_v23 = vld [vmem:[%s1959_s24 + $0x50] sm:$0xff] }
  0xa9   : > { %v1211_v16 = vmax.bf16 %v1195_v54, %v1179_v5  ;;  %v1117_v17 = vmax.bf16 %v1101_v61, %v1085_v8  ;;  %v1023_v18 = vmax.bf16 %v1007_v4, %v991_v10  ;;  %v1008_v21 = vld [vmem:[%s1926_s30 + $0x68] sm:$0xff]  ;;  %v1197_v24 = vld [vmem:[%s1963_s25 + $0x50] sm:$0xff]  ;;  %v1086_v25 = vmax.bf16 %v1070_v9, %v1054_v13  ;;  %v1071_v26 = vld [vmem:[%s1937_s21 + $0x60] sm:$0xff] }
  0xaa   : > { %v1180_v22 = vmax.bf16 %v1164_v6, %v1148_v11  ;;  %v992_v27 = vmax.bf16 %v976_v20, %v960_v19  ;;  %v1134_v29 = vld [vmem:[%s1950_s23 + $0x58] sm:$0xff]  ;;  %v1103_v31 = vld [vmem:[%s1941_s22 + $0x60] sm:$0xff]  ;;  %v1040_v32 = vld [vmem:[%s1931_s20 + $0x68] sm:$0xff] }
  0xab   : > { %1227 = vst [vmem:[%s1985_s26 + $0x40] sm:$0xff] %v1211_v16  ;;  %v1149_v28 = vmax.bf16 %v1133_v12, %v1117_v17  ;;  %v1055_v30 = vmax.bf16 %v1039_v15, %v1023_v18  ;;  %v1118_v34 = vmax.bf16 %v1102_v14, %v1086_v25  ;;  %v961_v36 = vld [vmem:[%s1917_s15 + $0x70] sm:$0xff]  ;;  %v1166_v40 = vld [vmem:[%s1959_s24 + $0x58] sm:$0xff]  ;;  %v1072_v43 = vld [vmem:[%s1937_s21 + $0x68] sm:$0xff] }
  0xac   : > { %v1212_v33 = vmax.bf16 %v1196_v7, %v1180_v22  ;;  %v1024_v35 = vmax.bf16 %v1008_v21, %v992_v27  ;;  %v977_v37 = vld [vmem:[%s1921_s19 + $0x70] sm:$0xff]  ;;  %v1198_v41 = vld [vmem:[%s1963_s25 + $0x58] sm:$0xff]  ;;  %v1135_v46 = vld [vmem:[%s1950_s23 + $0x60] sm:$0xff] }
  0xad   : > { %v1009_v38 = vld [vmem:[%s1926_s30 + $0x70] sm:$0xff]  ;;  %v1181_v39 = vmax.bf16 %v1165_v23, %v1149_v28  ;;  %v1087_v42 = vmax.bf16 %v1071_v26, %v1055_v30  ;;  %v993_v44 = vmax.bf16 %v977_v37, %v961_v36  ;;  %v1150_v45 = vmax.bf16 %v1134_v29, %v1118_v34  ;;  %v1104_v48 = vld [vmem:[%s1941_s22 + $0x68] sm:$0xff]  ;;  %v962_v53 = vld [vmem:[%s1917_s15 + $0x78] sm:$0xff] }
  0xae   : > { %1228 = vst [vmem:[%s1985_s26 + $0x48] sm:$0xff] %v1212_v33  ;;  %v1056_v47 = vmax.bf16 %v1040_v32, %v1024_v35  ;;  %v1041_v49 = vld [vmem:[%s1931_s20 + $0x70] sm:$0xff]  ;;  %v978_v54 = vld [vmem:[%s1921_s19 + $0x78] sm:$0xff]  ;;  %v1167_v57 = vld [vmem:[%s1959_s24 + $0x60] sm:$0xff] }
  0xaf   : > { %v1213_v50 = vmax.bf16 %v1197_v24, %v1181_v39  ;;  %v1119_v51 = vmax.bf16 %v1103_v31, %v1087_v42  ;;  %v1025_v52 = vmax.bf16 %v1009_v38, %v993_v44  ;;  %v1010_v55 = vld [vmem:[%s1926_s30 + $0x78] sm:$0xff]  ;;  %v1182_v56 = vmax.bf16 %v1166_v40, %v1150_v45  ;;  %v1073_v59 = vld [vmem:[%s1937_s21 + $0x70] sm:$0xff]  ;;  %v1136_v62 = vld [vmem:[%s1950_s23 + $0x68] sm:$0xff] }
  0xb0   : > { %v1088_v58 = vmax.bf16 %v1072_v43, %v1056_v47  ;;  %v994_v60 = vmax.bf16 %v978_v54, %v962_v53  ;;  %v1042_v0 = vld [vmem:[%s1931_s20 + $0x78] sm:$0xff]  ;;  %v1199_v2 = vld [vmem:[%s1963_s25 + $0x60] sm:$0xff]  ;;  %v1105_v4 = vld [vmem:[%s1941_s22 + $0x70] sm:$0xff] }
  0xb1   : > { %1229 = vst [vmem:[%s1985_s26 + $0x50] sm:$0xff] %v1213_v50  ;;  %v1151_v61 = vmax.bf16 %v1135_v46, %v1119_v51  ;;  %v1057_v63 = vmax.bf16 %v1041_v49, %v1025_v52  ;;  %v1214_v1 = vmax.bf16 %v1198_v41, %v1182_v56  ;;  %v1168_v7 = vld [vmem:[%s1959_s24 + $0x68] sm:$0xff]  ;;  %v1074_v9 = vld [vmem:[%s1937_s21 + $0x78] sm:$0xff]  ;;  %v1137_v11 = vld [vmem:[%s1950_s23 + $0x70] sm:$0xff] }
  0xb2   : > { %v1120_v3 = vmax.bf16 %v1104_v48, %v1088_v58  ;;  %v1026_v5 = vmax.bf16 %v1010_v55, %v994_v60  ;;  %v1200_v14 = vld [vmem:[%s1963_s25 + $0x68] sm:$0xff]  ;;  %v1106_v16 = vld [vmem:[%s1941_s22 + $0x78] sm:$0xff]  ;;  %v1169_v18 = vld [vmem:[%s1959_s24 + $0x70] sm:$0xff] }
  0xb3   : > { %v1183_v6 = vmax.bf16 %v1167_v57, %v1151_v61  ;;  %v1089_v8 = vmax.bf16 %v1073_v59, %v1057_v63  ;;  %1230 = vst [vmem:[%s1985_s26 + $0x58] sm:$0xff] %v1214_v1  ;;  %v1138_v21 = vld [vmem:[%s1950_s23 + $0x78] sm:$0xff]  ;;  %v1201_v23 = vld [vmem:[%s1963_s25 + $0x70] sm:$0xff]  ;;  %v1257_v32 = vld [vmem:[%s1985_s26] sm:$0xff] (%p1681_p5) }
  0xb4   : > { %v1152_v10 = vmax.bf16 %v1136_v62, %v1120_v3  ;;  %v1058_v12 = vmax.bf16 %v1042_v0, %v1026_v5  ;;  %v1170_v26 = vld [vmem:[%s1959_s24 + $0x78] sm:$0xff]  ;;  %v1259_v33 = vld [vmem:[%s1985_s26 + $0x8] sm:$0xff] (%p1681_p5)  ;;  %v1261_v34 = vld [vmem:[%s1985_s26 + $0x10] sm:$0xff] (%p1681_p5)  ;;  %1258 = vst [vmem:[%s1244_s18] sm:$0xff] (%p1681_p5), %v1257_v32 }
  0xb5   : > { %v1215_v13 = vmax.bf16 %v1199_v2, %v1183_v6  ;;  %v1121_v15 = vmax.bf16 %v1105_v4, %v1089_v8  ;;  %v1202_v29 = vld [vmem:[%s1963_s25 + $0x78] sm:$0xff]  ;;  %v1265_v36 = vld [vmem:[%s1985_s26 + $0x20] sm:$0xff] (%p1681_p5)  ;;  %v1267_v37 = vld [vmem:[%s1985_s26 + $0x28] sm:$0xff] (%p1681_p5)  ;;  %1260 = vst [vmem:[%s1244_s18 + $0x8] sm:$0xff] (%p1681_p5), %v1259_v33 }
  0xb6   : > { %v1184_v17 = vmax.bf16 %v1168_v7, %v1152_v10  ;;  %v1090_v19 = vmax.bf16 %v1074_v9, %v1058_v12  ;;  %v1263_v35 = vld [vmem:[%s1985_s26 + $0x18] sm:$0xff] (%p1681_p5)  ;;  %1262 = vst [vmem:[%s1244_s18 + $0x10] sm:$0xff] (%p1681_p5), %v1261_v34  ;;  %1266 = vst [vmem:[%s1244_s18 + $0x20] sm:$0xff] (%p1681_p5), %v1265_v36  ;;  %v1269_v38 = vld [vmem:[%s1985_s26 + $0x30] sm:$0xff] (%p1681_p5) }
  0xb7   : > { %1231 = vst [vmem:[%s1985_s26 + $0x60] sm:$0xff] %v1215_v13  ;;  %v1153_v20 = vmax.bf16 %v1137_v11, %v1121_v15  ;;  %1264 = vst [vmem:[%s1244_s18 + $0x18] sm:$0xff] (%p1681_p5), %v1263_v35  ;;  %v1271_v39 = vld [vmem:[%s1985_s26 + $0x38] sm:$0xff] (%p1681_p5)  ;;  %v1273_v40 = vld [vmem:[%s1985_s26 + $0x40] sm:$0xff] (%p1681_p5) }
  0xb8   : > { %v1216_v22 = vmax.bf16 %v1200_v14, %v1184_v17  ;;  %v1122_v24 = vmax.bf16 %v1106_v16, %v1090_v19  ;;  %1268 = vst [vmem:[%s1244_s18 + $0x28] sm:$0xff] (%p1681_p5), %v1267_v37  ;;  %1270 = vst [vmem:[%s1244_s18 + $0x30] sm:$0xff] (%p1681_p5), %v1269_v38  ;;  %v1275_v41 = vld [vmem:[%s1985_s26 + $0x48] sm:$0xff] (%p1681_p5)  ;;  %v1277_v42 = vld [vmem:[%s1985_s26 + $0x50] sm:$0xff] (%p1681_p5) }
  0xb9   : > { %v1185_v25 = vmax.bf16 %v1169_v18, %v1153_v20  ;;  %1272 = vst [vmem:[%s1244_s18 + $0x38] sm:$0xff] (%p1681_p5), %v1271_v39  ;;  %1274 = vst [vmem:[%s1244_s18 + $0xc0] sm:$0xff] (%p1681_p5), %v1273_v40 }
  0xba   : > { %1232 = vst [vmem:[%s1985_s26 + $0x68] sm:$0xff] %v1216_v22  ;;  %v1154_v27 = vmax.bf16 %v1138_v21, %v1122_v24  ;;  %v1279_v43 = vld [vmem:[%s1985_s26 + $0x58] sm:$0xff] (%p1681_p5)  ;;  %1276 = vst [vmem:[%s1244_s18 + $0xc8] sm:$0xff] (%p1681_p5), %v1275_v41 }
  0xbb   : > { %v1217_v28 = vmax.bf16 %v1201_v23, %v1185_v25  ;;  %1278 = vst [vmem:[%s1244_s18 + $0xd0] sm:$0xff] (%p1681_p5), %v1277_v42  ;;  %1280 = vst [vmem:[%s1244_s18 + $0xd8] sm:$0xff] (%p1681_p5), %v1279_v43 }
  0xbc   : > { %v1186_v30 = vmax.bf16 %v1170_v26, %v1154_v27  ;;  %1241 = sbr.rel (!%p1681_p5) target bundleno = 201 (0xc9), region = 267 }
  0xbd   : > { %1233 = vst [vmem:[%s1985_s26 + $0x70] sm:$0xff] %v1217_v28 }
  0xbe   : > { %v1218_v31 = vmax.bf16 %v1202_v29, %v1186_v30  ;;  %v1281_v44 = vld [vmem:[%s1985_s26 + $0x60] sm:$0xff] (%p1681_p5) }
  0xbf   : > { %1282 = vst [vmem:[%s1244_s18 + $0xe0] sm:$0xff] (%p1681_p5), %v1281_v44 }
  0xc0   : > { %1234 = vst [vmem:[%s1985_s26 + $0x78] sm:$0xff] %v1218_v31 }
  0xc1   : > { %v1283_v45 = vld [vmem:[%s1985_s26 + $0x68] sm:$0xff] }
  0xc2   : > { %1284 = vst [vmem:[%s1244_s18 + $0xe8] sm:$0xff] %v1283_v45 }
  0xc4   : > { %v1285_v46 = vld [vmem:[%s1985_s26 + $0x70] sm:$0xff] }
  0xc5   : > { %1286 = vst [vmem:[%s1244_s18 + $0xf0] sm:$0xff] %v1285_v46 }
  0xc7   : > { %v1287_v47 = vld [vmem:[%s1985_s26 + $0x78] sm:$0xff] }
  0xc8   : > { %1288 = vst [vmem:[%s1244_s18 + $0xf8] sm:$0xff] %v1287_v47 }
  0xc9 PF: > { %p16_p10 = scmp.ge.s32.totalorder %s1664_s13, 5   ;;  %s2151_s30 = smov %s1591_s10 }
  0xca   : > { %s2152_s10 = smov %s1675_s16  ;;  %s2153_s11 = smov %s1664_s13 }
  0xcb   :  { %18 = sbr.rel (!%p16_p10) target bundleno = 2 (0x2), region = 385 }

// kernel: critic_forward.8
= control target key start
LH: loop header
LB: loop body
LE: loop exit
PB: predicated region body
PF: predicated region fallthrough
CT: control target
= control target key end

     0   :  { %v1600_v1 = vmov 0   ;;  %vm709_vm0 = vcmask 130048   ;;  %vm1231_vm1 = vcmask 1043456   ;;  %vm1232_vm2 = vcmask 293892   ;;  %s2153_s1 = inlined_call_operand.vmem [shape: bf16[144,1444], index: 1, kind: input, shape index: {}]   ;;  %s2154_s0 = inlined_call_operand.vmem [shape: bf16[32,144], index: 0, kind: input, shape index: {}]   ;;  %s2155_s2 = inlined_call_operand.vmem [shape: f32[32,1], index: 2, kind: input, shape index: {}]   ;;  %s2156_s3 = inlined_call_operand.vmem [shape: bf16[32,1444], index: 3, kind: output, shape index: {}]  }
   0x1   :  { %v1432_v0 = vld [vmem:[%s2153_s1 + $0x2a4] ss:$48 sps:$4 sm:$0xff]   ;;  %1430 = vset.pattern.permute.xlu0 %v1600_v1  ;;  %1431 = vset.pattern.permute.xlu1 %v1600_v1  ;;  %v1434_v2 = vld [vmem:[%s2153_s1 + $0x2ac] ss:$48 sps:$4 sm:$0xff]   ;;  %v1436_v3 = vld [vmem:[%s2153_s1 + $0x2a0] ss:$48 sps:$4 sm:$0xff]  }
   0x2   :  { %716 = vmatprep.subr.bf16.mxu0 %v1432_v0  ;;  %v1437_v4 = vld [vmem:[%s2153_s1 + $0x2a8] ss:$48 sps:$4 sm:$0xff]   ;;  %769 = vmatprep.subr.bf16.mxu1 %v1434_v2  ;;  %v1438_v5 = vld [vmem:[%s2153_s1 + $0x244] ss:$48 sps:$4 sm:$0xff]   ;;  %v1440_v6 = vld [vmem:[%s2153_s1 + $0x24c] ss:$48 sps:$4 sm:$0xff]  }
   0x3   :  { %717 = vmatpush1.bf16.msra.mxu0 %v1436_v3  ;;  %770 = vmatpush1.bf16.msra.mxu1 %v1437_v4  ;;  %v1442_v7 = vld [vmem:[%s2153_s1 + $0x240] ss:$48 sps:$4 sm:$0xff]   ;;  %v1443_v8 = vld [vmem:[%s2153_s1 + $0x248] ss:$48 sps:$4 sm:$0xff]   ;;  %v1444_v9 = vld [vmem:[%s2153_s1 + $0x1e4] ss:$48 sps:$4 sm:$0xff]  }
   0x4   :  { %718 = vmatprep.subr.bf16.mxu0 %v1438_v5  ;;  %771 = vmatprep.subr.bf16.mxu1 %v1440_v6  ;;  %v1446_v10 = vld [vmem:[%s2153_s1 + $0x1ec] ss:$48 sps:$4 sm:$0xff]   ;;  %v1448_v11 = vld [vmem:[%s2153_s1 + $0x1e0] ss:$48 sps:$4 sm:$0xff]   ;;  %v1449_v12 = vld [vmem:[%s2153_s1 + $0x1e8] ss:$48 sps:$4 sm:$0xff]  }
   0x5   :  { %v1450_v13 = vld [vmem:[%s2153_s1 + $0x184] ss:$48 sps:$4 sm:$0xff]   ;;  %v1452_v14 = vld [vmem:[%s2153_s1 + $0x18c] ss:$48 sps:$4 sm:$0xff]   ;;  %v1454_v15 = vld [vmem:[%s2153_s1 + $0x180] ss:$48 sps:$4 sm:$0xff]  }
   0x6   :  { %v1455_v16 = vld [vmem:[%s2153_s1 + $0x188] ss:$48 sps:$4 sm:$0xff]   ;;  %v1456_v17 = vld [vmem:[%s2153_s1 + $0x124] ss:$48 sps:$4 sm:$0xff]   ;;  %v1458_v18 = vld [vmem:[%s2153_s1 + $0x12c] ss:$48 sps:$4 sm:$0xff]  }
   0x7   :  { %719 = vmatpush1.bf16.msra.mxu0 %v1442_v7  ;;  %772 = vmatpush1.bf16.msra.mxu1 %v1443_v8  ;;  %v1460_v19 = vld [vmem:[%s2153_s1 + $0x120] ss:$48 sps:$4 sm:$0xff]   ;;  %v1461_v20 = vld [vmem:[%s2153_s1 + $0x128] ss:$48 sps:$4 sm:$0xff]   ;;  %v1462_v21 = vld [vmem:[%s2153_s1 + $0xc4] ss:$48 sps:$4 sm:$0xff]  }
   0x8   :  { %720 = vmatprep.subr.bf16.mxu0 %v1444_v9  ;;  %773 = vmatprep.subr.bf16.mxu1 %v1446_v10  ;;  %v1464_v22 = vld [vmem:[%s2153_s1 + $0xcc] ss:$48 sps:$4 sm:$0xff]   ;;  %v1466_v23 = vld [vmem:[%s2153_s1 + $0xc0] ss:$48 sps:$4 sm:$0xff]   ;;  %v1467_v24 = vld [vmem:[%s2153_s1 + $0xc8] ss:$48 sps:$4 sm:$0xff]  }
   0x9   :  { %v1468_v25 = vld [vmem:[%s2153_s1 + $0x64] ss:$48 sps:$4 sm:$0xff]   ;;  %v1470_v26 = vld [vmem:[%s2153_s1 + $0x6c] ss:$48 sps:$4 sm:$0xff]   ;;  %v1472_v27 = vld [vmem:[%s2153_s1 + $0x60] ss:$48 sps:$4 sm:$0xff]  }
   0xa   :  { %v1473_v28 = vld [vmem:[%s2153_s1 + $0x68] ss:$48 sps:$4 sm:$0xff]   ;;  %v1474_v29 = vld [vmem:[%s2153_s1 + $0x4] ss:$48 sps:$4 sm:$0xff]   ;;  %v1476_v31 = vld [vmem:[%s2153_s1 + $0xc] ss:$48 sps:$4 sm:$0xff]  }
   0xb   :  { %721 = vmatpush1.bf16.msra.mxu0 %v1448_v11  ;;  %774 = vmatpush1.bf16.msra.mxu1 %v1449_v12  ;;  %v1711_v30 = vld [vmem:[%s2154_s0 + $0x4] ss:$8 sps:$4 sm:$0xff]   ;;  %v1478_v32 = vld [vmem:[%s2153_s1] ss:$48 sps:$4 sm:$0xff]   ;;  %v1479_v33 = vld [vmem:[%s2153_s1 + $0x8] ss:$48 sps:$4 sm:$0xff]  }
   0xc   :  { %722 = vmatprep.subr.bf16.mxu0 %v1450_v13  ;;  %775 = vmatprep.subr.bf16.mxu1 %v1452_v14  ;;  %v1480_v34 = vld [vmem:[%s2153_s1 + $0x304] ss:$48 sps:$4 sm:$0xff]   ;;  %v1482_v35 = vld [vmem:[%s2153_s1 + $0x30c] ss:$48 sps:$4 sm:$0xff]   ;;  %v1484_v36 = vld [vmem:[%s2153_s1 + $0x300] ss:$48 sps:$4 sm:$0xff]  }
   0xd   :  { %1369 = vmatprep.mubr.msk.bf16.mxu0 %vm709_vm0, %v1711_v30  ;;  %1371 = vmatprep.mubr.msk.bf16.mxu1 %vm709_vm0, %v1711_v30  ;;  %v1485_v37 = vld [vmem:[%s2153_s1 + $0x308] ss:$48 sps:$4 sm:$0xff]   ;;  %v1491_v38 = vld [vmem:[%s2153_s1 + $0x2b4] ss:$48 sps:$4 sm:$0xff]   ;;  %v1494_v39 = vld [vmem:[%s2153_s1 + $0x2bc] ss:$48 sps:$4 sm:$0xff]  }
   0xe   :  { %v1747_v40 = vld [vmem:[%s2154_s0] ss:$8 sps:$4 sm:$0xff]   ;;  %v1497_v43 = vld [vmem:[%s2153_s1 + $0x254] ss:$48 sps:$4 sm:$0xff]   ;;  %v1500_v44 = vld [vmem:[%s2153_s1 + $0x25c] ss:$48 sps:$4 sm:$0xff]  }
   0xf   :  { %723 = vmatpush1.bf16.msra.mxu0 %v1454_v15  ;;  %776 = vmatpush1.bf16.msra.mxu1 %v1455_v16  ;;  %v1489_v41 = vld [vmem:[%s2153_s1 + $0x2b0] ss:$48 sps:$4 sm:$0xff]   ;;  %v1492_v42 = vld [vmem:[%s2153_s1 + $0x2b8] ss:$48 sps:$4 sm:$0xff]   ;;  %v1503_v47 = vld [vmem:[%s2153_s1 + $0x1f4] ss:$48 sps:$4 sm:$0xff]  }
  0x10   :  { %724 = vmatprep.subr.bf16.mxu0 %v1456_v17  ;;  %777 = vmatprep.subr.bf16.mxu1 %v1458_v18  ;;  %v1495_v45 = vld [vmem:[%s2153_s1 + $0x250] ss:$48 sps:$4 sm:$0xff]   ;;  %v1498_v46 = vld [vmem:[%s2153_s1 + $0x258] ss:$48 sps:$4 sm:$0xff]   ;;  %v1506_v48 = vld [vmem:[%s2153_s1 + $0x1fc] ss:$48 sps:$4 sm:$0xff]  }
  0x11   :  { %v1501_v49 = vld [vmem:[%s2153_s1 + $0x1f0] ss:$48 sps:$4 sm:$0xff]   ;;  %v1781_v50 = vld [vmem:[%s2154_s0 + $0x14] ss:$8 sps:$4 sm:$0xff]   ;;  %v1504_v51 = vld [vmem:[%s2153_s1 + $0x1f8] ss:$48 sps:$4 sm:$0xff]  }
  0x12   :  { %v1789_v52 = vld [vmem:[%s2154_s0 + $0x10] ss:$8 sps:$4 sm:$0xff]   ;;  %v1509_v53 = vld [vmem:[%s2153_s1 + $0x194] ss:$48 sps:$4 sm:$0xff]   ;;  %v1512_v54 = vld [vmem:[%s2153_s1 + $0x19c] ss:$48 sps:$4 sm:$0xff]  }
  0x13   :  { %725 = vmatpush1.bf16.msra.mxu0 %v1460_v19  ;;  %778 = vmatpush1.bf16.msra.mxu1 %v1461_v20  ;;  %v1507_v55 = vld [vmem:[%s2153_s1 + $0x190] ss:$48 sps:$4 sm:$0xff]   ;;  %v1510_v56 = vld [vmem:[%s2153_s1 + $0x198] ss:$48 sps:$4 sm:$0xff]   ;;  %v1515_v57 = vld [vmem:[%s2153_s1 + $0x134] ss:$48 sps:$4 sm:$0xff]  }
  0x14   :  { %726 = vmatprep.subr.bf16.mxu0 %v1462_v21  ;;  %779 = vmatprep.subr.bf16.mxu1 %v1464_v22  ;;  %v1518_v58 = vld [vmem:[%s2153_s1 + $0x13c] ss:$48 sps:$4 sm:$0xff]   ;;  %v1513_v59 = vld [vmem:[%s2153_s1 + $0x130] ss:$48 sps:$4 sm:$0xff]   ;;  %v1516_v60 = vld [vmem:[%s2153_s1 + $0x138] ss:$48 sps:$4 sm:$0xff]  }
  0x15   :  { %v1521_v61 = vld [vmem:[%s2153_s1 + $0xd4] ss:$48 sps:$4 sm:$0xff]   ;;  %v1524_v62 = vld [vmem:[%s2153_s1 + $0xdc] ss:$48 sps:$4 sm:$0xff]   ;;  %v1519_v63 = vld [vmem:[%s2153_s1 + $0xd0] ss:$48 sps:$4 sm:$0xff]  }
  0x16   :  { %v1522_v0 = vld [vmem:[%s2153_s1 + $0xd8] ss:$48 sps:$4 sm:$0xff]   ;;  %v1530_v1 = vld [vmem:[%s2153_s1 + $0x74] ss:$48 sps:$4 sm:$0xff]   ;;  %v1533_v2 = vld [vmem:[%s2153_s1 + $0x7c] ss:$48 sps:$4 sm:$0xff]  }
  0x17   :  { %727 = vmatpush1.bf16.msra.mxu0 %v1466_v23  ;;  %780 = vmatpush1.bf16.msra.mxu1 %v1467_v24  ;;  %v1528_v3 = vld [vmem:[%s2153_s1 + $0x70] ss:$48 sps:$4 sm:$0xff]   ;;  %v1531_v4 = vld [vmem:[%s2153_s1 + $0x78] ss:$48 sps:$4 sm:$0xff]   ;;  %v1536_v5 = vld [vmem:[%s2153_s1 + $0x14] ss:$48 sps:$4 sm:$0xff]  }
  0x18   :  { %728 = vmatprep.subr.bf16.mxu0 %v1468_v25  ;;  %781 = vmatprep.subr.bf16.mxu1 %v1470_v26  ;;  %v1539_v6 = vld [vmem:[%s2153_s1 + $0x1c] ss:$48 sps:$4 sm:$0xff]   ;;  %v1534_v7 = vld [vmem:[%s2153_s1 + $0x10] ss:$48 sps:$4 sm:$0xff]   ;;  %v1537_v8 = vld [vmem:[%s2153_s1 + $0x18] ss:$48 sps:$4 sm:$0xff]  }
  0x19   :  { %v1542_v9 = vld [vmem:[%s2153_s1 + $0x314] ss:$48 sps:$4 sm:$0xff]   ;;  %v1545_v10 = vld [vmem:[%s2153_s1 + $0x31c] ss:$48 sps:$4 sm:$0xff]   ;;  %v1540_v11 = vld [vmem:[%s2153_s1 + $0x310] ss:$48 sps:$4 sm:$0xff]  }
  0x1a   :  { %v1543_v12 = vld [vmem:[%s2153_s1 + $0x318] ss:$48 sps:$4 sm:$0xff]   ;;  %v1548_v13 = vld [vmem:[%s2153_s1 + $0x2c4] ss:$48 sps:$4 sm:$0xff]   ;;  %v1551_v14 = vld [vmem:[%s2153_s1 + $0x2cc] ss:$48 sps:$4 sm:$0xff]  }
  0x1b   :  { %729 = vmatpush1.bf16.msra.mxu0 %v1472_v27  ;;  %782 = vmatpush1.bf16.msra.mxu1 %v1473_v28  ;;  %v1546_v15 = vld [vmem:[%s2153_s1 + $0x2c0] ss:$48 sps:$4 sm:$0xff]   ;;  %v1549_v16 = vld [vmem:[%s2153_s1 + $0x2c8] ss:$48 sps:$4 sm:$0xff]   ;;  %v1554_v17 = vld [vmem:[%s2153_s1 + $0x264] ss:$48 sps:$4 sm:$0xff]  }
  0x1c   :  { %730 = vmatprep.subr.bf16.mxu0 %v1474_v29  ;;  %783 = vmatprep.subr.bf16.mxu1 %v1476_v31  ;;  %v1557_v18 = vld [vmem:[%s2153_s1 + $0x26c] ss:$48 sps:$4 sm:$0xff]   ;;  %v1552_v19 = vld [vmem:[%s2153_s1 + $0x260] ss:$48 sps:$4 sm:$0xff]   ;;  %v1555_v20 = vld [vmem:[%s2153_s1 + $0x268] ss:$48 sps:$4 sm:$0xff]  }
  0x1d   :  { %v127_v21 = vld [vmem:[%s2155_s2] sm:$0xff]  ;;  %v129_v22 = vld [vmem:[%s2155_s2 + $0x10] sm:$0xff]  ;;  %v1563_v24 = vld [vmem:[%s2153_s1 + $0x20c] ss:$48 sps:$4 sm:$0xff]  }
  0x1e   :  { %v1560_v23 = vld [vmem:[%s2153_s1 + $0x204] ss:$48 sps:$4 sm:$0xff]   ;;  %133 = vperm.xlu0 %1430, %v127_v21   ;;  %143 = vperm.xlu1 %1431, %v129_v22   ;;  %v1558_v25 = vld [vmem:[%s2153_s1 + $0x200] ss:$48 sps:$4 sm:$0xff]   ;;  %v1561_v26 = vld [vmem:[%s2153_s1 + $0x208] ss:$48 sps:$4 sm:$0xff]  }
  0x1f   :  { %731 = vmatpush1.bf16.msra.mxu0 %v1478_v32  ;;  %784 = vmatpush1.bf16.msra.mxu1 %v1479_v33  ;;  %v1566_v27 = vld [vmem:[%s2153_s1 + $0x1a4] ss:$48 sps:$4 sm:$0xff]   ;;  %v1569_v28 = vld [vmem:[%s2153_s1 + $0x1ac] ss:$48 sps:$4 sm:$0xff]   ;;  %v1564_v29 = vld [vmem:[%s2153_s1 + $0x1a0] ss:$48 sps:$4 sm:$0xff]  }
  0x20   :  { %746 = vmatprep.subr.bf16.mxu0 %v1480_v34  ;;  %799 = vmatprep.subr.bf16.mxu1 %v1482_v35  ;;  %v1567_v31 = vld [vmem:[%s2153_s1 + $0x1a8] ss:$48 sps:$4 sm:$0xff]   ;;  %v1572_v34 = vld [vmem:[%s2153_s1 + $0x144] ss:$48 sps:$4 sm:$0xff]   ;;  %v1575_v35 = vld [vmem:[%s2153_s1 + $0x14c] ss:$48 sps:$4 sm:$0xff]  }
  0x21   :  { %v128_v32 = vld [vmem:[%s2155_s2 + $0x8] sm:$0xff]  ;;  %v130_v33 = vld [vmem:[%s2155_s2 + $0x18] sm:$0xff]  ;;  %vm2105_vm3 = vmor %vm1232_vm2, %vm1231_vm1 }
  0x22   :  { %138 = vperm.xlu0 %1430, %v128_v32   ;;  %148 = vperm.xlu1 %1431, %v130_v33  }
  0x23   :  { %747 = vmatpush2.bf16.msra.mxu0 %v1484_v36  ;;  %800 = vmatpush2.bf16.msra.mxu1 %v1485_v37  ;;  %v1570_v36 = vld [vmem:[%s2153_s1 + $0x140] ss:$48 sps:$4 sm:$0xff]   ;;  %v1573_v37 = vld [vmem:[%s2153_s1 + $0x148] ss:$48 sps:$4 sm:$0xff]  }
  0x24   :  { %822 = vmatprep.subr.bf16.mxu0 %v1491_v38  ;;  %875 = vmatprep.subr.bf16.mxu1 %v1494_v39  ;;  %v1578_v38 = vld [vmem:[%s2153_s1 + $0xe4] ss:$48 sps:$4 sm:$0xff]   ;;  %v1576_v39 = vld [vmem:[%s2153_s1 + $0xe0] ss:$48 sps:$4 sm:$0xff]  }
  0x26   :  { %749 = vmatmul.mubr.bf16.vlgmr.msra.gmra.mxu0 %v1747_v40  ;;  %802 = vmatmul.mubr.bf16.vlgmr.msra.gmra.mxu1 %v1747_v40 }
  0x27   :  { %823 = vmatpush1.bf16.msra.mxu0 %v1489_v41  ;;  %876 = vmatpush1.bf16.msra.mxu1 %v1492_v42  ;;  %v1579_v41 = vld [vmem:[%s2153_s1 + $0xe8] ss:$48 sps:$4 sm:$0xff]   ;;  %v1584_v42 = vld [vmem:[%s2153_s1 + $0x84] ss:$48 sps:$4 sm:$0xff]  }
  0x28   :  { %824 = vmatprep.subr.bf16.mxu0 %v1497_v43  ;;  %877 = vmatprep.subr.bf16.mxu1 %v1500_v44  ;;  %v1587_v43 = vld [vmem:[%s2153_s1 + $0x8c] ss:$48 sps:$4 sm:$0xff]   ;;  %v1582_v44 = vld [vmem:[%s2153_s1 + $0x80] ss:$48 sps:$4 sm:$0xff]  }
  0x29   :  { %1370 = vmatprep.mubr.msk.bf16.mxu0 %vm709_vm0, %v1781_v50  ;;  %1372 = vmatprep.mubr.msk.bf16.mxu1 %vm709_vm0, %v1781_v50 }
  0x2b   :  { %825 = vmatpush1.bf16.msra.mxu0 %v1495_v45  ;;  %878 = vmatpush1.bf16.msra.mxu1 %v1498_v46  ;;  %v1585_v45 = vld [vmem:[%s2153_s1 + $0x88] ss:$48 sps:$4 sm:$0xff]   ;;  %v1590_v46 = vld [vmem:[%s2153_s1 + $0x24] ss:$48 sps:$4 sm:$0xff]  }
  0x2c   :  { %826 = vmatprep.subr.bf16.mxu0 %v1503_v47  ;;  %879 = vmatprep.subr.bf16.mxu1 %v1506_v48  ;;  %v1593_v47 = vld [vmem:[%s2153_s1 + $0x2c] ss:$48 sps:$4 sm:$0xff]   ;;  %v1588_v48 = vld [vmem:[%s2153_s1 + $0x20] ss:$48 sps:$4 sm:$0xff]  }
  0x2e   :  { %759 = vmatmul.mubr.bf16.gmra.mxu0 %v1789_v52  ;;  %812 = vmatmul.mubr.bf16.gmra.mxu1 %v1789_v52 }
  0x2f   :  { %827 = vmatpush1.bf16.msra.mxu0 %v1501_v49  ;;  %880 = vmatpush1.bf16.msra.mxu1 %v1504_v51  ;;  %v1591_v49 = vld [vmem:[%s2153_s1 + $0x28] ss:$48 sps:$4 sm:$0xff]   ;;  %v1596_v51 = vld [vmem:[%s2153_s1 + $0x324] ss:$48 sps:$4 sm:$0xff]  }
  0x30   :  { %828 = vmatprep.subr.bf16.mxu0 %v1509_v53  ;;  %881 = vmatprep.subr.bf16.mxu1 %v1512_v54  ;;  %v1599_v53 = vld [vmem:[%s2153_s1 + $0x32c] ss:$48 sps:$4 sm:$0xff]   ;;  %v1594_v54 = vld [vmem:[%s2153_s1 + $0x320] ss:$48 sps:$4 sm:$0xff]  }
  0x31   :  { %1373 = vmatprep.mubr.msk.bf16.mxu0 %vm709_vm0, %v1711_v30  ;;  %1375 = vmatprep.mubr.msk.bf16.mxu1 %vm709_vm0, %v1711_v30 }
  0x33   :  { %829 = vmatpush1.bf16.msra.mxu0 %v1507_v55  ;;  %882 = vmatpush1.bf16.msra.mxu1 %v1510_v56  ;;  %v1597_v55 = vld [vmem:[%s2153_s1 + $0x328] ss:$48 sps:$4 sm:$0xff]  }
  0x34   :  { %830 = vmatprep.subr.bf16.mxu0 %v1515_v57  ;;  %883 = vmatprep.subr.bf16.mxu1 %v1518_v58 }
  0x37   :  { %831 = vmatpush1.bf16.msra.mxu0 %v1513_v59  ;;  %884 = vmatpush1.bf16.msra.mxu1 %v1516_v60 }
  0x38   :  { %832 = vmatprep.subr.bf16.mxu0 %v1521_v61  ;;  %885 = vmatprep.subr.bf16.mxu1 %v1524_v62 }
  0x3b   :  { %833 = vmatpush1.bf16.msra.mxu0 %v1519_v63  ;;  %886 = vmatpush1.bf16.msra.mxu1 %v1522_v0 }
  0x3c   :  { %834 = vmatprep.subr.bf16.mxu0 %v1530_v1  ;;  %887 = vmatprep.subr.bf16.mxu1 %v1533_v2 }
  0x3f   :  { %835 = vmatpush1.bf16.msra.mxu0 %v1528_v3  ;;  %888 = vmatpush1.bf16.msra.mxu1 %v1531_v4 }
  0x40   :  { %836 = vmatprep.subr.bf16.mxu0 %v1536_v5  ;;  %889 = vmatprep.subr.bf16.mxu1 %v1539_v6 }
  0x43   :  { %837 = vmatpush1.bf16.msra.mxu0 %v1534_v7  ;;  %890 = vmatpush1.bf16.msra.mxu1 %v1537_v8 }
  0x44   :  { %852 = vmatprep.subr.bf16.mxu0 %v1542_v9  ;;  %905 = vmatprep.subr.bf16.mxu1 %v1545_v10 }
  0x47   :  { %853 = vmatpush2.bf16.msra.mxu0 %v1540_v11  ;;  %906 = vmatpush2.bf16.msra.mxu1 %v1543_v12 }
  0x48   :  { %928 = vmatprep.subr.bf16.mxu0 %v1548_v13  ;;  %981 = vmatprep.subr.bf16.mxu1 %v1551_v14 }
  0x4a   :  { %855 = vmatmul.mubr.bf16.vlgmr.msra.gmra.mxu0 %v1747_v40  ;;  %908 = vmatmul.mubr.bf16.vlgmr.msra.gmra.mxu1 %v1747_v40 }
  0x4b   :  { %929 = vmatpush1.bf16.msra.mxu0 %v1546_v15  ;;  %982 = vmatpush1.bf16.msra.mxu1 %v1549_v16 }
  0x4c   :  { %930 = vmatprep.subr.bf16.mxu0 %v1554_v17  ;;  %983 = vmatprep.subr.bf16.mxu1 %v1557_v18 }
  0x4d   :  { %1374 = vmatprep.mubr.msk.bf16.mxu0 %vm709_vm0, %v1781_v50  ;;  %1376 = vmatprep.mubr.msk.bf16.mxu1 %vm709_vm0, %v1781_v50 }
  0x4f   :  { %931 = vmatpush1.bf16.msra.mxu0 %v1552_v19  ;;  %984 = vmatpush1.bf16.msra.mxu1 %v1555_v20 }
  0x50   :  { %932 = vmatprep.subr.bf16.mxu0 %v1560_v23  ;;  %985 = vmatprep.subr.bf16.mxu1 %v1563_v24 }
  0x52   :  { %865 = vmatmul.mubr.bf16.gmra.mxu0 %v1789_v52  ;;  %918 = vmatmul.mubr.bf16.gmra.mxu1 %v1789_v52 }
  0x53   :  { %933 = vmatpush1.bf16.msra.mxu0 %v1558_v25  ;;  %986 = vmatpush1.bf16.msra.mxu1 %v1561_v26 }
  0x54   :  { %934 = vmatprep.subr.bf16.mxu0 %v1566_v27  ;;  %987 = vmatprep.subr.bf16.mxu1 %v1569_v28 }
  0x55   :  { %1377 = vmatprep.mubr.msk.bf16.mxu0 %vm709_vm0, %v1711_v30  ;;  %1379 = vmatprep.mubr.msk.bf16.mxu1 %vm709_vm0, %v1711_v30  ;;  %v1581_v30 = vld [vmem:[%s2153_s1 + $0xec] ss:$48 sps:$4 sm:$0xff]  }
  0x57   :  { %935 = vmatpush1.bf16.msra.mxu0 %v1564_v29  ;;  %988 = vmatpush1.bf16.msra.mxu1 %v1567_v31 }
  0x58   :  { %936 = vmatprep.subr.bf16.mxu0 %v1572_v34  ;;  %989 = vmatprep.subr.bf16.mxu1 %v1575_v35 }
  0x5b   :  { %937 = vmatpush1.bf16.msra.mxu0 %v1570_v36  ;;  %990 = vmatpush1.bf16.msra.mxu1 %v1573_v37 }
  0x5c   :  { %938 = vmatprep.subr.bf16.mxu0 %v1578_v38  ;;  %991 = vmatprep.subr.bf16.mxu1 %v1581_v30 }
  0x5f   :  { %939 = vmatpush1.bf16.msra.mxu0 %v1576_v39  ;;  %992 = vmatpush1.bf16.msra.mxu1 %v1579_v41 }
  0x60   :  { %940 = vmatprep.subr.bf16.mxu0 %v1584_v42  ;;  %993 = vmatprep.subr.bf16.mxu1 %v1587_v43 }
  0x63   :  { %941 = vmatpush1.bf16.msra.mxu0 %v1582_v44  ;;  %994 = vmatpush1.bf16.msra.mxu1 %v1585_v45 }
  0x64   :  { %942 = vmatprep.subr.bf16.mxu0 %v1590_v46  ;;  %995 = vmatprep.subr.bf16.mxu1 %v1593_v47 }
  0x67   :  { %943 = vmatpush1.bf16.msra.mxu0 %v1588_v48  ;;  %996 = vmatpush1.bf16.msra.mxu1 %v1591_v49 }
  0x68   :  { %958 = vmatprep.subr.bf16.mxu0 %v1596_v51  ;;  %1011 = vmatprep.subr.bf16.mxu1 %v1599_v53 }
  0x6b   :  { %959 = vmatpush2.bf16.msra.mxu0 %v1594_v54  ;;  %1012 = vmatpush2.bf16.msra.mxu1 %v1597_v55 }
  0x6e   :  { %961 = vmatmul.mubr.bf16.vlgmr.msra.gmra.mxu0 %v1747_v40  ;;  %1014 = vmatmul.mubr.bf16.vlgmr.msra.gmra.mxu1 %v1747_v40 }
  0x6f   :  { %1378 = vmatprep.mubr.msk.bf16.mxu0 %vm709_vm0, %v1781_v50  ;;  %1380 = vmatprep.mubr.msk.bf16.mxu1 %vm709_vm0, %v1781_v50 }
  0x76   :  { %971 = vmatmul.mubr.bf16.gmra.mxu0 %v1789_v52  ;;  %1024 = vmatmul.mubr.bf16.gmra.mxu1 %v1789_v52 }
  0x99   :  { %v2013_v56 = vpop.permute.xlu0 %133  ;;  %v2021_v2 = vpop.permute.xlu1 %143 }
  0x9d   :  { %v2019_v1 = vpop.permute.xlu0 %138  ;;  %v2035_v18 = vpop.permute.xlu1 %148 }
  0xe6   :  { %v750_v57 = vpop.f32.mrf.mxu0  ;;  %v803_v58 = vpop.f32.mrf.mxu1 }
  0xe7   :  { %v751_v59 = vadd.f32 %v750_v57, %v2013_v56  ;;  %v804_v60 = vadd.f32 %v803_v58, %v2013_v56 }
  0xe8   :  { %v752_v61 = vpop.f32.mrf.mxu0  ;;  %v805_v40 = vpop.f32.mrf.mxu1 }
  0xe9   :  { %v1034_v62 = vmax.f32 %v751_v59, 0.0  ;;  %v1036_v63 = vmax.f32 %v804_v60, 0.0  ;;  %v753_v0 = vadd.f32 %v752_v61, %v2013_v56  ;;  %v806_v50 = vadd.f32 %v805_v40, %v2013_v56 }
  0xea   :  { %v754_v52 = vpop.f32.mrf.mxu0  ;;  %v807_v3 = vpop.f32.mrf.mxu1 }
  0xeb   :  { %v1035_v4 = vmax.f32 %v753_v0, 0.0  ;;  %v1037_v5 = vmax.f32 %v806_v50, 0.0  ;;  %v755_v6 = vadd.f32 %v754_v52, %v2019_v1  ;;  %v808_v7 = vadd.f32 %v807_v3, %v2019_v1 }
  0xec   :  { %v756_v8 = vpop.f32.mrf.mxu0  ;;  %v809_v9 = vpop.f32.mrf.mxu1 }
  0xed   :  { %v1405_v10 = vpack.c.bf16 %v1035_v4, %v1034_v62  ;;  %v1406_v11 = vpack.c.bf16 %v1037_v5, %v1036_v63  ;;  %v757_v12 = vadd.f32 %v756_v8, %v2019_v1  ;;  %v810_v13 = vadd.f32 %v809_v9, %v2019_v1 }
  0xee   :  { %v760_v14 = vpop.f32.mrf.mxu0  ;;  %v813_v15 = vpop.f32.mrf.mxu1  ;;  %v1046_v19 = vmax.f32 %v755_v6, 0.0  ;;  %v1048_v20 = vmax.f32 %v808_v7, 0.0 }
  0xef   :  { %1226 = vst [vmem:[%s2156_s3] sm:$0xff] %v1405_v10  ;;  %1227 = vst [vmem:[%s2156_s3 + $0x8] sm:$0xff] %v1406_v11  ;;  %v761_v16 = vadd.f32 %v760_v14, %v2021_v2  ;;  %v814_v17 = vadd.f32 %v813_v15, %v2021_v2  ;;  %v1047_v21 = vmax.f32 %v757_v12, 0.0  ;;  %v1049_v22 = vmax.f32 %v810_v13, 0.0 }
  0xf0   :  { %v762_v23 = vpop.f32.mrf.mxu0  ;;  %v815_v24 = vpop.f32.mrf.mxu1 }
  0xf1   :  { %v763_v25 = vadd.f32 %v762_v23, %v2021_v2  ;;  %v1058_v26 = vmax.f32 %v761_v16, 0.0  ;;  %v816_v27 = vadd.f32 %v815_v24, %v2021_v2  ;;  %v1060_v28 = vmax.f32 %v814_v17, 0.0 }
  0xf2   :  { %v1411_v29 = vpack.c.bf16 %v1047_v21, %v1046_v19  ;;  %v1412_v31 = vpack.c.bf16 %v1049_v22, %v1048_v20  ;;  %v764_v32 = vpop.f32.mrf.mxu0  ;;  %v817_v33 = vpop.f32.mrf.mxu1 }
  0xf3   :  { %v1059_v34 = vmax.f32 %v763_v25, 0.0  ;;  %v1061_v35 = vmax.f32 %v816_v27, 0.0  ;;  %v765_v36 = vadd.f32 %v764_v32, %v2035_v18  ;;  %v818_v37 = vadd.f32 %v817_v33, %v2035_v18 }
  0xf4   :  { %1235 = vst [vmem:[%s2156_s3 + $0x30] sm:$0xff] %v1411_v29  ;;  %1236 = vst [vmem:[%s2156_s3 + $0x38] sm:$0xff] %v1412_v31  ;;  %v766_v38 = vpop.f32.mrf.mxu0  ;;  %v819_v30 = vpop.f32.mrf.mxu1 }
  0xf5   :  { %v1417_v39 = vpack.c.bf16 %v1059_v34, %v1058_v26  ;;  %v1418_v41 = vpack.c.bf16 %v1061_v35, %v1060_v28  ;;  %v767_v42 = vadd.f32 %v766_v38, %v2035_v18  ;;  %v1070_v43 = vmax.f32 %v765_v36, 0.0 }
  0xf6   :  { %v820_v44 = vadd.f32 %v819_v30, %v2035_v18  ;;  %v1072_v45 = vmax.f32 %v818_v37, 0.0 }
  0xf7   :  { %1241 = vst [vmem:[%s2156_s3 + $0x60] sm:$0xff] %v1417_v39  ;;  %1242 = vst [vmem:[%s2156_s3 + $0x68] sm:$0xff] %v1418_v41  ;;  %v1071_v46 = vmax.f32 %v767_v42, 0.0 }
  0xf8   :  { %v1073_v47 = vmax.f32 %v820_v44, 0.0 }
  0xf9   :  { %v1423_v48 = vpack.c.bf16 %v1071_v46, %v1070_v43 }
  0xfa   :  { %v1424_v49 = vpack.c.bf16 %v1073_v47, %v1072_v45 }
  0xfb   :  { %1247 = vst [vmem:[%s2156_s3 + $0x90] sm:$0xff] %v1423_v48 }
  0xfc   :  { %1248 = vst [vmem:[%s2156_s3 + $0x98] sm:$0xff] %v1424_v49 }
 0x10a   :  { %v856_v51 = vpop.f32.mrf.mxu0  ;;  %v909_v53 = vpop.f32.mrf.mxu1 }
 0x10b   :  { %v857_v54 = vadd.f32 %v856_v51, %v2013_v56  ;;  %v910_v55 = vadd.f32 %v909_v53, %v2013_v56 }
 0x10c   :  { %v858_v57 = vpop.f32.mrf.mxu0  ;;  %v911_v58 = vpop.f32.mrf.mxu1 }
 0x10d   :  { %v1038_v59 = vmax.f32 %v857_v54, 0.0  ;;  %v1040_v60 = vmax.f32 %v910_v55, 0.0  ;;  %v859_v61 = vadd.f32 %v858_v57, %v2013_v56  ;;  %v912_v40 = vadd.f32 %v911_v58, %v2013_v56 }
 0x10e   :  { %v860_v62 = vpop.f32.mrf.mxu0  ;;  %v913_v63 = vpop.f32.mrf.mxu1 }
 0x10f   :  { %v1039_v0 = vmax.f32 %v859_v61, 0.0  ;;  %v1041_v50 = vmax.f32 %v912_v40, 0.0  ;;  %v861_v52 = vadd.f32 %v860_v62, %v2019_v1  ;;  %v914_v3 = vadd.f32 %v913_v63, %v2019_v1 }
 0x110   :  { %v862_v4 = vpop.f32.mrf.mxu0  ;;  %v915_v5 = vpop.f32.mrf.mxu1 }
 0x111   :  { %v1407_v6 = vpack.c.bf16 %v1039_v0, %v1038_v59  ;;  %v1408_v7 = vpack.c.bf16 %v1041_v50, %v1040_v60  ;;  %v863_v8 = vadd.f32 %v862_v4, %v2019_v1  ;;  %v916_v9 = vadd.f32 %v915_v5, %v2019_v1 }
 0x112   :  { %v866_v10 = vpop.f32.mrf.mxu0  ;;  %v919_v11 = vpop.f32.mrf.mxu1  ;;  %v1050_v14 = vmax.f32 %v861_v52, 0.0  ;;  %v1052_v15 = vmax.f32 %v914_v3, 0.0 }
 0x113   :  { %1228 = vst [vmem:[%s2156_s3 + $0x10] sm:$0xff] %v1407_v6  ;;  %1229 = vst [vmem:[%s2156_s3 + $0x18] sm:$0xff] %v1408_v7  ;;  %v867_v12 = vadd.f32 %v866_v10, %v2021_v2  ;;  %v920_v13 = vadd.f32 %v919_v11, %v2021_v2  ;;  %v1051_v16 = vmax.f32 %v863_v8, 0.0  ;;  %v1053_v17 = vmax.f32 %v916_v9, 0.0 }
 0x114   :  { %v868_v19 = vpop.f32.mrf.mxu0  ;;  %v921_v20 = vpop.f32.mrf.mxu1 }
 0x115   :  { %v1062_v21 = vmax.f32 %v867_v12, 0.0  ;;  %v1064_v22 = vmax.f32 %v920_v13, 0.0  ;;  %v869_v23 = vadd.f32 %v868_v19, %v2021_v2  ;;  %v922_v24 = vadd.f32 %v921_v20, %v2021_v2 }
 0x116   :  { %v1413_v25 = vpack.c.bf16 %v1051_v16, %v1050_v14  ;;  %v1414_v26 = vpack.c.bf16 %v1053_v17, %v1052_v15  ;;  %v870_v27 = vpop.f32.mrf.mxu0  ;;  %v923_v28 = vpop.f32.mrf.mxu1 }
 0x117   :  { %v1063_v29 = vmax.f32 %v869_v23, 0.0  ;;  %v1065_v31 = vmax.f32 %v922_v24, 0.0  ;;  %v871_v32 = vadd.f32 %v870_v27, %v2035_v18  ;;  %v924_v33 = vadd.f32 %v923_v28, %v2035_v18 }
 0x118   :  { %1237 = vst [vmem:[%s2156_s3 + $0x40] sm:$0xff] %v1413_v25  ;;  %1238 = vst [vmem:[%s2156_s3 + $0x48] sm:$0xff] %v1414_v26  ;;  %v872_v34 = vpop.f32.mrf.mxu0  ;;  %v925_v35 = vpop.f32.mrf.mxu1 }
 0x119   :  { %v1419_v36 = vpack.c.bf16 %v1063_v29, %v1062_v21  ;;  %v1420_v37 = vpack.c.bf16 %v1065_v31, %v1064_v22  ;;  %v1074_v38 = vmax.f32 %v871_v32, 0.0  ;;  %v1076_v30 = vmax.f32 %v924_v33, 0.0 }
 0x11a   :  { %v873_v39 = vadd.f32 %v872_v34, %v2035_v18  ;;  %v926_v41 = vadd.f32 %v925_v35, %v2035_v18 }
 0x11b   :  { %1243 = vst [vmem:[%s2156_s3 + $0x70] sm:$0xff] %v1419_v36  ;;  %1244 = vst [vmem:[%s2156_s3 + $0x78] sm:$0xff] %v1420_v37 }
 0x11c   :  { %v1075_v42 = vmax.f32 %v873_v39, 0.0  ;;  %v1077_v43 = vmax.f32 %v926_v41, 0.0 }
 0x11e   :  { %v1425_v44 = vpack.c.bf16 %v1075_v42, %v1074_v38  ;;  %v1426_v45 = vpack.c.bf16 %v1077_v43, %v1076_v30 }
 0x120   :  { %1249 = vst [vmem:[%s2156_s3 + $0xa0] sm:$0xff] %v1425_v44  ;;  %1250 = vst [vmem:[%s2156_s3 + $0xa8] sm:$0xff] %v1426_v45 }
 0x12e   :  { %v962_v46 = vpop.f32.mrf.mxu0  ;;  %v1015_v47 = vpop.f32.mrf.mxu1 }
 0x12f   :  { %v963_v48 = vadd.f32 %v962_v46, %v2013_v56  ;;  %v1016_v49 = vadd.f32 %v1015_v47, %v2013_v56 }
 0x130   :  { %v964_v51 = vpop.f32.mrf.mxu0  ;;  %v1017_v53 = vpop.f32.mrf.mxu1 }
 0x131   :  { %v965_v54 = vadd.f32 %v964_v51, %v2013_v56  ;;  %v1018_v55 = vadd.f32 %v1017_v53, %v2013_v56  ;;  %v1042_v59 = vmax.f32 %v963_v48, 0.0  ;;  %v1044_v60 = vmax.f32 %v1016_v49, 0.0 }
 0x132   :  { %v966_v57 = vpop.f32.mrf.mxu0  ;;  %v1019_v58 = vpop.f32.mrf.mxu1 }
 0x133   :  { %v1043_v61 = vmax.f32 %v965_v54, 0.0  ;;  %v1045_v40 = vmax.f32 %v1018_v55, 0.0  ;;  %v967_v63 = vadd.f32 %v966_v57, %v2019_v1  ;;  %v1020_v0 = vadd.f32 %v1019_v58, %v2019_v1 }
 0x134   :  { %v968_v50 = vpop.f32.mrf.mxu0  ;;  %v1021_v52 = vpop.f32.mrf.mxu1 }
 0x135   :  { %v1409_v3 = vpack.c.bf16 %v1043_v61, %v1042_v59  ;;  %v1410_v56 = vpack.c.bf16 %v1045_v40, %v1044_v60  ;;  %v969_v4 = vadd.f32 %v968_v50, %v2019_v1  ;;  %v1022_v5 = vadd.f32 %v1021_v52, %v2019_v1 }
 0x136   :  { %v972_v6 = vpop.f32.mrf.mxu0  ;;  %v1025_v7 = vpop.f32.mrf.mxu1  ;;  %v1054_v10 = vmax.f32 %v967_v63, 0.0  ;;  %v1056_v11 = vmax.f32 %v1020_v0, 0.0 }
 0x137   :  { %1230 = vst [vmem:[%s2156_s3 + $0x20] sm:$0xff] %v1409_v3  ;;  %1234 = vst.msk [vmem:[%s2156_s3 + $0x28] sm:$0xff] %vm2105_vm3, %v1410_v56  ;;  %v973_v8 = vadd.f32 %v972_v6, %v2021_v2  ;;  %v1026_v9 = vadd.f32 %v1025_v7, %v2021_v2  ;;  %v1055_v12 = vmax.f32 %v969_v4, 0.0  ;;  %v1057_v1 = vmax.f32 %v1022_v5, 0.0 }
 0x138   :  { %v974_v13 = vpop.f32.mrf.mxu0  ;;  %v1027_v14 = vpop.f32.mrf.mxu1 }
 0x139   :  { %v975_v15 = vadd.f32 %v974_v13, %v2021_v2  ;;  %v1028_v16 = vadd.f32 %v1027_v14, %v2021_v2  ;;  %v1415_v17 = vpack.c.bf16 %v1055_v12, %v1054_v10  ;;  %v1416_v19 = vpack.c.bf16 %v1057_v1, %v1056_v11 }
 0x13a   :  { %v976_v20 = vpop.f32.mrf.mxu0  ;;  %v1029_v21 = vpop.f32.mrf.mxu1  ;;  %v1066_v22 = vmax.f32 %v973_v8, 0.0  ;;  %v1068_v23 = vmax.f32 %v1026_v9, 0.0 }
 0x13b   :  { %v1067_v24 = vmax.f32 %v975_v15, 0.0  ;;  %v1069_v25 = vmax.f32 %v1028_v16, 0.0  ;;  %1239 = vst [vmem:[%s2156_s3 + $0x50] sm:$0xff] %v1415_v17  ;;  %1240 = vst.msk [vmem:[%s2156_s3 + $0x58] sm:$0xff] %vm2105_vm3, %v1416_v19  ;;  %v977_v2 = vadd.f32 %v976_v20, %v2035_v18  ;;  %v1030_v26 = vadd.f32 %v1029_v21, %v2035_v18 }
 0x13c   :  { %v978_v27 = vpop.f32.mrf.mxu0  ;;  %v1031_v28 = vpop.f32.mrf.mxu1 }
 0x13d   :  { %v1421_v29 = vpack.c.bf16 %v1067_v24, %v1066_v22  ;;  %v1422_v31 = vpack.c.bf16 %v1069_v25, %v1068_v23  ;;  %v979_v32 = vadd.f32 %v978_v27, %v2035_v18  ;;  %v1032_v33 = vadd.f32 %v1031_v28, %v2035_v18 }
 0x13e   :  { %v1078_v34 = vmax.f32 %v977_v2, 0.0  ;;  %v1080_v35 = vmax.f32 %v1030_v26, 0.0 }
 0x13f   :  { %1245 = vst [vmem:[%s2156_s3 + $0x80] sm:$0xff] %v1421_v29  ;;  %1246 = vst.msk [vmem:[%s2156_s3 + $0x88] sm:$0xff] %vm2105_vm3, %v1422_v31  ;;  %v1079_v36 = vmax.f32 %v979_v32, 0.0  ;;  %v1081_v37 = vmax.f32 %v1032_v33, 0.0 }
 0x141   :  { %v1427_v38 = vpack.c.bf16 %v1079_v36, %v1078_v34  ;;  %v1428_v30 = vpack.c.bf16 %v1081_v37, %v1080_v35 }
 0x143   :  { %1251 = vst [vmem:[%s2156_s3 + $0xb0] sm:$0xff] %v1427_v38  ;;  %1252 = vst.msk [vmem:[%s2156_s3 + $0xb8] sm:$0xff] %vm2105_vm3, %v1428_v30 }

// kernel: critic_forward.9
= control target key start
LH: loop header
LB: loop body
LE: loop exit
PB: predicated region body
PF: predicated region fallthrough
CT: control target
= control target key end

     0   :  { %v1168_v1 = vmov 0   ;;  %vm499_vm0 = vcmask 261120   ;;  %vm893_vm1 = vcmask 551936   ;;  %s1543_s1 = inlined_call_operand.vmem [shape: bf16[288,324], index: 1, kind: input, shape index: {}]   ;;  %s1544_s0 = inlined_call_operand.vmem [shape: bf16[64,288], index: 0, kind: input, shape index: {}]   ;;  %s1545_s2 = inlined_call_operand.vmem [shape: f32[64,1], index: 2, kind: input, shape index: {}]   ;;  %s1546_s3 = inlined_call_operand.vmem [shape: bf16[64,324], index: 3, kind: output, shape index: {}]  }
   0x1   :  { %v1080_v0 = vld [vmem:[%s1543_s1 + $0xac] ss:$12 sps:$4 sm:$0xff]   ;;  %617 = vmatprep.mubr.bf16.mxu1 %v1168_v1  ;;  %1078 = vset.pattern.permute.xlu0 %v1168_v1  ;;  %v1082_v2 = vld [vmem:[%s1543_s1 + $0x19c] ss:$12 sps:$4 sm:$0xff]   ;;  %v1086_v5 = vld [vmem:[%s1543_s1 + $0x94] ss:$12 sps:$4 sm:$0xff]  }
   0x2   :  { %1079 = vset.pattern.permute.xlu1 %v1168_v1  ;;  %512 = vmatprep.subr.bf16.mxu0 %v1080_v0  ;;  %v1084_v3 = vld [vmem:[%s1543_s1 + $0xa8] ss:$12 sps:$4 sm:$0xff]   ;;  %v1085_v4 = vld [vmem:[%s1543_s1 + $0x198] ss:$12 sps:$4 sm:$0xff]   ;;  %v1090_v7 = vld [vmem:[%s1543_s1 + $0x90] ss:$12 sps:$4 sm:$0xff]  }
   0x3   :  { %597 = vmatprep.subr.bf16.mxu1 %v1082_v2  ;;  %513 = vmatpush1.bf16.msra.mxu0 %v1084_v3  ;;  %v1088_v6 = vld [vmem:[%s1543_s1 + $0x184] ss:$12 sps:$4 sm:$0xff]   ;;  %v1091_v8 = vld [vmem:[%s1543_s1 + $0x180] ss:$12 sps:$4 sm:$0xff]   ;;  %v1092_v9 = vld [vmem:[%s1543_s1 + $0x7c] ss:$12 sps:$4 sm:$0xff]  }
   0x4   :  { %598 = vmatpush1.bf16.msra.mxu1 %v1085_v4  ;;  %514 = vmatprep.subr.bf16.mxu0 %v1086_v5  ;;  %v1222_v10 = vld [vmem:[%s1544_s0 + $0x8] ss:$12 sps:$4 sm:$0xff]   ;;  %v1095_v11 = vld [vmem:[%s1543_s1 + $0x170] ss:$12 sps:$4 sm:$0xff]   ;;  %v1096_v12 = vld [vmem:[%s1543_s1 + $0x78] ss:$12 sps:$4 sm:$0xff]  }
   0x5   :  { %599 = vmatprep.subr.bf16.mxu1 %v1088_v6  ;;  %v1097_v13 = vld [vmem:[%s1543_s1 + $0xb0] ss:$12 sps:$4 sm:$0xff]   ;;  %v1100_v15 = vld [vmem:[%s1543_s1 + $0x158] ss:$12 sps:$4 sm:$0xff]   ;;  %v1101_v16 = vld [vmem:[%s1543_s1 + $0x60] ss:$12 sps:$4 sm:$0xff]  }
   0x6   :  { %v1098_v14 = vld [vmem:[%s1543_s1 + $0x64] ss:$12 sps:$4 sm:$0xff]   ;;  %v1103_v18 = vld [vmem:[%s1543_s1 + $0x4c] ss:$12 sps:$4 sm:$0xff]   ;;  %v1107_v21 = vld [vmem:[%s1543_s1 + $0x48] ss:$12 sps:$4 sm:$0xff]  }
   0x7   :  { %515 = vmatpush1.bf16.msra.mxu0 %v1090_v7  ;;  %v1102_v17 = vld [vmem:[%s1543_s1 + $0x98] ss:$12 sps:$4 sm:$0xff]   ;;  %v1254_v19 = vld [vmem:[%s1544_s0 + $0x20] ss:$12 sps:$4 sm:$0xff]   ;;  %v1111_v24 = vld [vmem:[%s1543_s1 + $0x128] ss:$12 sps:$4 sm:$0xff]  }
   0x8   :  { %600 = vmatpush1.bf16.msra.mxu1 %v1091_v8  ;;  %516 = vmatprep.subr.bf16.mxu0 %v1092_v9  ;;  %v1106_v20 = vld [vmem:[%s1543_s1 + $0x140] ss:$12 sps:$4 sm:$0xff]   ;;  %v1112_v25 = vld [vmem:[%s1543_s1 + $0x30] ss:$12 sps:$4 sm:$0xff]   ;;  %v1113_v26 = vld [vmem:[%s1543_s1 + $0x68] ss:$12 sps:$4 sm:$0xff]  }
   0x9   :  { %1019 = vmatprep.subr.bf16.mxu1 %v1095_v11  ;;  %v1108_v22 = vld [vmem:[%s1543_s1 + $0x80] ss:$12 sps:$4 sm:$0xff]   ;;  %v1114_v27 = vld [vmem:[%s1543_s1 + $0x1c] ss:$12 sps:$4 sm:$0xff]   ;;  %v1286_v28 = vld [vmem:[%s1544_s0 + $0x38] ss:$12 sps:$4 sm:$0xff]  }
   0xa   :  { %v1109_v23 = vld [vmem:[%s1543_s1 + $0x34] ss:$12 sps:$4 sm:$0xff]   ;;  %v1117_v29 = vld [vmem:[%s1543_s1 + $0x110] ss:$12 sps:$4 sm:$0xff]   ;;  %v1118_v30 = vld [vmem:[%s1543_s1 + $0x18] ss:$12 sps:$4 sm:$0xff]  }
   0xb   :  { %979 = vmatmul.mubr.msk.bf16.vlgmr.msra.gmra.mxu1 %vm499_vm0, %v1222_v10  ;;  %517 = vmatpush1.bf16.msra.mxu0 %v1096_v12  ;;  %v1119_v31 = vld [vmem:[%s1543_s1 + $0x50] ss:$12 sps:$4 sm:$0xff]   ;;  %v1122_v33 = vld [vmem:[%s1543_s1 + $0xf8] ss:$12 sps:$4 sm:$0xff]   ;;  %v1123_v34 = vld [vmem:[%s1543_s1] ss:$12 sps:$4 sm:$0xff]  }
   0xc   :  { %1020 = vmatpush3.bf16.msra.mxu1 %v1097_v13  ;;  %518 = vmatprep.subr.bf16.mxu0 %v1098_v14  ;;  %v1120_v32 = vld [vmem:[%s1543_s1 + $0x4] ss:$12 sps:$4 sm:$0xff]   ;;  %v1125_v36 = vld [vmem:[%s1543_s1 + $0x16c] ss:$12 sps:$4 sm:$0xff]   ;;  %v1129_v39 = vld [vmem:[%s1543_s1 + $0x168] ss:$12 sps:$4 sm:$0xff]  }
   0xd   :  { %1021 = vmatprep.subr.bf16.mxu1 %v1100_v15  ;;  %627 = vmatprep.mubr.bf16.mxu1 %v1168_v1  ;;  %v1124_v35 = vld [vmem:[%s1543_s1 + $0x38] ss:$12 sps:$4 sm:$0xff]   ;;  %v1318_v37 = vld [vmem:[%s1544_s0 + $0x50] ss:$12 sps:$4 sm:$0xff]   ;;  %v1128_v38 = vld [vmem:[%s1543_s1 + $0xe0] ss:$12 sps:$4 sm:$0xff]  }
   0xe   :  { %v1130_v40 = vld [vmem:[%s1543_s1 + $0x20] ss:$12 sps:$4 sm:$0xff]   ;;  %v1133_v42 = vld [vmem:[%s1543_s1 + $0xc8] ss:$12 sps:$4 sm:$0xff]   ;;  %v1134_v43 = vld [vmem:[%s1543_s1 + $0x150] ss:$12 sps:$4 sm:$0xff]  }
   0xf   :  { %519 = vmatpush1.bf16.msra.mxu0 %v1101_v16  ;;  %v1131_v41 = vld [vmem:[%s1543_s1 + $0x154] ss:$12 sps:$4 sm:$0xff]   ;;  %v1138_v45 = vld [vmem:[%s1544_s0 + $0x4] ss:$12 sps:$4 sm:$0xff]   ;;  %v1139_v46 = vld [vmem:[%s1543_s1 + $0x13c] ss:$12 sps:$4 sm:$0xff]  }
  0x10   :  { %1022 = vmatpush3.bf16.msra.mxu1 %v1102_v17  ;;  %520 = vmatprep.subr.bf16.mxu0 %v1103_v18  ;;  %v1135_v44 = vld [vmem:[%s1543_s1 + $0x8] ss:$12 sps:$4 sm:$0xff]   ;;  %v1136_v47 = vld [vmem:[%s1544_s0] ss:$12 sps:$4 sm:$0xff]   ;;  %v1141_v48 = vld [vmem:[%s1543_s1 + $0x138] ss:$12 sps:$4 sm:$0xff]  }
  0x11   :  { %1023 = vmatprep.subr.bf16.mxu1 %v1106_v20  ;;  %544 = vmatprep.mubr.bf16.mxu0 %v1138_v45  ;;  %v1145_v49 = vld [vmem:[%s1544_s0 + $0x1c] ss:$12 sps:$4 sm:$0xff]   ;;  %v1142_v50 = vld [vmem:[%s1543_s1 + $0x124] ss:$12 sps:$4 sm:$0xff]   ;;  %v1151_v51 = vld [vmem:[%s1543_s1 + $0x1a0] ss:$12 sps:$4 sm:$0xff]  }
  0x12   :  { %v1144_v52 = vld [vmem:[%s1543_s1 + $0x120] ss:$12 sps:$4 sm:$0xff]   ;;  %v1149_v54 = vld [vmem:[%s1544_s0 + $0x18] ss:$12 sps:$4 sm:$0xff]   ;;  %v1150_v55 = vld [vmem:[%s1543_s1 + $0x108] ss:$12 sps:$4 sm:$0xff]  }
  0x13   :  { %980 = vmatmul.mubr.msk.bf16.gmra.mxu1 %vm499_vm0, %v1254_v19  ;;  %521 = vmatpush1.bf16.msra.mxu0 %v1107_v21  ;;  %v1147_v53 = vld [vmem:[%s1543_s1 + $0x10c] ss:$12 sps:$4 sm:$0xff]   ;;  %v1155_v56 = vld [vmem:[%s1544_s0 + $0x34] ss:$12 sps:$4 sm:$0xff]   ;;  %v1154_v60 = vld [vmem:[%s1543_s1 + $0xf0] ss:$12 sps:$4 sm:$0xff]  }
  0x14   :  { %1024 = vmatpush3.bf16.msra.mxu1 %v1108_v22  ;;  %522 = vmatprep.subr.bf16.mxu0 %v1109_v23  ;;  %v1152_v57 = vld [vmem:[%s1543_s1 + $0xf4] ss:$12 sps:$4 sm:$0xff]   ;;  %v1157_v62 = vld [vmem:[%s1543_s1 + $0xdc] ss:$12 sps:$4 sm:$0xff]   ;;  %v1164_v2 = vld [vmem:[%s1544_s0 + $0x4c] ss:$12 sps:$4 sm:$0xff]  }
  0x15   :  { %1025 = vmatprep.subr.bf16.mxu1 %v1111_v24  ;;  %637 = vmatprep.mubr.bf16.mxu1 %v1168_v1  ;;  %v1167_v58 = vld [vmem:[%s1543_s1 + $0x188] ss:$12 sps:$4 sm:$0xff]   ;;  %v103_v59 = vld [vmem:[%s1545_s2] sm:$0xff]  ;;  %v1159_v63 = vld [vmem:[%s1544_s0 + $0x30] ss:$12 sps:$4 sm:$0xff]  }
  0x16   :  { %v105_v61 = vld [vmem:[%s1545_s2 + $0x10] sm:$0xff]  ;;  %113 = vperm.xlu0 %1078, %v103_v59   ;;  %v104_v0 = vld [vmem:[%s1545_s2 + $0x8] sm:$0xff]  ;;  %v106_v3 = vld [vmem:[%s1545_s2 + $0x18] sm:$0xff] }
  0x17   :  { %523 = vmatpush1.bf16.msra.mxu0 %v1112_v25  ;;  %123 = vperm.xlu1 %1079, %v105_v61   ;;  %v1161_v4 = vld [vmem:[%s1543_s1 + $0xc4] ss:$12 sps:$4 sm:$0xff]   ;;  %v1163_v6 = vld [vmem:[%s1543_s1 + $0xc0] ss:$12 sps:$4 sm:$0xff]   ;;  %v1166_v8 = vld [vmem:[%s1544_s0 + $0x48] ss:$12 sps:$4 sm:$0xff]  }
  0x18   :  { %1026 = vmatpush3.bf16.msra.mxu1 %v1113_v26  ;;  %524 = vmatprep.subr.bf16.mxu0 %v1114_v27  ;;  %v107_v5 = vld [vmem:[%s1545_s2 + $0x20] sm:$0xff]  ;;  %v108_v7 = vld [vmem:[%s1545_s2 + $0x28] sm:$0xff]  ;;  %v109_v9 = vld [vmem:[%s1545_s2 + $0x30] sm:$0xff] }
  0x19   :  { %1027 = vmatprep.subr.bf16.mxu1 %v1117_v29  ;;  %v110_v11 = vld [vmem:[%s1545_s2 + $0x38] sm:$0xff] }
  0x1a   :  { %118 = vperm.xlu0 %1078, %v104_v0  }
  0x1b   :  { %981 = vmatmul.mubr.msk.bf16.gmra.mxu1 %vm499_vm0, %v1286_v28  ;;  %525 = vmatpush1.bf16.msra.mxu0 %v1118_v30 }
  0x1c   :  { %1028 = vmatpush3.bf16.msra.mxu1 %v1119_v31  ;;  %526 = vmatprep.subr.bf16.mxu0 %v1120_v32 }
  0x1d   :  { %1029 = vmatprep.subr.bf16.mxu1 %v1122_v33  ;;  %647 = vmatprep.mubr.bf16.mxu1 %v1168_v1  ;;  %v1160_v1 = vld [vmem:[%s1543_s1 + $0xd8] ss:$12 sps:$4 sm:$0xff]  }
  0x1e   :  { %128 = vperm.xlu1 %1079, %v106_v3   ;;  %133 = vperm.xlu0 %1078, %v107_v5  }
  0x1f   :  { %527 = vmatpush1.bf16.msra.mxu0 %v1123_v34 }
  0x20   :  { %1030 = vmatpush3.bf16.msra.mxu1 %v1124_v35  ;;  %528 = vmatprep.subr.bf16.mxu0 %v1125_v36 }
  0x21   :  { %1031 = vmatprep.subr.bf16.mxu1 %v1128_v38 }
  0x22   :  { %138 = vperm.xlu1 %1079, %v108_v7   ;;  %143 = vperm.xlu0 %1078, %v109_v9  }
  0x23   :  { %982 = vmatmul.mubr.msk.bf16.gmra.mxu1 %vm499_vm0, %v1318_v37  ;;  %529 = vmatpush2.bf16.msra.mxu0 %v1129_v39 }
  0x24   :  { %1032 = vmatpush3.bf16.msra.mxu1 %v1130_v40  ;;  %530 = vmatprep.subr.bf16.mxu0 %v1131_v41 }
  0x25   :  { %1033 = vmatprep.subr.bf16.mxu1 %v1133_v42  ;;  %690 = vmatprep.mubr.bf16.mxu1 %v1138_v45 }
  0x26   :  { %148 = vperm.xlu1 %1079, %v110_v11  }
  0x27   :  { %531 = vmatpush2.bf16.msra.mxu0 %v1134_v43 }
  0x28   :  { %1034 = vmatpush3.bf16.msra.mxu1 %v1135_v44  ;;  %532 = vmatprep.subr.bf16.mxu0 %v1139_v46 }
  0x29   :  { %1065 = vmatprep.subr.bf16.mxu1 %v1151_v51 }
  0x2b   :  { %691 = vmatmul.mubr.bf16.vlgmr.msra.gmra.mxu1 %v1136_v47  ;;  %533 = vmatpush2.bf16.msra.mxu0 %v1141_v48 }
  0x2c   :  { %698 = vmatprep.mubr.bf16.mxu1 %v1145_v49  ;;  %534 = vmatprep.subr.bf16.mxu0 %v1142_v50 }
  0x2d   :  { %1066 = vmatpush3.bf16.msra.mxu1 %v1151_v51 }
  0x2e   :  { %1067 = vmatprep.subr.bf16.mxu1 %v1167_v58 }
  0x2f   :  { %535 = vmatpush2.bf16.msra.mxu0 %v1144_v52 }
  0x30   :  { %536 = vmatprep.subr.bf16.mxu0 %v1147_v53 }
  0x31   :  { %1068 = vmatpush3.bf16.msra.mxu1 %v1167_v58 }
  0x33   :  { %699 = vmatmul.mubr.bf16.gmra.mxu1 %v1149_v54  ;;  %537 = vmatpush2.bf16.msra.mxu0 %v1150_v55 }
  0x34   :  { %706 = vmatprep.mubr.bf16.mxu1 %v1155_v56  ;;  %538 = vmatprep.subr.bf16.mxu0 %v1152_v57 }
  0x37   :  { %539 = vmatpush2.bf16.msra.mxu0 %v1154_v60 }
  0x38   :  { %540 = vmatprep.subr.bf16.mxu0 %v1157_v62 }
  0x3b   :  { %707 = vmatmul.mubr.bf16.gmra.mxu1 %v1159_v63  ;;  %541 = vmatpush2.bf16.msra.mxu0 %v1160_v1 }
  0x3c   :  { %714 = vmatprep.mubr.bf16.mxu1 %v1164_v2  ;;  %542 = vmatprep.subr.bf16.mxu0 %v1161_v4 }
  0x3f   :  { %543 = vmatpush2.bf16.msra.mxu0 %v1163_v6 }
  0x42   :  { %545 = vmatmul.mubr.bf16.vlgmr.msra.gmra.mxu0 %v1136_v47 }
  0x43   :  { %715 = vmatmul.mubr.bf16.gmra.mxu1 %v1166_v8  ;;  %554 = vmatprep.mubr.bf16.mxu0 %v1145_v49 }
  0x44   :  { %1069 = vmatprep.mubr.msk.bf16.mxu1 %vm499_vm0, %v1222_v10 }
  0x4a   :  { %555 = vmatmul.mubr.bf16.gmra.mxu0 %v1149_v54 }
  0x4b   :  { %1070 = vmatmul.mubr.msk.bf16.vlgmr.msra.gmra.mxu1 %vm499_vm0, %v1254_v19  ;;  %564 = vmatprep.mubr.bf16.mxu0 %v1155_v56 }
  0x4c   :  { %1073 = vmatprep.mubr.msk.bf16.mxu1 %vm499_vm0, %v1286_v28 }
  0x52   :  { %565 = vmatmul.mubr.bf16.gmra.mxu0 %v1159_v63 }
  0x53   :  { %1074 = vmatmul.mubr.msk.bf16.gmra.mxu1 %vm499_vm0, %v1318_v37  ;;  %574 = vmatprep.mubr.bf16.mxu0 %v1164_v2 }
  0x5a   :  { %575 = vmatmul.mubr.bf16.gmra.mxu0 %v1166_v8 }
  0x91   :  { %v114_v38 = vpop.permute.xlu0 %113 }
  0x92   :  { %v124_v46 = vpop.permute.xlu1 %123 }
  0x95   :  { %v119_v45 = vpop.permute.xlu0 %118 }
  0x99   :  { %v129_v2 = vpop.permute.xlu1 %128  ;;  %v134_v4 = vpop.permute.xlu0 %133 }
  0xcb   :  { %v619_v12 = vpop.f32.mrf.mxu1 }
  0xcd   :  { %v621_v13 = vpop.f32.mrf.mxu1 }
  0xcf   :  { %v623_v14 = vpop.f32.mrf.mxu1 }
  0xd1   :  { %v625_v15 = vpop.f32.mrf.mxu1 }
  0xd3   :  { %v1441_v10 = vpop.f32.mrf.mxu1 }
  0xd5   :  { %v1443_v16 = vpop.f32.mrf.mxu1 }
  0xd7   :  { %v1445_v17 = vpop.f32.mrf.mxu1 }
  0xd9   :  { %v1447_v18 = vpop.f32.mrf.mxu1 }
  0xdb   :  { %v1449_v19 = vpop.f32.mrf.mxu1 }
  0xdd   :  { %v1451_v20 = vpop.f32.mrf.mxu1 }
  0xdf   :  { %v1453_v21 = vpop.f32.mrf.mxu1 }
  0xe1   :  { %v1455_v22 = vpop.f32.mrf.mxu1 }
  0xe3   :  { %v1457_v23 = vpop.f32.mrf.mxu1 }
  0xe5   :  { %v1459_v24 = vpop.f32.mrf.mxu1 }
  0xe7   :  { %v1461_v25 = vpop.f32.mrf.mxu1 }
  0xe9   :  { %v1463_v26 = vpop.f32.mrf.mxu1 }
  0xeb   :  { %v1035_v27 = vpop.f32.mrf.mxu1 }
  0xed   :  { %v1036_v28 = vpop.f32.mrf.mxu1 }
  0xee   :  { %v1037_v52 = vadd.f32 %v1036_v28, %v1035_v27 }
  0xef   :  { %v1038_v29 = vpop.f32.mrf.mxu1 }
  0xf0   :  { %v693_v7 = vadd.f32 %v1037_v52, %v114_v38 }
  0xf1   :  { %v1039_v30 = vpop.f32.mrf.mxu1 }
  0xf2   :  { %v1040_v55 = vadd.f32 %v1039_v30, %v1038_v29 }
  0xf3   :  { %v1041_v31 = vpop.f32.mrf.mxu1 }
  0xf5   :  { %v1042_v32 = vpop.f32.mrf.mxu1 }
  0xf6   :  { %v1043_v49 = vadd.f32 %v1042_v32, %v1041_v31 }
  0xf7   :  { %v1044_v33 = vpop.f32.mrf.mxu1 }
  0xf8   :  { %v701_v0 = vadd.f32 %v1043_v49, %v124_v46 }
  0xf9   :  { %v1045_v34 = vpop.f32.mrf.mxu1 }
  0xfa   :  { %v1046_v62 = vadd.f32 %v1045_v34, %v1044_v33 }
  0xfb   :  { %v1047_v35 = vpop.f32.mrf.mxu1 }
  0xfc   :  { %v704_v33 = vadd.f32 %v1046_v62, %v129_v2 }
  0xfd   :  { %v1048_v36 = vpop.f32.mrf.mxu1 }
  0xfe   :  { %v1049_v30 = vadd.f32 %v1048_v36, %v1047_v35 }
  0xff   :  { %v1050_v37 = vpop.f32.mrf.mxu1 }
 0x101   :  { %v1051_v39 = vpop.f32.mrf.mxu1 }
 0x102   :  { %v546_v40 = vpop.f32.mrf.mxu0 }
 0x103   :  { %v1053_v41 = vpop.f32.mrf.mxu1  ;;  %v547_v42 = vadd.f32 %v546_v40, %v114_v38  ;;  %v139_v40 = vpop.permute.xlu1 %138 }
 0x104   :  { %v548_v43 = vpop.f32.mrf.mxu0 }
 0x105   :  { %v1054_v44 = vpop.f32.mrf.mxu1  ;;  %v620_v47 = vadd.f32 %v619_v12, %v547_v42  ;;  %v549_v48 = vadd.f32 %v548_v43, %v114_v38  ;;  %v1052_v38 = vadd.f32 %v1051_v39, %v1050_v37 }
 0x106   :  { %v550_v50 = vpop.f32.mrf.mxu0  ;;  %v1055_v31 = vadd.f32 %v1054_v44, %v1053_v41 }
 0x107   :  { %v1056_v51 = vpop.f32.mrf.mxu1  ;;  %v622_v53 = vadd.f32 %v621_v13, %v549_v48  ;;  %v551_v54 = vadd.f32 %v550_v50, %v119_v45  ;;  %v788_v58 = vmax.f32 %v620_v47, 0.0  ;;  %v696_v13 = vadd.f32 %v1040_v55, %v119_v45  ;;  %v1470_v47 = vpop.permute.xlu0 %143 }
 0x108   :  { %v552_v56 = vpop.f32.mrf.mxu0 }
 0x109   :  { %v1057_v57 = vpop.f32.mrf.mxu1  ;;  %v789_v59 = vmax.f32 %v622_v53, 0.0  ;;  %v624_v60 = vadd.f32 %v623_v14, %v551_v54  ;;  %v553_v61 = vadd.f32 %v552_v56, %v119_v45 }
 0x10a   :  { %v556_v63 = vpop.f32.mrf.mxu0  ;;  %v1058_v41 = vadd.f32 %v1057_v57, %v1056_v51 }
 0x10b   :  { %v1071_v1 = vpop.f32.mrf.mxu1  ;;  %v1003_v3 = vpack.c.bf16 %v789_v59, %v788_v58  ;;  %v626_v5 = vadd.f32 %v625_v15, %v553_v61  ;;  %v557_v6 = vadd.f32 %v556_v63, %v124_v46  ;;  %v791_v8 = vmax.f32 %v624_v60, 0.0  ;;  %v1485_v58 = vpop.permute.xlu1 %148 }
 0x10c   :  { %v766_v9 = vadd.f32 %v1071_v1, %v701_v0  ;;  %v558_v11 = vpop.f32.mrf.mxu0 }
 0x10d   :  { %v757_v12 = vpop.f32.mrf.mxu1  ;;  %892 = vst [vmem:[%s1546_s3] sm:$0xff] %v1003_v3  ;;  %v792_v14 = vmax.f32 %v626_v5, 0.0  ;;  %v630_v27 = vadd.f32 %v1441_v10, %v557_v6  ;;  %v559_v28 = vadd.f32 %v558_v11, %v124_v46  ;;  %v720_v6 = vadd.f32 %v1058_v41, %v1485_v58 }
 0x10e   :  { %v758_v29 = vadd.f32 %v757_v12, %v693_v7  ;;  %v796_v15 = vmax.f32 %v766_v9, 0.0  ;;  %v560_v32 = vpop.f32.mrf.mxu0  ;;  %v712_v12 = vadd.f32 %v1052_v38, %v139_v40 }
 0x10f   :  { %v1072_v34 = vpop.f32.mrf.mxu1  ;;  %v1005_v42 = vpack.c.bf16 %v792_v14, %v791_v8  ;;  %v632_v43 = vadd.f32 %v1443_v16, %v559_v28  ;;  %v794_v48 = vmax.f32 %v630_v27, 0.0  ;;  %v561_v50 = vadd.f32 %v560_v32, %v129_v2 }
 0x110   :  { %v790_v45 = vmax.f32 %v758_v29, 0.0  ;;  %v1008_v49 = vpack.c.bf16 %v796_v15, %v796_v15  ;;  %v769_v10 = vadd.f32 %v1072_v34, %v704_v33  ;;  %v562_v46 = vpop.f32.mrf.mxu0  ;;  %v717_v16 = vadd.f32 %v1055_v31, %v1470_v47 }
 0x111   :  { %v760_v52 = vpop.f32.mrf.mxu1  ;;  %895 = vst [vmem:[%s1546_s3 + $0xc] sm:$0xff] %v1005_v42  ;;  %v795_v35 = vmax.f32 %v632_v43, 0.0  ;;  %v563_v37 = vadd.f32 %v562_v46, %v129_v2  ;;  %v634_v44 = vadd.f32 %v1445_v17, %v561_v50  ;;  %v709_v17 = vadd.f32 %v1049_v30, %v134_v4 }
 0x112   :  { %v1004_v36 = vpack.c.bf16 %v790_v45, %v790_v45  ;;  %v761_v39 = vadd.f32 %v760_v52, %v696_v13  ;;  %898 = vst.msk [vmem:[%s1546_s3 + $0x20] sm:$0xf] %vm893_vm1, %v1008_v49  ;;  %v799_v53 = vmax.f32 %v769_v10, 0.0  ;;  %v566_v54 = vpop.f32.mrf.mxu0 }
 0x113   :  { %v1075_v55 = vpop.f32.mrf.mxu1  ;;  %v1007_v56 = vpack.c.bf16 %v795_v35, %v794_v48  ;;  %v636_v51 = vadd.f32 %v1447_v18, %v563_v37  ;;  %v567_v59 = vadd.f32 %v566_v54, %v134_v4  ;;  %v797_v60 = vmax.f32 %v634_v44, 0.0 }
 0x114   :  { %894 = vst.msk [vmem:[%s1546_s3 + $0x8] sm:$0xf] %vm893_vm1, %v1004_v36  ;;  %v793_v57 = vmax.f32 %v761_v39, 0.0  ;;  %v1010_v61 = vpack.c.bf16 %v799_v53, %v799_v53  ;;  %v782_v62 = vadd.f32 %v1075_v55, %v717_v16  ;;  %v568_v63 = vpop.f32.mrf.mxu0 }
 0x115   :  { %v773_v0 = vpop.f32.mrf.mxu1  ;;  %897 = vst [vmem:[%s1546_s3 + $0x18] sm:$0xff] %v1007_v56  ;;  %v798_v1 = vmax.f32 %v636_v51, 0.0  ;;  %v640_v3 = vadd.f32 %v1449_v19, %v567_v59  ;;  %v569_v5 = vadd.f32 %v568_v63, %v134_v4 }
 0x116   :  { %v1006_v2 = vpack.c.bf16 %v793_v57, %v793_v57  ;;  %900 = vst.msk [vmem:[%s1546_s3 + $0x2c] sm:$0xf] %vm893_vm1, %v1010_v61  ;;  %v808_v18 = vmax.f32 %v782_v62, 0.0  ;;  %v774_v7 = vadd.f32 %v773_v0, %v709_v17  ;;  %v570_v8 = vpop.f32.mrf.mxu0 }
 0x117   :  { %v1076_v9 = vpop.f32.mrf.mxu1  ;;  %v1009_v11 = vpack.c.bf16 %v798_v1, %v797_v60  ;;  %v642_v19 = vadd.f32 %v1451_v20, %v569_v5  ;;  %v571_v4 = vadd.f32 %v570_v8, %v139_v40  ;;  %v800_v13 = vmax.f32 %v640_v3, 0.0 }
 0x118   :  { %896 = vst.msk [vmem:[%s1546_s3 + $0x14] sm:$0xf] %vm893_vm1, %v1006_v2  ;;  %v1016_v14 = vpack.c.bf16 %v808_v18, %v808_v18  ;;  %v802_v27 = vmax.f32 %v774_v7, 0.0  ;;  %v785_v28 = vadd.f32 %v1076_v9, %v720_v6  ;;  %v572_v29 = vpop.f32.mrf.mxu0 }
 0x119   :  { %v776_v30 = vpop.f32.mrf.mxu1  ;;  %899 = vst [vmem:[%s1546_s3 + $0x24] sm:$0xff] %v1009_v11  ;;  %v801_v31 = vmax.f32 %v642_v19, 0.0  ;;  %v644_v15 = vadd.f32 %v1453_v21, %v571_v4  ;;  %v573_v32 = vadd.f32 %v572_v29, %v139_v40 }
 0x11a   :  { %v777_v33 = vadd.f32 %v776_v30, %v712_v12  ;;  %906 = vst.msk [vmem:[%s1546_s3 + $0x50] sm:$0xf] %vm893_vm1, %v1016_v14  ;;  %v1012_v20 = vpack.c.bf16 %v802_v27, %v802_v27  ;;  %v811_v34 = vmax.f32 %v785_v28, 0.0  ;;  %v576_v38 = vpop.f32.mrf.mxu0 }
 0x11b   :  { %v1011_v42 = vpack.c.bf16 %v801_v31, %v800_v13  ;;  %v646_v43 = vadd.f32 %v1455_v22, %v573_v32  ;;  %v577_v40 = vadd.f32 %v576_v38, %v1470_v47  ;;  %v803_v49 = vmax.f32 %v644_v15, 0.0 }
 0x11c   :  { %v805_v45 = vmax.f32 %v777_v33, 0.0  ;;  %902 = vst.msk [vmem:[%s1546_s3 + $0x38] sm:$0xf] %vm893_vm1, %v1012_v20  ;;  %v1018_v21 = vpack.c.bf16 %v811_v34, %v811_v34  ;;  %v578_v48 = vpop.f32.mrf.mxu0 }
 0x11d   :  { %901 = vst [vmem:[%s1546_s3 + $0x30] sm:$0xff] %v1011_v42  ;;  %v804_v50 = vmax.f32 %v646_v43, 0.0  ;;  %v579_v46 = vadd.f32 %v578_v48, %v1470_v47  ;;  %v650_v22 = vadd.f32 %v1457_v23, %v577_v40 }
 0x11e   :  { %v1014_v10 = vpack.c.bf16 %v805_v45, %v805_v45  ;;  %908 = vst.msk [vmem:[%s1546_s3 + $0x5c] sm:$0xf] %vm893_vm1, %v1018_v21  ;;  %v580_v52 = vpop.f32.mrf.mxu0 }
 0x11f   :  { %v1013_v35 = vpack.c.bf16 %v804_v50, %v803_v49  ;;  %v652_v36 = vadd.f32 %v1459_v24, %v579_v46  ;;  %v581_v37 = vadd.f32 %v580_v52, %v1485_v58  ;;  %v806_v47 = vmax.f32 %v650_v22, 0.0 }
 0x120   :  { %904 = vst.msk [vmem:[%s1546_s3 + $0x44] sm:$0xf] %vm893_vm1, %v1014_v10  ;;  %v582_v39 = vpop.f32.mrf.mxu0 }
 0x121   :  { %903 = vst [vmem:[%s1546_s3 + $0x3c] sm:$0xff] %v1013_v35  ;;  %v807_v41 = vmax.f32 %v652_v36, 0.0  ;;  %v654_v23 = vadd.f32 %v1461_v25, %v581_v37  ;;  %v583_v16 = vadd.f32 %v582_v39, %v1485_v58 }
 0x123   :  { %v1015_v44 = vpack.c.bf16 %v807_v41, %v806_v47  ;;  %v656_v53 = vadd.f32 %v1463_v26, %v583_v16  ;;  %v809_v24 = vmax.f32 %v654_v23, 0.0 }
 0x125   :  { %905 = vst [vmem:[%s1546_s3 + $0x48] sm:$0xff] %v1015_v44  ;;  %v810_v54 = vmax.f32 %v656_v53, 0.0 }
 0x127   :  { %v1017_v55 = vpack.c.bf16 %v810_v54, %v809_v24 }
 0x129   :  { %907 = vst [vmem:[%s1546_s3 + $0x54] sm:$0xff] %v1017_v55 }

// kernel: critic_forward.11
= control target key start
LH: loop header
LB: loop body
LE: loop exit
PB: predicated region body
PF: predicated region fallthrough
CT: control target
= control target key end

     0   :  { %s817_s0 = inlined_call_operand.vmem [shape: f32[1,128], index: 0, kind: input, shape index: {}]   ;;  %s818_s1 = inlined_call_operand.vmem [shape: f32[1,16], index: 1, kind: input, shape index: {}]   ;;  %s819_s2 = inlined_call_operand.vmem [shape: f32[1,16], index: 2, kind: input, shape index: {}]   ;;  %s820_s3 = inlined_call_operand.vmem [shape: f32[128,64], index: 3, kind: input, shape index: {}]   ;;  %s821_s4 = inlined_call_operand.vmem [shape: f32[16,64], index: 4, kind: input, shape index: {}]   ;;  %s822_s5 = inlined_call_operand.vmem [shape: f32[1,64], index: 5, kind: input, shape index: {}]   ;;  %s823_s6 = inlined_call_operand.vmem [shape: f32[16,4], index: 6, kind: input, shape index: {}]   ;;  %s824_s7 = inlined_call_operand.vmem [shape: f32[1,4], index: 7, kind: input, shape index: {}]   ;;  %s825_s8 = inlined_call_operand.vmem [shape: f32[4,1], index: 8, kind: input, shape index: {}]   ;;  %s826_s9 = inlined_call_operand.<no memory space> [shape: f32[1,1], index: 9, kind: input, shape index: {}]   ;;  %s827_s10 = inlined_call_operand.hbm [shape: f32[1,1], index: 10, kind: output, shape index: {0}]   ;;  %s828_s11 = inlined_call_operand.hbm [shape: f32[1,16], index: 11, kind: output, shape index: {1}]   ;;  %s829_s12 = inlined_call_operand.hbm [shape: f32[1,16], index: 12, kind: output, shape index: {2}]  }
   0x1   :  { %v18_v0 = vstv %s826_s9 }
   0x2   :  { %19 = vst [vmem:[#allocation2] sm:$0x1] %v18_v0 }
   0x3   :  { %20 = vsyncpa [#allocation4], 0  ;;  %v60_v1 = vld [vmem:[%s820_s3 + $0x78] sm:$0xff]  ;;  %v621_v2 = vmov 0.0   ;;  %v59_v3 = vld [vmem:[%s820_s3 + $0x70] sm:$0xff]  ;;  %vm622_vm0 = vmmov 0  }
   0x4   :  { %490 = vmatprep.subr.mxu1 %v621_v2  ;;  %483 = vmatprep.subr.mxu0 %v621_v2  ;;  %v58_v4 = vld [vmem:[%s820_s3 + $0x68] sm:$0xff]  ;;  %v57_v6 = vld [vmem:[%s820_s3 + $0x60] sm:$0xff]  ;;  %vm64_vm1 = vcmask 130048  }
   0x5   :  { %491 = vmatpush3.msra.mxu1 %v60_v1  ;;  %487 = vmatprep.mubr.msk.f32.mxu0 %vm622_vm0, %v621_v2  ;;  %v62_v5 = vld [vmem:[%s821_s4 + $0x8] sm:$0xff]  ;;  %v61_v7 = vld [vmem:[%s821_s4] sm:$0xff] }
   0x6   :  { %492 = vmatprep.subr.mxu1 %v621_v2  ;;  %522 = vmatprep.mubr.msk.f32.mxu1 %vm622_vm0, %v621_v2  ;;  %v43_v8 = vld [vmem:[%s818_s1] sm:$0x1] }
   0x7   :  { %493 = vmatpush3.msra.mxu1 %v59_v3  ;;  %484 = vmatpush3.msra.mxu0 %v62_v5 }
   0x8   :  { %494 = vmatprep.subr.mxu1 %v621_v2  ;;  %485 = vmatprep.subr.mxu0 %v621_v2 }
   0x9   :  { %495 = vmatpush3.msra.mxu1 %v58_v4 }
   0xa   :  { %21 = vsyncpa [#allocation6], 0  ;;  %496 = vmatprep.subr.mxu1 %v621_v2  ;;  %v56_v9 = vld [vmem:[%s820_s3 + $0x58] sm:$0xff]  ;;  %486 = vmatpush3.msra.mxu0 %v61_v7  ;;  %v55_v10 = vld [vmem:[%s820_s3 + $0x50] sm:$0xff]  ;;  %s624_s24 = smov 16   ;;  %s625_s9 = smov 32  }
   0xb   :  { %497 = vmatpush3.msra.mxu1 %v57_v6  ;;  %488 = vmatmul.mubr.msk.f32.vlgmr.msra.gmra.mxu0 %vm64_vm1, %v43_v8  ;;  %v54_v11 = vld [vmem:[%s820_s3 + $0x48] sm:$0xff]  ;;  %v53_v12 = vld [vmem:[%s820_s3 + $0x40] sm:$0xff]  ;;  %v52_v13 = vld [vmem:[%s820_s3 + $0x38] sm:$0xff]  ;;  %s626_s27 = smov 112   ;;  %vm245_vm2 = vcmask 122880   ;;  %s627_s28 = smov 80  }
   0xc   :  { %498 = vmatprep.subr.mxu1 %v621_v2  ;;  %525 = vmatprep.subr.mxu0 %v621_v2  ;;  %v51_v14 = vld [vmem:[%s820_s3 + $0x30] sm:$0xff]  ;;  %v50_v15 = vld [vmem:[%s820_s3 + $0x28] sm:$0xff]  ;;  %v49_v16 = vld [vmem:[%s820_s3 + $0x20] sm:$0xff]  ;;  %vm334_vm3 = vcmask 1043456   ;;  %vm330_vm4 = vcmask 31744   ;;  %s628_s14 = smov [#allocation5]  }
   0xd   :  { %499 = vmatpush3.msra.mxu1 %v56_v9  ;;  %529 = vmatprep.mubr.msk.f32.mxu0 %vm622_vm0, %v621_v2  ;;  %v48_v17 = vld [vmem:[%s820_s3 + $0x18] sm:$0xff]  ;;  %v47_v18 = vld [vmem:[%s820_s3 + $0x10] sm:$0xff]  ;;  %v46_v19 = vld [vmem:[%s820_s3 + $0x8] sm:$0xff]  ;;  %s427_s15 = sshll.u32 %s628_s14, 4  ;;  %s428_s15 = int_to_ptr.vmem [resolvable:$true] %s427_s15 }
   0xe   :  { %500 = vmatprep.subr.mxu1 %v621_v2  ;;  %v45_v20 = vld [vmem:[%s820_s3] sm:$0xff]  ;;  %s623_s3 = smov 96   ;;  %v253_v41 = vld [vmem:[%s823_s6 + $0x8] sm:$0xff]  ;;  %s557_s16 = scalar_lea.vmem %s428_s15, 16 }
   0xf   :  { %501 = vmatpush3.msra.mxu1 %v55_v10  ;;  %v42_v21 = vld [vmem:[%s817_s0] sm:$0x1]  ;;  %526 = vmatpush3.msra.mxu0 %v253_v41  ;;  %p558_p0 = scmp.ne.s32.totalorder %s428_s15, %s557_s16  ;;  %s561_s17 = scalar_lea.vmem %s428_s15, 32 }
  0x10   :  { %502 = vmatprep.subr.mxu1 %v621_v2  ;;  %v63_v24 = vld [vmem:[%s822_s5] sm:$0x1]  ;;  %527 = vmatprep.subr.mxu0 %v621_v2  ;;  %p562_p1 = scmp.lt.s32.totalorder %s428_s15, %s428_s15  ;;  %p563_p2 = scmp.lt.s32.totalorder %s561_s17, %s557_s16 }
  0x11   :  { %503 = vmatpush3.msra.mxu1 %v54_v11  ;;  %v454_v30 = vld [vmem:[%s819_s2] ss:$0 sm:$0xff] }
  0x12   :  { %504 = vmatprep.subr.mxu1 %v621_v2  ;;  %v252_v42 = vld [vmem:[%s823_s6] sm:$0xff]  ;;  %p564_p3 = por %p563_p2, %p562_p1 }
  0x13   :  { %505 = vmatpush3.msra.mxu1 %v53_v12  ;;  %528 = vmatpush3.msra.mxu0 %v252_v42  ;;  %v328_v48 = vld [vmem:[%s825_s8] sm:$0xf] }
  0x14   :  { %506 = vmatprep.subr.mxu1 %v621_v2  ;;  %532 = vmatprep.subr.mxu0 %v621_v2  ;;  %v254_v49 = vld [vmem:[%s824_s7] sm:$0x1]  ;;  %p565_p4 = pnand %p564_p3, %p558_p0 }
  0x15   :  { %507 = vmatpush3.msra.mxu1 %v52_v13 }
  0x16   :  { %508 = vmatprep.subr.mxu1 %v621_v2 }
  0x17   :  { %509 = vmatpush3.msra.mxu1 %v51_v14 }
  0x18   :  { %510 = vmatprep.subr.mxu1 %v621_v2 }
  0x19   :  { %511 = vmatpush3.msra.mxu1 %v50_v15 }
  0x1a   :  { %512 = vmatprep.subr.mxu1 %v621_v2 }
  0x1b   :  { %513 = vmatpush3.msra.mxu1 %v49_v16 }
  0x1c   :  { %514 = vmatprep.subr.mxu1 %v621_v2 }
  0x1d   :  { %515 = vmatpush3.msra.mxu1 %v48_v17 }
  0x1e   :  { %516 = vmatprep.subr.mxu1 %v621_v2 }
  0x1f   :  { %517 = vmatpush3.msra.mxu1 %v47_v18 }
  0x20   :  { %518 = vmatprep.subr.mxu1 %v621_v2 }
  0x21   :  { %519 = vmatpush3.msra.mxu1 %v46_v19 }
  0x22   :  { %520 = vmatprep.subr.mxu1 %v621_v2 }
  0x23   :  { %521 = vmatpush3.msra.mxu1 %v45_v20 }
  0x24   :  { %523 = vmatmul.mubr.f32.vlgmr.msra.gmra.mxu1 %v42_v21 }
  0xcb   :  { %v134_v22 = vpop.f32.mrf.mxu0 }
  0xcd   :  { %v489_v23 = vpop.f32.mrf.mxu0 }
  0xe4   :  { %v204_v25 = vpop.f32.mrf.mxu1 }
  0xe5   :  { %v205_v26 = vadd.f32 %v204_v25, %v134_v22 }
  0xe6   :  { %v524_v27 = vpop.f32.mrf.mxu1 }
  0xe7   :  { %v208_v28 = vadd.f32 %v205_v26, %v63_v24 }
  0xe9   :  { %547 = vtanh.f32 %v208_v28  ;;  %v453_v31 = vmul.f32 -1.442695, %v208_v28 }
  0xeb   :  { %549 = vpow2.f32 %v453_v31 }
  0xf6   :  { %v548_v29 = vpop.eup %547 }
  0xf7   :  { %226 = vrot.lane.b32.xlu0 %v548_v29, %s623_s3 }
  0xf8   :  { %v550_v32 = vpop.eup %549 }
  0xf9   :  { %v212_v33 = vadd.f32 1.0, %v550_v32 }
  0xfb   :  { %221 = vrot.lane.b32.xlu0 %v454_v30, %s624_s24  ;;  %551 = vrcp.f32 %v212_v33 }
 0x108   :  { %v552_v34 = vpop.eup %551 }
 0x169   :  { %v227_v35 = vpop.permute.xlu0 %226 }
 0x16a   :  { %v229_v36 = vmul.f32 %v552_v34, %v227_v35 }
 0x16c   :  { %231 = vrot.lane.b32.xlu1 %v229_v36, %s624_s24 }
 0x16d   :  { %v222_v37 = vpop.permute.xlu0 %221 }
 0x16e   :  { %v224_v38 = vmul.f32 %v552_v34, %v222_v37 }
 0x1de   :  { %v232_v39 = vpop.permute.xlu1 %231 }
 0x1df   :  { %v234_v40 = vadd.f32 %v232_v39, %v224_v38 }
 0x1e1   :  { %553 = vtanh.f32 %v234_v40 }
 0x1ee   :  { %v554_v43 = vpop.eup %553 }
 0x1ef   :  { %237 = vrot.lane.b32.xlu1 %v554_v43, %s625_s9 }
 0x1f3   :  { %248 = vrot.lane.b32.xlu1 %v234_v40, %s626_s27 }
 0x261   :  { %v238_v44 = vpop.permute.xlu1 %237 }
 0x262   :  { %v240_v45 = vmul.f32 %v552_v34, %v238_v44 }
 0x264   :  { %242 = vrot.lane.b32.xlu0 %v240_v45, %s627_s28 }
 0x265   :  { %v249_v46 = vpop.permute.xlu1 %248 }
 0x266   :  { %251 = vst.msk [vmem:[#allocation7] sm:$0x1] %vm245_vm2, %v249_v46 }
 0x2d6   :  { %v243_v47 = vpop.permute.xlu0 %242 }
 0x2d7   :  { %246 = vst.msk [vmem:[#allocation5] sm:$0x1] %vm245_vm2, %v243_v47  ;;  %530 = vmatmul.mubr.msk.f32.vlgmr.msra.gmra.mxu0 %vm64_vm1, %v243_v47 }
 0x2d8   :  { %534 = vmatprep.mubr.msk.f32.mxu0 %vm622_vm0, %v621_v2  ;;  %533 = vmatpush3.msk.msra.mxu0 %vm334_vm3, %v328_v48 }
 0x397   :  { %v323_v50 = vpop.f32.mrf.mxu0 }
 0x398   :  { %v324_v51 = vadd.f32 %v323_v50, %v254_v49 }
 0x399   :  { %v531_v52 = vpop.f32.mrf.mxu0 }
 0x39a   :  { %v327_v53 = vmax.f32 %v324_v51, 0.0 }
 0x39c   :  { %535 = vmatmul.mubr.msk.f32.vlgmr.msra.gmra.mxu0 %vm330_vm4, %v327_v53 }
 0x39d   :  { %568 = shalt.err (!%p565_p4)
}
 0x39e   :  { %430 = dma.vmem_to_hbm [thread:$0]  %s428_s15, 16, %s828_s11, [#allocation6]  }
 0x39f   :  { %s629_s7 = smov [#allocation7]  }
 0x3a0   :  { %s437_s19 = sshll.u32 %s629_s7, 4  ;;  %s438_s19 = int_to_ptr.vmem [resolvable:$true] %s437_s19 }
 0x3a1   :  { %s577_s4 = scalar_lea.vmem %s438_s19, 16  ;;  %s581_s20 = scalar_lea.vmem %s438_s19, 32 }
 0x3a2   :  { %p578_p5 = scmp.ne.s32.totalorder %s438_s19, %s577_s4  ;;  %p582_p6 = scmp.lt.s32.totalorder %s438_s19, %s438_s19 }
 0x3a3   :  { %p583_p7 = scmp.lt.s32.totalorder %s581_s20, %s577_s4 }
 0x3a5   :  { %p584_p8 = por %p583_p7, %p582_p6 }
 0x3a7   :  { %p585_p9 = pnand %p584_p8, %p578_p5 }
 0x3a9   :  { %588 = shalt.err (!%p585_p9)
}
 0x3aa   :  { %440 = dma.vmem_to_hbm [thread:$0]  %s438_s19, 16, %s829_s12, [#allocation6]   ;;  %v329_v54 = vld [vmem:[#allocation2] sm:$0x1]  ;;  %vm409_vm5 = vcmask 0  }
 0x3ab   :  { %s630_s11 = smov [#allocation3]  }
 0x3ac   :  { %s417_s22 = sshll.u32 %s630_s11, 4  ;;  %s418_s22 = int_to_ptr.vmem [resolvable:$true] %s417_s22 }
 0x3ad   :  { %s597_s3 = scalar_lea.vmem %s418_s22, 16  ;;  %s601_s23 = scalar_lea.vmem %s418_s22, 32 }
 0x3ae   :  { %p598_p10 = scmp.ne.s32.totalorder %s418_s22, %s597_s3  ;;  %p602_p11 = scmp.lt.s32.totalorder %s418_s22, %s418_s22 }
 0x3af   :  { %p603_p12 = scmp.lt.s32.totalorder %s601_s23, %s597_s3 }
 0x3b1   :  { %p604_p13 = por %p603_p12, %p602_p11 }
 0x3b3   :  { %p605_p0 = pnand %p604_p13, %p598_p10 }
 0x45c   :  { %v404_v55 = vpop.f32.mrf.mxu0 }
 0x45d   :  { %v405_v56 = vadd.f32 %v404_v55, %v329_v54 }
 0x45e   :  { %v536_v57 = vpop.f32.mrf.mxu0 }
 0x45f   :  { %555 = vtanh.f32 %v405_v56 }
 0x46c   :  { %v556_v58 = vpop.eup %555 }
 0x46d   :  { %410 = vst.msk [vmem:[#allocation3] sm:$0x1] %vm409_vm5, %v556_v58 }
 0x46e   :  { %608 = shalt.err (!%p605_p0)
}
 0x46f   :  { %420 = dma.vmem_to_hbm [thread:$0]  %s418_s22, 16, %s827_s10, [#allocation4]  }
 0x470   :  { %617 = dma.done.wait [#allocation4], 16  }
 0x471   :  { %618 = vsyncadd [#allocation4], 4294967280 }
 0x472   :  { %619 = dma.done.wait [#allocation6], 32  }
 0x473   :  { %620 = vsyncadd [#allocation6], 4294967264 }
 0x474   :  { %450 = vsyncpa [#allocation4], 1 }
 0x475   :  { %451 = vsyncpa [#allocation6], 1 }

// kernel: critic_forward.10
= control target key start
LH: loop header
LB: loop body
LE: loop exit
PB: predicated region body
PF: predicated region fallthrough
CT: control target
= control target key end

     0   :  { %s10362_s0 = inlined_call_operand.vmem [shape: bf16[4,5184], index: 0, kind: input, shape index: {}]   ;;  %s10363_s1 = inlined_call_operand.vmem [shape: f32[4,9], index: 1, kind: input, shape index: {}]   ;;  %s10364_s2 = inlined_call_operand.vmem [shape: f32[4,16], index: 2, kind: input, shape index: {}]   ;;  %s10365_s3 = inlined_call_operand.vmem [shape: f32[4,16], index: 3, kind: input, shape index: {}]   ;;  %s10366_s4 = inlined_call_operand.vmem [shape: f32[4,16], index: 4, kind: input, shape index: {}]   ;;  %s10367_s5 = inlined_call_operand.vmem [shape: f32[4,16], index: 5, kind: input, shape index: {}]   ;;  %s10368_s6 = inlined_call_operand.vmem [shape: bf16[5184,256], index: 6, kind: input, shape index: {}]   ;;  %s10369_s7 = inlined_call_operand.vmem [shape: f32[1,256], index: 7, kind: input, shape index: {}]   ;;  %s10370_s8 = inlined_call_operand.vmem [shape: f32[256,64], index: 8, kind: input, shape index: {}]   ;;  %s10371_s9 = inlined_call_operand.vmem [shape: f32[16,64], index: 9, kind: input, shape index: {}]   ;;  %s10372_s10 = inlined_call_operand.vmem [shape: f32[1,64], index: 10, kind: input, shape index: {}]   ;;  %s10373_s11 = inlined_call_operand.vmem [shape: f32[9,64], index: 11, kind: input, shape index: {}]   ;;  %s10374_s12 = inlined_call_operand.vmem [shape: f32[1,64], index: 12, kind: input, shape index: {}]   ;;  %s10375_s13 = inlined_call_operand.vmem [shape: f32[64,128], index: 13, kind: input, shape index: {}]   ;;  %s10376_s14 = inlined_call_operand.vmem [shape: f32[1,128], index: 14, kind: input, shape index: {}]   ;;  %s10377_s15 = inlined_call_operand.vmem [shape: f32[128,128], index: 15, kind: input, shape index: {}]   ;;  %s10378_s16 = inlined_call_operand.vmem [shape: f32[1,128], index: 16, kind: input, shape index: {}]   ;;  %s10379_s17 = inlined_call_operand.vmem [shape: f32[128,64], index: 17, kind: input, shape index: {}]   ;;  %s10380_s18 = inlined_call_operand.vmem [shape: f32[16,64], index: 18, kind: input, shape index: {}]   ;;  %s10381_s19 = inlined_call_operand.vmem [shape: f32[1,64], index: 19, kind: input, shape index: {}]   ;;  %s10382_s20 = inlined_call_operand.vmem [shape: f32[4,16], index: 20, kind: output, shape index: {0}]   ;;  %s10383_s21 = inlined_call_operand.hbm [shape: f32[4,16], index: 21, kind: output, shape index: {1}]   ;;  %s10384_s22 = inlined_call_operand.vmem [shape: f32[4,16], index: 22, kind: output, shape index: {2}]   ;;  %s10385_s23 = inlined_call_operand.hbm [shape: f32[4,16], index: 23, kind: output, shape index: {3}]  }
   0x1   :  { %10388 = sst [smem:[#allocation8_spill]] %s10362_s0 }
   0x2   :  { %10389 = sst [smem:[#allocation9_spill]] %s10363_s1 }
   0x3   :  { %10390 = sst [smem:[#allocation10_spill]] %s10364_s2 }
   0x4   :  { %10391 = sst [smem:[#allocation11_spill]] %s10365_s3 }
   0x5   :  { %10392 = sst [smem:[#allocation12_spill]] %s10366_s4 }
   0x6   :  { %10393 = sst [smem:[#allocation13_spill]] %s10367_s5 }
   0x7   :  { %10394 = sst [smem:[#allocation14_spill]] %s10368_s6 }
   0x8   :  { %10395 = sst [smem:[#allocation15_spill]] %s10369_s7 }
   0x9   :  { %29 = vsyncpa [#allocation3], 0  ;;  %s10396_s24 = sld [smem:[#allocation14_spill]]  ;;  %v733_v35 = vlaneseq  ;;  %v7734_v36 = vmov 1983009808  }
   0xa   :  { %v756_v37 = vunpack.c.l.s4 %v7734_v36  ;;  %s10397_s28 = sld [smem:[#allocation8_spill]] }
   0xb   :  { %v7982_v42 = vshrl.u32 %v733_v35, 7  ;;  %s10398_s7 = sld [smem:[#allocation15_spill]] }
   0xc   :  { %v757_v43 = vunpack.c.0.s8 %v756_v37 }
   0xe   :  { %v7997_v48 = vsub.s32 %v757_v43, %v7982_v42 }
   0xf   :  { %v6692_v0 = vld [vmem:[%s10396_s24 + $0x74] ss:$8 sps:$4 sm:$0xff]   ;;  %v6694_v1 = vld [vmem:[%s10396_s24 + $0x70] ss:$8 sps:$4 sm:$0xff]   ;;  %v6698_v4 = vld [vmem:[%s10396_s24 + $0x64] ss:$8 sps:$4 sm:$0xff]  }
  0x10   :  { %4215 = vmatprep.subr.bf16.mxu0 %v6692_v0  ;;  %v6695_v2 = vld [vmem:[%s10396_s24 + $0x174] ss:$8 sps:$4 sm:$0xff]   ;;  %v6697_v3 = vld [vmem:[%s10396_s24 + $0x170] ss:$8 sps:$4 sm:$0xff]   ;;  %v6700_v5 = vld [vmem:[%s10396_s24 + $0x60] ss:$8 sps:$4 sm:$0xff]  }
  0x11   :  { %4216 = vmatpush1.bf16.msra.mxu0 %v6694_v1  ;;  %4256 = vmatprep.subr.bf16.mxu1 %v6695_v2  ;;  %v6701_v6 = vld [vmem:[%s10396_s24 + $0x164] ss:$8 sps:$4 sm:$0xff]   ;;  %v6703_v7 = vld [vmem:[%s10396_s24 + $0x160] ss:$8 sps:$4 sm:$0xff]   ;;  %v6704_v8 = vld [vmem:[%s10396_s24 + $0x54] ss:$8 sps:$4 sm:$0xff]  }
  0x12   :  { %4257 = vmatpush1.bf16.msra.mxu1 %v6697_v3  ;;  %4217 = vmatprep.subr.bf16.mxu0 %v6698_v4  ;;  %v6706_v9 = vld [vmem:[%s10396_s24 + $0x50] ss:$8 sps:$4 sm:$0xff]   ;;  %v6707_v10 = vld [vmem:[%s10396_s24 + $0x154] ss:$8 sps:$4 sm:$0xff]   ;;  %v6710_v11 = vld [vmem:[%s10396_s24 + $0x44] ss:$8 sps:$4 sm:$0xff]  }
  0x13   :  { %4258 = vmatprep.subr.bf16.mxu1 %v6701_v6  ;;  %v6709_v12 = vld [vmem:[%s10396_s24 + $0x150] ss:$8 sps:$4 sm:$0xff]   ;;  %v6713_v13 = vld [vmem:[%s10396_s24 + $0x144] ss:$8 sps:$4 sm:$0xff]   ;;  %v6712_v14 = vld [vmem:[%s10396_s24 + $0x40] ss:$8 sps:$4 sm:$0xff]  }
  0x14   :  { %v6716_v15 = vld [vmem:[%s10396_s24 + $0x34] ss:$8 sps:$4 sm:$0xff]   ;;  %v6715_v16 = vld [vmem:[%s10396_s24 + $0x140] ss:$8 sps:$4 sm:$0xff]   ;;  %v6718_v18 = vld [vmem:[%s10396_s24 + $0x30] ss:$8 sps:$4 sm:$0xff]  }
  0x15   :  { %4218 = vmatpush1.bf16.msra.mxu0 %v6700_v5  ;;  %v6719_v17 = vld [vmem:[%s10396_s24 + $0x134] ss:$8 sps:$4 sm:$0xff]   ;;  %v6722_v19 = vld [vmem:[%s10396_s24 + $0x24] ss:$8 sps:$4 sm:$0xff]   ;;  %v6721_v20 = vld [vmem:[%s10396_s24 + $0x130] ss:$8 sps:$4 sm:$0xff]  }
  0x16   :  { %4219 = vmatprep.subr.bf16.mxu0 %v6704_v8  ;;  %4259 = vmatpush1.bf16.msra.mxu1 %v6703_v7  ;;  %v6725_v21 = vld [vmem:[%s10396_s24 + $0x124] ss:$8 sps:$4 sm:$0xff]   ;;  %v6724_v22 = vld [vmem:[%s10396_s24 + $0x20] ss:$8 sps:$4 sm:$0xff]   ;;  %v6728_v23 = vld [vmem:[%s10396_s24 + $0x14] ss:$8 sps:$4 sm:$0xff]  }
  0x17   :  { %4260 = vmatprep.subr.bf16.mxu1 %v6707_v10  ;;  %v6727_v24 = vld [vmem:[%s10396_s24 + $0x120] ss:$8 sps:$4 sm:$0xff]   ;;  %v6731_v25 = vld [vmem:[%s10396_s24 + $0x114] ss:$8 sps:$4 sm:$0xff]   ;;  %v6730_v26 = vld [vmem:[%s10396_s24 + $0x10] ss:$8 sps:$4 sm:$0xff]  }
  0x18   :  { %v6734_v27 = vld [vmem:[%s10396_s24 + $0x4] ss:$8 sps:$4 sm:$0xff]   ;;  %v6733_v28 = vld [vmem:[%s10396_s24 + $0x110] ss:$8 sps:$4 sm:$0xff]   ;;  %v6736_v30 = vld [vmem:[%s10396_s24] ss:$8 sps:$4 sm:$0xff]  }
  0x19   :  { %4220 = vmatpush1.bf16.msra.mxu0 %v6706_v9  ;;  %v6737_v29 = vld [vmem:[%s10396_s24 + $0x104] ss:$8 sps:$4 sm:$0xff]   ;;  %v6740_v31 = vld [vmem:[%s10396_s24 + $0xf4] ss:$8 sps:$4 sm:$0xff]   ;;  %v6739_v32 = vld [vmem:[%s10396_s24 + $0x100] ss:$8 sps:$4 sm:$0xff]  }
  0x1a   :  { %4221 = vmatprep.subr.bf16.mxu0 %v6710_v11  ;;  %4261 = vmatpush1.bf16.msra.mxu1 %v6709_v12  ;;  %v6743_v33 = vld [vmem:[%s10396_s24 + $0x1f4] ss:$8 sps:$4 sm:$0xff]   ;;  %v6742_v34 = vld [vmem:[%s10396_s24 + $0xf0] ss:$8 sps:$4 sm:$0xff]   ;;  %v6746_v38 = vld [vmem:[%s10396_s24 + $0xe4] ss:$8 sps:$4 sm:$0xff]  }
  0x1b   :  { %4262 = vmatprep.subr.bf16.mxu1 %v6713_v13  ;;  %v6745_v39 = vld [vmem:[%s10396_s24 + $0x1f0] ss:$8 sps:$4 sm:$0xff]   ;;  %v6749_v40 = vld [vmem:[%s10396_s24 + $0x1e4] ss:$8 sps:$4 sm:$0xff]   ;;  %v6748_v41 = vld [vmem:[%s10396_s24 + $0xe0] ss:$8 sps:$4 sm:$0xff]  }
  0x1c   :  { %v6752_v44 = vld [vmem:[%s10396_s24 + $0xd4] ss:$8 sps:$4 sm:$0xff]   ;;  %v6751_v45 = vld [vmem:[%s10396_s24 + $0x1e0] ss:$8 sps:$4 sm:$0xff]   ;;  %v6754_v47 = vld [vmem:[%s10396_s24 + $0xd0] ss:$8 sps:$4 sm:$0xff]  }
  0x1d   :  { %4222 = vmatpush1.bf16.msra.mxu0 %v6712_v14  ;;  %v6755_v46 = vld [vmem:[%s10396_s24 + $0x1d4] ss:$8 sps:$4 sm:$0xff]   ;;  %v6758_v49 = vld [vmem:[%s10396_s24 + $0xc4] ss:$8 sps:$4 sm:$0xff]   ;;  %v6757_v50 = vld [vmem:[%s10396_s24 + $0x1d0] ss:$8 sps:$4 sm:$0xff]  }
  0x1e   :  { %4223 = vmatprep.subr.bf16.mxu0 %v6716_v15  ;;  %4263 = vmatpush1.bf16.msra.mxu1 %v6715_v16  ;;  %v6761_v51 = vld [vmem:[%s10396_s24 + $0x1c4] ss:$8 sps:$4 sm:$0xff]   ;;  %v6760_v53 = vld [vmem:[%s10396_s24 + $0xc0] ss:$8 sps:$4 sm:$0xff]   ;;  %v6764_v56 = vld [vmem:[%s10396_s24 + $0xb4] ss:$8 sps:$4 sm:$0xff]  }
  0x1f   :  { %4264 = vmatprep.subr.bf16.mxu1 %v6719_v17  ;;  %v72_v52 = vld [vmem:[%s10397_s28] sm:$0xff]  ;;  %v6767_v60 = vld [vmem:[%s10396_s24 + $0x1b4] ss:$8 sps:$4 sm:$0xff]   ;;  %v6766_v61 = vld [vmem:[%s10396_s24 + $0xb0] ss:$8 sps:$4 sm:$0xff]  }
  0x20   :  { %v761_v54 = vrot.slane %v72_v52, %v7997_v48  ;;  %v754_v55 = vcombine.high %v72_v52, %v72_v52  ;;  %v6763_v57 = vld [vmem:[%s10396_s24 + $0x1c0] ss:$8 sps:$4 sm:$0xff]   ;;  %v6770_v63 = vld [vmem:[%s10396_s24 + $0xa4] ss:$8 sps:$4 sm:$0xff]   ;;  %v6769_v0 = vld [vmem:[%s10396_s24 + $0x1b0] ss:$8 sps:$4 sm:$0xff]  }
  0x21   :  { %4224 = vmatpush1.bf16.msra.mxu0 %v6718_v18  ;;  %v6773_v1 = vld [vmem:[%s10396_s24 + $0x1a4] ss:$8 sps:$4 sm:$0xff]   ;;  %v6772_v2 = vld [vmem:[%s10396_s24 + $0xa0] ss:$8 sps:$4 sm:$0xff]   ;;  %v6776_v3 = vld [vmem:[%s10396_s24 + $0x94] ss:$8 sps:$4 sm:$0xff]  }
  0x22   :  { %4225 = vmatprep.subr.bf16.mxu0 %v6722_v19  ;;  %4265 = vmatpush1.bf16.msra.mxu1 %v6721_v20  ;;  %v769_v58 = vcombine.high %v761_v54, %v761_v54  ;;  %v768_v59 = vrot.slane %v754_v55, %v7997_v48  ;;  %v6775_v4 = vld [vmem:[%s10396_s24 + $0x1a0] ss:$8 sps:$4 sm:$0xff]   ;;  %v6779_v5 = vld [vmem:[%s10396_s24 + $0x194] ss:$8 sps:$4 sm:$0xff]   ;;  %v6778_v6 = vld [vmem:[%s10396_s24 + $0x90] ss:$8 sps:$4 sm:$0xff]  }
  0x23   :  { %4266 = vmatprep.subr.bf16.mxu1 %v6725_v21  ;;  %v6782_v7 = vld [vmem:[%s10396_s24 + $0x84] ss:$8 sps:$4 sm:$0xff]   ;;  %v6781_v8 = vld [vmem:[%s10396_s24 + $0x190] ss:$8 sps:$4 sm:$0xff]   ;;  %v6784_v10 = vld [vmem:[%s10396_s24 + $0x80] ss:$8 sps:$4 sm:$0xff]  }
  0x24   :  { %4247 = vmatprep.mubr.bf16.mxu0 %v769_v58  ;;  %v770_v62 = vcombine.high %v768_v59, %v768_v59  ;;  %v6785_v9 = vld [vmem:[%s10396_s24 + $0x184] ss:$8 sps:$4 sm:$0xff]   ;;  %v6790_v11 = vld [vmem:[%s10396_s24 + $0x274] ss:$8 sps:$4 sm:$0xff]   ;;  %v6787_v12 = vld [vmem:[%s10396_s24 + $0x180] ss:$8 sps:$4 sm:$0xff]  }
  0x25   :  { %4226 = vmatpush1.bf16.msra.mxu0 %v6724_v22  ;;  %v6794_v13 = vld [vmem:[%s10396_s24 + $0x374] ss:$8 sps:$4 sm:$0xff]   ;;  %v6788_v14 = vld [vmem:[%s10396_s24 + $0x270] ss:$8 sps:$4 sm:$0xff]   ;;  %v6797_v15 = vld [vmem:[%s10396_s24 + $0x264] ss:$8 sps:$4 sm:$0xff]  }
  0x26   :  { %4227 = vmatprep.subr.bf16.mxu0 %v6728_v23  ;;  %4267 = vmatpush1.bf16.msra.mxu1 %v6727_v24  ;;  %v6792_v16 = vld [vmem:[%s10396_s24 + $0x370] ss:$8 sps:$4 sm:$0xff]   ;;  %v6800_v17 = vld [vmem:[%s10396_s24 + $0x364] ss:$8 sps:$4 sm:$0xff]   ;;  %v6795_v18 = vld [vmem:[%s10396_s24 + $0x260] ss:$8 sps:$4 sm:$0xff]  }
  0x27   :  { %4268 = vmatprep.subr.bf16.mxu1 %v6731_v25  ;;  %4288 = vmatprep.mubr.bf16.mxu1 %v770_v62  ;;  %v6803_v19 = vld [vmem:[%s10396_s24 + $0x254] ss:$8 sps:$4 sm:$0xff]   ;;  %v6798_v20 = vld [vmem:[%s10396_s24 + $0x360] ss:$8 sps:$4 sm:$0xff]   ;;  %v6801_v22 = vld [vmem:[%s10396_s24 + $0x250] ss:$8 sps:$4 sm:$0xff]  }
  0x28   :  { %v6806_v21 = vld [vmem:[%s10396_s24 + $0x354] ss:$8 sps:$4 sm:$0xff]   ;;  %v6809_v23 = vld [vmem:[%s10396_s24 + $0x244] ss:$8 sps:$4 sm:$0xff]   ;;  %v6804_v24 = vld [vmem:[%s10396_s24 + $0x350] ss:$8 sps:$4 sm:$0xff]  }
  0x29   :  { %4228 = vmatpush1.bf16.msra.mxu0 %v6730_v26  ;;  %v6812_v25 = vld [vmem:[%s10396_s24 + $0x344] ss:$8 sps:$4 sm:$0xff]   ;;  %v6807_v26 = vld [vmem:[%s10396_s24 + $0x240] ss:$8 sps:$4 sm:$0xff]   ;;  %v6827_v35 = vld [vmem:[%s10396_s24 + $0x214] ss:$8 sps:$4 sm:$0xff]  }
  0x2a   :  { %4229 = vmatprep.subr.bf16.mxu0 %v6734_v27  ;;  %4269 = vmatpush1.bf16.msra.mxu1 %v6733_v28  ;;  %v6815_v27 = vld [vmem:[%s10396_s24 + $0x234] ss:$8 sps:$4 sm:$0xff]   ;;  %v6810_v28 = vld [vmem:[%s10396_s24 + $0x340] ss:$8 sps:$4 sm:$0xff]   ;;  %v6833_v43 = vld [vmem:[%s10396_s24 + $0x204] ss:$8 sps:$4 sm:$0xff]  }
  0x2b   :  { %4270 = vmatprep.subr.bf16.mxu1 %v6737_v29  ;;  %v6818_v29 = vld [vmem:[%s10396_s24 + $0x334] ss:$8 sps:$4 sm:$0xff]   ;;  %v6822_v36 = vld [vmem:[%s10396_s24 + $0x320] ss:$8 sps:$4 sm:$0xff]   ;;  %v6845_v55 = vld [vmem:[%s10396_s24 + $0x2e4] ss:$8 sps:$4 sm:$0xff]  }
  0x2c   :  { %v73_v37 = vld [vmem:[%s10397_s28 + $0x8] sm:$0xff]  ;;  %v6849_v62 = vld [vmem:[%s10396_s24 + $0x2d0] ss:$8 sps:$4 sm:$0xff]  }
  0x2d   :  { %4230 = vmatpush1.bf16.msra.mxu0 %v6736_v30  ;;  %v6813_v30 = vld [vmem:[%s10396_s24 + $0x230] ss:$8 sps:$4 sm:$0xff]   ;;  %v6834_v52 = vld [vmem:[%s10396_s24 + $0x300] ss:$8 sps:$4 sm:$0xff]  }
  0x2e   :  { %4231 = vmatprep.subr.bf16.mxu0 %v6740_v31  ;;  %4271 = vmatpush1.bf16.msra.mxu1 %v6739_v32  ;;  %v6821_v31 = vld [vmem:[%s10396_s24 + $0x224] ss:$8 sps:$4 sm:$0xff]   ;;  %v6816_v32 = vld [vmem:[%s10396_s24 + $0x330] ss:$8 sps:$4 sm:$0xff]   ;;  %v6843_v58 = vld [vmem:[%s10396_s24 + $0x2e0] ss:$8 sps:$4 sm:$0xff]  }
  0x2f   :  { %4272 = vmatprep.subr.bf16.mxu1 %v6743_v33  ;;  %v6824_v33 = vld [vmem:[%s10396_s24 + $0x324] ss:$8 sps:$4 sm:$0xff]  }
  0x31   :  { %4232 = vmatpush2.bf16.msra.mxu0 %v6742_v34  ;;  %v6819_v34 = vld [vmem:[%s10396_s24 + $0x220] ss:$8 sps:$4 sm:$0xff]  }
  0x32   :  { %4233 = vmatprep.subr.bf16.mxu0 %v6746_v38  ;;  %4273 = vmatpush2.bf16.msra.mxu1 %v6745_v39  ;;  %v6830_v38 = vld [vmem:[%s10396_s24 + $0x314] ss:$8 sps:$4 sm:$0xff]   ;;  %v8149_v39 = vrot.slane %v73_v37, %v7997_v48 }
  0x33   :  { %4274 = vmatprep.subr.bf16.mxu1 %v6749_v40  ;;  %v771_v40 = vcombine.high %v73_v37, %v73_v37  ;;  %v6906_v37 = vld [vmem:[%s10396_s24 + $0x444] ss:$8 sps:$4 sm:$0xff]  }
  0x35   :  { %4234 = vmatpush2.bf16.msra.mxu0 %v6748_v41  ;;  %v6825_v41 = vld [vmem:[%s10396_s24 + $0x210] ss:$8 sps:$4 sm:$0xff]  }
  0x36   :  { %4235 = vmatprep.subr.bf16.mxu0 %v6752_v44  ;;  %4275 = vmatpush2.bf16.msra.mxu1 %v6751_v45  ;;  %v786_v44 = vcombine.high %v8149_v39, %v8149_v39  ;;  %v8160_v45 = vrot.slane %v771_v40, %v7997_v48  ;;  %v6904_v40 = vld [vmem:[%s10396_s24 + $0x440] ss:$8 sps:$4 sm:$0xff]  }
  0x37   :  { %4276 = vmatprep.subr.bf16.mxu1 %v6755_v46  ;;  %v6828_v46 = vld [vmem:[%s10396_s24 + $0x310] ss:$8 sps:$4 sm:$0xff]  }
  0x39   :  { %4236 = vmatpush2.bf16.msra.mxu0 %v6754_v47  ;;  %v6836_v47 = vld [vmem:[%s10396_s24 + $0x304] ss:$8 sps:$4 sm:$0xff]  }
  0x3a   :  { %4237 = vmatprep.subr.bf16.mxu0 %v6758_v49  ;;  %4277 = vmatpush2.bf16.msra.mxu1 %v6757_v50  ;;  %v787_v49 = vcombine.high %v8160_v45, %v8160_v45  ;;  %v6831_v50 = vld [vmem:[%s10396_s24 + $0x200] ss:$8 sps:$4 sm:$0xff]  }
  0x3b   :  { %4278 = vmatprep.subr.bf16.mxu1 %v6761_v51  ;;  %v6839_v51 = vld [vmem:[%s10396_s24 + $0x2f4] ss:$8 sps:$4 sm:$0xff]  }
  0x3d   :  { %4238 = vmatpush2.bf16.msra.mxu0 %v6760_v53  ;;  %v6842_v53 = vld [vmem:[%s10396_s24 + $0x3f4] ss:$8 sps:$4 sm:$0xff]  }
  0x3e   :  { %4239 = vmatprep.subr.bf16.mxu0 %v6764_v56  ;;  %4279 = vmatpush2.bf16.msra.mxu1 %v6763_v57  ;;  %v6840_v56 = vld [vmem:[%s10396_s24 + $0x3f0] ss:$8 sps:$4 sm:$0xff]   ;;  %v6848_v57 = vld [vmem:[%s10396_s24 + $0x3e4] ss:$8 sps:$4 sm:$0xff]  }
  0x3f   :  { %4280 = vmatprep.subr.bf16.mxu1 %v6767_v60  ;;  %v6846_v60 = vld [vmem:[%s10396_s24 + $0x3e0] ss:$8 sps:$4 sm:$0xff]  }
  0x41   :  { %4240 = vmatpush2.bf16.msra.mxu0 %v6766_v61  ;;  %v6854_v61 = vld [vmem:[%s10396_s24 + $0x3d4] ss:$8 sps:$4 sm:$0xff]  }
  0x42   :  { %4241 = vmatprep.subr.bf16.mxu0 %v6770_v63  ;;  %4281 = vmatpush2.bf16.msra.mxu1 %v6769_v0  ;;  %v6857_v63 = vld [vmem:[%s10396_s24 + $0x2c4] ss:$8 sps:$4 sm:$0xff]   ;;  %v6852_v0 = vld [vmem:[%s10396_s24 + $0x3d0] ss:$8 sps:$4 sm:$0xff]  }
  0x43   :  { %4282 = vmatprep.subr.bf16.mxu1 %v6773_v1  ;;  %v6860_v1 = vld [vmem:[%s10396_s24 + $0x3c4] ss:$8 sps:$4 sm:$0xff]  }
  0x45   :  { %4242 = vmatpush2.bf16.msra.mxu0 %v6772_v2  ;;  %v6855_v2 = vld [vmem:[%s10396_s24 + $0x2c0] ss:$8 sps:$4 sm:$0xff]  }
  0x46   :  { %4243 = vmatprep.subr.bf16.mxu0 %v6776_v3  ;;  %4283 = vmatpush2.bf16.msra.mxu1 %v6775_v4  ;;  %v6863_v3 = vld [vmem:[%s10396_s24 + $0x2b4] ss:$8 sps:$4 sm:$0xff]   ;;  %v6858_v4 = vld [vmem:[%s10396_s24 + $0x3c0] ss:$8 sps:$4 sm:$0xff]  }
  0x47   :  { %4284 = vmatprep.subr.bf16.mxu1 %v6779_v5  ;;  %v6866_v5 = vld [vmem:[%s10396_s24 + $0x3b4] ss:$8 sps:$4 sm:$0xff]  }
  0x49   :  { %4244 = vmatpush2.bf16.msra.mxu0 %v6778_v6  ;;  %v6861_v6 = vld [vmem:[%s10396_s24 + $0x2b0] ss:$8 sps:$4 sm:$0xff]  }
  0x4a   :  { %4245 = vmatprep.subr.bf16.mxu0 %v6782_v7  ;;  %4285 = vmatpush2.bf16.msra.mxu1 %v6781_v8  ;;  %v6869_v7 = vld [vmem:[%s10396_s24 + $0x2a4] ss:$8 sps:$4 sm:$0xff]   ;;  %v6864_v8 = vld [vmem:[%s10396_s24 + $0x3b0] ss:$8 sps:$4 sm:$0xff]  }
  0x4b   :  { %4286 = vmatprep.subr.bf16.mxu1 %v6785_v9  ;;  %v6872_v9 = vld [vmem:[%s10396_s24 + $0x3a4] ss:$8 sps:$4 sm:$0xff]  }
  0x4d   :  { %4246 = vmatpush2.bf16.msra.mxu0 %v6784_v10  ;;  %v6867_v10 = vld [vmem:[%s10396_s24 + $0x2a0] ss:$8 sps:$4 sm:$0xff]  }
  0x4e   :  { %4297 = vmatprep.subr.bf16.mxu0 %v6790_v11  ;;  %4287 = vmatpush2.bf16.msra.mxu1 %v6787_v12  ;;  %v6875_v11 = vld [vmem:[%s10396_s24 + $0x294] ss:$8 sps:$4 sm:$0xff]   ;;  %v6870_v12 = vld [vmem:[%s10396_s24 + $0x3a0] ss:$8 sps:$4 sm:$0xff]  }
  0x4f   :  { %4338 = vmatprep.subr.bf16.mxu1 %v6794_v13  ;;  %v6878_v13 = vld [vmem:[%s10396_s24 + $0x394] ss:$8 sps:$4 sm:$0xff]  }
  0x50   :  { %4248 = vmatmul.mubr.bf16.vlgmr.msra.gmra.mxu0 %v761_v54  ;;  %v6837_v54 = vld [vmem:[%s10396_s24 + $0x2f0] ss:$8 sps:$4 sm:$0xff]  }
  0x51   :  { %4298 = vmatpush1.bf16.msra.mxu0 %v6788_v14  ;;  %4289 = vmatmul.mubr.bf16.vlgmr.msra.gmra.mxu1 %v768_v59  ;;  %v6851_v59 = vld [vmem:[%s10396_s24 + $0x2d4] ss:$8 sps:$4 sm:$0xff]   ;;  %v6873_v14 = vld [vmem:[%s10396_s24 + $0x290] ss:$8 sps:$4 sm:$0xff]  }
  0x52   :  { %4299 = vmatprep.subr.bf16.mxu0 %v6797_v15  ;;  %4339 = vmatpush1.bf16.msra.mxu1 %v6792_v16  ;;  %v6881_v15 = vld [vmem:[%s10396_s24 + $0x284] ss:$8 sps:$4 sm:$0xff]   ;;  %v6876_v16 = vld [vmem:[%s10396_s24 + $0x390] ss:$8 sps:$4 sm:$0xff]  }
  0x53   :  { %4340 = vmatprep.subr.bf16.mxu1 %v6800_v17  ;;  %4329 = vmatprep.mubr.bf16.mxu0 %v786_v44  ;;  %v6884_v17 = vld [vmem:[%s10396_s24 + $0x384] ss:$8 sps:$4 sm:$0xff]   ;;  %v6915_v44 = vld [vmem:[%s10396_s24 + $0x534] ss:$8 sps:$4 sm:$0xff]  }
  0x54   :  { %4370 = vmatprep.mubr.bf16.mxu1 %v787_v49  ;;  %v6921_v49 = vld [vmem:[%s10396_s24 + $0x524] ss:$8 sps:$4 sm:$0xff]  }
  0x55   :  { %4300 = vmatpush1.bf16.msra.mxu0 %v6795_v18  ;;  %v6879_v18 = vld [vmem:[%s10396_s24 + $0x280] ss:$8 sps:$4 sm:$0xff]  }
  0x56   :  { %4301 = vmatprep.subr.bf16.mxu0 %v6803_v19  ;;  %4341 = vmatpush1.bf16.msra.mxu1 %v6798_v20  ;;  %v6887_v19 = vld [vmem:[%s10396_s24 + $0x474] ss:$8 sps:$4 sm:$0xff]   ;;  %v6882_v20 = vld [vmem:[%s10396_s24 + $0x380] ss:$8 sps:$4 sm:$0xff]  }
  0x57   :  { %4342 = vmatprep.subr.bf16.mxu1 %v6806_v21  ;;  %v6891_v21 = vld [vmem:[%s10396_s24 + $0x574] ss:$8 sps:$4 sm:$0xff]  }
  0x59   :  { %4302 = vmatpush1.bf16.msra.mxu0 %v6801_v22  ;;  %v6885_v22 = vld [vmem:[%s10396_s24 + $0x470] ss:$8 sps:$4 sm:$0xff]  }
  0x5a   :  { %4303 = vmatprep.subr.bf16.mxu0 %v6809_v23  ;;  %4343 = vmatpush1.bf16.msra.mxu1 %v6804_v24  ;;  %v6894_v23 = vld [vmem:[%s10396_s24 + $0x464] ss:$8 sps:$4 sm:$0xff]   ;;  %v74_v24 = vld [vmem:[%s10397_s28 + $0x10] sm:$0xff] }
  0x5b   :  { %4344 = vmatprep.subr.bf16.mxu1 %v6812_v25  ;;  %v6889_v25 = vld [vmem:[%s10396_s24 + $0x570] ss:$8 sps:$4 sm:$0xff]  }
  0x5d   :  { %4304 = vmatpush1.bf16.msra.mxu0 %v6807_v26  ;;  %v8291_v26 = vrot.slane %v74_v24, %v7997_v48 }
  0x5e   :  { %4305 = vmatprep.subr.bf16.mxu0 %v6815_v27  ;;  %4345 = vmatpush1.bf16.msra.mxu1 %v6810_v28  ;;  %v788_v27 = vcombine.high %v74_v24, %v74_v24  ;;  %v6897_v28 = vld [vmem:[%s10396_s24 + $0x564] ss:$8 sps:$4 sm:$0xff]  }
  0x5f   :  { %4346 = vmatprep.subr.bf16.mxu1 %v6818_v29  ;;  %v6892_v29 = vld [vmem:[%s10396_s24 + $0x460] ss:$8 sps:$4 sm:$0xff]   ;;  %v6978_v24 = vld [vmem:[%s10396_s24 + $0x484] ss:$8 sps:$4 sm:$0xff]  }
  0x61   :  { %4306 = vmatpush1.bf16.msra.mxu0 %v6813_v30  ;;  %v803_v30 = vcombine.high %v8291_v26, %v8291_v26 }
  0x62   :  { %4307 = vmatprep.subr.bf16.mxu0 %v6821_v31  ;;  %4347 = vmatpush1.bf16.msra.mxu1 %v6816_v32  ;;  %v8303_v31 = vrot.slane %v788_v27, %v7997_v48  ;;  %v6900_v32 = vld [vmem:[%s10396_s24 + $0x454] ss:$8 sps:$4 sm:$0xff]  }
  0x63   :  { %4348 = vmatprep.subr.bf16.mxu1 %v6824_v33  ;;  %v6895_v33 = vld [vmem:[%s10396_s24 + $0x560] ss:$8 sps:$4 sm:$0xff]  }
  0x65   :  { %4308 = vmatpush1.bf16.msra.mxu0 %v6819_v34  ;;  %v804_v34 = vcombine.high %v8303_v31, %v8303_v31 }
  0x66   :  { %4309 = vmatprep.subr.bf16.mxu0 %v6827_v35  ;;  %4349 = vmatpush1.bf16.msra.mxu1 %v6822_v36  ;;  %v6903_v35 = vld [vmem:[%s10396_s24 + $0x554] ss:$8 sps:$4 sm:$0xff]   ;;  %v6898_v36 = vld [vmem:[%s10396_s24 + $0x450] ss:$8 sps:$4 sm:$0xff]  }
  0x67   :  { %4350 = vmatprep.subr.bf16.mxu1 %v6830_v38  ;;  %v6901_v38 = vld [vmem:[%s10396_s24 + $0x550] ss:$8 sps:$4 sm:$0xff]  }
  0x69   :  { %4310 = vmatpush1.bf16.msra.mxu0 %v6825_v41  ;;  %v6912_v41 = vld [vmem:[%s10396_s24 + $0x434] ss:$8 sps:$4 sm:$0xff]  }
  0x6a   :  { %4311 = vmatprep.subr.bf16.mxu0 %v6833_v43  ;;  %4351 = vmatpush1.bf16.msra.mxu1 %v6828_v46  ;;  %v6907_v43 = vld [vmem:[%s10396_s24 + $0x540] ss:$8 sps:$4 sm:$0xff]   ;;  %v6918_v46 = vld [vmem:[%s10396_s24 + $0x424] ss:$8 sps:$4 sm:$0xff]  }
  0x6b   :  { %4352 = vmatprep.subr.bf16.mxu1 %v6836_v47  ;;  %v6913_v47 = vld [vmem:[%s10396_s24 + $0x530] ss:$8 sps:$4 sm:$0xff]  }
  0x6d   :  { %4312 = vmatpush1.bf16.msra.mxu0 %v6831_v50  ;;  %v6916_v50 = vld [vmem:[%s10396_s24 + $0x420] ss:$8 sps:$4 sm:$0xff]  }
  0x6e   :  { %4313 = vmatprep.subr.bf16.mxu0 %v6839_v51  ;;  %4353 = vmatpush1.bf16.msra.mxu1 %v6834_v52  ;;  %v6924_v51 = vld [vmem:[%s10396_s24 + $0x414] ss:$8 sps:$4 sm:$0xff]   ;;  %v6919_v52 = vld [vmem:[%s10396_s24 + $0x520] ss:$8 sps:$4 sm:$0xff]  }
  0x6f   :  { %4354 = vmatprep.subr.bf16.mxu1 %v6842_v53  ;;  %v6927_v53 = vld [vmem:[%s10396_s24 + $0x514] ss:$8 sps:$4 sm:$0xff]  }
  0x71   :  { %4314 = vmatpush2.bf16.msra.mxu0 %v6837_v54  ;;  %v6922_v54 = vld [vmem:[%s10396_s24 + $0x410] ss:$8 sps:$4 sm:$0xff]  }
  0x72   :  { %4315 = vmatprep.subr.bf16.mxu0 %v6845_v55  ;;  %4355 = vmatpush2.bf16.msra.mxu1 %v6840_v56  ;;  %v6930_v55 = vld [vmem:[%s10396_s24 + $0x404] ss:$8 sps:$4 sm:$0xff]   ;;  %v6925_v56 = vld [vmem:[%s10396_s24 + $0x510] ss:$8 sps:$4 sm:$0xff]  }
  0x73   :  { %4356 = vmatprep.subr.bf16.mxu1 %v6848_v57  ;;  %v6933_v57 = vld [vmem:[%s10396_s24 + $0x504] ss:$8 sps:$4 sm:$0xff]  }
  0x75   :  { %4316 = vmatpush2.bf16.msra.mxu0 %v6843_v58  ;;  %v6928_v58 = vld [vmem:[%s10396_s24 + $0x400] ss:$8 sps:$4 sm:$0xff]  }
  0x76   :  { %4317 = vmatprep.subr.bf16.mxu0 %v6851_v59  ;;  %4357 = vmatpush2.bf16.msra.mxu1 %v6846_v60  ;;  %v6936_v59 = vld [vmem:[%s10396_s24 + $0x4f4] ss:$8 sps:$4 sm:$0xff]   ;;  %v6931_v60 = vld [vmem:[%s10396_s24 + $0x500] ss:$8 sps:$4 sm:$0xff]  }
  0x77   :  { %4358 = vmatprep.subr.bf16.mxu1 %v6854_v61  ;;  %v6939_v61 = vld [vmem:[%s10396_s24 + $0x5f4] ss:$8 sps:$4 sm:$0xff]  }
  0x79   :  { %4318 = vmatpush2.bf16.msra.mxu0 %v6849_v62  ;;  %v6934_v62 = vld [vmem:[%s10396_s24 + $0x4f0] ss:$8 sps:$4 sm:$0xff]  }
  0x7a   :  { %4319 = vmatprep.subr.bf16.mxu0 %v6857_v63  ;;  %4359 = vmatpush2.bf16.msra.mxu1 %v6852_v0  ;;  %v6942_v63 = vld [vmem:[%s10396_s24 + $0x4e4] ss:$8 sps:$4 sm:$0xff]   ;;  %v6937_v0 = vld [vmem:[%s10396_s24 + $0x5f0] ss:$8 sps:$4 sm:$0xff]  }
  0x7b   :  { %4360 = vmatprep.subr.bf16.mxu1 %v6860_v1  ;;  %v6945_v1 = vld [vmem:[%s10396_s24 + $0x5e4] ss:$8 sps:$4 sm:$0xff]  }
  0x7d   :  { %4320 = vmatpush2.bf16.msra.mxu0 %v6855_v2  ;;  %v6940_v2 = vld [vmem:[%s10396_s24 + $0x4e0] ss:$8 sps:$4 sm:$0xff]  }
  0x7e   :  { %4321 = vmatprep.subr.bf16.mxu0 %v6863_v3  ;;  %4361 = vmatpush2.bf16.msra.mxu1 %v6858_v4  ;;  %v6948_v3 = vld [vmem:[%s10396_s24 + $0x4d4] ss:$8 sps:$4 sm:$0xff]   ;;  %v6943_v4 = vld [vmem:[%s10396_s24 + $0x5e0] ss:$8 sps:$4 sm:$0xff]  }
  0x7f   :  { %4362 = vmatprep.subr.bf16.mxu1 %v6866_v5  ;;  %v6951_v5 = vld [vmem:[%s10396_s24 + $0x5d4] ss:$8 sps:$4 sm:$0xff]  }
  0x81   :  { %4322 = vmatpush2.bf16.msra.mxu0 %v6861_v6  ;;  %v6946_v6 = vld [vmem:[%s10396_s24 + $0x4d0] ss:$8 sps:$4 sm:$0xff]  }
  0x82   :  { %4323 = vmatprep.subr.bf16.mxu0 %v6869_v7  ;;  %4363 = vmatpush2.bf16.msra.mxu1 %v6864_v8  ;;  %v6954_v7 = vld [vmem:[%s10396_s24 + $0x4c4] ss:$8 sps:$4 sm:$0xff]   ;;  %v6949_v8 = vld [vmem:[%s10396_s24 + $0x5d0] ss:$8 sps:$4 sm:$0xff]  }
  0x83   :  { %4364 = vmatprep.subr.bf16.mxu1 %v6872_v9  ;;  %v6957_v9 = vld [vmem:[%s10396_s24 + $0x5c4] ss:$8 sps:$4 sm:$0xff]  }
  0x85   :  { %4324 = vmatpush2.bf16.msra.mxu0 %v6867_v10  ;;  %v6952_v10 = vld [vmem:[%s10396_s24 + $0x4c0] ss:$8 sps:$4 sm:$0xff]  }
  0x86   :  { %4325 = vmatprep.subr.bf16.mxu0 %v6875_v11  ;;  %4365 = vmatpush2.bf16.msra.mxu1 %v6870_v12  ;;  %v6960_v11 = vld [vmem:[%s10396_s24 + $0x4b4] ss:$8 sps:$4 sm:$0xff]   ;;  %v6955_v12 = vld [vmem:[%s10396_s24 + $0x5c0] ss:$8 sps:$4 sm:$0xff]  }
  0x87   :  { %4366 = vmatprep.subr.bf16.mxu1 %v6878_v13  ;;  %v6963_v13 = vld [vmem:[%s10396_s24 + $0x5b4] ss:$8 sps:$4 sm:$0xff]  }
  0x89   :  { %4326 = vmatpush2.bf16.msra.mxu0 %v6873_v14  ;;  %v6958_v14 = vld [vmem:[%s10396_s24 + $0x4b0] ss:$8 sps:$4 sm:$0xff]  }
  0x8a   :  { %4327 = vmatprep.subr.bf16.mxu0 %v6881_v15  ;;  %4367 = vmatpush2.bf16.msra.mxu1 %v6876_v16  ;;  %v6966_v15 = vld [vmem:[%s10396_s24 + $0x4a4] ss:$8 sps:$4 sm:$0xff]   ;;  %v6961_v16 = vld [vmem:[%s10396_s24 + $0x5b0] ss:$8 sps:$4 sm:$0xff]  }
  0x8b   :  { %4368 = vmatprep.subr.bf16.mxu1 %v6884_v17  ;;  %v6969_v17 = vld [vmem:[%s10396_s24 + $0x5a4] ss:$8 sps:$4 sm:$0xff]  }
  0x8d   :  { %4328 = vmatpush2.bf16.msra.mxu0 %v6879_v18  ;;  %v6964_v18 = vld [vmem:[%s10396_s24 + $0x4a0] ss:$8 sps:$4 sm:$0xff]  }
  0x8e   :  { %4379 = vmatprep.subr.bf16.mxu0 %v6887_v19  ;;  %4369 = vmatpush2.bf16.msra.mxu1 %v6882_v20  ;;  %v6972_v19 = vld [vmem:[%s10396_s24 + $0x494] ss:$8 sps:$4 sm:$0xff]   ;;  %v6967_v20 = vld [vmem:[%s10396_s24 + $0x5a0] ss:$8 sps:$4 sm:$0xff]  }
  0x8f   :  { %4420 = vmatprep.subr.bf16.mxu1 %v6891_v21  ;;  %v6975_v21 = vld [vmem:[%s10396_s24 + $0x594] ss:$8 sps:$4 sm:$0xff]  }
  0x90   :  { %4330 = vmatmul.mubr.bf16.vlgmr.msra.gmra.mxu0 %v8149_v39  ;;  %v6909_v39 = vld [vmem:[%s10396_s24 + $0x544] ss:$8 sps:$4 sm:$0xff]  }
  0x91   :  { %4380 = vmatpush1.bf16.msra.mxu0 %v6885_v22  ;;  %4371 = vmatmul.mubr.bf16.vlgmr.msra.gmra.mxu1 %v8160_v45  ;;  %v6910_v45 = vld [vmem:[%s10396_s24 + $0x430] ss:$8 sps:$4 sm:$0xff]  }
  0x92   :  { %4381 = vmatprep.subr.bf16.mxu0 %v6894_v23  ;;  %4421 = vmatpush1.bf16.msra.mxu1 %v6889_v25  ;;  %v75_v22 = vld [vmem:[%s10397_s28 + $0x18] sm:$0xff] }
  0x93   :  { %4411 = vmatprep.mubr.bf16.mxu0 %v803_v30  ;;  %4422 = vmatprep.subr.bf16.mxu1 %v6897_v28  ;;  %v6970_v23 = vld [vmem:[%s10396_s24 + $0x490] ss:$8 sps:$4 sm:$0xff]   ;;  %v805_v27 = vcombine.high %v75_v22, %v75_v22  ;;  %v6981_v28 = vld [vmem:[%s10396_s24 + $0x584] ss:$8 sps:$4 sm:$0xff]   ;;  %v8480_v30 = vrot.slane %v75_v22, %v7997_v48 }
  0x94   :  { %4452 = vmatprep.mubr.bf16.mxu1 %v804_v34  ;;  %v6973_v25 = vld [vmem:[%s10396_s24 + $0x590] ss:$8 sps:$4 sm:$0xff]  }
  0x95   :  { %4382 = vmatpush1.bf16.msra.mxu0 %v6892_v29  ;;  %v6976_v29 = vld [vmem:[%s10396_s24 + $0x480] ss:$8 sps:$4 sm:$0xff]   ;;  %v8489_v34 = vrot.slane %v805_v27, %v7997_v48  ;;  %v7055_v22 = vld [vmem:[%s10396_s24 + $0x6b0] ss:$8 sps:$4 sm:$0xff]  }
  0x96   :  { %4383 = vmatprep.subr.bf16.mxu0 %v6900_v32  ;;  %4423 = vmatpush1.bf16.msra.mxu1 %v6895_v33  ;;  %v6984_v32 = vld [vmem:[%s10396_s24 + $0x674] ss:$8 sps:$4 sm:$0xff]   ;;  %v6979_v33 = vld [vmem:[%s10396_s24 + $0x580] ss:$8 sps:$4 sm:$0xff]  }
  0x97   :  { %4424 = vmatprep.subr.bf16.mxu1 %v6903_v35  ;;  %v6988_v35 = vld [vmem:[%s10396_s24 + $0x774] ss:$8 sps:$4 sm:$0xff]   ;;  %v7061_v27 = vld [vmem:[%s10396_s24 + $0x6a0] ss:$8 sps:$4 sm:$0xff]  }
  0x99   :  { %4384 = vmatpush1.bf16.msra.mxu0 %v6898_v36  ;;  %v6982_v36 = vld [vmem:[%s10396_s24 + $0x670] ss:$8 sps:$4 sm:$0xff]  }
  0x9a   :  { %4385 = vmatprep.subr.bf16.mxu0 %v6906_v37  ;;  %4425 = vmatpush1.bf16.msra.mxu1 %v6901_v38  ;;  %v820_v37 = vcombine.high %v8480_v30, %v8480_v30  ;;  %v6991_v38 = vld [vmem:[%s10396_s24 + $0x664] ss:$8 sps:$4 sm:$0xff]  }
  0x9b   :  { %4426 = vmatprep.subr.bf16.mxu1 %v6909_v39  ;;  %v6986_v39 = vld [vmem:[%s10396_s24 + $0x770] ss:$8 sps:$4 sm:$0xff]  }
  0x9d   :  { %4386 = vmatpush1.bf16.msra.mxu0 %v6904_v40  ;;  %v821_v40 = vcombine.high %v8489_v34, %v8489_v34 }
  0x9e   :  { %4387 = vmatprep.subr.bf16.mxu0 %v6912_v41  ;;  %4427 = vmatpush1.bf16.msra.mxu1 %v6907_v43  ;;  %v6994_v41 = vld [vmem:[%s10396_s24 + $0x764] ss:$8 sps:$4 sm:$0xff]   ;;  %v6989_v43 = vld [vmem:[%s10396_s24 + $0x660] ss:$8 sps:$4 sm:$0xff]  }
  0x9f   :  { %4428 = vmatprep.subr.bf16.mxu1 %v6915_v44  ;;  %v6997_v44 = vld [vmem:[%s10396_s24 + $0x654] ss:$8 sps:$4 sm:$0xff]  }
  0xa1   :  { %4388 = vmatpush1.bf16.msra.mxu0 %v6910_v45  ;;  %v7000_v45 = vld [vmem:[%s10396_s24 + $0x754] ss:$8 sps:$4 sm:$0xff]  }
  0xa2   :  { %4389 = vmatprep.subr.bf16.mxu0 %v6918_v46  ;;  %4429 = vmatpush1.bf16.msra.mxu1 %v6913_v47  ;;  %v7003_v46 = vld [vmem:[%s10396_s24 + $0x644] ss:$8 sps:$4 sm:$0xff]   ;;  %v6998_v47 = vld [vmem:[%s10396_s24 + $0x750] ss:$8 sps:$4 sm:$0xff]  }
  0xa3   :  { %4430 = vmatprep.subr.bf16.mxu1 %v6921_v49  ;;  %v7006_v49 = vld [vmem:[%s10396_s24 + $0x744] ss:$8 sps:$4 sm:$0xff]  }
  0xa5   :  { %4390 = vmatpush1.bf16.msra.mxu0 %v6916_v50  ;;  %v7001_v50 = vld [vmem:[%s10396_s24 + $0x640] ss:$8 sps:$4 sm:$0xff]  }
  0xa6   :  { %4391 = vmatprep.subr.bf16.mxu0 %v6924_v51  ;;  %4431 = vmatpush1.bf16.msra.mxu1 %v6919_v52  ;;  %v7009_v51 = vld [vmem:[%s10396_s24 + $0x634] ss:$8 sps:$4 sm:$0xff]   ;;  %v7004_v52 = vld [vmem:[%s10396_s24 + $0x740] ss:$8 sps:$4 sm:$0xff]  }
  0xa7   :  { %4432 = vmatprep.subr.bf16.mxu1 %v6927_v53  ;;  %v7012_v53 = vld [vmem:[%s10396_s24 + $0x734] ss:$8 sps:$4 sm:$0xff]  }
  0xa9   :  { %4392 = vmatpush1.bf16.msra.mxu0 %v6922_v54  ;;  %v7007_v54 = vld [vmem:[%s10396_s24 + $0x630] ss:$8 sps:$4 sm:$0xff]  }
  0xaa   :  { %4393 = vmatprep.subr.bf16.mxu0 %v6930_v55  ;;  %4433 = vmatpush1.bf16.msra.mxu1 %v6925_v56  ;;  %v7015_v55 = vld [vmem:[%s10396_s24 + $0x624] ss:$8 sps:$4 sm:$0xff]   ;;  %v7010_v56 = vld [vmem:[%s10396_s24 + $0x730] ss:$8 sps:$4 sm:$0xff]  }
  0xab   :  { %4434 = vmatprep.subr.bf16.mxu1 %v6933_v57  ;;  %v7018_v57 = vld [vmem:[%s10396_s24 + $0x724] ss:$8 sps:$4 sm:$0xff]  }
  0xad   :  { %4394 = vmatpush1.bf16.msra.mxu0 %v6928_v58  ;;  %v7013_v58 = vld [vmem:[%s10396_s24 + $0x620] ss:$8 sps:$4 sm:$0xff]  }
  0xae   :  { %4395 = vmatprep.subr.bf16.mxu0 %v6936_v59  ;;  %4435 = vmatpush1.bf16.msra.mxu1 %v6931_v60  ;;  %v7021_v59 = vld [vmem:[%s10396_s24 + $0x614] ss:$8 sps:$4 sm:$0xff]   ;;  %v7016_v60 = vld [vmem:[%s10396_s24 + $0x720] ss:$8 sps:$4 sm:$0xff]  }
  0xaf   :  { %4436 = vmatprep.subr.bf16.mxu1 %v6939_v61  ;;  %v7024_v61 = vld [vmem:[%s10396_s24 + $0x714] ss:$8 sps:$4 sm:$0xff]  }
  0xb1   :  { %4396 = vmatpush2.bf16.msra.mxu0 %v6934_v62  ;;  %v7019_v62 = vld [vmem:[%s10396_s24 + $0x610] ss:$8 sps:$4 sm:$0xff]  }
  0xb2   :  { %4397 = vmatprep.subr.bf16.mxu0 %v6942_v63  ;;  %4437 = vmatpush2.bf16.msra.mxu1 %v6937_v0  ;;  %v7027_v63 = vld [vmem:[%s10396_s24 + $0x604] ss:$8 sps:$4 sm:$0xff]   ;;  %v7022_v0 = vld [vmem:[%s10396_s24 + $0x710] ss:$8 sps:$4 sm:$0xff]  }
  0xb3   :  { %4438 = vmatprep.subr.bf16.mxu1 %v6945_v1  ;;  %v7030_v1 = vld [vmem:[%s10396_s24 + $0x704] ss:$8 sps:$4 sm:$0xff]  }
  0xb5   :  { %4398 = vmatpush2.bf16.msra.mxu0 %v6940_v2  ;;  %v7025_v2 = vld [vmem:[%s10396_s24 + $0x600] ss:$8 sps:$4 sm:$0xff]  }
  0xb6   :  { %4399 = vmatprep.subr.bf16.mxu0 %v6948_v3  ;;  %4439 = vmatpush2.bf16.msra.mxu1 %v6943_v4  ;;  %v7033_v3 = vld [vmem:[%s10396_s24 + $0x6f4] ss:$8 sps:$4 sm:$0xff]   ;;  %v7028_v4 = vld [vmem:[%s10396_s24 + $0x700] ss:$8 sps:$4 sm:$0xff]  }
  0xb7   :  { %4440 = vmatprep.subr.bf16.mxu1 %v6951_v5  ;;  %v7036_v5 = vld [vmem:[%s10396_s24 + $0x7f4] ss:$8 sps:$4 sm:$0xff]  }
  0xb9   :  { %4400 = vmatpush2.bf16.msra.mxu0 %v6946_v6  ;;  %v7031_v6 = vld [vmem:[%s10396_s24 + $0x6f0] ss:$8 sps:$4 sm:$0xff]  }
  0xba   :  { %4401 = vmatprep.subr.bf16.mxu0 %v6954_v7  ;;  %4441 = vmatpush2.bf16.msra.mxu1 %v6949_v8  ;;  %v7039_v7 = vld [vmem:[%s10396_s24 + $0x6e4] ss:$8 sps:$4 sm:$0xff]   ;;  %v7034_v8 = vld [vmem:[%s10396_s24 + $0x7f0] ss:$8 sps:$4 sm:$0xff]  }
  0xbb   :  { %4442 = vmatprep.subr.bf16.mxu1 %v6957_v9  ;;  %v7042_v9 = vld [vmem:[%s10396_s24 + $0x7e4] ss:$8 sps:$4 sm:$0xff]  }
  0xbd   :  { %4402 = vmatpush2.bf16.msra.mxu0 %v6952_v10  ;;  %v7037_v10 = vld [vmem:[%s10396_s24 + $0x6e0] ss:$8 sps:$4 sm:$0xff]  }
  0xbe   :  { %4403 = vmatprep.subr.bf16.mxu0 %v6960_v11  ;;  %4443 = vmatpush2.bf16.msra.mxu1 %v6955_v12  ;;  %v7045_v11 = vld [vmem:[%s10396_s24 + $0x6d4] ss:$8 sps:$4 sm:$0xff]   ;;  %v7040_v12 = vld [vmem:[%s10396_s24 + $0x7e0] ss:$8 sps:$4 sm:$0xff]  }
  0xbf   :  { %4444 = vmatprep.subr.bf16.mxu1 %v6963_v13  ;;  %v7048_v13 = vld [vmem:[%s10396_s24 + $0x7d4] ss:$8 sps:$4 sm:$0xff]  }
  0xc1   :  { %4404 = vmatpush2.bf16.msra.mxu0 %v6958_v14  ;;  %v7043_v14 = vld [vmem:[%s10396_s24 + $0x6d0] ss:$8 sps:$4 sm:$0xff]  }
  0xc2   :  { %4405 = vmatprep.subr.bf16.mxu0 %v6966_v15  ;;  %4445 = vmatpush2.bf16.msra.mxu1 %v6961_v16  ;;  %v7051_v15 = vld [vmem:[%s10396_s24 + $0x6c4] ss:$8 sps:$4 sm:$0xff]   ;;  %v7046_v16 = vld [vmem:[%s10396_s24 + $0x7d0] ss:$8 sps:$4 sm:$0xff]  }
  0xc3   :  { %4446 = vmatprep.subr.bf16.mxu1 %v6969_v17  ;;  %v7054_v17 = vld [vmem:[%s10396_s24 + $0x7c4] ss:$8 sps:$4 sm:$0xff]  }
  0xc5   :  { %4406 = vmatpush2.bf16.msra.mxu0 %v6964_v18  ;;  %v7049_v18 = vld [vmem:[%s10396_s24 + $0x6c0] ss:$8 sps:$4 sm:$0xff]  }
  0xc6   :  { %4407 = vmatprep.subr.bf16.mxu0 %v6972_v19  ;;  %4447 = vmatpush2.bf16.msra.mxu1 %v6967_v20  ;;  %v7057_v19 = vld [vmem:[%s10396_s24 + $0x6b4] ss:$8 sps:$4 sm:$0xff]   ;;  %v7052_v20 = vld [vmem:[%s10396_s24 + $0x7c0] ss:$8 sps:$4 sm:$0xff]  }
  0xc7   :  { %4448 = vmatprep.subr.bf16.mxu1 %v6975_v21  ;;  %v7060_v21 = vld [vmem:[%s10396_s24 + $0x7b4] ss:$8 sps:$4 sm:$0xff]  }
  0xc9   :  { %4408 = vmatpush2.bf16.msra.mxu0 %v6970_v23  ;;  %v7063_v23 = vld [vmem:[%s10396_s24 + $0x6a4] ss:$8 sps:$4 sm:$0xff]  }
  0xca   :  { %4409 = vmatprep.subr.bf16.mxu0 %v6978_v24  ;;  %4449 = vmatpush2.bf16.msra.mxu1 %v6973_v25  ;;  %v7058_v24 = vld [vmem:[%s10396_s24 + $0x7b0] ss:$8 sps:$4 sm:$0xff]   ;;  %v7066_v25 = vld [vmem:[%s10396_s24 + $0x7a4] ss:$8 sps:$4 sm:$0xff]  }
  0xcb   :  { %4450 = vmatprep.subr.bf16.mxu1 %v6981_v28  ;;  %v7069_v28 = vld [vmem:[%s10396_s24 + $0x694] ss:$8 sps:$4 sm:$0xff]  }
  0xcd   :  { %4410 = vmatpush2.bf16.msra.mxu0 %v6976_v29  ;;  %v7064_v29 = vld [vmem:[%s10396_s24 + $0x7a0] ss:$8 sps:$4 sm:$0xff]  }
  0xce   :  { %4461 = vmatprep.subr.bf16.mxu0 %v6984_v32  ;;  %4451 = vmatpush2.bf16.msra.mxu1 %v6979_v33  ;;  %v7072_v32 = vld [vmem:[%s10396_s24 + $0x794] ss:$8 sps:$4 sm:$0xff]   ;;  %v76_v33 = vld [vmem:[%s10397_s28 + $0x20] sm:$0xff] }
  0xcf   :  { %4502 = vmatprep.subr.bf16.mxu1 %v6988_v35  ;;  %v7067_v35 = vld [vmem:[%s10396_s24 + $0x690] ss:$8 sps:$4 sm:$0xff]  }
  0xd0   :  { %4412 = vmatmul.mubr.bf16.vlgmr.msra.gmra.mxu0 %v8291_v26  ;;  %v6992_v26 = vld [vmem:[%s10396_s24 + $0x760] ss:$8 sps:$4 sm:$0xff]  }
  0xd1   :  { %4462 = vmatpush1.bf16.msra.mxu0 %v6982_v36  ;;  %4493 = vmatprep.mubr.bf16.mxu0 %v820_v37  ;;  %v7075_v36 = vld [vmem:[%s10396_s24 + $0x684] ss:$8 sps:$4 sm:$0xff]   ;;  %v7070_v37 = vld [vmem:[%s10396_s24 + $0x790] ss:$8 sps:$4 sm:$0xff]  }
  0xd2   :  { %4453 = vmatmul.mubr.bf16.vlgmr.msra.gmra.mxu1 %v8303_v31  ;;  %4463 = vmatprep.subr.bf16.mxu0 %v6991_v38  ;;  %v6995_v31 = vld [vmem:[%s10396_s24 + $0x650] ss:$8 sps:$4 sm:$0xff]   ;;  %v822_v38 = vcombine.high %v76_v33, %v76_v33 }
  0xd3   :  { %4503 = vmatpush1.bf16.msra.mxu1 %v6986_v39  ;;  %4534 = vmatprep.mubr.bf16.mxu1 %v821_v40  ;;  %v7078_v39 = vld [vmem:[%s10396_s24 + $0x784] ss:$8 sps:$4 sm:$0xff]   ;;  %v7073_v40 = vld [vmem:[%s10396_s24 + $0x680] ss:$8 sps:$4 sm:$0xff]  }
  0xd4   :  { %4504 = vmatprep.subr.bf16.mxu1 %v6994_v41  ;;  %v735_v41 = vsub.s32 0, %v7982_v42 }
  0xd5   :  { %4464 = vmatpush1.bf16.msra.mxu0 %v6989_v43  ;;  %v8688_v43 = vrot.slane %v76_v33, %v7997_v48  ;;  %v7133_v33 = vld [vmem:[%s10396_s24 + $0x9f4] ss:$8 sps:$4 sm:$0xff]  }
  0xd6   :  { %4465 = vmatprep.subr.bf16.mxu0 %v6997_v44  ;;  %v731_v44 = vld [vmem:[%s10398_s7] sm:$0x3] }
  0xd7   :  { %4505 = vmatpush1.bf16.msra.mxu1 %v6992_v26  ;;  %v7081_v26 = vld [vmem:[%s10396_s24 + $0x874] ss:$8 sps:$4 sm:$0xff]  }
  0xd8   :  { %4506 = vmatprep.subr.bf16.mxu1 %v7000_v45  ;;  %v7076_v45 = vld [vmem:[%s10396_s24 + $0x780] ss:$8 sps:$4 sm:$0xff]  }
  0xd9   :  { %4466 = vmatpush1.bf16.msra.mxu0 %v6995_v31  ;;  %v739_v31 = vsub.s32 1, %v7982_v42  ;;  %v7088_v42 = vld [vmem:[%s10396_s24 + $0x864] ss:$8 sps:$4 sm:$0xff]  }
  0xda   :  { %4467 = vmatprep.subr.bf16.mxu0 %v7003_v46  ;;  %v8701_v46 = vrot.slane %v822_v38, %v7997_v48  ;;  %v7139_v38 = vld [vmem:[%s10396_s24 + $0x9e4] ss:$8 sps:$4 sm:$0xff]  }
  0xdb   :  { %4507 = vmatpush1.bf16.msra.mxu1 %v6998_v47  ;;  %v7085_v47 = vld [vmem:[%s10396_s24 + $0x974] ss:$8 sps:$4 sm:$0xff]  }
  0xdc   :  { %4508 = vmatprep.subr.bf16.mxu1 %v7006_v49  ;;  %v736_v49 = vrot.slane %v731_v44, %v735_v41  ;;  %v7140_v41 = vld [vmem:[%s10396_s24 + $0x8d0] ss:$8 sps:$4 sm:$0xff]  }
  0xdd   :  { %4468 = vmatpush1.bf16.msra.mxu0 %v7001_v50  ;;  %v7079_v50 = vld [vmem:[%s10396_s24 + $0x870] ss:$8 sps:$4 sm:$0xff]  }
  0xde   :  { %4469 = vmatprep.subr.bf16.mxu0 %v7009_v51  ;;  %v837_v51 = vcombine.high %v8688_v43, %v8688_v43 }
  0xdf   :  { %4509 = vmatpush1.bf16.msra.mxu1 %v7004_v52  ;;  %v740_v52 = vrot.slane %v731_v44, %v739_v31  ;;  %v7145_v44 = vld [vmem:[%s10396_s24 + $0x9d4] ss:$8 sps:$4 sm:$0xff]   ;;  %v7146_v31 = vld [vmem:[%s10396_s24 + $0x8c0] ss:$8 sps:$4 sm:$0xff]  }
  0xe0   :  { %4510 = vmatprep.subr.bf16.mxu1 %v7012_v53  ;;  %v7083_v53 = vld [vmem:[%s10396_s24 + $0x970] ss:$8 sps:$4 sm:$0xff]  }
  0xe1   :  { %4470 = vmatpush1.bf16.msra.mxu0 %v7007_v54  ;;  %v838_v54 = vcombine.high %v8701_v46, %v8701_v46 }
  0xe2   :  { %4471 = vmatprep.subr.bf16.mxu0 %v7015_v55 }
  0xe3   :  { %4511 = vmatpush1.bf16.msra.mxu1 %v7010_v56  ;;  %v7091_v56 = vld [vmem:[%s10396_s24 + $0x964] ss:$8 sps:$4 sm:$0xff]  }
  0xe4   :  { %4512 = vmatprep.subr.bf16.mxu1 %v7018_v57 }
  0xe5   :  { %4472 = vmatpush1.bf16.msra.mxu0 %v7013_v58  ;;  %v7086_v58 = vld [vmem:[%s10396_s24 + $0x860] ss:$8 sps:$4 sm:$0xff]  }
  0xe6   :  { %4473 = vmatprep.subr.bf16.mxu0 %v7021_v59 }
  0xe7   :  { %4513 = vmatpush1.bf16.msra.mxu1 %v7016_v60 }
  0xe8   :  { %4514 = vmatprep.subr.bf16.mxu1 %v7024_v61 }
  0xe9   :  { %4474 = vmatpush1.bf16.msra.mxu0 %v7019_v62 }
  0xea   :  { %4475 = vmatprep.subr.bf16.mxu0 %v7027_v63  ;;  %v7089_v63 = vld [vmem:[%s10396_s24 + $0x960] ss:$8 sps:$4 sm:$0xff]  }
  0xeb   :  { %4515 = vmatpush1.bf16.msra.mxu1 %v7022_v0 }
  0xec   :  { %4516 = vmatprep.subr.bf16.mxu1 %v7030_v1 }
  0xed   :  { %4476 = vmatpush1.bf16.msra.mxu0 %v7025_v2 }
  0xee   :  { %4477 = vmatprep.subr.bf16.mxu0 %v7033_v3  ;;  %v7092_v3 = vld [vmem:[%s10396_s24 + $0x850] ss:$8 sps:$4 sm:$0xff]  }
  0xef   :  { %4517 = vmatpush1.bf16.msra.mxu1 %v7028_v4  ;;  %v7095_v4 = vld [vmem:[%s10396_s24 + $0x950] ss:$8 sps:$4 sm:$0xff]  }
  0xf0   :  { %4518 = vmatprep.subr.bf16.mxu1 %v7036_v5 }
  0xf1   :  { %4478 = vmatpush2.bf16.msra.mxu0 %v7031_v6  ;;  %v7100_v6 = vld [vmem:[%s10396_s24 + $0x844] ss:$8 sps:$4 sm:$0xff]  }
  0xf2   :  { %4479 = vmatprep.subr.bf16.mxu0 %v7039_v7 }
  0xf3   :  { %4519 = vmatpush2.bf16.msra.mxu1 %v7034_v8  ;;  %v7098_v8 = vld [vmem:[%s10396_s24 + $0x840] ss:$8 sps:$4 sm:$0xff]  }
  0xf4   :  { %4520 = vmatprep.subr.bf16.mxu1 %v7042_v9  ;;  %v7103_v9 = vld [vmem:[%s10396_s24 + $0x944] ss:$8 sps:$4 sm:$0xff]  }
  0xf5   :  { %4480 = vmatpush2.bf16.msra.mxu0 %v7037_v10 }
  0xf6   :  { %4481 = vmatprep.subr.bf16.mxu0 %v7045_v11  ;;  %v7101_v11 = vld [vmem:[%s10396_s24 + $0x940] ss:$8 sps:$4 sm:$0xff]  }
  0xf7   :  { %4521 = vmatpush2.bf16.msra.mxu1 %v7040_v12  ;;  %v7106_v12 = vld [vmem:[%s10396_s24 + $0x834] ss:$8 sps:$4 sm:$0xff]  }
  0xf8   :  { %4522 = vmatprep.subr.bf16.mxu1 %v7048_v13  ;;  %v7104_v13 = vld [vmem:[%s10396_s24 + $0x830] ss:$8 sps:$4 sm:$0xff]  }
  0xf9   :  { %4482 = vmatpush2.bf16.msra.mxu0 %v7043_v14  ;;  %v7109_v14 = vld [vmem:[%s10396_s24 + $0x934] ss:$8 sps:$4 sm:$0xff]  }
  0xfa   :  { %4483 = vmatprep.subr.bf16.mxu0 %v7051_v15  ;;  %v7107_v15 = vld [vmem:[%s10396_s24 + $0x930] ss:$8 sps:$4 sm:$0xff]  }
  0xfb   :  { %4523 = vmatpush2.bf16.msra.mxu1 %v7046_v16  ;;  %v7112_v16 = vld [vmem:[%s10396_s24 + $0x824] ss:$8 sps:$4 sm:$0xff]  }
  0xfc   :  { %4524 = vmatprep.subr.bf16.mxu1 %v7054_v17  ;;  %v7110_v17 = vld [vmem:[%s10396_s24 + $0x820] ss:$8 sps:$4 sm:$0xff]  }
  0xfd   :  { %4484 = vmatpush2.bf16.msra.mxu0 %v7049_v18  ;;  %v7115_v18 = vld [vmem:[%s10396_s24 + $0x924] ss:$8 sps:$4 sm:$0xff]  }
  0xfe   :  { %4485 = vmatprep.subr.bf16.mxu0 %v7057_v19  ;;  %v7113_v19 = vld [vmem:[%s10396_s24 + $0x920] ss:$8 sps:$4 sm:$0xff]  }
  0xff   :  { %4525 = vmatpush2.bf16.msra.mxu1 %v7052_v20  ;;  %v7118_v20 = vld [vmem:[%s10396_s24 + $0x814] ss:$8 sps:$4 sm:$0xff]  }
 0x100   :  { %4526 = vmatprep.subr.bf16.mxu1 %v7060_v21  ;;  %v7116_v21 = vld [vmem:[%s10396_s24 + $0x810] ss:$8 sps:$4 sm:$0xff]  }
 0x101   :  { %4486 = vmatpush2.bf16.msra.mxu0 %v7055_v22  ;;  %v7121_v22 = vld [vmem:[%s10396_s24 + $0x914] ss:$8 sps:$4 sm:$0xff]  }
 0x102   :  { %4487 = vmatprep.subr.bf16.mxu0 %v7063_v23  ;;  %v7119_v23 = vld [vmem:[%s10396_s24 + $0x910] ss:$8 sps:$4 sm:$0xff]  }
 0x103   :  { %4527 = vmatpush2.bf16.msra.mxu1 %v7058_v24  ;;  %v7124_v24 = vld [vmem:[%s10396_s24 + $0x804] ss:$8 sps:$4 sm:$0xff]  }
 0x104   :  { %4528 = vmatprep.subr.bf16.mxu1 %v7066_v25  ;;  %v7122_v25 = vld [vmem:[%s10396_s24 + $0x800] ss:$8 sps:$4 sm:$0xff]  }
 0x105   :  { %4488 = vmatpush2.bf16.msra.mxu0 %v7061_v27  ;;  %v7127_v27 = vld [vmem:[%s10396_s24 + $0x904] ss:$8 sps:$4 sm:$0xff]  }
 0x106   :  { %4489 = vmatprep.subr.bf16.mxu0 %v7069_v28  ;;  %v7125_v28 = vld [vmem:[%s10396_s24 + $0x900] ss:$8 sps:$4 sm:$0xff]  }
 0x107   :  { %4529 = vmatpush2.bf16.msra.mxu1 %v7064_v29  ;;  %v7130_v29 = vld [vmem:[%s10396_s24 + $0x8f4] ss:$8 sps:$4 sm:$0xff]  }
 0x108   :  { %4530 = vmatprep.subr.bf16.mxu1 %v7072_v32  ;;  %v7128_v32 = vld [vmem:[%s10396_s24 + $0x8f0] ss:$8 sps:$4 sm:$0xff]  }
 0x109   :  { %4490 = vmatpush2.bf16.msra.mxu0 %v7067_v35  ;;  %v7131_v35 = vld [vmem:[%s10396_s24 + $0x9f0] ss:$8 sps:$4 sm:$0xff]  }
 0x10a   :  { %4491 = vmatprep.subr.bf16.mxu0 %v7075_v36  ;;  %v7136_v36 = vld [vmem:[%s10396_s24 + $0x8e4] ss:$8 sps:$4 sm:$0xff]  }
 0x10b   :  { %4531 = vmatpush2.bf16.msra.mxu1 %v7070_v37  ;;  %v7134_v37 = vld [vmem:[%s10396_s24 + $0x8e0] ss:$8 sps:$4 sm:$0xff]  }
 0x10c   :  { %4532 = vmatprep.subr.bf16.mxu1 %v7078_v39  ;;  %v7137_v39 = vld [vmem:[%s10396_s24 + $0x9e0] ss:$8 sps:$4 sm:$0xff]  }
 0x10d   :  { %4492 = vmatpush2.bf16.msra.mxu0 %v7073_v40  ;;  %v7142_v40 = vld [vmem:[%s10396_s24 + $0x8d4] ss:$8 sps:$4 sm:$0xff]  }
 0x10e   :  { %4543 = vmatprep.subr.bf16.mxu0 %v7081_v26  ;;  %v7143_v26 = vld [vmem:[%s10396_s24 + $0x9d0] ss:$8 sps:$4 sm:$0xff]  }
 0x10f   :  { %4533 = vmatpush2.bf16.msra.mxu1 %v7076_v45  ;;  %v7148_v45 = vld [vmem:[%s10396_s24 + $0x8c4] ss:$8 sps:$4 sm:$0xff]  }
 0x110   :  { %v4249_v55 = vpop.f32.mrf.mxu0  ;;  %4494 = vmatmul.mubr.bf16.vlgmr.msra.gmra.mxu0 %v8480_v30  ;;  %4584 = vmatprep.subr.bf16.mxu1 %v7085_v47  ;;  %v7094_v30 = vld [vmem:[%s10396_s24 + $0x854] ss:$8 sps:$4 sm:$0xff]   ;;  %v7151_v47 = vld [vmem:[%s10396_s24 + $0x9c4] ss:$8 sps:$4 sm:$0xff]  }
 0x111   :  { %v4250_v57 = vadd.f32 %v4249_v55, %v736_v49  ;;  %4544 = vmatpush1.bf16.msra.mxu0 %v7079_v50  ;;  %4575 = vmatprep.mubr.bf16.mxu0 %v837_v51  ;;  %v4290_v60 = vpop.f32.mrf.mxu1  ;;  %v7149_v49 = vld [vmem:[%s10396_s24 + $0x9c0] ss:$8 sps:$4 sm:$0xff]   ;;  %v7154_v50 = vld [vmem:[%s10396_s24 + $0x8b4] ss:$8 sps:$4 sm:$0xff]   ;;  %v7152_v51 = vld [vmem:[%s10396_s24 + $0x8b0] ss:$8 sps:$4 sm:$0xff]  }
 0x112   :  { %v4251_v59 = vpop.f32.mrf.mxu0  ;;  %4535 = vmatmul.mubr.bf16.vlgmr.msra.gmra.mxu1 %v8489_v34  ;;  %4545 = vmatprep.subr.bf16.mxu0 %v7088_v42  ;;  %v7097_v34 = vld [vmem:[%s10396_s24 + $0x954] ss:$8 sps:$4 sm:$0xff]   ;;  %v7163_v55 = vld [vmem:[%s10396_s24 + $0x9a4] ss:$8 sps:$4 sm:$0xff]  }
 0x113   :  { %v4252_v61 = vadd.f32 %v4251_v59, %v740_v52  ;;  %v8730_v62 = vadd.f32 %v4290_v60, %v4250_v57  ;;  %4585 = vmatpush1.bf16.msra.mxu1 %v7083_v53  ;;  %4616 = vmatprep.mubr.bf16.mxu1 %v838_v54  ;;  %v4292_v1 = vpop.f32.mrf.mxu1  ;;  %v7157_v42 = vld [vmem:[%s10396_s24 + $0x9b4] ss:$8 sps:$4 sm:$0xff]   ;;  %v7155_v52 = vld [vmem:[%s10396_s24 + $0x9b0] ss:$8 sps:$4 sm:$0xff]   ;;  %v7160_v53 = vld [vmem:[%s10396_s24 + $0x8a4] ss:$8 sps:$4 sm:$0xff]  }
 0x114   :  { %v4253_v0 = vpop.f32.mrf.mxu0  ;;  %4586 = vmatprep.subr.bf16.mxu1 %v7091_v56  ;;  %v7158_v54 = vld [vmem:[%s10396_s24 + $0x8a0] ss:$8 sps:$4 sm:$0xff]   ;;  %v7166_v57 = vld [vmem:[%s10396_s24 + $0x894] ss:$8 sps:$4 sm:$0xff]   ;;  %v7164_v60 = vld [vmem:[%s10396_s24 + $0x890] ss:$8 sps:$4 sm:$0xff]  }
 0x115   :  { %v8738_v2 = vadd.f32 %v4292_v1, %v4252_v61  ;;  %4546 = vmatpush1.bf16.msra.mxu0 %v7086_v58  ;;  %v4294_v7 = vpop.f32.mrf.mxu1  ;;  %v7161_v56 = vld [vmem:[%s10396_s24 + $0x9a0] ss:$8 sps:$4 sm:$0xff]   ;;  %v7169_v58 = vld [vmem:[%s10396_s24 + $0x994] ss:$8 sps:$4 sm:$0xff]   ;;  %v7167_v61 = vld [vmem:[%s10396_s24 + $0x990] ss:$8 sps:$4 sm:$0xff]  }
 0x116   :  { %v4254_v5 = vpop.f32.mrf.mxu0  ;;  %4547 = vmatprep.subr.bf16.mxu0 %v7094_v30  ;;  %v77_v59 = vld [vmem:[%s10397_s28 + $0x28] sm:$0xff]  ;;  %v7182_v7 = vld [vmem:[%s10396_s24 + $0xb74] ss:$8 sps:$4 sm:$0xff]  }
 0x117   :  { %4587 = vmatpush1.bf16.msra.mxu1 %v7089_v63  ;;  %v4295_v10 = vpop.f32.mrf.mxu1  ;;  %v7172_v30 = vld [vmem:[%s10396_s24 + $0x884] ss:$8 sps:$4 sm:$0xff]   ;;  %v839_v63 = vcombine.high %v77_v59, %v77_v59  ;;  %v7170_v1 = vld [vmem:[%s10396_s24 + $0x880] ss:$8 sps:$4 sm:$0xff]   ;;  %v7176_v5 = vld [vmem:[%s10396_s24 + $0xa70] ss:$8 sps:$4 sm:$0xff]  }
 0x118   :  { %4588 = vmatprep.subr.bf16.mxu1 %v7097_v34  ;;  %v7175_v0 = vld [vmem:[%s10396_s24 + $0x984] ss:$8 sps:$4 sm:$0xff]   ;;  %v8903_v34 = vrot.slane %v77_v59, %v7997_v48  ;;  %v7234_v59 = vld [vmem:[%s10396_s24 + $0xbe0] ss:$8 sps:$4 sm:$0xff]  }
 0x119   :  { %4548 = vmatpush1.bf16.msra.mxu0 %v7092_v3  ;;  %v7173_v3 = vld [vmem:[%s10396_s24 + $0x980] ss:$8 sps:$4 sm:$0xff]   ;;  %v7185_v10 = vld [vmem:[%s10396_s24 + $0xa64] ss:$8 sps:$4 sm:$0xff]  }
 0x11a   :  { %4549 = vmatprep.subr.bf16.mxu0 %v7100_v6  ;;  %v8915_v6 = vrot.slane %v839_v63, %v7997_v48  ;;  %v7240_v63 = vld [vmem:[%s10396_s24 + $0xbd0] ss:$8 sps:$4 sm:$0xff]  }
 0x11b   :  { %4589 = vmatpush1.bf16.msra.mxu1 %v7095_v4  ;;  %v7178_v4 = vld [vmem:[%s10396_s24 + $0xa74] ss:$8 sps:$4 sm:$0xff]  }
 0x11c   :  { %4590 = vmatprep.subr.bf16.mxu1 %v7103_v9  ;;  %v854_v9 = vcombine.high %v8903_v34, %v8903_v34 }
 0x11d   :  { %4550 = vmatpush1.bf16.msra.mxu0 %v7098_v8  ;;  %v7180_v8 = vld [vmem:[%s10396_s24 + $0xb70] ss:$8 sps:$4 sm:$0xff]  }
 0x11e   :  { %4551 = vmatprep.subr.bf16.mxu0 %v7106_v12  ;;  %v855_v12 = vcombine.high %v8915_v6, %v8915_v6 }
 0x11f   :  { %4591 = vmatpush1.bf16.msra.mxu1 %v7101_v11  ;;  %v7183_v11 = vld [vmem:[%s10396_s24 + $0xa60] ss:$8 sps:$4 sm:$0xff]  }
 0x120   :  { %4592 = vmatprep.subr.bf16.mxu1 %v7109_v14  ;;  %v7188_v14 = vld [vmem:[%s10396_s24 + $0xb64] ss:$8 sps:$4 sm:$0xff]  }
 0x121   :  { %4552 = vmatpush1.bf16.msra.mxu0 %v7104_v13 }
 0x122   :  { %4553 = vmatprep.subr.bf16.mxu0 %v7112_v16  ;;  %v7186_v16 = vld [vmem:[%s10396_s24 + $0xb60] ss:$8 sps:$4 sm:$0xff]  }
 0x123   :  { %4593 = vmatpush1.bf16.msra.mxu1 %v7107_v15 }
 0x124   :  { %4594 = vmatprep.subr.bf16.mxu1 %v7115_v18 }
 0x125   :  { %4554 = vmatpush1.bf16.msra.mxu0 %v7110_v17 }
 0x126   :  { %4555 = vmatprep.subr.bf16.mxu0 %v7118_v20 }
 0x127   :  { %4595 = vmatpush1.bf16.msra.mxu1 %v7113_v19 }
 0x128   :  { %4596 = vmatprep.subr.bf16.mxu1 %v7121_v22 }
 0x129   :  { %4556 = vmatpush1.bf16.msra.mxu0 %v7116_v21 }
 0x12a   :  { %4557 = vmatprep.subr.bf16.mxu0 %v7124_v24 }
 0x12b   :  { %4597 = vmatpush1.bf16.msra.mxu1 %v7119_v23 }
 0x12c   :  { %4598 = vmatprep.subr.bf16.mxu1 %v7127_v27 }
 0x12d   :  { %4558 = vmatpush1.bf16.msra.mxu0 %v7122_v25  ;;  %v7197_v25 = vld [vmem:[%s10396_s24 + $0xa44] ss:$8 sps:$4 sm:$0xff]  }
 0x12e   :  { %4559 = vmatprep.subr.bf16.mxu0 %v7130_v29  ;;  %v7200_v29 = vld [vmem:[%s10396_s24 + $0xb44] ss:$8 sps:$4 sm:$0xff]  }
 0x12f   :  { %4599 = vmatpush1.bf16.msra.mxu1 %v7125_v28  ;;  %v7195_v28 = vld [vmem:[%s10396_s24 + $0xa40] ss:$8 sps:$4 sm:$0xff]  }
 0x130   :  { %4600 = vmatprep.subr.bf16.mxu1 %v7133_v33  ;;  %v7198_v33 = vld [vmem:[%s10396_s24 + $0xb40] ss:$8 sps:$4 sm:$0xff]  }
 0x131   :  { %4560 = vmatpush2.bf16.msra.mxu0 %v7128_v32 }
 0x132   :  { %4561 = vmatprep.subr.bf16.mxu0 %v7136_v36  ;;  %v7201_v36 = vld [vmem:[%s10396_s24 + $0xa30] ss:$8 sps:$4 sm:$0xff]  }
 0x133   :  { %4601 = vmatpush2.bf16.msra.mxu1 %v7131_v35  ;;  %v7203_v35 = vld [vmem:[%s10396_s24 + $0xa34] ss:$8 sps:$4 sm:$0xff]  }
 0x134   :  { %4602 = vmatprep.subr.bf16.mxu1 %v7139_v38  ;;  %v7204_v38 = vld [vmem:[%s10396_s24 + $0xb30] ss:$8 sps:$4 sm:$0xff]  }
 0x135   :  { %4562 = vmatpush2.bf16.msra.mxu0 %v7134_v37  ;;  %v7206_v37 = vld [vmem:[%s10396_s24 + $0xb34] ss:$8 sps:$4 sm:$0xff]  }
 0x136   :  { %4563 = vmatprep.subr.bf16.mxu0 %v7142_v40  ;;  %v7207_v40 = vld [vmem:[%s10396_s24 + $0xa20] ss:$8 sps:$4 sm:$0xff]  }
 0x137   :  { %4603 = vmatpush2.bf16.msra.mxu1 %v7137_v39  ;;  %v7209_v39 = vld [vmem:[%s10396_s24 + $0xa24] ss:$8 sps:$4 sm:$0xff]  }
 0x138   :  { %4604 = vmatprep.subr.bf16.mxu1 %v7145_v44  ;;  %v7210_v44 = vld [vmem:[%s10396_s24 + $0xb20] ss:$8 sps:$4 sm:$0xff]  }
 0x139   :  { %4564 = vmatpush2.bf16.msra.mxu0 %v7140_v41  ;;  %v7212_v41 = vld [vmem:[%s10396_s24 + $0xb24] ss:$8 sps:$4 sm:$0xff]  }
 0x13a   :  { %4565 = vmatprep.subr.bf16.mxu0 %v7148_v45  ;;  %v7213_v45 = vld [vmem:[%s10396_s24 + $0xa10] ss:$8 sps:$4 sm:$0xff]  }
 0x13b   :  { %4605 = vmatpush2.bf16.msra.mxu1 %v7143_v26  ;;  %v7215_v26 = vld [vmem:[%s10396_s24 + $0xa14] ss:$8 sps:$4 sm:$0xff]  }
 0x13c   :  { %4606 = vmatprep.subr.bf16.mxu1 %v7151_v47  ;;  %v7216_v47 = vld [vmem:[%s10396_s24 + $0xb10] ss:$8 sps:$4 sm:$0xff]  }
 0x13d   :  { %4566 = vmatpush2.bf16.msra.mxu0 %v7146_v31  ;;  %v7218_v31 = vld [vmem:[%s10396_s24 + $0xb14] ss:$8 sps:$4 sm:$0xff]  }
 0x13e   :  { %4567 = vmatprep.subr.bf16.mxu0 %v7154_v50  ;;  %v7219_v50 = vld [vmem:[%s10396_s24 + $0xa00] ss:$8 sps:$4 sm:$0xff]  }
 0x13f   :  { %4607 = vmatpush2.bf16.msra.mxu1 %v7149_v49  ;;  %v7221_v49 = vld [vmem:[%s10396_s24 + $0xa04] ss:$8 sps:$4 sm:$0xff]  }
 0x140   :  { %4608 = vmatprep.subr.bf16.mxu1 %v7157_v42  ;;  %v7222_v42 = vld [vmem:[%s10396_s24 + $0xb00] ss:$8 sps:$4 sm:$0xff]  }
 0x141   :  { %4568 = vmatpush2.bf16.msra.mxu0 %v7152_v51  ;;  %v7224_v51 = vld [vmem:[%s10396_s24 + $0xb04] ss:$8 sps:$4 sm:$0xff]  }
 0x142   :  { %4569 = vmatprep.subr.bf16.mxu0 %v7160_v53  ;;  %v7225_v53 = vld [vmem:[%s10396_s24 + $0xaf0] ss:$8 sps:$4 sm:$0xff]  }
 0x143   :  { %4609 = vmatpush2.bf16.msra.mxu1 %v7155_v52  ;;  %v7227_v52 = vld [vmem:[%s10396_s24 + $0xaf4] ss:$8 sps:$4 sm:$0xff]  }
 0x144   :  { %4610 = vmatprep.subr.bf16.mxu1 %v7163_v55  ;;  %v7228_v55 = vld [vmem:[%s10396_s24 + $0xbf0] ss:$8 sps:$4 sm:$0xff]  }
 0x145   :  { %4570 = vmatpush2.bf16.msra.mxu0 %v7158_v54  ;;  %v7230_v54 = vld [vmem:[%s10396_s24 + $0xbf4] ss:$8 sps:$4 sm:$0xff]  }
 0x146   :  { %4571 = vmatprep.subr.bf16.mxu0 %v7166_v57  ;;  %v7231_v57 = vld [vmem:[%s10396_s24 + $0xae0] ss:$8 sps:$4 sm:$0xff]  }
 0x147   :  { %4611 = vmatpush2.bf16.msra.mxu1 %v7161_v56  ;;  %v7233_v56 = vld [vmem:[%s10396_s24 + $0xae4] ss:$8 sps:$4 sm:$0xff]  }
 0x148   :  { %4612 = vmatprep.subr.bf16.mxu1 %v7169_v58  ;;  %v7236_v58 = vld [vmem:[%s10396_s24 + $0xbe4] ss:$8 sps:$4 sm:$0xff]  }
 0x149   :  { %4572 = vmatpush2.bf16.msra.mxu0 %v7164_v60  ;;  %v7239_v60 = vld [vmem:[%s10396_s24 + $0xad4] ss:$8 sps:$4 sm:$0xff]  }
 0x14a   :  { %4573 = vmatprep.subr.bf16.mxu0 %v7172_v30  ;;  %v7237_v30 = vld [vmem:[%s10396_s24 + $0xad0] ss:$8 sps:$4 sm:$0xff]  }
 0x14b   :  { %4613 = vmatpush2.bf16.msra.mxu1 %v7167_v61  ;;  %v7242_v61 = vld [vmem:[%s10396_s24 + $0xbd4] ss:$8 sps:$4 sm:$0xff]  }
 0x14c   :  { %4614 = vmatprep.subr.bf16.mxu1 %v7175_v0  ;;  %v7245_v0 = vld [vmem:[%s10396_s24 + $0xac4] ss:$8 sps:$4 sm:$0xff]  }
 0x14d   :  { %4574 = vmatpush2.bf16.msra.mxu0 %v7170_v1  ;;  %v7243_v1 = vld [vmem:[%s10396_s24 + $0xac0] ss:$8 sps:$4 sm:$0xff]  }
 0x14e   :  { %4625 = vmatprep.subr.bf16.mxu0 %v7178_v4  ;;  %v7246_v4 = vld [vmem:[%s10396_s24 + $0xbc0] ss:$8 sps:$4 sm:$0xff]  }
 0x14f   :  { %4615 = vmatpush2.bf16.msra.mxu1 %v7173_v3  ;;  %v7248_v3 = vld [vmem:[%s10396_s24 + $0xbc4] ss:$8 sps:$4 sm:$0xff]  }
 0x150   :  { %v4331_v13 = vpop.f32.mrf.mxu0  ;;  %4576 = vmatmul.mubr.bf16.vlgmr.msra.gmra.mxu0 %v8688_v43  ;;  %4666 = vmatprep.subr.bf16.mxu1 %v7182_v7  ;;  %v7191_v43 = vld [vmem:[%s10396_s24 + $0xa54] ss:$8 sps:$4 sm:$0xff]   ;;  %v7249_v7 = vld [vmem:[%s10396_s24 + $0xab0] ss:$8 sps:$4 sm:$0xff]  }
 0x151   :  { %v4332_v15 = vadd.f32 %v4331_v13, %v8730_v62  ;;  %4626 = vmatpush1.bf16.msra.mxu0 %v7176_v5  ;;  %4657 = vmatprep.mubr.bf16.mxu0 %v854_v9  ;;  %v4372_v18 = vpop.f32.mrf.mxu1  ;;  %v7189_v62 = vld [vmem:[%s10396_s24 + $0xa50] ss:$8 sps:$4 sm:$0xff]   ;;  %v7251_v5 = vld [vmem:[%s10396_s24 + $0xab4] ss:$8 sps:$4 sm:$0xff]   ;;  %v7258_v13 = vld [vmem:[%s10396_s24 + $0xba0] ss:$8 sps:$4 sm:$0xff]  }
 0x152   :  { %v4333_v17 = vpop.f32.mrf.mxu0  ;;  %4617 = vmatmul.mubr.bf16.vlgmr.msra.gmra.mxu1 %v8701_v46  ;;  %4627 = vmatprep.subr.bf16.mxu0 %v7185_v10  ;;  %v7194_v46 = vld [vmem:[%s10396_s24 + $0xb54] ss:$8 sps:$4 sm:$0xff]   ;;  %v7252_v9 = vld [vmem:[%s10396_s24 + $0xbb0] ss:$8 sps:$4 sm:$0xff]   ;;  %v7257_v10 = vld [vmem:[%s10396_s24 + $0xaa4] ss:$8 sps:$4 sm:$0xff]  }
 0x153   :  { %v4334_v19 = vadd.f32 %v4333_v17, %v8738_v2  ;;  %v8946_v20 = vadd.f32 %v4372_v18, %v4332_v15  ;;  %4667 = vmatpush1.bf16.msra.mxu1 %v7180_v8  ;;  %4698 = vmatprep.mubr.bf16.mxu1 %v855_v12  ;;  %v4374_v22 = vpop.f32.mrf.mxu1  ;;  %v7192_v2 = vld [vmem:[%s10396_s24 + $0xb50] ss:$8 sps:$4 sm:$0xff]   ;;  %v7254_v8 = vld [vmem:[%s10396_s24 + $0xbb4] ss:$8 sps:$4 sm:$0xff]   ;;  %v7260_v12 = vld [vmem:[%s10396_s24 + $0xba4] ss:$8 sps:$4 sm:$0xff]  }
 0x154   :  { %v4335_v21 = vpop.f32.mrf.mxu0  ;;  %4668 = vmatprep.subr.bf16.mxu1 %v7188_v14  ;;  %v7263_v14 = vld [vmem:[%s10396_s24 + $0xa94] ss:$8 sps:$4 sm:$0xff]   ;;  %v7261_v17 = vld [vmem:[%s10396_s24 + $0xa90] ss:$8 sps:$4 sm:$0xff]   ;;  %v7269_v18 = vld [vmem:[%s10396_s24 + $0xa84] ss:$8 sps:$4 sm:$0xff]  }
 0x155   :  { %v8954_v23 = vadd.f32 %v4374_v22, %v4334_v19  ;;  %4628 = vmatpush1.bf16.msra.mxu0 %v7183_v11  ;;  %v4376_v27 = vpop.f32.mrf.mxu1  ;;  %v7255_v11 = vld [vmem:[%s10396_s24 + $0xaa0] ss:$8 sps:$4 sm:$0xff]   ;;  %v7266_v15 = vld [vmem:[%s10396_s24 + $0xb94] ss:$8 sps:$4 sm:$0xff]  }
 0x156   :  { %v4336_v24 = vpop.f32.mrf.mxu0  ;;  %4629 = vmatprep.subr.bf16.mxu0 %v7191_v43  ;;  %v7264_v43 = vld [vmem:[%s10396_s24 + $0xb90] ss:$8 sps:$4 sm:$0xff]   ;;  %v7267_v21 = vld [vmem:[%s10396_s24 + $0xa80] ss:$8 sps:$4 sm:$0xff]  }
 0x157   :  { %4669 = vmatpush1.bf16.msra.mxu1 %v7186_v16  ;;  %v4377_v32 = vpop.f32.mrf.mxu1  ;;  %v78_v16 = vld [vmem:[%s10397_s28 + $0x30] sm:$0xff] }
 0x158   :  { %4670 = vmatprep.subr.bf16.mxu1 %v7194_v46  ;;  %v856_v19 = vcombine.high %v78_v16, %v78_v16  ;;  %v9116_v22 = vrot.slane %v78_v16, %v7997_v48  ;;  %v7275_v46 = vld [vmem:[%s10396_s24 + $0xc74] ss:$8 sps:$4 sm:$0xff]   ;;  %v7273_v27 = vld [vmem:[%s10396_s24 + $0xc70] ss:$8 sps:$4 sm:$0xff]  }
 0x159   :  { %4630 = vmatpush1.bf16.msra.mxu0 %v7189_v62  ;;  %v7272_v62 = vld [vmem:[%s10396_s24 + $0xb84] ss:$8 sps:$4 sm:$0xff]   ;;  %v7277_v32 = vld [vmem:[%s10396_s24 + $0xd70] ss:$8 sps:$4 sm:$0xff]  }
 0x15a   :  { %4631 = vmatprep.subr.bf16.mxu0 %v7197_v25  ;;  %v9125_v24 = vrot.slane %v856_v19, %v7997_v48  ;;  %v7279_v25 = vld [vmem:[%s10396_s24 + $0xd74] ss:$8 sps:$4 sm:$0xff]  }
 0x15b   :  { %4671 = vmatpush1.bf16.msra.mxu1 %v7192_v2  ;;  %v7270_v2 = vld [vmem:[%s10396_s24 + $0xb80] ss:$8 sps:$4 sm:$0xff]  }
 0x15c   :  { %4672 = vmatprep.subr.bf16.mxu1 %v7200_v29  ;;  %v7282_v29 = vld [vmem:[%s10396_s24 + $0xc64] ss:$8 sps:$4 sm:$0xff]  }
 0x15d   :  { %4632 = vmatpush1.bf16.msra.mxu0 %v7195_v28  ;;  %v871_v28 = vcombine.high %v9116_v22, %v9116_v22 }
 0x15e   :  { %4633 = vmatprep.subr.bf16.mxu0 %v7203_v35 }
 0x15f   :  { %4673 = vmatpush1.bf16.msra.mxu1 %v7198_v33  ;;  %v872_v33 = vcombine.high %v9125_v24, %v9125_v24 }
 0x160   :  { %4674 = vmatprep.subr.bf16.mxu1 %v7206_v37 }
 0x161   :  { %4634 = vmatpush1.bf16.msra.mxu0 %v7201_v36  ;;  %v7285_v36 = vld [vmem:[%s10396_s24 + $0xd64] ss:$8 sps:$4 sm:$0xff]  }
 0x162   :  { %4635 = vmatprep.subr.bf16.mxu0 %v7209_v39 }
 0x163   :  { %4675 = vmatpush1.bf16.msra.mxu1 %v7204_v38  ;;  %v7280_v38 = vld [vmem:[%s10396_s24 + $0xc60] ss:$8 sps:$4 sm:$0xff]  }
 0x164   :  { %4676 = vmatprep.subr.bf16.mxu1 %v7212_v41 }
 0x165   :  { %4636 = vmatpush1.bf16.msra.mxu0 %v7207_v40 }
 0x166   :  { %4637 = vmatprep.subr.bf16.mxu0 %v7215_v26 }
 0x167   :  { %4677 = vmatpush1.bf16.msra.mxu1 %v7210_v44 }
 0x168   :  { %4678 = vmatprep.subr.bf16.mxu1 %v7218_v31 }
 0x169   :  { %4638 = vmatpush1.bf16.msra.mxu0 %v7213_v45 }
 0x16a   :  { %4639 = vmatprep.subr.bf16.mxu0 %v7221_v49  ;;  %v7294_v49 = vld [vmem:[%s10396_s24 + $0xc44] ss:$8 sps:$4 sm:$0xff]  }
 0x16b   :  { %4679 = vmatpush1.bf16.msra.mxu1 %v7216_v47 }
 0x16c   :  { %4680 = vmatprep.subr.bf16.mxu1 %v7224_v51 }
 0x16d   :  { %4640 = vmatpush1.bf16.msra.mxu0 %v7219_v50 }
 0x16e   :  { %4641 = vmatprep.subr.bf16.mxu0 %v7227_v52 }
 0x16f   :  { %4681 = vmatpush1.bf16.msra.mxu1 %v7222_v42 }
 0x170   :  { %4682 = vmatprep.subr.bf16.mxu1 %v7230_v54 }
 0x171   :  { %4642 = vmatpush2.bf16.msra.mxu0 %v7225_v53 }
 0x172   :  { %4643 = vmatprep.subr.bf16.mxu0 %v7233_v56 }
 0x173   :  { %4683 = vmatpush2.bf16.msra.mxu1 %v7228_v55 }
 0x174   :  { %4684 = vmatprep.subr.bf16.mxu1 %v7236_v58 }
 0x175   :  { %4644 = vmatpush2.bf16.msra.mxu0 %v7231_v57 }
 0x176   :  { %4645 = vmatprep.subr.bf16.mxu0 %v7239_v60 }
 0x177   :  { %4685 = vmatpush2.bf16.msra.mxu1 %v7234_v59 }
 0x178   :  { %4686 = vmatprep.subr.bf16.mxu1 %v7242_v61 }
 0x179   :  { %4646 = vmatpush2.bf16.msra.mxu0 %v7237_v30 }
 0x17a   :  { %4647 = vmatprep.subr.bf16.mxu0 %v7245_v0 }
 0x17b   :  { %4687 = vmatpush2.bf16.msra.mxu1 %v7240_v63 }
 0x17c   :  { %4688 = vmatprep.subr.bf16.mxu1 %v7248_v3 }
 0x17d   :  { %4648 = vmatpush2.bf16.msra.mxu0 %v7243_v1 }
 0x17e   :  { %4649 = vmatprep.subr.bf16.mxu0 %v7251_v5 }
 0x17f   :  { %4689 = vmatpush2.bf16.msra.mxu1 %v7246_v4 }
 0x180   :  { %4690 = vmatprep.subr.bf16.mxu1 %v7254_v8 }
 0x181   :  { %4650 = vmatpush2.bf16.msra.mxu0 %v7249_v7 }
 0x182   :  { %4651 = vmatprep.subr.bf16.mxu0 %v7257_v10 }
 0x183   :  { %4691 = vmatpush2.bf16.msra.mxu1 %v7252_v9 }
 0x184   :  { %4692 = vmatprep.subr.bf16.mxu1 %v7260_v12 }
 0x185   :  { %4652 = vmatpush2.bf16.msra.mxu0 %v7255_v11 }
 0x186   :  { %4653 = vmatprep.subr.bf16.mxu0 %v7263_v14 }
 0x187   :  { %4693 = vmatpush2.bf16.msra.mxu1 %v7258_v13 }
 0x188   :  { %4694 = vmatprep.subr.bf16.mxu1 %v7266_v15 }
 0x189   :  { %4654 = vmatpush2.bf16.msra.mxu0 %v7261_v17 }
 0x18a   :  { %4655 = vmatprep.subr.bf16.mxu0 %v7269_v18 }
 0x18b   :  { %4695 = vmatpush2.bf16.msra.mxu1 %v7264_v43 }
 0x18c   :  { %4696 = vmatprep.subr.bf16.mxu1 %v7272_v62 }
 0x18d   :  { %4656 = vmatpush2.bf16.msra.mxu0 %v7267_v21 }
 0x18e   :  { %4707 = vmatprep.subr.bf16.mxu0 %v7275_v46 }
 0x18f   :  { %4697 = vmatpush2.bf16.msra.mxu1 %v7270_v2 }
 0x190   :  { %v4413_v35 = vpop.f32.mrf.mxu0  ;;  %4658 = vmatmul.mubr.bf16.vlgmr.msra.gmra.mxu0 %v8903_v34  ;;  %4748 = vmatprep.subr.bf16.mxu1 %v7279_v25  ;;  %v7288_v34 = vld [vmem:[%s10396_s24 + $0xc54] ss:$8 sps:$4 sm:$0xff]  }
 0x191   :  { %v4414_v37 = vadd.f32 %v4413_v35, %v8946_v20  ;;  %4708 = vmatpush1.bf16.msra.mxu0 %v7273_v27  ;;  %4739 = vmatprep.mubr.bf16.mxu0 %v871_v28  ;;  %v7283_v20 = vld [vmem:[%s10396_s24 + $0xd60] ss:$8 sps:$4 sm:$0xff]  }
 0x192   :  { %v4415_v39 = vpop.f32.mrf.mxu0  ;;  %v4454_v40 = vpop.f32.mrf.mxu1  ;;  %4699 = vmatmul.mubr.bf16.vlgmr.msra.gmra.mxu1 %v8915_v6  ;;  %4709 = vmatprep.subr.bf16.mxu0 %v7282_v29  ;;  %v7291_v6 = vld [vmem:[%s10396_s24 + $0xd54] ss:$8 sps:$4 sm:$0xff]  }
 0x193   :  { %v4416_v41 = vadd.f32 %v4415_v39, %v8954_v23  ;;  %v9156_v44 = vadd.f32 %v4454_v40, %v4414_v37  ;;  %4749 = vmatpush1.bf16.msra.mxu1 %v7277_v32  ;;  %4780 = vmatprep.mubr.bf16.mxu1 %v872_v33  ;;  %v7286_v23 = vld [vmem:[%s10396_s24 + $0xc50] ss:$8 sps:$4 sm:$0xff]  }
 0x194   :  { %v4417_v26 = vpop.f32.mrf.mxu0  ;;  %v4456_v45 = vpop.f32.mrf.mxu1  ;;  %4750 = vmatprep.subr.bf16.mxu1 %v7285_v36 }
 0x195   :  { %v9164_v31 = vadd.f32 %v4456_v45, %v4416_v41  ;;  %4710 = vmatpush1.bf16.msra.mxu0 %v7280_v38 }
 0x196   :  { %v4418_v47 = vpop.f32.mrf.mxu0  ;;  %4711 = vmatprep.subr.bf16.mxu0 %v7288_v34  ;;  %v4458_v50 = vpop.f32.mrf.mxu1 }
 0x197   :  { %30 = vsyncpa [#allocation5], 0  ;;  %4751 = vmatpush1.bf16.msra.mxu1 %v7283_v20  ;;  %v7289_v51 = vld [vmem:[%s10396_s24 + $0xd50] ss:$8 sps:$4 sm:$0xff]   ;;  %v7297_v42 = vld [vmem:[%s10396_s24 + $0xd44] ss:$8 sps:$4 sm:$0xff]  }
 0x198   :  { %4752 = vmatprep.subr.bf16.mxu1 %v7291_v6  ;;  %v4459_v52 = vpop.f32.mrf.mxu1  ;;  %v7292_v53 = vld [vmem:[%s10396_s24 + $0xc40] ss:$8 sps:$4 sm:$0xff]   ;;  %v7300_v54 = vld [vmem:[%s10396_s24 + $0xc34] ss:$8 sps:$4 sm:$0xff]   ;;  %v7298_v57 = vld [vmem:[%s10396_s24 + $0xc30] ss:$8 sps:$4 sm:$0xff]  }
 0x199   :  { %4712 = vmatpush1.bf16.msra.mxu0 %v7286_v23  ;;  %v7295_v55 = vld [vmem:[%s10396_s24 + $0xd40] ss:$8 sps:$4 sm:$0xff]   ;;  %v7303_v56 = vld [vmem:[%s10396_s24 + $0xd34] ss:$8 sps:$4 sm:$0xff]   ;;  %v7306_v58 = vld [vmem:[%s10396_s24 + $0xc24] ss:$8 sps:$4 sm:$0xff]  }
 0x19a   :  { %4713 = vmatprep.subr.bf16.mxu0 %v7294_v49  ;;  %v7301_v59 = vld [vmem:[%s10396_s24 + $0xd30] ss:$8 sps:$4 sm:$0xff]   ;;  %v7309_v60 = vld [vmem:[%s10396_s24 + $0xd24] ss:$8 sps:$4 sm:$0xff]   ;;  %v7304_v30 = vld [vmem:[%s10396_s24 + $0xc20] ss:$8 sps:$4 sm:$0xff]  }
 0x19b   :  { %4753 = vmatpush1.bf16.msra.mxu1 %v7289_v51  ;;  %v7312_v61 = vld [vmem:[%s10396_s24 + $0xc14] ss:$8 sps:$4 sm:$0xff]   ;;  %v7307_v63 = vld [vmem:[%s10396_s24 + $0xd20] ss:$8 sps:$4 sm:$0xff]   ;;  %v7310_v1 = vld [vmem:[%s10396_s24 + $0xc10] ss:$8 sps:$4 sm:$0xff]  }
 0x19c   :  { %4754 = vmatprep.subr.bf16.mxu1 %v7297_v42  ;;  %v7315_v0 = vld [vmem:[%s10396_s24 + $0xd14] ss:$8 sps:$4 sm:$0xff]   ;;  %v7318_v3 = vld [vmem:[%s10396_s24 + $0xc04] ss:$8 sps:$4 sm:$0xff]   ;;  %v7313_v4 = vld [vmem:[%s10396_s24 + $0xd10] ss:$8 sps:$4 sm:$0xff]  }
 0x19d   :  { %4714 = vmatpush1.bf16.msra.mxu0 %v7292_v53  ;;  %v7321_v5 = vld [vmem:[%s10396_s24 + $0xd04] ss:$8 sps:$4 sm:$0xff]   ;;  %v7316_v7 = vld [vmem:[%s10396_s24 + $0xc00] ss:$8 sps:$4 sm:$0xff]   ;;  %v7324_v8 = vld [vmem:[%s10396_s24 + $0xcf4] ss:$8 sps:$4 sm:$0xff]  }
 0x19e   :  { %4715 = vmatprep.subr.bf16.mxu0 %v7300_v54  ;;  %v7319_v9 = vld [vmem:[%s10396_s24 + $0xd00] ss:$8 sps:$4 sm:$0xff]   ;;  %v7327_v10 = vld [vmem:[%s10396_s24 + $0xdf4] ss:$8 sps:$4 sm:$0xff]   ;;  %v7322_v11 = vld [vmem:[%s10396_s24 + $0xcf0] ss:$8 sps:$4 sm:$0xff]  }
 0x19f   :  { %4755 = vmatpush1.bf16.msra.mxu1 %v7295_v55  ;;  %v7330_v12 = vld [vmem:[%s10396_s24 + $0xce4] ss:$8 sps:$4 sm:$0xff]   ;;  %v7325_v13 = vld [vmem:[%s10396_s24 + $0xdf0] ss:$8 sps:$4 sm:$0xff]   ;;  %v7328_v15 = vld [vmem:[%s10396_s24 + $0xce0] ss:$8 sps:$4 sm:$0xff]  }
 0x1a0   :  { %4756 = vmatprep.subr.bf16.mxu1 %v7303_v56  ;;  %v7333_v14 = vld [vmem:[%s10396_s24 + $0xde4] ss:$8 sps:$4 sm:$0xff]   ;;  %v7336_v16 = vld [vmem:[%s10396_s24 + $0xcd4] ss:$8 sps:$4 sm:$0xff]   ;;  %v7331_v17 = vld [vmem:[%s10396_s24 + $0xde0] ss:$8 sps:$4 sm:$0xff]  }
 0x1a1   :  { %4716 = vmatpush1.bf16.msra.mxu0 %v7298_v57  ;;  %v7339_v18 = vld [vmem:[%s10396_s24 + $0xdd4] ss:$8 sps:$4 sm:$0xff]   ;;  %v7334_v43 = vld [vmem:[%s10396_s24 + $0xcd0] ss:$8 sps:$4 sm:$0xff]   ;;  %v7342_v19 = vld [vmem:[%s10396_s24 + $0xcc4] ss:$8 sps:$4 sm:$0xff]  }
 0x1a2   :  { %4717 = vmatprep.subr.bf16.mxu0 %v7306_v58  ;;  %v7337_v62 = vld [vmem:[%s10396_s24 + $0xdd0] ss:$8 sps:$4 sm:$0xff]   ;;  %v7345_v21 = vld [vmem:[%s10396_s24 + $0xdc4] ss:$8 sps:$4 sm:$0xff]   ;;  %v7340_v46 = vld [vmem:[%s10396_s24 + $0xcc0] ss:$8 sps:$4 sm:$0xff]  }
 0x1a3   :  { %4757 = vmatpush1.bf16.msra.mxu1 %v7301_v59  ;;  %v7348_v2 = vld [vmem:[%s10396_s24 + $0xcb4] ss:$8 sps:$4 sm:$0xff]   ;;  %v7343_v25 = vld [vmem:[%s10396_s24 + $0xdc0] ss:$8 sps:$4 sm:$0xff]   ;;  %v7346_v28 = vld [vmem:[%s10396_s24 + $0xcb0] ss:$8 sps:$4 sm:$0xff]  }
 0x1a4   :  { %4758 = vmatprep.subr.bf16.mxu1 %v7309_v60  ;;  %v7351_v27 = vld [vmem:[%s10396_s24 + $0xdb4] ss:$8 sps:$4 sm:$0xff]   ;;  %v7354_v29 = vld [vmem:[%s10396_s24 + $0xca4] ss:$8 sps:$4 sm:$0xff]   ;;  %v7349_v32 = vld [vmem:[%s10396_s24 + $0xdb0] ss:$8 sps:$4 sm:$0xff]  }
 0x1a5   :  { %4718 = vmatpush1.bf16.msra.mxu0 %v7304_v30  ;;  %v7357_v33 = vld [vmem:[%s10396_s24 + $0xda4] ss:$8 sps:$4 sm:$0xff]   ;;  %v7352_v35 = vld [vmem:[%s10396_s24 + $0xca0] ss:$8 sps:$4 sm:$0xff]   ;;  %v7360_v36 = vld [vmem:[%s10396_s24 + $0xc94] ss:$8 sps:$4 sm:$0xff]  }
 0x1a6   :  { %4719 = vmatprep.subr.bf16.mxu0 %v7312_v61  ;;  %v7355_v37 = vld [vmem:[%s10396_s24 + $0xda0] ss:$8 sps:$4 sm:$0xff]   ;;  %v7363_v38 = vld [vmem:[%s10396_s24 + $0xd94] ss:$8 sps:$4 sm:$0xff]   ;;  %v7358_v40 = vld [vmem:[%s10396_s24 + $0xc90] ss:$8 sps:$4 sm:$0xff]  }
 0x1a7   :  { %4759 = vmatpush1.bf16.msra.mxu1 %v7307_v63  ;;  %v79_v39 = vld [vmem:[%s10397_s28 + $0x38] sm:$0xff]  ;;  %v7366_v34 = vld [vmem:[%s10396_s24 + $0xc84] ss:$8 sps:$4 sm:$0xff]   ;;  %v7364_v45 = vld [vmem:[%s10396_s24 + $0xc80] ss:$8 sps:$4 sm:$0xff]   ;;  %vm7737_vm0 = vmmov 0  }
 0x1a8   :  { %4760 = vmatprep.subr.bf16.mxu1 %v7315_v0  ;;  %v7361_v41 = vld [vmem:[%s10396_s24 + $0xd90] ss:$8 sps:$4 sm:$0xff]   ;;  %v873_v20 = vcombine.high %v79_v39, %v79_v39  ;;  %v7369_v26 = vld [vmem:[%s10396_s24 + $0xd84] ss:$8 sps:$4 sm:$0xff]   ;;  %v9329_v6 = vrot.slane %v79_v39, %v7997_v48  ;;  %v7372_v23 = vld [vmem:[%s10396_s24 + $0xe74] ss:$8 sps:$4 sm:$0xff]  }
 0x1a9   :  { %4720 = vmatpush1.bf16.msra.mxu0 %v7310_v1  ;;  %v7367_v47 = vld [vmem:[%s10396_s24 + $0xd80] ss:$8 sps:$4 sm:$0xff]   ;;  %v7376_v50 = vld [vmem:[%s10396_s24 + $0xf74] ss:$8 sps:$4 sm:$0xff]   ;;  %v7370_v51 = vld [vmem:[%s10396_s24 + $0xe70] ss:$8 sps:$4 sm:$0xff]  }
 0x1aa   :  { %4721 = vmatprep.subr.bf16.mxu0 %v7318_v3  ;;  %v9338_v49 = vrot.slane %v873_v20, %v7997_v48  ;;  %v888_v42 = vcombine.high %v9329_v6, %v9329_v6  ;;  %v7379_v52 = vld [vmem:[%s10396_s24 + $0xe64] ss:$8 sps:$4 sm:$0xff]   ;;  %v7374_v53 = vld [vmem:[%s10396_s24 + $0xf70] ss:$8 sps:$4 sm:$0xff]   ;;  %v7377_v58 = vld [vmem:[%s10396_s24 + $0xe60] ss:$8 sps:$4 sm:$0xff]  }
 0x1ab   :  { %4761 = vmatpush1.bf16.msra.mxu1 %v7313_v4  ;;  %v7382_v56 = vld [vmem:[%s10396_s24 + $0xf64] ss:$8 sps:$4 sm:$0xff]   ;;  %v7433_v39 = vld [vmem:[%s10396_s24 + $0xed4] ss:$8 sps:$4 sm:$0xff]   ;;  %s10399_s2 = sld [smem:[#allocation10_spill]]  ;;  %vm5115_vm1 = vcmask 130048  }
 0x1ac   :  { %4762 = vmatprep.subr.bf16.mxu1 %v7321_v5  ;;  %v889_v54 = vcombine.high %v9338_v49, %v9338_v49  ;;  %v7391_v4 = vld [vmem:[%s10396_s24 + $0xe44] ss:$8 sps:$4 sm:$0xff]   ;;  %vm4211_vm2 = vcmask 523264   ;;  %vm5319_vm3 = vcmask 1040384   ;;  %s10400_s30 = sld [smem:[#allocation9_spill]]  ;;  %vm5315_vm4 = vcmask 72704  }
 0x1ad   :  { %4722 = vmatpush1.bf16.msra.mxu0 %v7316_v7  ;;  %v7386_v7 = vld [vmem:[%s10396_s24 + $0xf50] ss:$8 sps:$4 sm:$0xff]   ;;  %v7439_v20 = vld [vmem:[%s10396_s24 + $0xec4] ss:$8 sps:$4 sm:$0xff]   ;;  %s10401_s0 = sld [smem:[#allocation11_spill]]  ;;  %s7738_s4 = smov 16  }
 0x1ae   :  { %4723 = vmatprep.subr.bf16.mxu0 %v7324_v8  ;;  %v7394_v8 = vld [vmem:[%s10396_s24 + $0xf44] ss:$8 sps:$4 sm:$0xff]   ;;  %s7739_s7 = smov 96   ;;  %s10403_s29 = sld [smem:[#allocation13_spill]]  ;;  %vm5298_vm5 = vcmask 125952  }
 0x1af   :  { %4763 = vmatpush1.bf16.msra.mxu1 %v7319_v9 }
 0x1b0   :  { %4764 = vmatprep.subr.bf16.mxu1 %v7327_v10  ;;  %v7389_v10 = vld [vmem:[%s10396_s24 + $0xe40] ss:$8 sps:$4 sm:$0xff]  }
 0x1b1   :  { %4724 = vmatpush2.bf16.msra.mxu0 %v7322_v11  ;;  %v7397_v11 = vld [vmem:[%s10396_s24 + $0xe34] ss:$8 sps:$4 sm:$0xff]  }
 0x1b2   :  { %4725 = vmatprep.subr.bf16.mxu0 %v7330_v12  ;;  %v7392_v12 = vld [vmem:[%s10396_s24 + $0xf40] ss:$8 sps:$4 sm:$0xff]  }
 0x1b3   :  { %4765 = vmatpush2.bf16.msra.mxu1 %v7325_v13  ;;  %v7400_v13 = vld [vmem:[%s10396_s24 + $0xf34] ss:$8 sps:$4 sm:$0xff]  }
 0x1b4   :  { %4766 = vmatprep.subr.bf16.mxu1 %v7333_v14  ;;  %v7395_v14 = vld [vmem:[%s10396_s24 + $0xe30] ss:$8 sps:$4 sm:$0xff]  }
 0x1b5   :  { %4726 = vmatpush2.bf16.msra.mxu0 %v7328_v15  ;;  %v7403_v15 = vld [vmem:[%s10396_s24 + $0xe24] ss:$8 sps:$4 sm:$0xff]  }
 0x1b6   :  { %4727 = vmatprep.subr.bf16.mxu0 %v7336_v16  ;;  %v7398_v16 = vld [vmem:[%s10396_s24 + $0xf30] ss:$8 sps:$4 sm:$0xff]  }
 0x1b7   :  { %4767 = vmatpush2.bf16.msra.mxu1 %v7331_v17  ;;  %v7406_v17 = vld [vmem:[%s10396_s24 + $0xf24] ss:$8 sps:$4 sm:$0xff]  }
 0x1b8   :  { %4768 = vmatprep.subr.bf16.mxu1 %v7339_v18  ;;  %v7401_v18 = vld [vmem:[%s10396_s24 + $0xe20] ss:$8 sps:$4 sm:$0xff]  }
 0x1b9   :  { %4728 = vmatpush2.bf16.msra.mxu0 %v7334_v43  ;;  %v7409_v43 = vld [vmem:[%s10396_s24 + $0xe14] ss:$8 sps:$4 sm:$0xff]  }
 0x1ba   :  { %4729 = vmatprep.subr.bf16.mxu0 %v7342_v19  ;;  %v7404_v19 = vld [vmem:[%s10396_s24 + $0xf20] ss:$8 sps:$4 sm:$0xff]  }
 0x1bb   :  { %4769 = vmatpush2.bf16.msra.mxu1 %v7337_v62  ;;  %v7412_v62 = vld [vmem:[%s10396_s24 + $0xf14] ss:$8 sps:$4 sm:$0xff]  }
 0x1bc   :  { %4770 = vmatprep.subr.bf16.mxu1 %v7345_v21  ;;  %v7407_v21 = vld [vmem:[%s10396_s24 + $0xe10] ss:$8 sps:$4 sm:$0xff]  }
 0x1bd   :  { %4730 = vmatpush2.bf16.msra.mxu0 %v7340_v46  ;;  %v7415_v46 = vld [vmem:[%s10396_s24 + $0xe04] ss:$8 sps:$4 sm:$0xff]  }
 0x1be   :  { %4731 = vmatprep.subr.bf16.mxu0 %v7348_v2  ;;  %v7410_v2 = vld [vmem:[%s10396_s24 + $0xf10] ss:$8 sps:$4 sm:$0xff]  }
 0x1bf   :  { %4771 = vmatpush2.bf16.msra.mxu1 %v7343_v25  ;;  %v7418_v25 = vld [vmem:[%s10396_s24 + $0xf04] ss:$8 sps:$4 sm:$0xff]  }
 0x1c0   :  { %4772 = vmatprep.subr.bf16.mxu1 %v7351_v27  ;;  %v7413_v27 = vld [vmem:[%s10396_s24 + $0xe00] ss:$8 sps:$4 sm:$0xff]  }
 0x1c1   :  { %4732 = vmatpush2.bf16.msra.mxu0 %v7346_v28  ;;  %v7421_v28 = vld [vmem:[%s10396_s24 + $0xef4] ss:$8 sps:$4 sm:$0xff]  }
 0x1c2   :  { %4733 = vmatprep.subr.bf16.mxu0 %v7354_v29  ;;  %v7416_v29 = vld [vmem:[%s10396_s24 + $0xf00] ss:$8 sps:$4 sm:$0xff]  }
 0x1c3   :  { %4773 = vmatpush2.bf16.msra.mxu1 %v7349_v32  ;;  %v7424_v32 = vld [vmem:[%s10396_s24 + $0xff4] ss:$8 sps:$4 sm:$0xff]  }
 0x1c4   :  { %4774 = vmatprep.subr.bf16.mxu1 %v7357_v33  ;;  %v7419_v33 = vld [vmem:[%s10396_s24 + $0xef0] ss:$8 sps:$4 sm:$0xff]  }
 0x1c5   :  { %4734 = vmatpush2.bf16.msra.mxu0 %v7352_v35  ;;  %v7427_v35 = vld [vmem:[%s10396_s24 + $0xee4] ss:$8 sps:$4 sm:$0xff]  }
 0x1c6   :  { %4735 = vmatprep.subr.bf16.mxu0 %v7360_v36  ;;  %v7422_v36 = vld [vmem:[%s10396_s24 + $0xff0] ss:$8 sps:$4 sm:$0xff]  }
 0x1c7   :  { %4775 = vmatpush2.bf16.msra.mxu1 %v7355_v37  ;;  %v7430_v37 = vld [vmem:[%s10396_s24 + $0xfe4] ss:$8 sps:$4 sm:$0xff]  }
 0x1c8   :  { %4776 = vmatprep.subr.bf16.mxu1 %v7363_v38  ;;  %v7425_v38 = vld [vmem:[%s10396_s24 + $0xee0] ss:$8 sps:$4 sm:$0xff]  }
 0x1c9   :  { %4736 = vmatpush2.bf16.msra.mxu0 %v7358_v40  ;;  %v7428_v40 = vld [vmem:[%s10396_s24 + $0xfe0] ss:$8 sps:$4 sm:$0xff]  }
 0x1ca   :  { %4737 = vmatprep.subr.bf16.mxu0 %v7366_v34  ;;  %v7436_v34 = vld [vmem:[%s10396_s24 + $0xfd4] ss:$8 sps:$4 sm:$0xff]  }
 0x1cb   :  { %4777 = vmatpush2.bf16.msra.mxu1 %v7361_v41  ;;  %v7431_v41 = vld [vmem:[%s10396_s24 + $0xed0] ss:$8 sps:$4 sm:$0xff]  }
 0x1cc   :  { %4778 = vmatprep.subr.bf16.mxu1 %v7369_v26  ;;  %v7434_v26 = vld [vmem:[%s10396_s24 + $0xfd0] ss:$8 sps:$4 sm:$0xff]  }
 0x1cd   :  { %4738 = vmatpush2.bf16.msra.mxu0 %v7364_v45  ;;  %v7442_v45 = vld [vmem:[%s10396_s24 + $0xfc4] ss:$8 sps:$4 sm:$0xff]  }
 0x1ce   :  { %4789 = vmatprep.subr.bf16.mxu0 %v7372_v23  ;;  %v7437_v23 = vld [vmem:[%s10396_s24 + $0xec0] ss:$8 sps:$4 sm:$0xff]  }
 0x1cf   :  { %4779 = vmatpush2.bf16.msra.mxu1 %v7367_v47  ;;  %v7445_v47 = vld [vmem:[%s10396_s24 + $0xeb4] ss:$8 sps:$4 sm:$0xff]  }
 0x1d0   :  { %v4495_v55 = vpop.f32.mrf.mxu0  ;;  %4740 = vmatmul.mubr.bf16.vlgmr.msra.gmra.mxu0 %v9116_v22  ;;  %4830 = vmatprep.subr.bf16.mxu1 %v7376_v50  ;;  %v7385_v22 = vld [vmem:[%s10396_s24 + $0xe54] ss:$8 sps:$4 sm:$0xff]   ;;  %v7440_v50 = vld [vmem:[%s10396_s24 + $0xfc0] ss:$8 sps:$4 sm:$0xff]  }
 0x1d1   :  { %v4496_v57 = vadd.f32 %v4495_v55, %v9156_v44  ;;  %4790 = vmatpush1.bf16.msra.mxu0 %v7370_v51  ;;  %4821 = vmatprep.mubr.bf16.mxu0 %v888_v42  ;;  %v7380_v44 = vld [vmem:[%s10396_s24 + $0xf60] ss:$8 sps:$4 sm:$0xff]   ;;  %v7448_v51 = vld [vmem:[%s10396_s24 + $0xfb4] ss:$8 sps:$4 sm:$0xff]   ;;  %v7443_v42 = vld [vmem:[%s10396_s24 + $0xeb0] ss:$8 sps:$4 sm:$0xff]  }
 0x1d2   :  { %v4497_v59 = vpop.f32.mrf.mxu0  ;;  %v4536_v60 = vpop.f32.mrf.mxu1  ;;  %4781 = vmatmul.mubr.bf16.vlgmr.msra.gmra.mxu1 %v9125_v24  ;;  %4791 = vmatprep.subr.bf16.mxu0 %v7379_v52  ;;  %v7388_v24 = vld [vmem:[%s10396_s24 + $0xf54] ss:$8 sps:$4 sm:$0xff]   ;;  %v7451_v52 = vld [vmem:[%s10396_s24 + $0xea4] ss:$8 sps:$4 sm:$0xff]   ;;  %v7449_v55 = vld [vmem:[%s10396_s24 + $0xea0] ss:$8 sps:$4 sm:$0xff]  }
 0x1d3   :  { %v4498_v30 = vadd.f32 %v4497_v59, %v9164_v31  ;;  %v9369_v61 = vadd.f32 %v4536_v60, %v4496_v57  ;;  %4831 = vmatpush1.bf16.msra.mxu1 %v7374_v53  ;;  %4862 = vmatprep.mubr.bf16.mxu1 %v889_v54  ;;  %v7383_v31 = vld [vmem:[%s10396_s24 + $0xe50] ss:$8 sps:$4 sm:$0xff]   ;;  %v7454_v54 = vld [vmem:[%s10396_s24 + $0xfa4] ss:$8 sps:$4 sm:$0xff]   ;;  %v7452_v57 = vld [vmem:[%s10396_s24 + $0xfa0] ss:$8 sps:$4 sm:$0xff]  }
 0x1d4   :  { %v4499_v63 = vpop.f32.mrf.mxu0  ;;  %v4538_v0 = vpop.f32.mrf.mxu1  ;;  %4832 = vmatprep.subr.bf16.mxu1 %v7382_v56  ;;  %v7446_v53 = vld [vmem:[%s10396_s24 + $0xfb0] ss:$8 sps:$4 sm:$0xff]   ;;  %v7457_v56 = vld [vmem:[%s10396_s24 + $0xe94] ss:$8 sps:$4 sm:$0xff]   ;;  %v80_v59 = vld [vmem:[%s10397_s28 + $0x40] sm:$0xff] }
 0x1d5   :  { %v9377_v1 = vadd.f32 %v4538_v0, %v4498_v30  ;;  %4792 = vmatpush1.bf16.msra.mxu0 %v7377_v58  ;;  %v7460_v58 = vld [vmem:[%s10396_s24 + $0xf94] ss:$8 sps:$4 sm:$0xff]   ;;  %v7455_v60 = vld [vmem:[%s10396_s24 + $0xe90] ss:$8 sps:$4 sm:$0xff]   ;;  %v7466_v63 = vld [vmem:[%s10396_s24 + $0xf84] ss:$8 sps:$4 sm:$0xff]  }
 0x1d6   :  { %v4500_v3 = vpop.f32.mrf.mxu0  ;;  %4793 = vmatprep.subr.bf16.mxu0 %v7385_v22  ;;  %v4540_v5 = vpop.f32.mrf.mxu1  ;;  %v7463_v22 = vld [vmem:[%s10396_s24 + $0xe84] ss:$8 sps:$4 sm:$0xff]   ;;  %v7458_v30 = vld [vmem:[%s10396_s24 + $0xf90] ss:$8 sps:$4 sm:$0xff]   ;;  %v7461_v0 = vld [vmem:[%s10396_s24 + $0xe80] ss:$8 sps:$4 sm:$0xff]  }
 0x1d7   :  { %4833 = vmatpush1.bf16.msra.mxu1 %v7380_v44  ;;  %v890_v44 = vcombine.high %v80_v59, %v80_v59  ;;  %v7464_v3 = vld [vmem:[%s10396_s24 + $0xf80] ss:$8 sps:$4 sm:$0xff]   ;;  %v7473_v5 = vld [vmem:[%s10396_s24 + $0x1174] ss:$8 sps:$4 sm:$0xff]  }
 0x1d8   :  { %4834 = vmatprep.subr.bf16.mxu1 %v7388_v24  ;;  %v4541_v9 = vpop.f32.mrf.mxu1  ;;  %v9542_v24 = vrot.slane %v80_v59, %v7997_v48  ;;  %v7530_v59 = vld [vmem:[%s10396_s24 + $0x10d4] ss:$8 sps:$4 sm:$0xff]  }
 0x1d9   :  { %4794 = vmatpush1.bf16.msra.mxu0 %v7383_v31  ;;  %v7469_v31 = vld [vmem:[%s10396_s24 + $0x1074] ss:$8 sps:$4 sm:$0xff]   ;;  %v7476_v9 = vld [vmem:[%s10396_s24 + $0x1064] ss:$8 sps:$4 sm:$0xff]  }
 0x1da   :  { %4795 = vmatprep.subr.bf16.mxu0 %v7391_v4  ;;  %v9551_v4 = vrot.slane %v890_v44, %v7997_v48  ;;  %v7536_v44 = vld [vmem:[%s10396_s24 + $0x10c4] ss:$8 sps:$4 sm:$0xff]  }
 0x1db   :  { %4835 = vmatpush1.bf16.msra.mxu1 %v7386_v7  ;;  %v7467_v7 = vld [vmem:[%s10396_s24 + $0x1070] ss:$8 sps:$4 sm:$0xff]  }
 0x1dc   :  { %4836 = vmatprep.subr.bf16.mxu1 %v7394_v8  ;;  %v905_v8 = vcombine.high %v9542_v24, %v9542_v24 }
 0x1dd   :  { %4796 = vmatpush1.bf16.msra.mxu0 %v7389_v10  ;;  %v7471_v10 = vld [vmem:[%s10396_s24 + $0x1170] ss:$8 sps:$4 sm:$0xff]  }
 0x1de   :  { %4797 = vmatprep.subr.bf16.mxu0 %v7397_v11  ;;  %v906_v11 = vcombine.high %v9551_v4, %v9551_v4 }
 0x1df   :  { %4837 = vmatpush1.bf16.msra.mxu1 %v7392_v12 }
 0x1e0   :  { %4838 = vmatprep.subr.bf16.mxu1 %v7400_v13  ;;  %v7479_v13 = vld [vmem:[%s10396_s24 + $0x1164] ss:$8 sps:$4 sm:$0xff]  }
 0x1e1   :  { %4798 = vmatpush1.bf16.msra.mxu0 %v7395_v14 }
 0x1e2   :  { %4799 = vmatprep.subr.bf16.mxu0 %v7403_v15  ;;  %v7474_v15 = vld [vmem:[%s10396_s24 + $0x1060] ss:$8 sps:$4 sm:$0xff]  }
 0x1e3   :  { %4839 = vmatpush1.bf16.msra.mxu1 %v7398_v16 }
 0x1e4   :  { %4840 = vmatprep.subr.bf16.mxu1 %v7406_v17 }
 0x1e5   :  { %4800 = vmatpush1.bf16.msra.mxu0 %v7401_v18 }
 0x1e6   :  { %4801 = vmatprep.subr.bf16.mxu0 %v7409_v43 }
 0x1e7   :  { %4841 = vmatpush1.bf16.msra.mxu1 %v7404_v19 }
 0x1e8   :  { %4842 = vmatprep.subr.bf16.mxu1 %v7412_v62 }
 0x1e9   :  { %4802 = vmatpush1.bf16.msra.mxu0 %v7407_v21 }
 0x1ea   :  { %4803 = vmatprep.subr.bf16.mxu0 %v7415_v46 }
 0x1eb   :  { %4843 = vmatpush1.bf16.msra.mxu1 %v7410_v2  ;;  %v7488_v2 = vld [vmem:[%s10396_s24 + $0x1044] ss:$8 sps:$4 sm:$0xff]  }
 0x1ec   :  { %4844 = vmatprep.subr.bf16.mxu1 %v7418_v25 }
 0x1ed   :  { %4804 = vmatpush1.bf16.msra.mxu0 %v7413_v27  ;;  %v7483_v27 = vld [vmem:[%s10396_s24 + $0x1150] ss:$8 sps:$4 sm:$0xff]  }
 0x1ee   :  { %4805 = vmatprep.subr.bf16.mxu0 %v7421_v28  ;;  %v7491_v28 = vld [vmem:[%s10396_s24 + $0x1144] ss:$8 sps:$4 sm:$0xff]  }
 0x1ef   :  { %4845 = vmatpush1.bf16.msra.mxu1 %v7416_v29 }
 0x1f0   :  { %4846 = vmatprep.subr.bf16.mxu1 %v7424_v32  ;;  %v7486_v32 = vld [vmem:[%s10396_s24 + $0x1040] ss:$8 sps:$4 sm:$0xff]  }
 0x1f1   :  { %4806 = vmatpush2.bf16.msra.mxu0 %v7419_v33  ;;  %v7494_v33 = vld [vmem:[%s10396_s24 + $0x1034] ss:$8 sps:$4 sm:$0xff]  }
 0x1f2   :  { %4807 = vmatprep.subr.bf16.mxu0 %v7427_v35  ;;  %v7489_v35 = vld [vmem:[%s10396_s24 + $0x1140] ss:$8 sps:$4 sm:$0xff]  }
 0x1f3   :  { %4847 = vmatpush2.bf16.msra.mxu1 %v7422_v36  ;;  %v7497_v36 = vld [vmem:[%s10396_s24 + $0x1134] ss:$8 sps:$4 sm:$0xff]  }
 0x1f4   :  { %4848 = vmatprep.subr.bf16.mxu1 %v7430_v37  ;;  %v7492_v37 = vld [vmem:[%s10396_s24 + $0x1030] ss:$8 sps:$4 sm:$0xff]  }
 0x1f5   :  { %4808 = vmatpush2.bf16.msra.mxu0 %v7425_v38  ;;  %v7500_v38 = vld [vmem:[%s10396_s24 + $0x1024] ss:$8 sps:$4 sm:$0xff]  }
 0x1f6   :  { %4809 = vmatprep.subr.bf16.mxu0 %v7433_v39  ;;  %v7495_v39 = vld [vmem:[%s10396_s24 + $0x1130] ss:$8 sps:$4 sm:$0xff]  }
 0x1f7   :  { %4849 = vmatpush2.bf16.msra.mxu1 %v7428_v40  ;;  %v7503_v40 = vld [vmem:[%s10396_s24 + $0x1124] ss:$8 sps:$4 sm:$0xff]  }
 0x1f8   :  { %4850 = vmatprep.subr.bf16.mxu1 %v7436_v34  ;;  %v7498_v34 = vld [vmem:[%s10396_s24 + $0x1020] ss:$8 sps:$4 sm:$0xff]  }
 0x1f9   :  { %4810 = vmatpush2.bf16.msra.mxu0 %v7431_v41  ;;  %v7506_v41 = vld [vmem:[%s10396_s24 + $0x1014] ss:$8 sps:$4 sm:$0xff]  }
 0x1fa   :  { %4811 = vmatprep.subr.bf16.mxu0 %v7439_v20  ;;  %v7501_v20 = vld [vmem:[%s10396_s24 + $0x1120] ss:$8 sps:$4 sm:$0xff]  }
 0x1fb   :  { %4851 = vmatpush2.bf16.msra.mxu1 %v7434_v26  ;;  %v7509_v26 = vld [vmem:[%s10396_s24 + $0x1114] ss:$8 sps:$4 sm:$0xff]  }
 0x1fc   :  { %4852 = vmatprep.subr.bf16.mxu1 %v7442_v45  ;;  %v7504_v45 = vld [vmem:[%s10396_s24 + $0x1010] ss:$8 sps:$4 sm:$0xff]  }
 0x1fd   :  { %4812 = vmatpush2.bf16.msra.mxu0 %v7437_v23  ;;  %v7512_v23 = vld [vmem:[%s10396_s24 + $0x1004] ss:$8 sps:$4 sm:$0xff]  }
 0x1fe   :  { %4813 = vmatprep.subr.bf16.mxu0 %v7445_v47  ;;  %v7507_v47 = vld [vmem:[%s10396_s24 + $0x1110] ss:$8 sps:$4 sm:$0xff]  }
 0x1ff   :  { %4853 = vmatpush2.bf16.msra.mxu1 %v7440_v50  ;;  %v7515_v50 = vld [vmem:[%s10396_s24 + $0x1104] ss:$8 sps:$4 sm:$0xff]  }
 0x200   :  { %4854 = vmatprep.subr.bf16.mxu1 %v7448_v51  ;;  %v7510_v51 = vld [vmem:[%s10396_s24 + $0x1000] ss:$8 sps:$4 sm:$0xff]  }
 0x201   :  { %4814 = vmatpush2.bf16.msra.mxu0 %v7443_v42  ;;  %v7518_v42 = vld [vmem:[%s10396_s24 + $0x10f4] ss:$8 sps:$4 sm:$0xff]  }
 0x202   :  { %4815 = vmatprep.subr.bf16.mxu0 %v7451_v52  ;;  %v7513_v52 = vld [vmem:[%s10396_s24 + $0x1100] ss:$8 sps:$4 sm:$0xff]  }
 0x203   :  { %4855 = vmatpush2.bf16.msra.mxu1 %v7446_v53  ;;  %v7521_v53 = vld [vmem:[%s10396_s24 + $0x11f4] ss:$8 sps:$4 sm:$0xff]  }
 0x204   :  { %4856 = vmatprep.subr.bf16.mxu1 %v7454_v54  ;;  %v7516_v54 = vld [vmem:[%s10396_s24 + $0x10f0] ss:$8 sps:$4 sm:$0xff]  }
 0x205   :  { %4816 = vmatpush2.bf16.msra.mxu0 %v7449_v55  ;;  %v7524_v55 = vld [vmem:[%s10396_s24 + $0x10e4] ss:$8 sps:$4 sm:$0xff]  }
 0x206   :  { %4817 = vmatprep.subr.bf16.mxu0 %v7457_v56  ;;  %v7519_v56 = vld [vmem:[%s10396_s24 + $0x11f0] ss:$8 sps:$4 sm:$0xff]  }
 0x207   :  { %4857 = vmatpush2.bf16.msra.mxu1 %v7452_v57  ;;  %v7527_v57 = vld [vmem:[%s10396_s24 + $0x11e4] ss:$8 sps:$4 sm:$0xff]  }
 0x208   :  { %4858 = vmatprep.subr.bf16.mxu1 %v7460_v58  ;;  %v7522_v58 = vld [vmem:[%s10396_s24 + $0x10e0] ss:$8 sps:$4 sm:$0xff]  }
 0x209   :  { %4818 = vmatpush2.bf16.msra.mxu0 %v7455_v60  ;;  %v7525_v60 = vld [vmem:[%s10396_s24 + $0x11e0] ss:$8 sps:$4 sm:$0xff]  }
 0x20a   :  { %4819 = vmatprep.subr.bf16.mxu0 %v7463_v22  ;;  %v7533_v22 = vld [vmem:[%s10396_s24 + $0x11d4] ss:$8 sps:$4 sm:$0xff]  }
 0x20b   :  { %4859 = vmatpush2.bf16.msra.mxu1 %v7458_v30  ;;  %v7528_v30 = vld [vmem:[%s10396_s24 + $0x10d0] ss:$8 sps:$4 sm:$0xff]  }
 0x20c   :  { %4860 = vmatprep.subr.bf16.mxu1 %v7466_v63  ;;  %v7531_v63 = vld [vmem:[%s10396_s24 + $0x11d0] ss:$8 sps:$4 sm:$0xff]  }
 0x20d   :  { %4820 = vmatpush2.bf16.msra.mxu0 %v7461_v0  ;;  %v7539_v0 = vld [vmem:[%s10396_s24 + $0x11c4] ss:$8 sps:$4 sm:$0xff]  }
 0x20e   :  { %4871 = vmatprep.subr.bf16.mxu0 %v7469_v31  ;;  %v7534_v31 = vld [vmem:[%s10396_s24 + $0x10c0] ss:$8 sps:$4 sm:$0xff]  }
 0x20f   :  { %4861 = vmatpush2.bf16.msra.mxu1 %v7464_v3  ;;  %v7542_v3 = vld [vmem:[%s10396_s24 + $0x10b4] ss:$8 sps:$4 sm:$0xff]  }
 0x210   :  { %v4577_v12 = vpop.f32.mrf.mxu0  ;;  %4822 = vmatmul.mubr.bf16.vlgmr.msra.gmra.mxu0 %v9329_v6  ;;  %4912 = vmatprep.subr.bf16.mxu1 %v7473_v5  ;;  %v7482_v6 = vld [vmem:[%s10396_s24 + $0x1054] ss:$8 sps:$4 sm:$0xff]   ;;  %v7537_v5 = vld [vmem:[%s10396_s24 + $0x11c0] ss:$8 sps:$4 sm:$0xff]  }
 0x211   :  { %v4578_v14 = vadd.f32 %v4577_v12, %v9369_v61  ;;  %4872 = vmatpush1.bf16.msra.mxu0 %v7467_v7  ;;  %4903 = vmatprep.mubr.bf16.mxu0 %v905_v8  ;;  %v7477_v61 = vld [vmem:[%s10396_s24 + $0x1160] ss:$8 sps:$4 sm:$0xff]   ;;  %v7545_v7 = vld [vmem:[%s10396_s24 + $0x11b4] ss:$8 sps:$4 sm:$0xff]   ;;  %v7540_v8 = vld [vmem:[%s10396_s24 + $0x10b0] ss:$8 sps:$4 sm:$0xff]  }
 0x212   :  { %v4579_v16 = vpop.f32.mrf.mxu0  ;;  %v4618_v17 = vpop.f32.mrf.mxu1  ;;  %4863 = vmatmul.mubr.bf16.vlgmr.msra.gmra.mxu1 %v9338_v49  ;;  %4873 = vmatprep.subr.bf16.mxu0 %v7476_v9  ;;  %v7485_v49 = vld [vmem:[%s10396_s24 + $0x1154] ss:$8 sps:$4 sm:$0xff]   ;;  %v7548_v9 = vld [vmem:[%s10396_s24 + $0x10a4] ss:$8 sps:$4 sm:$0xff]   ;;  %v7546_v12 = vld [vmem:[%s10396_s24 + $0x10a0] ss:$8 sps:$4 sm:$0xff]  }
 0x213   :  { %v4580_v18 = vadd.f32 %v4579_v16, %v9377_v1  ;;  %v9582_v43 = vadd.f32 %v4618_v17, %v4578_v14  ;;  %4913 = vmatpush1.bf16.msra.mxu1 %v7471_v10  ;;  %4944 = vmatprep.mubr.bf16.mxu1 %v906_v11  ;;  %v7480_v1 = vld [vmem:[%s10396_s24 + $0x1050] ss:$8 sps:$4 sm:$0xff]   ;;  %v7551_v11 = vld [vmem:[%s10396_s24 + $0x11a4] ss:$8 sps:$4 sm:$0xff]   ;;  %v7549_v14 = vld [vmem:[%s10396_s24 + $0x11a0] ss:$8 sps:$4 sm:$0xff]  }
 0x214   :  { %v4581_v19 = vpop.f32.mrf.mxu0  ;;  %v4620_v62 = vpop.f32.mrf.mxu1  ;;  %4914 = vmatprep.subr.bf16.mxu1 %v7479_v13  ;;  %v7543_v10 = vld [vmem:[%s10396_s24 + $0x11b0] ss:$8 sps:$4 sm:$0xff]   ;;  %v7554_v13 = vld [vmem:[%s10396_s24 + $0x1094] ss:$8 sps:$4 sm:$0xff]   ;;  %v81_v16 = vld [vmem:[%s10397_s28 + $0x48] sm:$0xff] }
 0x215   :  { %v9590_v21 = vadd.f32 %v4620_v62, %v4580_v18  ;;  %4874 = vmatpush1.bf16.msra.mxu0 %v7474_v15  ;;  %v7557_v15 = vld [vmem:[%s10396_s24 + $0x1194] ss:$8 sps:$4 sm:$0xff]   ;;  %v7552_v17 = vld [vmem:[%s10396_s24 + $0x1090] ss:$8 sps:$4 sm:$0xff]   ;;  %v7563_v19 = vld [vmem:[%s10396_s24 + $0x1184] ss:$8 sps:$4 sm:$0xff]  }
 0x216   :  { %v4582_v46 = vpop.f32.mrf.mxu0  ;;  %4875 = vmatprep.subr.bf16.mxu0 %v7482_v6  ;;  %v4622_v25 = vpop.f32.mrf.mxu1  ;;  %v7560_v6 = vld [vmem:[%s10396_s24 + $0x1084] ss:$8 sps:$4 sm:$0xff]   ;;  %v7555_v18 = vld [vmem:[%s10396_s24 + $0x1190] ss:$8 sps:$4 sm:$0xff]   ;;  %v7558_v62 = vld [vmem:[%s10396_s24 + $0x1080] ss:$8 sps:$4 sm:$0xff]  }
 0x217   :  { %4915 = vmatpush1.bf16.msra.mxu1 %v7477_v61  ;;  %v907_v61 = vcombine.high %v81_v16, %v81_v16  ;;  %v7561_v46 = vld [vmem:[%s10396_s24 + $0x1180] ss:$8 sps:$4 sm:$0xff]   ;;  %v7570_v25 = vld [vmem:[%s10396_s24 + $0x1374] ss:$8 sps:$4 sm:$0xff]  }
 0x218   :  { %4916 = vmatprep.subr.bf16.mxu1 %v7485_v49  ;;  %v4623_v29 = vpop.f32.mrf.mxu1  ;;  %v9755_v49 = vrot.slane %v81_v16, %v7997_v48  ;;  %v7622_v16 = vld [vmem:[%s10396_s24 + $0x13e0] ss:$8 sps:$4 sm:$0xff]  }
 0x219   :  { %4876 = vmatpush1.bf16.msra.mxu0 %v7480_v1  ;;  %v7566_v1 = vld [vmem:[%s10396_s24 + $0x1274] ss:$8 sps:$4 sm:$0xff]   ;;  %v7573_v29 = vld [vmem:[%s10396_s24 + $0x1264] ss:$8 sps:$4 sm:$0xff]  }
 0x21a   :  { %4877 = vmatprep.subr.bf16.mxu0 %v7488_v2  ;;  %v9764_v2 = vrot.slane %v907_v61, %v7997_v48  ;;  %v7568_v48 = vld [vmem:[%s10396_s24 + $0x1370] ss:$8 sps:$4 sm:$0xff]  }
 0x21b   :  { %4917 = vmatpush1.bf16.msra.mxu1 %v7483_v27  ;;  %v7564_v27 = vld [vmem:[%s10396_s24 + $0x1270] ss:$8 sps:$4 sm:$0xff]  }
 0x21c   :  { %4918 = vmatprep.subr.bf16.mxu1 %v7491_v28  ;;  %v922_v28 = vcombine.high %v9755_v49, %v9755_v49  ;;  %v7628_v61 = vld [vmem:[%s10396_s24 + $0x13d0] ss:$8 sps:$4 sm:$0xff]  }
 0x21d   :  { %4878 = vmatpush1.bf16.msra.mxu0 %v7486_v32  ;;  %v923_v32 = vcombine.high %v9764_v2, %v9764_v2 }
 0x21e   :  { %4879 = vmatprep.subr.bf16.mxu0 %v7494_v33 }
 0x21f   :  { %4919 = vmatpush1.bf16.msra.mxu1 %v7489_v35  ;;  %v7576_v35 = vld [vmem:[%s10396_s24 + $0x1364] ss:$8 sps:$4 sm:$0xff]  }
 0x220   :  { %4920 = vmatprep.subr.bf16.mxu1 %v7497_v36 }
 0x221   :  { %4880 = vmatpush1.bf16.msra.mxu0 %v7492_v37  ;;  %v7571_v37 = vld [vmem:[%s10396_s24 + $0x1260] ss:$8 sps:$4 sm:$0xff]  }
 0x222   :  { %4881 = vmatprep.subr.bf16.mxu0 %v7500_v38 }
 0x223   :  { %4921 = vmatpush1.bf16.msra.mxu1 %v7495_v39 }
 0x224   :  { %4922 = vmatprep.subr.bf16.mxu1 %v7503_v40 }
 0x225   :  { %4882 = vmatpush1.bf16.msra.mxu0 %v7498_v34 }
 0x226   :  { %4883 = vmatprep.subr.bf16.mxu0 %v7506_v41 }
 0x227   :  { %4923 = vmatpush1.bf16.msra.mxu1 %v7501_v20 }
 0x228   :  { %4924 = vmatprep.subr.bf16.mxu1 %v7509_v26 }
 0x229   :  { %4884 = vmatpush1.bf16.msra.mxu0 %v7504_v45 }
 0x22a   :  { %4885 = vmatprep.subr.bf16.mxu0 %v7512_v23  ;;  %v7585_v23 = vld [vmem:[%s10396_s24 + $0x1244] ss:$8 sps:$4 sm:$0xff]  }
 0x22b   :  { %4925 = vmatpush1.bf16.msra.mxu1 %v7507_v47 }
 0x22c   :  { %4926 = vmatprep.subr.bf16.mxu1 %v7515_v50  ;;  %v7580_v50 = vld [vmem:[%s10396_s24 + $0x1350] ss:$8 sps:$4 sm:$0xff]  }
 0x22d   :  { %4886 = vmatpush1.bf16.msra.mxu0 %v7510_v51  ;;  %v7588_v51 = vld [vmem:[%s10396_s24 + $0x1344] ss:$8 sps:$4 sm:$0xff]  }
 0x22e   :  { %4887 = vmatprep.subr.bf16.mxu0 %v7518_v42 }
 0x22f   :  { %4927 = vmatpush1.bf16.msra.mxu1 %v7513_v52  ;;  %v7583_v52 = vld [vmem:[%s10396_s24 + $0x1240] ss:$8 sps:$4 sm:$0xff]  }
 0x230   :  { %4928 = vmatprep.subr.bf16.mxu1 %v7521_v53  ;;  %v7591_v53 = vld [vmem:[%s10396_s24 + $0x1234] ss:$8 sps:$4 sm:$0xff]  }
 0x231   :  { %4888 = vmatpush2.bf16.msra.mxu0 %v7516_v54  ;;  %v7586_v54 = vld [vmem:[%s10396_s24 + $0x1340] ss:$8 sps:$4 sm:$0xff]  }
 0x232   :  { %4889 = vmatprep.subr.bf16.mxu0 %v7524_v55  ;;  %v7594_v55 = vld [vmem:[%s10396_s24 + $0x1334] ss:$8 sps:$4 sm:$0xff]  }
 0x233   :  { %4929 = vmatpush2.bf16.msra.mxu1 %v7519_v56  ;;  %v7589_v56 = vld [vmem:[%s10396_s24 + $0x1230] ss:$8 sps:$4 sm:$0xff]  }
 0x234   :  { %4930 = vmatprep.subr.bf16.mxu1 %v7527_v57  ;;  %v7597_v57 = vld [vmem:[%s10396_s24 + $0x1224] ss:$8 sps:$4 sm:$0xff]  }
 0x235   :  { %4890 = vmatpush2.bf16.msra.mxu0 %v7522_v58  ;;  %v7592_v58 = vld [vmem:[%s10396_s24 + $0x1330] ss:$8 sps:$4 sm:$0xff]  }
 0x236   :  { %4891 = vmatprep.subr.bf16.mxu0 %v7530_v59  ;;  %v7600_v59 = vld [vmem:[%s10396_s24 + $0x1324] ss:$8 sps:$4 sm:$0xff]  }
 0x237   :  { %4931 = vmatpush2.bf16.msra.mxu1 %v7525_v60  ;;  %v7595_v60 = vld [vmem:[%s10396_s24 + $0x1220] ss:$8 sps:$4 sm:$0xff]  }
 0x238   :  { %4932 = vmatprep.subr.bf16.mxu1 %v7533_v22  ;;  %v7603_v22 = vld [vmem:[%s10396_s24 + $0x1214] ss:$8 sps:$4 sm:$0xff]  }
 0x239   :  { %4892 = vmatpush2.bf16.msra.mxu0 %v7528_v30  ;;  %v7598_v30 = vld [vmem:[%s10396_s24 + $0x1320] ss:$8 sps:$4 sm:$0xff]  }
 0x23a   :  { %4893 = vmatprep.subr.bf16.mxu0 %v7536_v44  ;;  %v7606_v44 = vld [vmem:[%s10396_s24 + $0x1314] ss:$8 sps:$4 sm:$0xff]  }
 0x23b   :  { %4933 = vmatpush2.bf16.msra.mxu1 %v7531_v63  ;;  %v7601_v63 = vld [vmem:[%s10396_s24 + $0x1210] ss:$8 sps:$4 sm:$0xff]  }
 0x23c   :  { %4934 = vmatprep.subr.bf16.mxu1 %v7539_v0  ;;  %v7609_v0 = vld [vmem:[%s10396_s24 + $0x1204] ss:$8 sps:$4 sm:$0xff]  }
 0x23d   :  { %4894 = vmatpush2.bf16.msra.mxu0 %v7534_v31  ;;  %v7604_v31 = vld [vmem:[%s10396_s24 + $0x1310] ss:$8 sps:$4 sm:$0xff]  }
 0x23e   :  { %4895 = vmatprep.subr.bf16.mxu0 %v7542_v3  ;;  %v7612_v3 = vld [vmem:[%s10396_s24 + $0x1304] ss:$8 sps:$4 sm:$0xff]  }
 0x23f   :  { %4935 = vmatpush2.bf16.msra.mxu1 %v7537_v5  ;;  %v7607_v5 = vld [vmem:[%s10396_s24 + $0x1200] ss:$8 sps:$4 sm:$0xff]  }
 0x240   :  { %4936 = vmatprep.subr.bf16.mxu1 %v7545_v7  ;;  %v7615_v7 = vld [vmem:[%s10396_s24 + $0x12f4] ss:$8 sps:$4 sm:$0xff]  }
 0x241   :  { %4896 = vmatpush2.bf16.msra.mxu0 %v7540_v8  ;;  %v7610_v8 = vld [vmem:[%s10396_s24 + $0x1300] ss:$8 sps:$4 sm:$0xff]  }
 0x242   :  { %4897 = vmatprep.subr.bf16.mxu0 %v7548_v9  ;;  %v7618_v9 = vld [vmem:[%s10396_s24 + $0x13f4] ss:$8 sps:$4 sm:$0xff]  }
 0x243   :  { %4937 = vmatpush2.bf16.msra.mxu1 %v7543_v10  ;;  %v7613_v10 = vld [vmem:[%s10396_s24 + $0x12f0] ss:$8 sps:$4 sm:$0xff]  }
 0x244   :  { %4938 = vmatprep.subr.bf16.mxu1 %v7551_v11  ;;  %v7621_v11 = vld [vmem:[%s10396_s24 + $0x12e4] ss:$8 sps:$4 sm:$0xff]  }
 0x245   :  { %4898 = vmatpush2.bf16.msra.mxu0 %v7546_v12  ;;  %v7616_v12 = vld [vmem:[%s10396_s24 + $0x13f0] ss:$8 sps:$4 sm:$0xff]  }
 0x246   :  { %4899 = vmatprep.subr.bf16.mxu0 %v7554_v13  ;;  %v7624_v13 = vld [vmem:[%s10396_s24 + $0x13e4] ss:$8 sps:$4 sm:$0xff]  }
 0x247   :  { %4939 = vmatpush2.bf16.msra.mxu1 %v7549_v14  ;;  %v7619_v14 = vld [vmem:[%s10396_s24 + $0x12e0] ss:$8 sps:$4 sm:$0xff]  }
 0x248   :  { %4940 = vmatprep.subr.bf16.mxu1 %v7557_v15  ;;  %v7627_v15 = vld [vmem:[%s10396_s24 + $0x12d4] ss:$8 sps:$4 sm:$0xff]  }
 0x249   :  { %4900 = vmatpush2.bf16.msra.mxu0 %v7552_v17  ;;  %v7630_v17 = vld [vmem:[%s10396_s24 + $0x13d4] ss:$8 sps:$4 sm:$0xff]  }
 0x24a   :  { %4901 = vmatprep.subr.bf16.mxu0 %v7560_v6  ;;  %v7625_v6 = vld [vmem:[%s10396_s24 + $0x12d0] ss:$8 sps:$4 sm:$0xff]  }
 0x24b   :  { %4941 = vmatpush2.bf16.msra.mxu1 %v7555_v18  ;;  %v7633_v18 = vld [vmem:[%s10396_s24 + $0x12c4] ss:$8 sps:$4 sm:$0xff]  }
 0x24c   :  { %4942 = vmatprep.subr.bf16.mxu1 %v7563_v19  ;;  %v7636_v19 = vld [vmem:[%s10396_s24 + $0x13c4] ss:$8 sps:$4 sm:$0xff]  }
 0x24d   :  { %4902 = vmatpush2.bf16.msra.mxu0 %v7558_v62  ;;  %v7631_v62 = vld [vmem:[%s10396_s24 + $0x12c0] ss:$8 sps:$4 sm:$0xff]  }
 0x24e   :  { %4953 = vmatprep.subr.bf16.mxu0 %v7566_v1  ;;  %v7639_v1 = vld [vmem:[%s10396_s24 + $0x12b4] ss:$8 sps:$4 sm:$0xff]  }
 0x24f   :  { %4943 = vmatpush2.bf16.msra.mxu1 %v7561_v46  ;;  %v7634_v46 = vld [vmem:[%s10396_s24 + $0x13c0] ss:$8 sps:$4 sm:$0xff]  }
 0x250   :  { %v4659_v33 = vpop.f32.mrf.mxu0  ;;  %4904 = vmatmul.mubr.bf16.vlgmr.msra.gmra.mxu0 %v9542_v24  ;;  %4994 = vmatprep.subr.bf16.mxu1 %v7570_v25  ;;  %v7579_v24 = vld [vmem:[%s10396_s24 + $0x1254] ss:$8 sps:$4 sm:$0xff]  }
 0x251   :  { %v4660_v36 = vadd.f32 %v4659_v33, %v9582_v43  ;;  %4954 = vmatpush1.bf16.msra.mxu0 %v7564_v27  ;;  %4985 = vmatprep.mubr.bf16.mxu0 %v922_v28  ;;  %v7574_v43 = vld [vmem:[%s10396_s24 + $0x1360] ss:$8 sps:$4 sm:$0xff]   ;;  %v7642_v25 = vld [vmem:[%s10396_s24 + $0x13b4] ss:$8 sps:$4 sm:$0xff]   ;;  %v7637_v27 = vld [vmem:[%s10396_s24 + $0x12b0] ss:$8 sps:$4 sm:$0xff]  }
 0x252   :  { %v4661_v38 = vpop.f32.mrf.mxu0  ;;  %v4700_v39 = vpop.f32.mrf.mxu1  ;;  %4945 = vmatmul.mubr.bf16.vlgmr.msra.gmra.mxu1 %v9551_v4  ;;  %4955 = vmatprep.subr.bf16.mxu0 %v7573_v29  ;;  %v7582_v4 = vld [vmem:[%s10396_s24 + $0x1354] ss:$8 sps:$4 sm:$0xff]   ;;  %v7645_v28 = vld [vmem:[%s10396_s24 + $0x12a4] ss:$8 sps:$4 sm:$0xff]   ;;  %v7640_v29 = vld [vmem:[%s10396_s24 + $0x13b0] ss:$8 sps:$4 sm:$0xff]  }
 0x253   :  { %v4662_v40 = vadd.f32 %v4661_v38, %v9590_v21  ;;  %v9795_v34 = vadd.f32 %v4700_v39, %v4660_v36  ;;  %4995 = vmatpush1.bf16.msra.mxu1 %v7568_v48  ;;  %5026 = vmatprep.mubr.bf16.mxu1 %v923_v32  ;;  %v7577_v21 = vld [vmem:[%s10396_s24 + $0x1250] ss:$8 sps:$4 sm:$0xff]   ;;  %v7648_v48 = vld [vmem:[%s10396_s24 + $0x13a4] ss:$8 sps:$4 sm:$0xff]   ;;  %v7643_v32 = vld [vmem:[%s10396_s24 + $0x12a0] ss:$8 sps:$4 sm:$0xff]  }
 0x254   :  { %v4663_v41 = vpop.f32.mrf.mxu0  ;;  %v4702_v20 = vpop.f32.mrf.mxu1  ;;  %4996 = vmatprep.subr.bf16.mxu1 %v7576_v35  ;;  %v7651_v33 = vld [vmem:[%s10396_s24 + $0x1294] ss:$8 sps:$4 sm:$0xff]   ;;  %v7646_v35 = vld [vmem:[%s10396_s24 + $0x13a0] ss:$8 sps:$4 sm:$0xff]   ;;  %v7657_v38 = vld [vmem:[%s10396_s24 + $0x1284] ss:$8 sps:$4 sm:$0xff]  }
 0x255   :  { %v9803_v26 = vadd.f32 %v4702_v20, %v4662_v40  ;;  %4956 = vmatpush1.bf16.msra.mxu0 %v7571_v37  ;;  %v7654_v36 = vld [vmem:[%s10396_s24 + $0x1394] ss:$8 sps:$4 sm:$0xff]   ;;  %v7649_v37 = vld [vmem:[%s10396_s24 + $0x1290] ss:$8 sps:$4 sm:$0xff]   ;;  %v7655_v40 = vld [vmem:[%s10396_s24 + $0x1280] ss:$8 sps:$4 sm:$0xff]  }
 0x256   :  { %v4664_v45 = vpop.f32.mrf.mxu0  ;;  %4957 = vmatprep.subr.bf16.mxu0 %v7579_v24  ;;  %v4704_v47 = vpop.f32.mrf.mxu1  ;;  %v7652_v39 = vld [vmem:[%s10396_s24 + $0x1390] ss:$8 sps:$4 sm:$0xff]   ;;  %v7660_v24 = vld [vmem:[%s10396_s24 + $0x1384] ss:$8 sps:$4 sm:$0xff]   ;;  %v7658_v41 = vld [vmem:[%s10396_s24 + $0x1380] ss:$8 sps:$4 sm:$0xff]  }
 0x257   :  { %4997 = vmatpush1.bf16.msra.mxu1 %v7574_v43  ;;  %v7663_v43 = vld [vmem:[%s10396_s24 + $0x1434] ss:$8 sps:$4 sm:$0xff]   ;;  %v7661_v20 = vld [vmem:[%s10396_s24 + $0x1430] ss:$8 sps:$4 sm:$0xff]   ;;  %v7735_v45 = vmov 0.0  }
 0x258   :  { %4998 = vmatprep.subr.bf16.mxu1 %v7582_v4  ;;  %v4705_v42 = vpop.f32.mrf.mxu1  ;;  %v7667_v4 = vld [vmem:[%s10396_s24 + $0x1424] ss:$8 sps:$4 sm:$0xff]   ;;  %v7665_v47 = vld [vmem:[%s10396_s24 + $0x1420] ss:$8 sps:$4 sm:$0xff]  }
 0x259   :  { %4958 = vmatpush1.bf16.msra.mxu0 %v7577_v21 }
 0x25a   :  { %4959 = vmatprep.subr.bf16.mxu0 %v7585_v23 }
 0x25b   :  { %4999 = vmatpush1.bf16.msra.mxu1 %v7580_v50  ;;  %v7736_v50 = vmov 0  }
 0x25c   :  { %5000 = vmatprep.subr.bf16.mxu1 %v7588_v51 }
 0x25d   :  { %4960 = vmatpush1.bf16.msra.mxu0 %v7583_v52 }
 0x25e   :  { %4961 = vmatprep.subr.bf16.mxu0 %v7591_v53 }
 0x25f   :  { %5001 = vmatpush1.bf16.msra.mxu1 %v7586_v54 }
 0x260   :  { %5002 = vmatprep.subr.bf16.mxu1 %v7594_v55 }
 0x261   :  { %4962 = vmatpush1.bf16.msra.mxu0 %v7589_v56 }
 0x262   :  { %4963 = vmatprep.subr.bf16.mxu0 %v7597_v57 }
 0x263   :  { %5003 = vmatpush1.bf16.msra.mxu1 %v7592_v58  ;;  %v5113_v58 = vld [vmem:[%s10371_s9 + $0x8] sm:$0xff] }
 0x264   :  { %5004 = vmatprep.subr.bf16.mxu1 %v7600_v59  ;;  %v5112_v59 = vld [vmem:[%s10371_s9] sm:$0xff] }
 0x265   :  { %4964 = vmatpush1.bf16.msra.mxu0 %v7595_v60  ;;  %v5111_v60 = vld [vmem:[%s10370_s8 + $0xf8] sm:$0xff] }
 0x266   :  { %4965 = vmatprep.subr.bf16.mxu0 %v7603_v22 }
 0x267   :  { %5005 = vmatpush1.bf16.msra.mxu1 %v7598_v30  ;;  %v5078_v30 = vld [vmem:[%s10399_s2] sm:$0xf] }
 0x268   :  { %5006 = vmatprep.subr.bf16.mxu1 %v7606_v44  ;;  %v7671_v44 = vld [vmem:[%s10396_s24 + $0x1400] ss:$8 sps:$4 sm:$0xff]  }
 0x269   :  { %4966 = vmatpush1.bf16.msra.mxu0 %v7601_v63  ;;  %v5095_v63 = vld [vmem:[%s10370_s8 + $0x78] sm:$0xff] }
 0x26a   :  { %4967 = vmatprep.subr.bf16.mxu0 %v7609_v0  ;;  %v5110_v0 = vld [vmem:[%s10370_s8 + $0xf0] sm:$0xff] }
 0x26b   :  { %5007 = vmatpush1.bf16.msra.mxu1 %v7604_v31  ;;  %v5094_v31 = vld [vmem:[%s10370_s8 + $0x70] sm:$0xff] }
 0x26c   :  { %5008 = vmatprep.subr.bf16.mxu1 %v7612_v3  ;;  %v5109_v3 = vld [vmem:[%s10370_s8 + $0xe8] sm:$0xff] }
 0x26d   :  { %4968 = vmatpush1.bf16.msra.mxu0 %v7607_v5  ;;  %v5822_v5 = vld.sshfl [vmem:[%s10397_s28 + $0x50] sm:$0x3 pattern:$0x76325410] }
 0x26e   :  { %4969 = vmatprep.subr.bf16.mxu0 %v7615_v7  ;;  %v5093_v7 = vld [vmem:[%s10370_s8 + $0x68] sm:$0xff] }
 0x26f   :  { %5009 = vmatpush1.bf16.msra.mxu1 %v7610_v8  ;;  %v5307_v8 = vld [vmem:[%s10373_s11 + $0x8] sm:$0x1] }
 0x270   :  { %5010 = vmatprep.subr.bf16.mxu1 %v7618_v9  ;;  %v5108_v9 = vld [vmem:[%s10370_s8 + $0xe0] sm:$0xff] }
 0x271   :  { %4970 = vmatpush2.bf16.msra.mxu0 %v7613_v10  ;;  %v5306_v10 = vld [vmem:[%s10373_s11] sm:$0xff] }
 0x272   :  { %4971 = vmatprep.subr.bf16.mxu0 %v7621_v11  ;;  %v5092_v11 = vld [vmem:[%s10370_s8 + $0x60] sm:$0xff] }
 0x273   :  { %5011 = vmatpush2.bf16.msra.mxu1 %v7616_v12  ;;  %v5305_v12 = vld [vmem:[%s10400_s30] sm:$0xf] }
 0x274   :  { %5012 = vmatprep.subr.bf16.mxu1 %v7624_v13  ;;  %v5107_v13 = vld [vmem:[%s10370_s8 + $0xd8] sm:$0xff] }
 0x275   :  { %4972 = vmatpush2.bf16.msra.mxu0 %v7619_v14 }
 0x276   :  { %4973 = vmatprep.subr.bf16.mxu0 %v7627_v15  ;;  %v5091_v15 = vld [vmem:[%s10370_s8 + $0x58] sm:$0xff] }
 0x277   :  { %5013 = vmatpush2.bf16.msra.mxu1 %v7622_v16 }
 0x278   :  { %5014 = vmatprep.subr.bf16.mxu1 %v7630_v17  ;;  %v5106_v17 = vld [vmem:[%s10370_s8 + $0xd0] sm:$0xff] }
 0x279   :  { %4974 = vmatpush2.bf16.msra.mxu0 %v7625_v6 }
 0x27a   :  { %4975 = vmatprep.subr.bf16.mxu0 %v7633_v18 }
 0x27b   :  { %5015 = vmatpush2.bf16.msra.mxu1 %v7628_v61  ;;  %v5090_v61 = vld [vmem:[%s10370_s8 + $0x50] sm:$0xff] }
 0x27c   :  { %5016 = vmatprep.subr.bf16.mxu1 %v7636_v19 }
 0x27d   :  { %4976 = vmatpush2.bf16.msra.mxu0 %v7631_v62 }
 0x27e   :  { %4977 = vmatprep.subr.bf16.mxu0 %v7639_v1  ;;  %v5105_v1 = vld [vmem:[%s10370_s8 + $0xc8] sm:$0xff] }
 0x27f   :  { %5017 = vmatpush2.bf16.msra.mxu1 %v7634_v46 }
 0x280   :  { %5018 = vmatprep.subr.bf16.mxu1 %v7642_v25 }
 0x281   :  { %4978 = vmatpush2.bf16.msra.mxu0 %v7637_v27  ;;  %v5089_v27 = vld [vmem:[%s10370_s8 + $0x48] sm:$0xff] }
 0x282   :  { %4979 = vmatprep.subr.bf16.mxu0 %v7645_v28 }
 0x283   :  { %5019 = vmatpush2.bf16.msra.mxu1 %v7640_v29  ;;  %v5104_v29 = vld [vmem:[%s10370_s8 + $0xc0] sm:$0xff] }
 0x284   :  { %5020 = vmatprep.subr.bf16.mxu1 %v7648_v48 }
 0x285   :  { %4980 = vmatpush2.bf16.msra.mxu0 %v7643_v32 }
 0x286   :  { %4981 = vmatprep.subr.bf16.mxu0 %v7651_v33  ;;  %v5088_v33 = vld [vmem:[%s10370_s8 + $0x40] sm:$0xff] }
 0x287   :  { %5021 = vmatpush2.bf16.msra.mxu1 %v7646_v35  ;;  %v5103_v35 = vld [vmem:[%s10370_s8 + $0xb8] sm:$0xff] }
 0x288   :  { %5022 = vmatprep.subr.bf16.mxu1 %v7654_v36  ;;  %v5087_v36 = vld [vmem:[%s10370_s8 + $0x38] sm:$0xff] }
 0x289   :  { %4982 = vmatpush2.bf16.msra.mxu0 %v7649_v37  ;;  %v5102_v37 = vld [vmem:[%s10370_s8 + $0xb0] sm:$0xff] }
 0x28a   :  { %4983 = vmatprep.subr.bf16.mxu0 %v7657_v38 }
 0x28b   :  { %5023 = vmatpush2.bf16.msra.mxu1 %v7652_v39  ;;  %v5086_v39 = vld [vmem:[%s10370_s8 + $0x30] sm:$0xff] }
 0x28c   :  { %5024 = vmatprep.subr.bf16.mxu1 %v7660_v24  ;;  %v5401_v24 = vld [vmem:[%s10375_s13 + $0x38] sm:$0xff] }
 0x28d   :  { %4984 = vmatpush2.bf16.msra.mxu0 %v7655_v40  ;;  %v5101_v40 = vld [vmem:[%s10370_s8 + $0xa8] sm:$0xff] }
 0x28e   :  { %5043 = vmatprep.subr.bf16.mxu0 %v7663_v43  ;;  %v5085_v43 = vld [vmem:[%s10370_s8 + $0x28] sm:$0xff] }
 0x28f   :  { %5025 = vmatpush2.bf16.msra.mxu1 %v7658_v41  ;;  %v5100_v41 = vld [vmem:[%s10370_s8 + $0xa0] sm:$0xff] }
 0x290   :  { %v4741_v21 = vpop.f32.mrf.mxu0  ;;  %4986 = vmatmul.mubr.bf16.vlgmr.msra.gmra.mxu0 %v9755_v49  ;;  %6571 = vmatprep.subr.mxu1 %v7735_v45  ;;  %v7670_v49 = vld [vmem:[%s10396_s24 + $0x1414] ss:$8 sps:$4 sm:$0xff]  }
 0x291   :  { %v4742_v23 = vadd.f32 %v4741_v21, %v9795_v34  ;;  %5044 = vmatpush1.bf16.msra.mxu0 %v7661_v20  ;;  %5067 = vmatprep.mubr.bf16.mxu0 %v7736_v50  ;;  %v5084_v20 = vld [vmem:[%s10370_s8 + $0x20] sm:$0xff]  ;;  %v5400_v21 = vld [vmem:[%s10375_s13 + $0x30] sm:$0xff]  ;;  %v5399_v50 = vld [vmem:[%s10375_s13 + $0x28] sm:$0xff] }
 0x292   :  { %v4743_v51 = vpop.f32.mrf.mxu0  ;;  %v4782_v42 = vpop.f32.mrf.mxu1  ;;  %5027 = vmatmul.mubr.bf16.vlgmr.msra.gmra.mxu1 %v9764_v2  ;;  %5045 = vmatprep.subr.bf16.mxu0 %v7667_v4  ;;  %v7668_v2 = vld [vmem:[%s10396_s24 + $0x1410] ss:$8 sps:$4 sm:$0xff]  }
 0x293   :  { %v4744_v52 = vadd.f32 %v4743_v51, %v9803_v26  ;;  %v4783_v53 = vadd.f32 %v4782_v42, %v4742_v23  ;;  %6575 = vmatprep.mubr.msk.f32.mxu1 %vm7737_vm0, %v7735_v45  ;;  %v7673_v26 = vld [vmem:[%s10396_s24 + $0x1404] ss:$8 sps:$4 sm:$0xff]   ;;  %6572 = vmatpush3.msra.mxu1 %v5113_v58  ;;  %v5099_v4 = vld [vmem:[%s10370_s8 + $0x98] sm:$0xff]  ;;  %v5082_v51 = vld [vmem:[%s10370_s8 + $0x10] sm:$0xff]  ;;  %s10402_s24 = sld [smem:[#allocation12_spill]] }
 0x294   :  { %v4745_v34 = vpop.f32.mrf.mxu0  ;;  %v4784_v54 = vpop.f32.mrf.mxu1  ;;  %6573 = vmatprep.subr.mxu1 %v7735_v45  ;;  %v5083_v23 = vld [vmem:[%s10370_s8 + $0x18] sm:$0xff]  ;;  %v5097_v42 = vld [vmem:[%s10370_s8 + $0x88] sm:$0xff] }
 0x295   :  { %v9989_v55 = vadd.f32 %v4784_v54, %v4744_v52  ;;  %5046 = vmatpush1.bf16.msra.mxu0 %v7665_v47  ;;  %6574 = vmatpush3.msra.mxu1 %v5112_v59  ;;  %v5098_v47 = vld [vmem:[%s10370_s8 + $0x90] sm:$0xff]  ;;  %v5081_v52 = vld [vmem:[%s10370_s8 + $0x8] sm:$0xff]  ;;  %v5397_v34 = vld [vmem:[%s10375_s13 + $0x18] sm:$0xff] }
 0x296   :  { %v4746_v56 = vpop.f32.mrf.mxu0  ;;  %5047 = vmatprep.subr.bf16.mxu0 %v7670_v49  ;;  %v4786_v57 = vpop.f32.mrf.mxu1  ;;  %6487 = vmatprep.subr.mxu1 %v5111_v60  ;;  %v5398_v49 = vld [vmem:[%s10375_s13 + $0x20] sm:$0xff] }
 0x297   :  { %v5080_v54 = vld [vmem:[%s10370_s8] sm:$0xff] }
 0x298   :  { %v4787_v22 = vpop.f32.mrf.mxu1  ;;  %v5394_v56 = vld [vmem:[%s10375_s13] sm:$0xff] }
 0x299   :  { %5048 = vmatpush1.bf16.msra.mxu0 %v7668_v2  ;;  %v5395_v2 = vld [vmem:[%s10375_s13 + $0x8] sm:$0xff] }
 0x29a   :  { %5049 = vmatprep.subr.bf16.mxu0 %v7673_v26  ;;  %6576 = vmatmul.mubr.msk.f32.vlgmr.msra.gmra.mxu1 %vm5115_vm1, %v5078_v30  ;;  %v5079_v26 = vld [vmem:[%s10401_s0] sm:$0xf] }
 0x29b   :  { %6488 = vmatpush3.msra.mxu1 %v5095_v63  ;;  %5274 = vrot.lane.b32.xlu1 %v5079_v26, %s7738_s4 }
 0x29c   :  { %6489 = vmatprep.subr.mxu1 %v5110_v0 }
 0x29d   :  { %5050 = vmatpush1.bf16.msra.mxu0 %v7671_v44  ;;  %6490 = vmatpush3.msra.mxu1 %v5094_v31 }
 0x29e   :  { %6578 = vmatprep.subr.mxu0 %v7735_v45  ;;  %6491 = vmatprep.subr.mxu1 %v5109_v3 }
 0x29f   :  { %6492 = vmatpush3.msra.mxu1 %v5093_v7 }
 0x2a0   :  { %6471 = vmatmul.mubr.msk.bf16.vlgmr.msra.gmra.mxu0 %vm4211_vm2, %v5822_v5  ;;  %6493 = vmatprep.subr.mxu1 %v5108_v9 }
 0x2a1   :  { %6579 = vmatpush3.msk.msra.mxu0 %vm5319_vm3, %v5307_v8  ;;  %6582 = vmatprep.mubr.msk.f32.mxu0 %vm7737_vm0, %v7735_v45 }
 0x2a2   :  { %6580 = vmatprep.subr.mxu0 %v7735_v45  ;;  %6494 = vmatpush3.msra.mxu1 %v5092_v11 }
 0x2a3   :  { %6581 = vmatpush3.msra.mxu0 %v5306_v10  ;;  %6495 = vmatprep.subr.mxu1 %v5107_v13 }
 0x2a4   :  { %6585 = vmatprep.subr.mxu0 %v7735_v45  ;;  %6496 = vmatpush3.msra.mxu1 %v5091_v15 }
 0x2a5   :  { %6497 = vmatprep.subr.mxu1 %v5106_v17 }
 0x2a6   :  { %6498 = vmatpush3.msra.mxu1 %v5090_v61 }
 0x2a7   :  { %6499 = vmatprep.subr.mxu1 %v5105_v1 }
 0x2a8   :  { %6583 = vmatmul.mubr.msk.f32.vlgmr.msra.gmra.mxu0 %vm5315_vm4, %v5305_v12  ;;  %6500 = vmatpush3.msra.mxu1 %v5089_v27 }
 0x2a9   :  { %6601 = vmatprep.mubr.msk.f32.mxu0 %vm7737_vm0, %v7735_v45  ;;  %6501 = vmatprep.subr.mxu1 %v5104_v29 }
 0x2aa   :  { %6502 = vmatpush3.msra.mxu1 %v5088_v33  ;;  %6586 = vmatpush3.msra.mxu0 %v5401_v24  ;;  %v5495_v24 = vld [vmem:[%s10377_s15 + $0x60] sm:$0xff] }
 0x2ab   :  { %6503 = vmatprep.subr.mxu1 %v5103_v35  ;;  %6587 = vmatprep.subr.mxu0 %v7735_v45 }
 0x2ac   :  { %6504 = vmatpush3.msra.mxu1 %v5087_v36  ;;  %6588 = vmatpush3.msra.mxu0 %v5400_v21  ;;  %v5489_v21 = vld [vmem:[%s10377_s15 + $0x30] sm:$0xff] }
 0x2ad   :  { %6505 = vmatprep.subr.mxu1 %v5102_v37  ;;  %6589 = vmatprep.subr.mxu0 %v7735_v45  ;;  %v5498_v37 = vld [vmem:[%s10377_s15 + $0x78] sm:$0xff] }
 0x2ae   :  { %6506 = vmatpush3.msra.mxu1 %v5086_v39  ;;  %6590 = vmatpush3.msra.mxu0 %v5399_v50  ;;  %v5496_v39 = vld [vmem:[%s10377_s15 + $0x68] sm:$0xff]  ;;  %v5486_v50 = vld [vmem:[%s10377_s15 + $0x18] sm:$0xff] }
 0x2af   :  { %6507 = vmatprep.subr.mxu1 %v5101_v40  ;;  %6591 = vmatprep.subr.mxu0 %v7735_v45  ;;  %v5494_v40 = vld [vmem:[%s10377_s15 + $0x58] sm:$0xff] }
 0x2b0   :  { %6508 = vmatpush3.msra.mxu1 %v5085_v43  ;;  %6592 = vmatpush3.msra.mxu0 %v5398_v49  ;;  %v5493_v43 = vld [vmem:[%s10377_s15 + $0x50] sm:$0xff]  ;;  %v5483_v49 = vld [vmem:[%s10377_s15] sm:$0xff] }
 0x2b1   :  { %6509 = vmatprep.subr.mxu1 %v5100_v41  ;;  %6593 = vmatprep.subr.mxu0 %v7735_v45  ;;  %v5492_v41 = vld [vmem:[%s10377_s15 + $0x48] sm:$0xff] }
 0x2b2   :  { %6510 = vmatpush3.msra.mxu1 %v5084_v20  ;;  %6594 = vmatpush3.msra.mxu0 %v5397_v34  ;;  %v5491_v20 = vld [vmem:[%s10377_s15 + $0x40] sm:$0xff] }
 0x2b3   :  { %6511 = vmatprep.subr.mxu1 %v5099_v4  ;;  %6595 = vmatprep.subr.mxu0 %v7735_v45  ;;  %v5490_v4 = vld [vmem:[%s10377_s15 + $0x38] sm:$0xff] }
 0x2b4   :  { %6512 = vmatpush3.msra.mxu1 %v5083_v23  ;;  %v5488_v23 = vld [vmem:[%s10377_s15 + $0x28] sm:$0xff] }
 0x2b5   :  { %6513 = vmatprep.subr.mxu1 %v5098_v47  ;;  %v5487_v47 = vld [vmem:[%s10377_s15 + $0x20] sm:$0xff] }
 0x2b6   :  { %6514 = vmatpush3.msra.mxu1 %v5082_v51  ;;  %v5485_v51 = vld [vmem:[%s10377_s15 + $0x10] sm:$0xff] }
 0x2b7   :  { %6515 = vmatprep.subr.mxu1 %v5097_v42  ;;  %v5484_v42 = vld [vmem:[%s10377_s15 + $0x8] sm:$0xff] }
 0x2b8   :  { %6516 = vmatpush3.msra.mxu1 %v5081_v52 }
 0x2d0   :  { %v4823_v14 = vpop.f32.mrf.mxu0 }
 0x2d1   :  { %v4824_v16 = vadd.f32 %v4823_v14, %v4783_v53  ;;  %v5096_v53 = vld [vmem:[%s10370_s8 + $0x80] sm:$0xff] }
 0x2d2   :  { %v4825_v6 = vpop.f32.mrf.mxu0  ;;  %v4864_v18 = vpop.f32.mrf.mxu1  ;;  %6517 = vmatprep.subr.mxu1 %v5096_v53 }
 0x2d3   :  { %v4826_v19 = vadd.f32 %v4825_v6, %v9989_v55  ;;  %v10068_v62 = vadd.f32 %v4864_v18, %v4824_v16  ;;  %6518 = vmatpush3.msra.mxu1 %v5080_v54  ;;  %v5396_v55 = vld [vmem:[%s10375_s13 + $0x10] sm:$0xff]  ;;  %v6478_v54 = vld [vmem:[%s10376_s14] ss:$0 sm:$0xff] }
 0x2d4   :  { %v4827_v46 = vpop.f32.mrf.mxu0  ;;  %v4866_v25 = vpop.f32.mrf.mxu1  ;;  %6596 = vmatpush3.msra.mxu0 %v5396_v55  ;;  %6639 = vmatprep.subr.mxu1 %v7735_v45  ;;  %v6473_v55 = vld [vmem:[%s10372_s10] ss:$0 sm:$0xff] }
 0x2d5   :  { %v10076_v28 = vadd.f32 %v4866_v25, %v4826_v19  ;;  %6597 = vmatprep.subr.mxu0 %v7735_v45 }
 0x2d6   :  { %v4828_v48 = vpop.f32.mrf.mxu0  ;;  %v4868_v32 = vpop.f32.mrf.mxu1  ;;  %6598 = vmatpush3.msra.mxu0 %v5395_v2 }
 0x2d7   :  { %6599 = vmatprep.subr.mxu0 %v7735_v45  ;;  %v6475_v48 = vld [vmem:[%s10374_s12] ss:$0 sm:$0xff] }
 0x2d8   :  { %v4869_v38 = vpop.f32.mrf.mxu1  ;;  %6600 = vmatpush3.msra.mxu0 %v5394_v56 }
 0x2d9   :  { %6604 = vmatprep.subr.mxu0 %v7735_v45  ;;  %v5497_v38 = vld [vmem:[%s10377_s15 + $0x70] sm:$0xff] }
 0x310   :  { %v4905_v57 = vpop.f32.mrf.mxu0 }
 0x311   :  { %v4906_v58 = vadd.f32 %v4905_v57, %v10068_v62 }
 0x312   :  { %v4907_v59 = vpop.f32.mrf.mxu0  ;;  %v4946_v60 = vpop.f32.mrf.mxu1 }
 0x313   :  { %v4908_v22 = vadd.f32 %v4907_v59, %v10076_v28  ;;  %v4947_v30 = vadd.f32 %v4946_v60, %v4906_v58  ;;  %v5596_v60 = vld [vmem:[%s10380_s18 + $0x8] sm:$0xff] }
 0x314   :  { %v4909_v44 = vpop.f32.mrf.mxu0  ;;  %v4948_v63 = vpop.f32.mrf.mxu1 }
 0x315   :  { %v4949_v0 = vadd.f32 %v4948_v63, %v4908_v22  ;;  %v5595_v22 = vld [vmem:[%s10380_s18] sm:$0xff]  ;;  %v5594_v44 = vld [vmem:[%s10379_s17 + $0x78] sm:$0xff]  ;;  %v5593_v63 = vld [vmem:[%s10379_s17 + $0x70] sm:$0xff] }
 0x316   :  { %v4910_v31 = vpop.f32.mrf.mxu0  ;;  %v4950_v3 = vpop.f32.mrf.mxu1 }
 0x317   :  { %v5591_v31 = vld [vmem:[%s10379_s17 + $0x60] sm:$0xff]  ;;  %v5590_v3 = vld [vmem:[%s10379_s17 + $0x58] sm:$0xff] }
 0x318   :  { %v4951_v5 = vpop.f32.mrf.mxu1 }
 0x350   :  { %v4987_v7 = vpop.f32.mrf.mxu0 }
 0x351   :  { %v4988_v16 = vadd.f32 %v4987_v7, %v4947_v30  ;;  %v5577_v30 = vld [vmem:[%s10402_s24] sm:$0xf]  ;;  %v5589_v7 = vld [vmem:[%s10379_s17 + $0x50] sm:$0xff] }
 0x352   :  { %v4989_v8 = vpop.f32.mrf.mxu0  ;;  %v5028_v9 = vpop.f32.mrf.mxu1 }
 0x353   :  { %v4990_v17 = vadd.f32 %v4989_v8, %v4949_v0  ;;  %v5029_v18 = vadd.f32 %v5028_v9, %v4988_v16  ;;  %v5592_v0 = vld [vmem:[%s10379_s17 + $0x68] sm:$0xff]  ;;  %v5587_v9 = vld [vmem:[%s10379_s17 + $0x40] sm:$0xff] }
 0x354   :  { %v4991_v10 = vpop.f32.mrf.mxu0  ;;  %v5030_v11 = vpop.f32.mrf.mxu1  ;;  %v5588_v8 = vld [vmem:[%s10379_s17 + $0x48] sm:$0xff] }
 0x355   :  { %v5031_v19 = vadd.f32 %v5030_v11, %v4990_v17  ;;  %v5586_v10 = vld [vmem:[%s10379_s17 + $0x38] sm:$0xff]  ;;  %v5585_v11 = vld [vmem:[%s10379_s17 + $0x30] sm:$0xff]  ;;  %v5580_v16 = vld [vmem:[%s10379_s17 + $0x8] sm:$0xff] }
 0x356   :  { %v4992_v12 = vpop.f32.mrf.mxu0  ;;  %v5032_v13 = vpop.f32.mrf.mxu1  ;;  %v5579_v17 = vld [vmem:[%s10379_s17] sm:$0xff] }
 0x357   :  { %v5584_v12 = vld [vmem:[%s10379_s17 + $0x28] sm:$0xff]  ;;  %v5583_v13 = vld [vmem:[%s10379_s17 + $0x20] sm:$0xff] }
 0x358   :  { %v5033_v14 = vpop.f32.mrf.mxu1 }
 0x359   :  { %v5582_v14 = vld [vmem:[%s10379_s17 + $0x18] sm:$0xff] }
 0x35a   :  { %v10171_v15 = vpop.f32.mrf.mxu1 }
 0x35c   :  { %v6577_v6 = vpop.f32.mrf.mxu1 }
 0x35d   :  { %v5578_v6 = vld [vmem:[%s10403_s29] sm:$0xf] }
 0x35e   :  { %5756 = vrot.lane.b32.xlu1 %v5578_v6, %s7738_s4 }
 0x360   :  { %v5069_v61 = vpop.f32.mrf.mxu0 }
 0x361   :  { %v5070_v62 = vadd.f32 %v5069_v61, %v5029_v18  ;;  %v6480_v18 = vld [vmem:[%s10378_s16] ss:$0 sm:$0xff]  ;;  %s7740_s16 = smov 32  }
 0x362   :  { %v5071_v1 = vpop.f32.mrf.mxu0 }
 0x363   :  { %v5072_v46 = vadd.f32 %v5071_v1, %v5031_v19  ;;  %v5076_v28 = vmax.f32 %v5070_v62, 0.0 }
 0x364   :  { %v5073_v25 = vpop.f32.mrf.mxu0 }
 0x365   :  { %v5077_v27 = vmax.f32 %v5072_v46, 0.0 }
 0x366   :  { %v5074_v29 = vpop.f32.mrf.mxu0 }
 0x367   :  { %5253 = vmatprep.mubr.f32.mxu1 %v5077_v27 }
 0x368   :  { %5254 = vmatmul.mubr.f32.vlgmr.msra.gmra.mxu1 %v5076_v28  ;;  %v5389_v32 = vpop.f32.mrf.mxu0  ;;  %v6482_v28 = vld [vmem:[%s10381_s19] ss:$0 sm:$0xff]  ;;  %s7741_s19 = smov 112  }
 0x369   :  { %v5390_v33 = vadd.f32 %v6475_v48, %v5389_v32  ;;  %6643 = vmatprep.mubr.msk.f32.mxu1 %vm7737_vm0, %v7735_v45  ;;  %6640 = vmatpush3.msra.mxu1 %v5596_v60 }
 0x36a   :  { %v6584_v35 = vpop.f32.mrf.mxu0  ;;  %6641 = vmatprep.subr.mxu1 %v7735_v45 }
 0x36b   :  { %v5393_v36 = vmax.f32 %v5390_v33, 0.0  ;;  %6642 = vmatpush3.msra.mxu1 %v5595_v22 }
 0x36c   :  { %6644 = vmatmul.mubr.msk.f32.vlgmr.msra.gmra.mxu1 %vm5115_vm1, %v5577_v30  ;;  %6646 = vmatprep.subr.mxu1 %v7735_v45 }
 0x36d   :  { %6602 = vmatmul.mubr.msk.f32.vlgmr.msra.gmra.mxu0 %vm4211_vm2, %v5393_v36  ;;  %6647 = vmatpush3.msra.mxu1 %v5594_v44 }
 0x36e   :  { %6605 = vmatpush3.msra.mxu0 %v5498_v37  ;;  %6636 = vmatprep.mubr.msk.f32.mxu0 %vm7737_vm0, %v7735_v45 }
 0x36f   :  { %6606 = vmatprep.subr.mxu0 %v7735_v45  ;;  %6678 = vmatprep.mubr.msk.f32.mxu1 %vm7737_vm0, %v7735_v45 }
 0x370   :  { %6607 = vmatpush3.msra.mxu0 %v5497_v38  ;;  %6648 = vmatprep.subr.mxu1 %v7735_v45 }
 0x371   :  { %6608 = vmatprep.subr.mxu0 %v7735_v45  ;;  %6649 = vmatpush3.msra.mxu1 %v5593_v63 }
 0x372   :  { %6609 = vmatpush3.msra.mxu0 %v5496_v39  ;;  %6650 = vmatprep.subr.mxu1 %v7735_v45 }
 0x373   :  { %6610 = vmatprep.subr.mxu0 %v7735_v45  ;;  %6651 = vmatpush3.msra.mxu1 %v5592_v0 }
 0x374   :  { %6611 = vmatpush3.msra.mxu0 %v5495_v24  ;;  %6652 = vmatprep.subr.mxu1 %v7735_v45 }
 0x375   :  { %6612 = vmatprep.subr.mxu0 %v7735_v45  ;;  %6653 = vmatpush3.msra.mxu1 %v5591_v31 }
 0x376   :  { %6613 = vmatpush3.msra.mxu0 %v5494_v40  ;;  %6654 = vmatprep.subr.mxu1 %v7735_v45 }
 0x377   :  { %6614 = vmatprep.subr.mxu0 %v7735_v45  ;;  %6655 = vmatpush3.msra.mxu1 %v5590_v3 }
 0x378   :  { %6615 = vmatpush3.msra.mxu0 %v5493_v43  ;;  %6656 = vmatprep.subr.mxu1 %v7735_v45 }
 0x379   :  { %6616 = vmatprep.subr.mxu0 %v7735_v45  ;;  %6657 = vmatpush3.msra.mxu1 %v5589_v7 }
 0x37a   :  { %6617 = vmatpush3.msra.mxu0 %v5492_v41  ;;  %6658 = vmatprep.subr.mxu1 %v7735_v45 }
 0x37b   :  { %6618 = vmatprep.subr.mxu0 %v7735_v45  ;;  %6659 = vmatpush3.msra.mxu1 %v5588_v8 }
 0x37c   :  { %6619 = vmatpush3.msra.mxu0 %v5491_v20  ;;  %6660 = vmatprep.subr.mxu1 %v7735_v45  ;;  %v5275_v20 = vpop.permute.xlu1 %5274 }
 0x37d   :  { %6620 = vmatprep.subr.mxu0 %v7735_v45  ;;  %6661 = vmatpush3.msra.mxu1 %v5587_v9 }
 0x37e   :  { %6621 = vmatpush3.msra.mxu0 %v5490_v4  ;;  %6662 = vmatprep.subr.mxu1 %v7735_v45 }
 0x37f   :  { %6622 = vmatprep.subr.mxu0 %v7735_v45  ;;  %6663 = vmatpush3.msra.mxu1 %v5586_v10 }
 0x380   :  { %6623 = vmatpush3.msra.mxu0 %v5489_v21  ;;  %6664 = vmatprep.subr.mxu1 %v7735_v45 }
 0x381   :  { %6624 = vmatprep.subr.mxu0 %v7735_v45  ;;  %6665 = vmatpush3.msra.mxu1 %v5585_v11 }
 0x382   :  { %6625 = vmatpush3.msra.mxu0 %v5488_v23  ;;  %6666 = vmatprep.subr.mxu1 %v7735_v45 }
 0x383   :  { %6626 = vmatprep.subr.mxu0 %v7735_v45  ;;  %6667 = vmatpush3.msra.mxu1 %v5584_v12 }
 0x384   :  { %6627 = vmatpush3.msra.mxu0 %v5487_v47  ;;  %6668 = vmatprep.subr.mxu1 %v7735_v45 }
 0x385   :  { %6628 = vmatprep.subr.mxu0 %v7735_v45  ;;  %6669 = vmatpush3.msra.mxu1 %v5583_v13 }
 0x386   :  { %6629 = vmatpush3.msra.mxu0 %v5486_v50  ;;  %6670 = vmatprep.subr.mxu1 %v7735_v45 }
 0x387   :  { %6630 = vmatprep.subr.mxu0 %v7735_v45  ;;  %6671 = vmatpush3.msra.mxu1 %v5582_v14 }
 0x388   :  { %6631 = vmatpush3.msra.mxu0 %v5485_v51  ;;  %6672 = vmatprep.subr.mxu1 %v7735_v45 }
 0x389   :  { %6632 = vmatprep.subr.mxu0 %v7735_v45 }
 0x38a   :  { %6633 = vmatpush3.msra.mxu0 %v5484_v42 }
 0x38b   :  { %6634 = vmatprep.subr.mxu0 %v7735_v45 }
 0x38c   :  { %6635 = vmatpush3.msra.mxu0 %v5483_v49 }
 0x3d0   :  { %v5757_v42 = vpop.permute.xlu1 %5756 }
 0x428   :  { %v6519_v52 = vpop.f32.mrf.mxu1 }
 0x42a   :  { %v6520_v53 = vpop.f32.mrf.mxu1 }
 0x42b   :  { %v6521_v34 = vadd.f32 %v6520_v53, %v6519_v52 }
 0x42d   :  { %v5256_v2 = vadd.f32 %v6521_v34, %v10171_v15  ;;  %v5478_v56 = vpop.f32.mrf.mxu0  ;;  %v5581_v15 = vld [vmem:[%s10379_s17 + $0x10] sm:$0xff] }
 0x42e   :  { %v5479_v26 = vadd.f32 %v6478_v54, %v5478_v56  ;;  %6673 = vmatpush3.msra.mxu1 %v5581_v15 }
 0x42f   :  { %v10251_v57 = vadd.f32 %v6473_v55, %v5256_v2  ;;  %v6603_v58 = vpop.f32.mrf.mxu0  ;;  %6674 = vmatprep.subr.mxu1 %v7735_v45 }
 0x430   :  { %v5482_v59 = vmax.f32 %v5479_v26, 0.0  ;;  %6675 = vmatpush3.msra.mxu1 %v5580_v16 }
 0x431   :  { %7674 = vtanh.f32 %v10251_v57  ;;  %6676 = vmatprep.subr.mxu1 %v7735_v45  ;;  %v5667_v45 = vpop.f32.mrf.mxu1  ;;  %v6474_v25 = vmul.f32 -1.442695, %v10251_v57 }
 0x432   :  { %6637 = vmatmul.mubr.f32.vlgmr.msra.gmra.mxu0 %v5482_v59  ;;  %6677 = vmatpush3.msra.mxu1 %v5579_v17 }
 0x433   :  { %v6645_v46 = vpop.f32.mrf.mxu1  ;;  %7676 = vpow2.f32 %v6474_v25 }
 0x43e   :  { %v7675_v5 = vpop.eup %7674 }
 0x43f   :  { %5279 = vrot.lane.b32.xlu0 %v7675_v5, %s7739_s7 }
 0x440   :  { %v7677_v27 = vpop.eup %7676 }
 0x441   :  { %v5269_v33 = vadd.f32 1.0, %v7677_v27 }
 0x4b1   :  { %v5280_v37 = vpop.permute.xlu0 %5279 }
 0x4f2   :  { %v5572_v61 = vpop.f32.mrf.mxu0 }
 0x4f3   :  { %v5573_v19 = vadd.f32 %v6480_v18, %v5572_v61 }
 0x4f4   :  { %v6638_v62 = vpop.f32.mrf.mxu0 }
 0x4f5   :  { %v5576_v1 = vmax.f32 %v5573_v19, 0.0 }
 0x4f7   :  { %6679 = vmatmul.mubr.f32.vlgmr.msra.gmra.mxu1 %v5576_v1 }
 0x5b7   :  { %v5737_v29 = vpop.f32.mrf.mxu1 }
 0x5b8   :  { %v5738_v48 = vadd.f32 %v5737_v29, %v5667_v45 }
 0x5b9   :  { %v6680_v32 = vpop.f32.mrf.mxu1 }
 0x5ba   :  { %v5747_v35 = vadd.f32 %v6482_v28, %v5738_v48 }
 0x5bc   :  { %7678 = vtanh.f32 %v5747_v35  ;;  %v6483_v24 = vmul.f32 -1.442695, %v5747_v35 }
 0x5bd   :  { %7680 = vrcp.f32 %v5269_v33 }
 0x5be   :  { %7682 = vpow2.f32 %v6483_v24 }
 0x5c9   :  { %v7679_v36 = vpop.eup %7678 }
 0x5ca   :  { %5761 = vrot.lane.b32.xlu0 %v7679_v36, %s7739_s7  ;;  %v7681_v38 = vpop.eup %7680  ;;  %s7743_s7 = smov [#allocation2]  }
 0x5cb   :  { %v5282_v39 = vmul.f32 %v7681_v38, %v5280_v37  ;;  %v7683_v40 = vpop.eup %7682  ;;  %v5277_v23 = vmul.f32 %v7681_v38, %v5275_v20  ;;  %s5794_s13 = sshll.u32 %s7743_s7, 4  ;;  %s5795_s13 = int_to_ptr.vmem [resolvable:$true] %s5794_s13 }
 0x5cc   :  { %v5751_v43 = vadd.f32 1.0, %v7683_v40  ;;  %s7690_s14 = scalar_lea.vmem %s5795_s13, 64  ;;  %p7695_p1 = scmp.lt.s32.totalorder %s5795_s13, %s5795_s13 }
 0x5cd   :  { %p7691_p0 = scmp.ne.s32.totalorder %s5795_s13, %s7690_s14  ;;  %p7696_p2 = scmp.lt.s32.totalorder %s7690_s14, %s7690_s14 }
 0x5ce   :  { %5284 = vrot.lane.b32.xlu0 %v5282_v39, %s7738_s4  ;;  %7684 = vrcp.f32 %v5751_v43 }
 0x5cf   :  { %p7697_p3 = por %p7696_p2, %p7695_p1 }
 0x5d1   :  { %p7698_p4 = pnand %p7697_p3, %p7691_p0 }
 0x5db   :  { %v7685_v41 = vpop.eup %7684 }
 0x5dc   :  { %v5759_v49 = vmul.f32 %v7685_v41, %v5757_v42 }
 0x63c   :  { %v5762_v4 = vpop.permute.xlu0 %5761 }
 0x63d   :  { %v5764_v21 = vmul.f32 %v7685_v41, %v5762_v4 }
 0x63f   :  { %5766 = vrot.lane.b32.xlu1 %v5764_v21, %s7738_s4  ;;  %s7742_s4 = smov 80  }
 0x640   :  { %v5285_v47 = vpop.permute.xlu0 %5284 }
 0x641   :  { %v5287_v50 = vadd.f32 %v5285_v47, %v5277_v23 }
 0x643   :  { %7686 = vtanh.f32 %v5287_v50 }
 0x650   :  { %v7687_v51 = vpop.eup %7686 }
 0x651   :  { %5290 = vrot.lane.b32.xlu0 %v7687_v51, %s7740_s16 }
 0x655   :  { %5301 = vrot.lane.b32.xlu0 %v5287_v50, %s7741_s19 }
 0x6b1   :  { %v5767_v52 = vpop.permute.xlu1 %5766 }
 0x6b2   :  { %v5769_v53 = vadd.f32 %v5767_v52, %v5759_v49 }
 0x6b4   :  { %7688 = vtanh.f32 %v5769_v53 }
 0x6c1   :  { %v7689_v34 = vpop.eup %7688 }
 0x6c2   :  { %5772 = vrot.lane.b32.xlu1 %v7689_v34, %s7740_s16 }
 0x6c3   :  { %v5291_v54 = vpop.permute.xlu0 %5290 }
 0x6c4   :  { %v5293_v55 = vmul.f32 %v7681_v38, %v5291_v54 }
 0x6c6   :  { %5782 = vrot.lane.b32.xlu1 %v5769_v53, %s7741_s19  ;;  %5295 = vrot.lane.b32.xlu0 %v5293_v55, %s7742_s4 }
 0x6c7   :  { %v5302_v2 = vpop.permute.xlu0 %5301 }
 0x6c8   :  { %5304 = vst.msk [vmem:[#allocation2] sm:$0xf] %vm5298_vm5, %v5302_v2 }
 0x6c9   :  { %7701 = shalt.err (!%p7698_p4)
}
 0x6ca   :  { %5797 = dma.vmem_to_hbm [thread:$0]  %s5795_s13, 64, %s10383_s21, [#allocation3]  }
 0x6cb   :  { %s7744_s11 = smov [#allocation4]  }
 0x6cc   :  { %s5806_s24 = sshll.u32 %s7744_s11, 4  ;;  %s5807_s24 = int_to_ptr.vmem [resolvable:$true] %s5806_s24 }
 0x6cd   :  { %s7710_s12 = scalar_lea.vmem %s5807_s24, 64  ;;  %p7715_p6 = scmp.lt.s32.totalorder %s5807_s24, %s5807_s24 }
 0x6ce   :  { %p7711_p5 = scmp.ne.s32.totalorder %s5807_s24, %s7710_s12  ;;  %p7716_p7 = scmp.lt.s32.totalorder %s7710_s12, %s7710_s12 }
 0x6d0   :  { %p7717_p8 = por %p7716_p7, %p7715_p6 }
 0x6d2   :  { %p7718_p9 = pnand %p7717_p8, %p7711_p5 }
 0x734   :  { %v5773_v56 = vpop.permute.xlu1 %5772 }
 0x735   :  { %v5775_v26 = vmul.f32 %v7685_v41, %v5773_v56 }
 0x737   :  { %5777 = vrot.lane.b32.xlu1 %v5775_v26, %s7742_s4 }
 0x738   :  { %v5783_v57 = vpop.permute.xlu1 %5782  ;;  %v5296_v58 = vpop.permute.xlu0 %5295 }
 0x739   :  { %5785 = vst.msk [vmem:[#allocation4] sm:$0xf] %vm5298_vm5, %v5783_v57  ;;  %5299 = vst.msk [vmem:[%s10382_s20] sm:$0xf] %vm5298_vm5, %v5296_v58 }
 0x73a   :  { %7721 = shalt.err (!%p7718_p9)
}
 0x73b   :  { %5809 = dma.vmem_to_hbm [thread:$0]  %s5807_s24, 64, %s10385_s23, [#allocation5]  }
 0x7a9   :  { %v5778_v59 = vpop.permute.xlu1 %5777 }
 0x7aa   :  { %5780 = vst.msk [vmem:[%s10384_s22] sm:$0xf] %vm5298_vm5, %v5778_v59 }
 0x7ab   :  { %7730 = dma.done.wait [#allocation3], 64  }
 0x7ac   :  { %7731 = vsyncadd [#allocation3], 4294967232 }
 0x7ad   :  { %7732 = dma.done.wait [#allocation5], 64  }
 0x7ae   :  { %7733 = vsyncadd [#allocation5], 4294967232 }
 0x7af   :  { %5820 = vsyncpa [#allocation3], 1 }
 0x7b0   :  { %5821 = vsyncpa [#allocation5], 1 }

</bundles_post_ra>
